<compile_context>
chip_gen: v6e
topology: v6e:2x2x1
jax: 0.10.0
libtpu: 0.0.40
codegen_flags: <defaults>
</compile_context>

<pallas_src>
import jax
import jax.numpy as jnp
from jax import lax
from jax.experimental import pallas as pl
from jax.experimental.pallas import tpu as pltpu


# --------------------------------------------------------------------------- #
# Pallas kernels
# --------------------------------------------------------------------------- #

def _mm_bias_relu_kernel(x_ref, w_ref, b_ref, o_ref):
    """One M-tile of relu(x @ w + b).  x, w bf16; f32 accumulation on the MXU."""
    acc = jnp.dot(x_ref[...], w_ref[...], preferred_element_type=jnp.float32)
    o_ref[...] = jnp.maximum(acc + b_ref[...], 0.0).astype(o_ref.dtype)


def _round_up(x, m):
    return (x + m - 1) // m * m


def _pick_m_tiling(m):
    """Row tile: >= 2 'parallel' blocks (both v7x TCs busy), 16-aligned for
    bf16 sublane packing, capped so per-block VMEM stays small."""
    tm = min(512, max(16, _round_up((m + 1) // 2, 16)))
    return tm, _round_up(m, tm)


def conv_matmul(x, w, b):
    """relu(x @ w + b) for an im2col'd conv layer.

    x: (M, K) bf16 patches, w: (K, OC) bf16, b: (1, OC) f32.
    Returns (M, OC) bf16 -- true OC width, nothing to slice off in XLA.
    """
    m, k = x.shape
    oc = w.shape[1]
    tm, mp = _pick_m_tiling(m)
    if mp != m:
        x = jnp.pad(x, ((0, mp - m), (0, 0)))
    y = pl.pallas_call(
        _mm_bias_relu_kernel,
        out_shape=jax.ShapeDtypeStruct((mp, oc), jnp.bfloat16),
        grid=(mp // tm,),
        in_specs=[
            pl.BlockSpec((tm, k), lambda i: (i, 0)),   # patches: tiled over rows
            pl.BlockSpec((k, oc), lambda i: (0, 0)),   # weights: resident
            pl.BlockSpec((1, oc), lambda i: (0, 0)),   # bias: resident
        ],
        out_specs=pl.BlockSpec((tm, oc), lambda i: (i, 0)),
        compiler_params=pltpu.CompilerParams(
            dimension_semantics=("parallel",)),
    )(x, w, b)
    # Padded rows (if any) hold relu(bias), not zeros: drop them here.
    return y if mp == m else y[:m]


def _tail_kernel(p3_ref, w3_ref, b3_ref, w1_ref, b1_ref, w2_ref, b2_ref,
                 o_ref, h3_ref, flat_ref):
    """conv3 + flatten + fc1 + fc2 for the WHOLE batch in one grid step.

    p3_ref : (N*49, 576) bf16 conv3 patches.
    w3_ref : (576, 64) bf16, b3_ref: (1, 64) f32.
    w1_ref : (3136, 512) bf16 (rows ordered spatial-major, channel-minor).
    b1_ref : (1, 512) f32, w2_ref: (512, out_dim) bf16, b2_ref: (1, out_dim) f32.
    o_ref  : (N, out_dim) f32.
    h3_ref : (N*49, 64) f32 scratch, flat_ref: (N, 3136) f32 scratch.
    """
    bsz = flat_ref.shape[0]
    c3 = h3_ref.shape[1]
    n_sp = h3_ref.shape[0] // bsz

    # conv3: one batched (N*49, 576) @ (576, 64) MXU matmul (+bias, ReLU).
    h3 = jnp.dot(p3_ref[...], w3_ref[...], preferred_element_type=jnp.float32)
    h3_ref[...] = jnp.maximum(h3 + b3_ref[...], 0.0)

    # Flatten (N*49, 64) -> (N, 3136) with small VMEM copies (fc1 weights were
    # repacked to this spatial-major / channel-minor order at init time).
    for s in range(bsz):
        for p in range(n_sp):
            flat_ref[pl.ds(s, 1), pl.ds(p * c3, c3)] = (
                h3_ref[pl.ds(s * n_sp + p, 1), :])

    # fc1: a single K=3136 matmul for the whole batch (one bulk bf16 cast).
    h1 = jnp.dot(flat_ref[...].astype(jnp.bfloat16), w1_ref[...],
                 preferred_element_type=jnp.float32)
    h1 = jnp.maximum(h1 + b1_ref[...], 0.0).astype(jnp.bfloat16)

    # fc2 (no activation).
    o_ref[...] = jnp.dot(h1, w2_ref[...],
                         preferred_element_type=jnp.float32) + b2_ref[...]


def tail_fused(p3, w3, b3, w1, b1, w2, b2, batch):
    """conv3 + flatten + fc1 + fc2 in a single, batched pallas_call."""
    m = p3.shape[0]                 # batch * 49
    c3 = w3.shape[1]                # 64
    k_flat = w1.shape[0]            # 3136
    out_dim = w2.shape[1]
    res2 = lambda i: (0, 0)         # all operands are 2-D and fully resident
    # TODO(synk): at large training batches, split the conv3 / fc rows into two
    # "parallel" blocks so both v7x TensorCores share the tail as well.
    return pl.pallas_call(
        _tail_kernel,
        out_shape=jax.ShapeDtypeStruct((batch, out_dim), jnp.float32),
        grid=(1,),
        in_specs=[
            pl.BlockSpec(p3.shape, res2),
            pl.BlockSpec(w3.shape, res2), pl.BlockSpec(b3.shape, res2),
            pl.BlockSpec(w1.shape, res2), pl.BlockSpec(b1.shape, res2),
            pl.BlockSpec(w2.shape, res2), pl.BlockSpec(b2.shape, res2),
        ],
        out_specs=pl.BlockSpec((batch, out_dim), res2),
        scratch_shapes=[pltpu.VMEM((m, c3), jnp.float32),
                        pltpu.VMEM((batch, k_flat), jnp.float32)],
        compiler_params=pltpu.CompilerParams(
            dimension_semantics=("arbitrary",),
            # ~3.4 MB of resident bf16 weights (x2 buffering) + tiny scratches:
            # explicit budget, safely under every generation's physical VMEM.
            vmem_limit_bytes=32 * 1024 * 1024),
    )(p3, w3, b3, w1, b1, w2, b2)


# --------------------------------------------------------------------------- #
# im2col via wide, lane-aligned contiguous slabs (no strided narrow slices)
# --------------------------------------------------------------------------- #

def _im2col(x, k, stride):
    """x: (N, H, W, C) NHWC -> (N, OH, OW, K*K*C); columns ordered (dy, dx, c).

    For strided convs, W and C are first grouped into lane blocks of width
    stride*C, so every slab is a contiguous slice of lane width stride*C
    (16 slabs of width 16 for conv1, 8 slabs of width 64 for conv2) instead of
    K*K strided slices of width C.
    """
    n, h, w, c = x.shape
    oh = (h - k) // stride + 1
    ow = (w - k) // stride + 1
    if stride == 1:
        slabs = [x[:, dy:dy + oh, dx:dx + ow, :]
                 for dy in range(k) for dx in range(k)]
        return jnp.concatenate(slabs, axis=-1), oh, ow
    assert h % stride == 0 and w % stride == 0 and k % stride == 0
    xg = x.reshape(n, h // stride, stride, w // stride, stride * c)
    nblk = k // stride
    slabs = [xg[:, bh:bh + oh, ih, bw:bw + ow, :]
             for bh in range(nblk) for ih in range(stride) for bw in range(nblk)]
    # concat order (bh, ih, bw) with in-slab lane order (iw, c) == (dy, dx, c)
    return jnp.concatenate(slabs, axis=-1), oh, ow


# --------------------------------------------------------------------------- #
# parameters (PyTorch-layout init + one-time repack for the kernels)
# --------------------------------------------------------------------------- #

def _uniform(key, shape, fan_in):
    bound = 1.0 / jnp.sqrt(jnp.float32(fan_in))
    return jax.random.uniform(key, shape, jnp.float32, -bound, bound)


def init_net_params(key, output_dim):
    ks = jax.random.split(key, 10)
    return {
        "c1_w": _uniform(ks[0], (32, 4, 8, 8), 4 * 8 * 8),
        "c1_b": _uniform(ks[1], (32,), 4 * 8 * 8),
        "c2_w": _uniform(ks[2], (64, 32, 4, 4), 32 * 4 * 4),
        "c2_b": _uniform(ks[3], (64,), 32 * 4 * 4),
        "c3_w": _uniform(ks[4], (64, 64, 3, 3), 64 * 3 * 3),
        "c3_b": _uniform(ks[5], (64,), 64 * 3 * 3),
        "fc1_w": _uniform(ks[6], (512, 3136), 3136),
        "fc1_b": _uniform(ks[7], (512,), 3136),
        "fc2_w": _uniform(ks[8], (output_dim, 512), 512),
        "fc2_b": _uniform(ks[9], (output_dim,), 512),
    }


def init_ddqn_params(key, output_dim):
    online = init_net_params(key, output_dim)
    target = {k: v for k, v in online.items()}   # copy.deepcopy equivalent
    return {"online": online, "target": target}


def prepare_net_params(p):
    """One-time repack of PyTorch-layout params into kernel-ready tensors."""
    def conv_w(w):
        oc, ic, kh, kw = w.shape
        # rows ordered (dy, dx, c) to match the im2col column order
        return (jnp.transpose(w, (2, 3, 1, 0))
                .reshape(kh * kw * ic, oc).astype(jnp.bfloat16))

    def bias(b):
        return b.reshape(1, -1).astype(jnp.float32)

    hidden, flat = p["fc1_w"].shape           # (512, 3136)
    c3_oc = p["c3_w"].shape[0]                # 64
    spatial = flat // c3_oc                   # 49
    # PyTorch flatten order is (channel, spatial) from NCHW; our conv3 rows are
    # (spatial, channel) -> permute fc1 columns ONCE and flatten to 2-D so fc1
    # is a single (N, 3136) @ (3136, 512) matmul in the kernel.
    fc1_wm = (jnp.transpose(p["fc1_w"].reshape(hidden, c3_oc, spatial), (2, 1, 0))
              .reshape(flat, hidden).astype(jnp.bfloat16))        # (3136, 512)
    return {
        "c1_wm": conv_w(p["c1_w"]), "c1_b": bias(p["c1_b"]),
        "c2_wm": conv_w(p["c2_w"]), "c2_b": bias(p["c2_b"]),
        "c3_wm": conv_w(p["c3_w"]), "c3_b": bias(p["c3_b"]),
        "fc1_wm": fc1_wm,           "fc1_b": bias(p["fc1_b"]),
        "fc2_wm": p["fc2_w"].T.astype(jnp.bfloat16),              # (512, out)
        "fc2_b": bias(p["fc2_b"]),
    }


# --------------------------------------------------------------------------- #
# forward
# --------------------------------------------------------------------------- #

def net_forward_pallas(pp, x):
    """Forward of one DQN head.  x: (N, 4, 84, 84) f32 NCHW (PyTorch layout)."""
    n = x.shape[0]
    xh = jnp.transpose(x, (0, 2, 3, 1)).astype(jnp.bfloat16)      # NHWC, once

    # conv1: 8x8 stride 4, 4 -> 32 channels.
    p1, oh, ow = _im2col(xh, 8, 4)                                # (N,20,20,256)
    a = conv_matmul(p1.reshape(n * oh * ow, -1), pp["c1_wm"], pp["c1_b"])
    a = a.reshape(n, oh, ow, -1)                                  # (N,20,20,32)

    # conv2: 4x4 stride 2, 32 -> 64 channels.
    p2, oh, ow = _im2col(a, 4, 2)                                 # (N,9,9,512)
    a = conv_matmul(p2.reshape(n * oh * ow, -1), pp["c2_wm"], pp["c2_b"])
    a = a.reshape(n, oh, ow, -1)                                  # (N,9,9,64)

    # conv3 (3x3 stride 1) + flatten + fc1 + fc2: one fused, batched kernel.
    p3, oh, ow = _im2col(a, 3, 1)                                 # (N,7,7,576)
    p3 = p3.reshape(n * oh * ow, -1)                              # (N*49,576)
    return tail_fused(p3, pp["c3_wm"], pp["c3_b"], pp["fc1_wm"], pp["fc1_b"],
                      pp["fc2_wm"], pp["fc2_b"], n)


@jax.jit
def _net_forward_pallas_jit(pp, x):
    return net_forward_pallas(pp, x)


def ddqn_forward(params, x, model):
    """Equivalent of DDQNSolvere.forward(input, model)."""
    key = "online" if model == "online" else "target"
    return _net_forward_pallas_jit(params[key], x)


def net_forward_reference(p, x):
    """Independent pure-JAX f32 reference (lax.conv, NCHW, PyTorch layouts)."""
    h = x
    for name, stride in (("c1", 4), ("c2", 2), ("c3", 1)):
        h = lax.conv_general_dilated(
            h, p[f"{name}_w"], (stride, stride), "VALID",
            dimension_numbers=("NCHW", "OIHW", "NCHW"))
        h = jnp.maximum(h + p[f"{name}_b"][None, :, None, None], 0.0)
    h = h.reshape(h.shape[0], -1)                        # nn.Flatten (NCHW order)
    h = jnp.maximum(h @ p["fc1_w"].T + p["fc1_b"], 0.0)
    return h @ p["fc2_w"].T + p["fc2_b"]


# --------------------------------------------------------------------------- #
# main
# --------------------------------------------------------------------------- #

if __name__ == "__main__":
    output_dim = 6
    key = jax.random.PRNGKey(0)
    kp, kx = jax.random.split(key)

    raw = init_ddqn_params(kp, output_dim)
    params = {m: prepare_net_params(raw[m]) for m in ("online", "target")}

    # Linear(3136, 512) pins the spatial input to 84x84 (64 * 7 * 7 = 3136).
    x = jax.random.normal(kx, (2, 4, 84, 84), jnp.float32)

    q_online = jax.block_until_ready(ddqn_forward(params, x, "online"))
    q_target = jax.block_until_ready(ddqn_forward(params, x, "target"))
    assert q_online.shape == (2, output_dim) and q_target.shape == (2, output_dim)

    # Correctness vs. an independent pure-JAX f32 reference.  Tolerance is the
    # deliberate bf16-operand budget (f32 accumulation throughout).
    ref = net_forward_reference(raw["online"], x)
    err = jnp.max(jnp.abs(q_online - ref))
    assert jnp.allclose(q_online, ref, rtol=2e-2, atol=2e-2), f"max abs err {err}"
    assert jnp.allclose(q_target, ref, rtol=2e-2, atol=2e-2)

    print("KERNEL_OK")
</pallas_src>

<mosaic_0001>
module attributes {stable_mosaic.version = 11 : i64} {
  func.func @_mm_bias_relu_kernel(%arg0: i32, %arg1: memref<400x256xbf16, #tpu.memory_space<vmem>>, %arg2: memref<256x32xbf16, #tpu.memory_space<vmem>>, %arg3: memref<1x32xf32, #tpu.memory_space<vmem>>, %arg4: memref<400x32xbf16, #tpu.memory_space<vmem>>) attributes {dimension_semantics = [#tpu.dimension_semantics<parallel>], iteration_bounds = array<i64: 2>, scalar_prefetch = 0 : i64, scratch_operands = 0 : i64, tpu.core_type = #tpu.core_type<tc>, window_params = [{transform_indices = @transform_0, window_bounds = array<i64: 400, 256>}, {pipeline_mode = #tpu.pipeline_mode<synchronous>, transform_indices = @transform_1, window_bounds = array<i64: 256, 32>}, {pipeline_mode = #tpu.pipeline_mode<synchronous>, transform_indices = @transform_2, window_bounds = array<i64: 1, 32>}, {transform_indices = @transform_3, window_bounds = array<i64: 400, 32>}]} {
    %c0 = arith.constant 0 : index
    %c0_0 = arith.constant 0 : index
    %0 = vector.load %arg1[%c0, %c0_0] : memref<400x256xbf16, #tpu.memory_space<vmem>>, vector<400x256xbf16>
    %c0_1 = arith.constant 0 : index
    %c0_2 = arith.constant 0 : index
    %1 = vector.load %arg2[%c0_1, %c0_2] : memref<256x32xbf16, #tpu.memory_space<vmem>>, vector<256x32xbf16>
    %cst = arith.constant dense<0.000000e+00> : vector<400x32xf32>
    %2 = tpu.matmul %0, %1, %cst {dimension_numbers = #tpu.dot_dimension_numbers<[1], [0], [0], [1], [0, 0, 1, 1], [], []>} : vector<400x256xbf16>, vector<256x32xbf16>, vector<400x32xf32> -> vector<400x32xf32>
    %c0_3 = arith.constant 0 : index
    %c0_4 = arith.constant 0 : index
    %3 = vector.load %arg3[%c0_3, %c0_4] : memref<1x32xf32, #tpu.memory_space<vmem>>, vector<1x32xf32>
    %4 = vector.broadcast %3 : vector<1x32xf32> to vector<400x32xf32>
    %5 = arith.addf %2, %4 : vector<400x32xf32>
    %cst_5 = arith.constant 0.000000e+00 : f32
    %6 = vector.broadcast %cst_5 : f32 to vector<400x32xf32>
    %7 = arith.maximumf %5, %6 : vector<400x32xf32>
    %8 = arith.truncf %7 : vector<400x32xf32> to vector<400x32xbf16>
    %c0_6 = arith.constant 0 : index
    %c0_7 = arith.constant 0 : index
    %9 = vector.load %arg4[%c0_6, %c0_7] : memref<400x32xbf16, #tpu.memory_space<vmem>>, vector<400x32xbf16>
    tpu.vector_store %arg4[%c0_6, %c0_7], %8 {strides = array<i32>} : memref<400x32xbf16, #tpu.memory_space<vmem>>, vector<400x32xbf16>,
    return
  }
  func.func @transform_0(%arg0: i32) -> (i32, i32) {
    %c0_i32 = arith.constant 0 : i32
    %c0_i32_0 = arith.constant 0 : i32
    return %arg0, %c0_i32 : i32, i32
  }
  func.func @transform_1(%arg0: i32) -> (i32, i32) {
    %c0_i32 = arith.constant 0 : i32
    %c0_i32_0 = arith.constant 0 : i32
    %c0_i32_1 = arith.constant 0 : i32
    return %c0_i32, %c0_i32_0 : i32, i32
  }
  func.func @transform_2(%arg0: i32) -> (i32, i32) {
    %c0_i32 = arith.constant 0 : i32
    %c0_i32_0 = arith.constant 0 : i32
    %c0_i32_1 = arith.constant 0 : i32
    return %c0_i32, %c0_i32_0 : i32, i32
  }
  func.func @transform_3(%arg0: i32) -> (i32, i32) {
    %c0_i32 = arith.constant 0 : i32
    %c0_i32_0 = arith.constant 0 : i32
    return %arg0, %c0_i32 : i32, i32
  }
}

module attributes {stable_mosaic.version = 11 : i64} {
  func.func @_mm_bias_relu_kernel(%arg0: i32, %arg1: memref<96x512xbf16, #tpu.memory_space<vmem>>, %arg2: memref<512x64xbf16, #tpu.memory_space<vmem>>, %arg3: memref<1x64xf32, #tpu.memory_space<vmem>>, %arg4: memref<96x64xbf16, #tpu.memory_space<vmem>>) attributes {dimension_semantics = [#tpu.dimension_semantics<parallel>], iteration_bounds = array<i64: 2>, scalar_prefetch = 0 : i64, scratch_operands = 0 : i64, tpu.core_type = #tpu.core_type<tc>, window_params = [{transform_indices = @transform_0, window_bounds = array<i64: 96, 512>}, {pipeline_mode = #tpu.pipeline_mode<synchronous>, transform_indices = @transform_1, window_bounds = array<i64: 512, 64>}, {pipeline_mode = #tpu.pipeline_mode<synchronous>, transform_indices = @transform_2, window_bounds = array<i64: 1, 64>}, {transform_indices = @transform_3, window_bounds = array<i64: 96, 64>}]} {
    %c0 = arith.constant 0 : index
    %c0_0 = arith.constant 0 : index
    %0 = vector.load %arg1[%c0, %c0_0] : memref<96x512xbf16, #tpu.memory_space<vmem>>, vector<96x512xbf16>
    %c0_1 = arith.constant 0 : index
    %c0_2 = arith.constant 0 : index
    %1 = vector.load %arg2[%c0_1, %c0_2] : memref<512x64xbf16, #tpu.memory_space<vmem>>, vector<512x64xbf16>
    %cst = arith.constant dense<0.000000e+00> : vector<96x64xf32>
    %2 = tpu.matmul %0, %1, %cst {dimension_numbers = #tpu.dot_dimension_numbers<[1], [0], [0], [1], [0, 0, 1, 1], [], []>} : vector<96x512xbf16>, vector<512x64xbf16>, vector<96x64xf32> -> vector<96x64xf32>
    %c0_3 = arith.constant 0 : index
    %c0_4 = arith.constant 0 : index
    %3 = vector.load %arg3[%c0_3, %c0_4] : memref<1x64xf32, #tpu.memory_space<vmem>>, vector<1x64xf32>
    %4 = vector.broadcast %3 : vector<1x64xf32> to vector<96x64xf32>
    %5 = arith.addf %2, %4 : vector<96x64xf32>
    %cst_5 = arith.constant 0.000000e+00 : f32
    %6 = vector.broadcast %cst_5 : f32 to vector<96x64xf32>
    %7 = arith.maximumf %5, %6 : vector<96x64xf32>
    %8 = arith.truncf %7 : vector<96x64xf32> to vector<96x64xbf16>
    %c0_6 = arith.constant 0 : index
    %c0_7 = arith.constant 0 : index
    %9 = vector.load %arg4[%c0_6, %c0_7] : memref<96x64xbf16, #tpu.memory_space<vmem>>, vector<96x64xbf16>
    tpu.vector_store %arg4[%c0_6, %c0_7], %8 {strides = array<i32>} : memref<96x64xbf16, #tpu.memory_space<vmem>>, vector<96x64xbf16>,
    return
  }
  func.func @transform_0(%arg0: i32) -> (i32, i32) {
    %c0_i32 = arith.constant 0 : i32
    %c0_i32_0 = arith.constant 0 : i32
    return %arg0, %c0_i32 : i32, i32
  }
  func.func @transform_1(%arg0: i32) -> (i32, i32) {
    %c0_i32 = arith.constant 0 : i32
    %c0_i32_0 = arith.constant 0 : i32
    %c0_i32_1 = arith.constant 0 : i32
    return %c0_i32, %c0_i32_0 : i32, i32
  }
  func.func @transform_2(%arg0: i32) -> (i32, i32) {
    %c0_i32 = arith.constant 0 : i32
    %c0_i32_0 = arith.constant 0 : i32
    %c0_i32_1 = arith.constant 0 : i32
    return %c0_i32, %c0_i32_0 : i32, i32
  }
  func.func @transform_3(%arg0: i32) -> (i32, i32) {
    %c0_i32 = arith.constant 0 : i32
    %c0_i32_0 = arith.constant 0 : i32
    return %arg0, %c0_i32 : i32, i32
  }
}

module attributes {stable_mosaic.version = 11 : i64} {
  func.func @_tail_kernel(%arg0: i32, %arg1: memref<98x576xbf16, #tpu.memory_space<vmem>>, %arg2: memref<576x64xbf16, #tpu.memory_space<vmem>>, %arg3: memref<1x64xf32, #tpu.memory_space<vmem>>, %arg4: memref<3136x512xbf16, #tpu.memory_space<vmem>>, %arg5: memref<1x512xf32, #tpu.memory_space<vmem>>, %arg6: memref<512x6xbf16, #tpu.memory_space<vmem>>, %arg7: memref<1x6xf32, #tpu.memory_space<vmem>>, %arg8: memref<2x6xf32, #tpu.memory_space<vmem>>, %arg9: memref<98x64xf32, #tpu.memory_space<vmem>>, %arg10: memref<2x3136xf32, #tpu.memory_space<vmem>>) attributes {dimension_semantics = [#tpu.dimension_semantics<arbitrary>], iteration_bounds = array<i64: 1>, scalar_prefetch = 0 : i64, scratch_operands = 2 : i64, tpu.core_type = #tpu.core_type<tc>, window_params = [{pipeline_mode = #tpu.pipeline_mode<synchronous>, transform_indices = @transform_0, window_bounds = array<i64: 98, 576>}, {pipeline_mode = #tpu.pipeline_mode<synchronous>, transform_indices = @transform_1, window_bounds = array<i64: 576, 64>}, {pipeline_mode = #tpu.pipeline_mode<synchronous>, transform_indices = @transform_2, window_bounds = array<i64: 1, 64>}, {pipeline_mode = #tpu.pipeline_mode<synchronous>, transform_indices = @transform_3, window_bounds = array<i64: 3136, 512>}, {pipeline_mode = #tpu.pipeline_mode<synchronous>, transform_indices = @transform_4, window_bounds = array<i64: 1, 512>}, {pipeline_mode = #tpu.pipeline_mode<synchronous>, transform_indices = @transform_5, window_bounds = array<i64: 512, 6>}, {pipeline_mode = #tpu.pipeline_mode<synchronous>, transform_indices = @transform_6, window_bounds = array<i64: 1, 6>}, {pipeline_mode = #tpu.pipeline_mode<synchronous>, transform_indices = @transform_7, window_bounds = array<i64: 2, 6>}]} {
    %c0 = arith.constant 0 : index
    %c0_0 = arith.constant 0 : index
    %0 = vector.load %arg1[%c0, %c0_0] : memref<98x576xbf16, #tpu.memory_space<vmem>>, vector<98x576xbf16>
    %c0_1 = arith.constant 0 : index
    %c0_2 = arith.constant 0 : index
    %1 = vector.load %arg2[%c0_1, %c0_2] : memref<576x64xbf16, #tpu.memory_space<vmem>>, vector<576x64xbf16>
    %cst = arith.constant dense<0.000000e+00> : vector<98x64xf32>
    %2 = tpu.matmul %0, %1, %cst {dimension_numbers = #tpu.dot_dimension_numbers<[1], [0], [0], [1], [0, 0, 1, 1], [], []>} : vector<98x576xbf16>, vector<576x64xbf16>, vector<98x64xf32> -> vector<98x64xf32>
    %c0_3 = arith.constant 0 : index
    %c0_4 = arith.constant 0 : index
    %3 = vector.load %arg3[%c0_3, %c0_4] : memref<1x64xf32, #tpu.memory_space<vmem>>, vector<1x64xf32>
    %4 = vector.broadcast %3 : vector<1x64xf32> to vector<98x64xf32>
    %5 = arith.addf %2, %4 : vector<98x64xf32>
    %cst_5 = arith.constant 0.000000e+00 : f32
    %6 = vector.broadcast %cst_5 : f32 to vector<98x64xf32>
    %7 = arith.maximumf %5, %6 : vector<98x64xf32>
    %c0_6 = arith.constant 0 : index
    %c0_7 = arith.constant 0 : index
    %8 = vector.load %arg9[%c0_6, %c0_7] : memref<98x64xf32, #tpu.memory_space<vmem>>, vector<98x64xf32>
    tpu.vector_store %arg9[%c0_6, %c0_7], %7 {strides = array<i32>} : memref<98x64xf32, #tpu.memory_space<vmem>>, vector<98x64xf32>,
    %c0_8 = arith.constant 0 : index
    %c0_9 = arith.constant 0 : index
    %9 = vector.load %arg9[%c0_8, %c0_9] : memref<98x64xf32, #tpu.memory_space<vmem>>, vector<1x64xf32>
    %c0_10 = arith.constant 0 : index
    %c0_11 = arith.constant 0 : index
    %10 = vector.load %arg10[%c0_10, %c0_11] : memref<2x3136xf32, #tpu.memory_space<vmem>>, vector<1x64xf32>
    tpu.vector_store %arg10[%c0_10, %c0_11], %9 {strides = array<i32>} : memref<2x3136xf32, #tpu.memory_space<vmem>>, vector<1x64xf32>,
    %c1 = arith.constant 1 : index
    %c0_12 = arith.constant 0 : index
    %11 = vector.load %arg9[%c1, %c0_12] : memref<98x64xf32, #tpu.memory_space<vmem>>, vector<1x64xf32>
    %c0_13 = arith.constant 0 : index
    %c64 = arith.constant 64 : index
    %12 = vector.load %arg10[%c0_13, %c64] : memref<2x3136xf32, #tpu.memory_space<vmem>>, vector<1x64xf32>
    tpu.vector_store %arg10[%c0_13, %c64], %11 {strides = array<i32>} : memref<2x3136xf32, #tpu.memory_space<vmem>>, vector<1x64xf32>,
    %c2 = arith.constant 2 : index
    %c0_14 = arith.constant 0 : index
    %13 = vector.load %arg9[%c2, %c0_14] : memref<98x64xf32, #tpu.memory_space<vmem>>, vector<1x64xf32>
    %c0_15 = arith.constant 0 : index
    %c128 = arith.constant 128 : index
    %14 = vector.load %arg10[%c0_15, %c128] : memref<2x3136xf32, #tpu.memory_space<vmem>>, vector<1x64xf32>
    tpu.vector_store %arg10[%c0_15, %c128], %13 {strides = array<i32>} : memref<2x3136xf32, #tpu.memory_space<vmem>>, vector<1x64xf32>,
    %c3 = arith.constant 3 : index
    %c0_16 = arith.constant 0 : index
    %15 = vector.load %arg9[%c3, %c0_16] : memref<98x64xf32, #tpu.memory_space<vmem>>, vector<1x64xf32>
    %c0_17 = arith.constant 0 : index
    %c192 = arith.constant 192 : index
    %16 = vector.load %arg10[%c0_17, %c192] : memref<2x3136xf32, #tpu.memory_space<vmem>>, vector<1x64xf32>
    tpu.vector_store %arg10[%c0_17, %c192], %15 {strides = array<i32>} : memref<2x3136xf32, #tpu.memory_space<vmem>>, vector<1x64xf32>,
    %c4 = arith.constant 4 : index
    %c0_18 = arith.constant 0 : index
    %17 = vector.load %arg9[%c4, %c0_18] : memref<98x64xf32, #tpu.memory_space<vmem>>, vector<1x64xf32>
    %c0_19 = arith.constant 0 : index
    %c256 = arith.constant 256 : index
    %18 = vector.load %arg10[%c0_19, %c256] : memref<2x3136xf32, #tpu.memory_space<vmem>>, vector<1x64xf32>
    tpu.vector_store %arg10[%c0_19, %c256], %17 {strides = array<i32>} : memref<2x3136xf32, #tpu.memory_space<vmem>>, vector<1x64xf32>,
    %c5 = arith.constant 5 : index
    %c0_20 = arith.constant 0 : index
    %19 = vector.load %arg9[%c5, %c0_20] : memref<98x64xf32, #tpu.memory_space<vmem>>, vector<1x64xf32>
    %c0_21 = arith.constant 0 : index
    %c320 = arith.constant 320 : index
    %20 = vector.load %arg10[%c0_21, %c320] : memref<2x3136xf32, #tpu.memory_space<vmem>>, vector<1x64xf32>
    tpu.vector_store %arg10[%c0_21, %c320], %19 {strides = array<i32>} : memref<2x3136xf32, #tpu.memory_space<vmem>>, vector<1x64xf32>,
    %c6 = arith.constant 6 : index
    %c0_22 = arith.constant 0 : index
    %21 = vector.load %arg9[%c6, %c0_22] : memref<98x64xf32, #tpu.memory_space<vmem>>, vector<1x64xf32>
    %c0_23 = arith.constant 0 : index
    %c384 = arith.constant 384 : index
    %22 = vector.load %arg10[%c0_23, %c384] : memref<2x3136xf32, #tpu.memory_space<vmem>>, vector<1x64xf32>
    tpu.vector_store %arg10[%c0_23, %c384], %21 {strides = array<i32>} : memref<2x3136xf32, #tpu.memory_space<vmem>>, vector<1x64xf32>,
    %c7 = arith.constant 7 : index
    %c0_24 = arith.constant 0 : index
    %23 = vector.load %arg9[%c7, %c0_24] : memref<98x64xf32, #tpu.memory_space<vmem>>, vector<1x64xf32>
    %c0_25 = arith.constant 0 : index
    %c448 = arith.constant 448 : index
    %24 = vector.load %arg10[%c0_25, %c448] : memref<2x3136xf32, #tpu.memory_space<vmem>>, vector<1x64xf32>
    tpu.vector_store %arg10[%c0_25, %c448], %23 {strides = array<i32>} : memref<2x3136xf32, #tpu.memory_space<vmem>>, vector<1x64xf32>,
    %c8 = arith.constant 8 : index
    %c0_26 = arith.constant 0 : index
    %25 = vector.load %arg9[%c8, %c0_26] : memref<98x64xf32, #tpu.memory_space<vmem>>, vector<1x64xf32>
    %c0_27 = arith.constant 0 : index
    %c512 = arith.constant 512 : index
    %26 = vector.load %arg10[%c0_27, %c512] : memref<2x3136xf32, #tpu.memory_space<vmem>>, vector<1x64xf32>
    tpu.vector_store %arg10[%c0_27, %c512], %25 {strides = array<i32>} : memref<2x3136xf32, #tpu.memory_space<vmem>>, vector<1x64xf32>,
    %c9 = arith.constant 9 : index
    %c0_28 = arith.constant 0 : index
    %27 = vector.load %arg9[%c9, %c0_28] : memref<98x64xf32, #tpu.memory_space<vmem>>, vector<1x64xf32>
    %c0_29 = arith.constant 0 : index
    %c576 = arith.constant 576 : index
    %28 = vector.load %arg10[%c0_29, %c576] : memref<2x3136xf32, #tpu.memory_space<vmem>>, vector<1x64xf32>
    tpu.vector_store %arg10[%c0_29, %c576], %27 {strides = array<i32>} : memref<2x3136xf32, #tpu.memory_space<vmem>>, vector<1x64xf32>,
    %c10 = arith.constant 10 : index
    %c0_30 = arith.constant 0 : index
    %29 = vector.load %arg9[%c10, %c0_30] : memref<98x64xf32, #tpu.memory_space<vmem>>, vector<1x64xf32>
    %c0_31 = arith.constant 0 : index
    %c640 = arith.constant 640 : index
    %30 = vector.load %arg10[%c0_31, %c640] : memref<2x3136xf32, #tpu.memory_space<vmem>>, vector<1x64xf32>
    tpu.vector_store %arg10[%c0_31, %c640], %29 {strides = array<i32>} : memref<2x3136xf32, #tpu.memory_space<vmem>>, vector<1x64xf32>,
    %c11 = arith.constant 11 : index
    %c0_32 = arith.constant 0 : index
    %31 = vector.load %arg9[%c11, %c0_32] : memref<98x64xf32, #tpu.memory_space<vmem>>, vector<1x64xf32>
    %c0_33 = arith.constant 0 : index
    %c704 = arith.constant 704 : index
    %32 = vector.load %arg10[%c0_33, %c704] : memref<2x3136xf32, #tpu.memory_space<vmem>>, vector<1x64xf32>
    tpu.vector_store %arg10[%c0_33, %c704], %31 {strides = array<i32>} : memref<2x3136xf32, #tpu.memory_space<vmem>>, vector<1x64xf32>,
    %c12 = arith.constant 12 : index
    %c0_34 = arith.constant 0 : index
    %33 = vector.load %arg9[%c12, %c0_34] : memref<98x64xf32, #tpu.memory_space<vmem>>, vector<1x64xf32>
    %c0_35 = arith.constant 0 : index
    %c768 = arith.constant 768 : index
    %34 = vector.load %arg10[%c0_35, %c768] : memref<2x3136xf32, #tpu.memory_space<vmem>>, vector<1x64xf32>
    tpu.vector_store %arg10[%c0_35, %c768], %33 {strides = array<i32>} : memref<2x3136xf32, #tpu.memory_space<vmem>>, vector<1x64xf32>,
    %c13 = arith.constant 13 : index
    %c0_36 = arith.constant 0 : index
    %35 = vector.load %arg9[%c13, %c0_36] : memref<98x64xf32, #tpu.memory_space<vmem>>, vector<1x64xf32>
    %c0_37 = arith.constant 0 : index
    %c832 = arith.constant 832 : index
    %36 = vector.load %arg10[%c0_37, %c832] : memref<2x3136xf32, #tpu.memory_space<vmem>>, vector<1x64xf32>
    tpu.vector_store %arg10[%c0_37, %c832], %35 {strides = array<i32>} : memref<2x3136xf32, #tpu.memory_space<vmem>>, vector<1x64xf32>,
    %c14 = arith.constant 14 : index
    %c0_38 = arith.constant 0 : index
    %37 = vector.load %arg9[%c14, %c0_38] : memref<98x64xf32, #tpu.memory_space<vmem>>, vector<1x64xf32>
    %c0_39 = arith.constant 0 : index
    %c896 = arith.constant 896 : index
    %38 = vector.load %arg10[%c0_39, %c896] : memref<2x3136xf32, #tpu.memory_space<vmem>>, vector<1x64xf32>
    tpu.vector_store %arg10[%c0_39, %c896], %37 {strides = array<i32>} : memref<2x3136xf32, #tpu.memory_space<vmem>>, vector<1x64xf32>,
    %c15 = arith.constant 15 : index
    %c0_40 = arith.constant 0 : index
    %39 = vector.load %arg9[%c15, %c0_40] : memref<98x64xf32, #tpu.memory_space<vmem>>, vector<1x64xf32>
    %c0_41 = arith.constant 0 : index
    %c960 = arith.constant 960 : index
    %40 = vector.load %arg10[%c0_41, %c960] : memref<2x3136xf32, #tpu.memory_space<vmem>>, vector<1x64xf32>
    tpu.vector_store %arg10[%c0_41, %c960], %39 {strides = array<i32>} : memref<2x3136xf32, #tpu.memory_space<vmem>>, vector<1x64xf32>,
    %c16 = arith.constant 16 : index
    %c0_42 = arith.constant 0 : index
    %41 = vector.load %arg9[%c16, %c0_42] : memref<98x64xf32, #tpu.memory_space<vmem>>, vector<1x64xf32>
    %c0_43 = arith.constant 0 : index
    %c1024 = arith.constant 1024 : index
    %42 = vector.load %arg10[%c0_43, %c1024] : memref<2x3136xf32, #tpu.memory_space<vmem>>, vector<1x64xf32>
    tpu.vector_store %arg10[%c0_43, %c1024], %41 {strides = array<i32>} : memref<2x3136xf32, #tpu.memory_space<vmem>>, vector<1x64xf32>,
    %c17 = arith.constant 17 : index
    %c0_44 = arith.constant 0 : index
    %43 = vector.load %arg9[%c17, %c0_44] : memref<98x64xf32, #tpu.memory_space<vmem>>, vector<1x64xf32>
    %c0_45 = arith.constant 0 : index
    %c1088 = arith.constant 1088 : index
    %44 = vector.load %arg10[%c0_45, %c1088] : memref<2x3136xf32, #tpu.memory_space<vmem>>, vector<1x64xf32>
    tpu.vector_store %arg10[%c0_45, %c1088], %43 {strides = array<i32>} : memref<2x3136xf32, #tpu.memory_space<vmem>>, vector<1x64xf32>,
    %c18 = arith.constant 18 : index
    %c0_46 = arith.constant 0 : index
    %45 = vector.load %arg9[%c18, %c0_46] : memref<98x64xf32, #tpu.memory_space<vmem>>, vector<1x64xf32>
    %c0_47 = arith.constant 0 : index
    %c1152 = arith.constant 1152 : index
    %46 = vector.load %arg10[%c0_47, %c1152] : memref<2x3136xf32, #tpu.memory_space<vmem>>, vector<1x64xf32>
    tpu.vector_store %arg10[%c0_47, %c1152], %45 {strides = array<i32>} : memref<2x3136xf32, #tpu.memory_space<vmem>>, vector<1x64xf32>,
    %c19 = arith.constant 19 : index
    %c0_48 = arith.constant 0 : index
    %47 = vector.load %arg9[%c19, %c0_48] : memref<98x64xf32, #tpu.memory_space<vmem>>, vector<1x64xf32>
    %c0_49 = arith.constant 0 : index
    %c1216 = arith.constant 1216 : index
    %48 = vector.load %arg10[%c0_49, %c1216] : memref<2x3136xf32, #tpu.memory_space<vmem>>, vector<1x64xf32>
    tpu.vector_store %arg10[%c0_49, %c1216], %47 {strides = array<i32>} : memref<2x3136xf32, #tpu.memory_space<vmem>>, vector<1x64xf32>,
    %c20 = arith.constant 20 : index
    %c0_50 = arith.constant 0 : index
    %49 = vector.load %arg9[%c20, %c0_50] : memref<98x64xf32, #tpu.memory_space<vmem>>, vector<1x64xf32>
    %c0_51 = arith.constant 0 : index
    %c1280 = arith.constant 1280 : index
    %50 = vector.load %arg10[%c0_51, %c1280] : memref<2x3136xf32, #tpu.memory_space<vmem>>, vector<1x64xf32>
    tpu.vector_store %arg10[%c0_51, %c1280], %49 {strides = array<i32>} : memref<2x3136xf32, #tpu.memory_space<vmem>>, vector<1x64xf32>,
    %c21 = arith.constant 21 : index
    %c0_52 = arith.constant 0 : index
    %51 = vector.load %arg9[%c21, %c0_52] : memref<98x64xf32, #tpu.memory_space<vmem>>, vector<1x64xf32>
    %c0_53 = arith.constant 0 : index
    %c1344 = arith.constant 1344 : index
    %52 = vector.load %arg10[%c0_53, %c1344] : memref<2x3136xf32, #tpu.memory_space<vmem>>, vector<1x64xf32>
    tpu.vector_store %arg10[%c0_53, %c1344], %51 {strides = array<i32>} : memref<2x3136xf32, #tpu.memory_space<vmem>>, vector<1x64xf32>,
    %c22 = arith.constant 22 : index
    %c0_54 = arith.constant 0 : index
    %53 = vector.load %arg9[%c22, %c0_54] : memref<98x64xf32, #tpu.memory_space<vmem>>, vector<1x64xf32>
    %c0_55 = arith.constant 0 : index
    %c1408 = arith.constant 1408 : index
    %54 = vector.load %arg10[%c0_55, %c1408] : memref<2x3136xf32, #tpu.memory_space<vmem>>, vector<1x64xf32>
    tpu.vector_store %arg10[%c0_55, %c1408], %53 {strides = array<i32>} : memref<2x3136xf32, #tpu.memory_space<vmem>>, vector<1x64xf32>,
    %c23 = arith.constant 23 : index
    %c0_56 = arith.constant 0 : index
    %55 = vector.load %arg9[%c23, %c0_56] : memref<98x64xf32, #tpu.memory_space<vmem>>, vector<1x64xf32>
    %c0_57 = arith.constant 0 : index
    %c1472 = arith.constant 1472 : index
    %56 = vector.load %arg10[%c0_57, %c1472] : memref<2x3136xf32, #tpu.memory_space<vmem>>, vector<1x64xf32>
    tpu.vector_store %arg10[%c0_57, %c1472], %55 {strides = array<i32>} : memref<2x3136xf32, #tpu.memory_space<vmem>>, vector<1x64xf32>,
    %c24 = arith.constant 24 : index
    %c0_58 = arith.constant 0 : index
    %57 = vector.load %arg9[%c24, %c0_58] : memref<98x64xf32, #tpu.memory_space<vmem>>, vector<1x64xf32>
    %c0_59 = arith.constant 0 : index
    %c1536 = arith.constant 1536 : index
    %58 = vector.load %arg10[%c0_59, %c1536] : memref<2x3136xf32, #tpu.memory_space<vmem>>, vector<1x64xf32>
    tpu.vector_store %arg10[%c0_59, %c1536], %57 {strides = array<i32>} : memref<2x3136xf32, #tpu.memory_space<vmem>>, vector<1x64xf32>,
    %c25 = arith.constant 25 : index
    %c0_60 = arith.constant 0 : index
    %59 = vector.load %arg9[%c25, %c0_60] : memref<98x64xf32, #tpu.memory_space<vmem>>, vector<1x64xf32>
    %c0_61 = arith.constant 0 : index
    %c1600 = arith.constant 1600 : index
    %60 = vector.load %arg10[%c0_61, %c1600] : memref<2x3136xf32, #tpu.memory_space<vmem>>, vector<1x64xf32>
    tpu.vector_store %arg10[%c0_61, %c1600], %59 {strides = array<i32>} : memref<2x3136xf32, #tpu.memory_space<vmem>>, vector<1x64xf32>,
    %c26 = arith.constant 26 : index
    %c0_62 = arith.constant 0 : index
    %61 = vector.load %arg9[%c26, %c0_62] : memref<98x64xf32, #tpu.memory_space<vmem>>, vector<1x64xf32>
    %c0_63 = arith.constant 0 : index
    %c1664 = arith.constant 1664 : index
    %62 = vector.load %arg10[%c0_63, %c1664] : memref<2x3136xf32, #tpu.memory_space<vmem>>, vector<1x64xf32>
    tpu.vector_store %arg10[%c0_63, %c1664], %61 {strides = array<i32>} : memref<2x3136xf32, #tpu.memory_space<vmem>>, vector<1x64xf32>,
    %c27 = arith.constant 27 : index
    %c0_64 = arith.constant 0 : index
    %63 = vector.load %arg9[%c27, %c0_64] : memref<98x64xf32, #tpu.memory_space<vmem>>, vector<1x64xf32>
    %c0_65 = arith.constant 0 : index
    %c1728 = arith.constant 1728 : index
    %64 = vector.load %arg10[%c0_65, %c1728] : memref<2x3136xf32, #tpu.memory_space<vmem>>, vector<1x64xf32>
    tpu.vector_store %arg10[%c0_65, %c1728], %63 {strides = array<i32>} : memref<2x3136xf32, #tpu.memory_space<vmem>>, vector<1x64xf32>,
    %c28 = arith.constant 28 : index
    %c0_66 = arith.constant 0 : index
    %65 = vector.load %arg9[%c28, %c0_66] : memref<98x64xf32, #tpu.memory_space<vmem>>, vector<1x64xf32>
    %c0_67 = arith.constant 0 : index
    %c1792 = arith.constant 1792 : index
    %66 = vector.load %arg10[%c0_67, %c1792] : memref<2x3136xf32, #tpu.memory_space<vmem>>, vector<1x64xf32>
    tpu.vector_store %arg10[%c0_67, %c1792], %65 {strides = array<i32>} : memref<2x3136xf32, #tpu.memory_space<vmem>>, vector<1x64xf32>,
    %c29 = arith.constant 29 : index
    %c0_68 = arith.constant 0 : index
    %67 = vector.load %arg9[%c29, %c0_68] : memref<98x64xf32, #tpu.memory_space<vmem>>, vector<1x64xf32>
    %c0_69 = arith.constant 0 : index
    %c1856 = arith.constant 1856 : index
    %68 = vector.load %arg10[%c0_69, %c1856] : memref<2x3136xf32, #tpu.memory_space<vmem>>, vector<1x64xf32>
    tpu.vector_store %arg10[%c0_69, %c1856], %67 {strides = array<i32>} : memref<2x3136xf32, #tpu.memory_space<vmem>>, vector<1x64xf32>,
    %c30 = arith.constant 30 : index
    %c0_70 = arith.constant 0 : index
    %69 = vector.load %arg9[%c30, %c0_70] : memref<98x64xf32, #tpu.memory_space<vmem>>, vector<1x64xf32>
    %c0_71 = arith.constant 0 : index
    %c1920 = arith.constant 1920 : index
    %70 = vector.load %arg10[%c0_71, %c1920] : memref<2x3136xf32, #tpu.memory_space<vmem>>, vector<1x64xf32>
    tpu.vector_store %arg10[%c0_71, %c1920], %69 {strides = array<i32>} : memref<2x3136xf32, #tpu.memory_space<vmem>>, vector<1x64xf32>,
    %c31 = arith.constant 31 : index
    %c0_72 = arith.constant 0 : index
    %71 = vector.load %arg9[%c31, %c0_72] : memref<98x64xf32, #tpu.memory_space<vmem>>, vector<1x64xf32>
    %c0_73 = arith.constant 0 : index
    %c1984 = arith.constant 1984 : index
    %72 = vector.load %arg10[%c0_73, %c1984] : memref<2x3136xf32, #tpu.memory_space<vmem>>, vector<1x64xf32>
    tpu.vector_store %arg10[%c0_73, %c1984], %71 {strides = array<i32>} : memref<2x3136xf32, #tpu.memory_space<vmem>>, vector<1x64xf32>,
    %c32 = arith.constant 32 : index
    %c0_74 = arith.constant 0 : index
    %73 = vector.load %arg9[%c32, %c0_74] : memref<98x64xf32, #tpu.memory_space<vmem>>, vector<1x64xf32>
    %c0_75 = arith.constant 0 : index
    %c2048 = arith.constant 2048 : index
    %74 = vector.load %arg10[%c0_75, %c2048] : memref<2x3136xf32, #tpu.memory_space<vmem>>, vector<1x64xf32>
    tpu.vector_store %arg10[%c0_75, %c2048], %73 {strides = array<i32>} : memref<2x3136xf32, #tpu.memory_space<vmem>>, vector<1x64xf32>,
    %c33 = arith.constant 33 : index
    %c0_76 = arith.constant 0 : index
    %75 = vector.load %arg9[%c33, %c0_76] : memref<98x64xf32, #tpu.memory_space<vmem>>, vector<1x64xf32>
    %c0_77 = arith.constant 0 : index
    %c2112 = arith.constant 2112 : index
    %76 = vector.load %arg10[%c0_77, %c2112] : memref<2x3136xf32, #tpu.memory_space<vmem>>, vector<1x64xf32>
    tpu.vector_store %arg10[%c0_77, %c2112], %75 {strides = array<i32>} : memref<2x3136xf32, #tpu.memory_space<vmem>>, vector<1x64xf32>,
    %c34 = arith.constant 34 : index
    %c0_78 = arith.constant 0 : index
    %77 = vector.load %arg9[%c34, %c0_78] : memref<98x64xf32, #tpu.memory_space<vmem>>, vector<1x64xf32>
    %c0_79 = arith.constant 0 : index
    %c2176 = arith.constant 2176 : index
    %78 = vector.load %arg10[%c0_79, %c2176] : memref<2x3136xf32, #tpu.memory_space<vmem>>, vector<1x64xf32>
    tpu.vector_store %arg10[%c0_79, %c2176], %77 {strides = array<i32>} : memref<2x3136xf32, #tpu.memory_space<vmem>>, vector<1x64xf32>,
    %c35 = arith.constant 35 : index
    %c0_80 = arith.constant 0 : index
    %79 = vector.load %arg9[%c35, %c0_80] : memref<98x64xf32, #tpu.memory_space<vmem>>, vector<1x64xf32>
    %c0_81 = arith.constant 0 : index
    %c2240 = arith.constant 2240 : index
    %80 = vector.load %arg10[%c0_81, %c2240] : memref<2x3136xf32, #tpu.memory_space<vmem>>, vector<1x64xf32>
    tpu.vector_store %arg10[%c0_81, %c2240], %79 {strides = array<i32>} : memref<2x3136xf32, #tpu.memory_space<vmem>>, vector<1x64xf32>,
    %c36 = arith.constant 36 : index
    %c0_82 = arith.constant 0 : index
    %81 = vector.load %arg9[%c36, %c0_82] : memref<98x64xf32, #tpu.memory_space<vmem>>, vector<1x64xf32>
    %c0_83 = arith.constant 0 : index
    %c2304 = arith.constant 2304 : index
    %82 = vector.load %arg10[%c0_83, %c2304] : memref<2x3136xf32, #tpu.memory_space<vmem>>, vector<1x64xf32>
    tpu.vector_store %arg10[%c0_83, %c2304], %81 {strides = array<i32>} : memref<2x3136xf32, #tpu.memory_space<vmem>>, vector<1x64xf32>,
    %c37 = arith.constant 37 : index
    %c0_84 = arith.constant 0 : index
    %83 = vector.load %arg9[%c37, %c0_84] : memref<98x64xf32, #tpu.memory_space<vmem>>, vector<1x64xf32>
    %c0_85 = arith.constant 0 : index
    %c2368 = arith.constant 2368 : index
    %84 = vector.load %arg10[%c0_85, %c2368] : memref<2x3136xf32, #tpu.memory_space<vmem>>, vector<1x64xf32>
    tpu.vector_store %arg10[%c0_85, %c2368], %83 {strides = array<i32>} : memref<2x3136xf32, #tpu.memory_space<vmem>>, vector<1x64xf32>,
    %c38 = arith.constant 38 : index
    %c0_86 = arith.constant 0 : index
    %85 = vector.load %arg9[%c38, %c0_86] : memref<98x64xf32, #tpu.memory_space<vmem>>, vector<1x64xf32>
    %c0_87 = arith.constant 0 : index
    %c2432 = arith.constant 2432 : index
    %86 = vector.load %arg10[%c0_87, %c2432] : memref<2x3136xf32, #tpu.memory_space<vmem>>, vector<1x64xf32>
    tpu.vector_store %arg10[%c0_87, %c2432], %85 {strides = array<i32>} : memref<2x3136xf32, #tpu.memory_space<vmem>>, vector<1x64xf32>,
    %c39 = arith.constant 39 : index
    %c0_88 = arith.constant 0 : index
    %87 = vector.load %arg9[%c39, %c0_88] : memref<98x64xf32, #tpu.memory_space<vmem>>, vector<1x64xf32>
    %c0_89 = arith.constant 0 : index
    %c2496 = arith.constant 2496 : index
    %88 = vector.load %arg10[%c0_89, %c2496] : memref<2x3136xf32, #tpu.memory_space<vmem>>, vector<1x64xf32>
    tpu.vector_store %arg10[%c0_89, %c2496], %87 {strides = array<i32>} : memref<2x3136xf32, #tpu.memory_space<vmem>>, vector<1x64xf32>,
    %c40 = arith.constant 40 : index
    %c0_90 = arith.constant 0 : index
    %89 = vector.load %arg9[%c40, %c0_90] : memref<98x64xf32, #tpu.memory_space<vmem>>, vector<1x64xf32>
    %c0_91 = arith.constant 0 : index
    %c2560 = arith.constant 2560 : index
    %90 = vector.load %arg10[%c0_91, %c2560] : memref<2x3136xf32, #tpu.memory_space<vmem>>, vector<1x64xf32>
    tpu.vector_store %arg10[%c0_91, %c2560], %89 {strides = array<i32>} : memref<2x3136xf32, #tpu.memory_space<vmem>>, vector<1x64xf32>,
    %c41 = arith.constant 41 : index
    %c0_92 = arith.constant 0 : index
    %91 = vector.load %arg9[%c41, %c0_92] : memref<98x64xf32, #tpu.memory_space<vmem>>, vector<1x64xf32>
    %c0_93 = arith.constant 0 : index
    %c2624 = arith.constant 2624 : index
    %92 = vector.load %arg10[%c0_93, %c2624] : memref<2x3136xf32, #tpu.memory_space<vmem>>, vector<1x64xf32>
    tpu.vector_store %arg10[%c0_93, %c2624], %91 {strides = array<i32>} : memref<2x3136xf32, #tpu.memory_space<vmem>>, vector<1x64xf32>,
    %c42 = arith.constant 42 : index
    %c0_94 = arith.constant 0 : index
    %93 = vector.load %arg9[%c42, %c0_94] : memref<98x64xf32, #tpu.memory_space<vmem>>, vector<1x64xf32>
    %c0_95 = arith.constant 0 : index
    %c2688 = arith.constant 2688 : index
    %94 = vector.load %arg10[%c0_95, %c2688] : memref<2x3136xf32, #tpu.memory_space<vmem>>, vector<1x64xf32>
    tpu.vector_store %arg10[%c0_95, %c2688], %93 {strides = array<i32>} : memref<2x3136xf32, #tpu.memory_space<vmem>>, vector<1x64xf32>,
    %c43 = arith.constant 43 : index
    %c0_96 = arith.constant 0 : index
    %95 = vector.load %arg9[%c43, %c0_96] : memref<98x64xf32, #tpu.memory_space<vmem>>, vector<1x64xf32>
    %c0_97 = arith.constant 0 : index
    %c2752 = arith.constant 2752 : index
    %96 = vector.load %arg10[%c0_97, %c2752] : memref<2x3136xf32, #tpu.memory_space<vmem>>, vector<1x64xf32>
    tpu.vector_store %arg10[%c0_97, %c2752], %95 {strides = array<i32>} : memref<2x3136xf32, #tpu.memory_space<vmem>>, vector<1x64xf32>,
    %c44 = arith.constant 44 : index
    %c0_98 = arith.constant 0 : index
    %97 = vector.load %arg9[%c44, %c0_98] : memref<98x64xf32, #tpu.memory_space<vmem>>, vector<1x64xf32>
    %c0_99 = arith.constant 0 : index
    %c2816 = arith.constant 2816 : index
    %98 = vector.load %arg10[%c0_99, %c2816] : memref<2x3136xf32, #tpu.memory_space<vmem>>, vector<1x64xf32>
    tpu.vector_store %arg10[%c0_99, %c2816], %97 {strides = array<i32>} : memref<2x3136xf32, #tpu.memory_space<vmem>>, vector<1x64xf32>,
    %c45 = arith.constant 45 : index
    %c0_100 = arith.constant 0 : index
    %99 = vector.load %arg9[%c45, %c0_100] : memref<98x64xf32, #tpu.memory_space<vmem>>, vector<1x64xf32>
    %c0_101 = arith.constant 0 : index
    %c2880 = arith.constant 2880 : index
    %100 = vector.load %arg10[%c0_101, %c2880] : memref<2x3136xf32, #tpu.memory_space<vmem>>, vector<1x64xf32>
    tpu.vector_store %arg10[%c0_101, %c2880], %99 {strides = array<i32>} : memref<2x3136xf32, #tpu.memory_space<vmem>>, vector<1x64xf32>,
    %c46 = arith.constant 46 : index
    %c0_102 = arith.constant 0 : index
    %101 = vector.load %arg9[%c46, %c0_102] : memref<98x64xf32, #tpu.memory_space<vmem>>, vector<1x64xf32>
    %c0_103 = arith.constant 0 : index
    %c2944 = arith.constant 2944 : index
    %102 = vector.load %arg10[%c0_103, %c2944] : memref<2x3136xf32, #tpu.memory_space<vmem>>, vector<1x64xf32>
    tpu.vector_store %arg10[%c0_103, %c2944], %101 {strides = array<i32>} : memref<2x3136xf32, #tpu.memory_space<vmem>>, vector<1x64xf32>,
    %c47 = arith.constant 47 : index
    %c0_104 = arith.constant 0 : index
    %103 = vector.load %arg9[%c47, %c0_104] : memref<98x64xf32, #tpu.memory_space<vmem>>, vector<1x64xf32>
    %c0_105 = arith.constant 0 : index
    %c3008 = arith.constant 3008 : index
    %104 = vector.load %arg10[%c0_105, %c3008] : memref<2x3136xf32, #tpu.memory_space<vmem>>, vector<1x64xf32>
    tpu.vector_store %arg10[%c0_105, %c3008], %103 {strides = array<i32>} : memref<2x3136xf32, #tpu.memory_space<vmem>>, vector<1x64xf32>,
    %c48 = arith.constant 48 : index
    %c0_106 = arith.constant 0 : index
    %105 = vector.load %arg9[%c48, %c0_106] : memref<98x64xf32, #tpu.memory_space<vmem>>, vector<1x64xf32>
    %c0_107 = arith.constant 0 : index
    %c3072 = arith.constant 3072 : index
    %106 = vector.load %arg10[%c0_107, %c3072] : memref<2x3136xf32, #tpu.memory_space<vmem>>, vector<1x64xf32>
    tpu.vector_store %arg10[%c0_107, %c3072], %105 {strides = array<i32>} : memref<2x3136xf32, #tpu.memory_space<vmem>>, vector<1x64xf32>,
    %c49 = arith.constant 49 : index
    %c0_108 = arith.constant 0 : index
    %107 = vector.load %arg9[%c49, %c0_108] : memref<98x64xf32, #tpu.memory_space<vmem>>, vector<1x64xf32>
    %c1_109 = arith.constant 1 : index
    %c0_110 = arith.constant 0 : index
    %108 = vector.load %arg10[%c1_109, %c0_110] : memref<2x3136xf32, #tpu.memory_space<vmem>>, vector<1x64xf32>
    tpu.vector_store %arg10[%c1_109, %c0_110], %107 {strides = array<i32>} : memref<2x3136xf32, #tpu.memory_space<vmem>>, vector<1x64xf32>,
    %c50 = arith.constant 50 : index
    %c0_111 = arith.constant 0 : index
    %109 = vector.load %arg9[%c50, %c0_111] : memref<98x64xf32, #tpu.memory_space<vmem>>, vector<1x64xf32>
    %c1_112 = arith.constant 1 : index
    %c64_113 = arith.constant 64 : index
    %110 = vector.load %arg10[%c1_112, %c64_113] : memref<2x3136xf32, #tpu.memory_space<vmem>>, vector<1x64xf32>
    tpu.vector_store %arg10[%c1_112, %c64_113], %109 {strides = array<i32>} : memref<2x3136xf32, #tpu.memory_space<vmem>>, vector<1x64xf32>,
    %c51 = arith.constant 51 : index
    %c0_114 = arith.constant 0 : index
    %111 = vector.load %arg9[%c51, %c0_114] : memref<98x64xf32, #tpu.memory_space<vmem>>, vector<1x64xf32>
    %c1_115 = arith.constant 1 : index
    %c128_116 = arith.constant 128 : index
    %112 = vector.load %arg10[%c1_115, %c128_116] : memref<2x3136xf32, #tpu.memory_space<vmem>>, vector<1x64xf32>
    tpu.vector_store %arg10[%c1_115, %c128_116], %111 {strides = array<i32>} : memref<2x3136xf32, #tpu.memory_space<vmem>>, vector<1x64xf32>,
    %c52 = arith.constant 52 : index
    %c0_117 = arith.constant 0 : index
    %113 = vector.load %arg9[%c52, %c0_117] : memref<98x64xf32, #tpu.memory_space<vmem>>, vector<1x64xf32>
    %c1_118 = arith.constant 1 : index
    %c192_119 = arith.constant 192 : index
    %114 = vector.load %arg10[%c1_118, %c192_119] : memref<2x3136xf32, #tpu.memory_space<vmem>>, vector<1x64xf32>
    tpu.vector_store %arg10[%c1_118, %c192_119], %113 {strides = array<i32>} : memref<2x3136xf32, #tpu.memory_space<vmem>>, vector<1x64xf32>,
    %c53 = arith.constant 53 : index
    %c0_120 = arith.constant 0 : index
    %115 = vector.load %arg9[%c53, %c0_120] : memref<98x64xf32, #tpu.memory_space<vmem>>, vector<1x64xf32>
    %c1_121 = arith.constant 1 : index
    %c256_122 = arith.constant 256 : index
    %116 = vector.load %arg10[%c1_121, %c256_122] : memref<2x3136xf32, #tpu.memory_space<vmem>>, vector<1x64xf32>
    tpu.vector_store %arg10[%c1_121, %c256_122], %115 {strides = array<i32>} : memref<2x3136xf32, #tpu.memory_space<vmem>>, vector<1x64xf32>,
    %c54 = arith.constant 54 : index
    %c0_123 = arith.constant 0 : index
    %117 = vector.load %arg9[%c54, %c0_123] : memref<98x64xf32, #tpu.memory_space<vmem>>, vector<1x64xf32>
    %c1_124 = arith.constant 1 : index
    %c320_125 = arith.constant 320 : index
    %118 = vector.load %arg10[%c1_124, %c320_125] : memref<2x3136xf32, #tpu.memory_space<vmem>>, vector<1x64xf32>
    tpu.vector_store %arg10[%c1_124, %c320_125], %117 {strides = array<i32>} : memref<2x3136xf32, #tpu.memory_space<vmem>>, vector<1x64xf32>,
    %c55 = arith.constant 55 : index
    %c0_126 = arith.constant 0 : index
    %119 = vector.load %arg9[%c55, %c0_126] : memref<98x64xf32, #tpu.memory_space<vmem>>, vector<1x64xf32>
    %c1_127 = arith.constant 1 : index
    %c384_128 = arith.constant 384 : index
    %120 = vector.load %arg10[%c1_127, %c384_128] : memref<2x3136xf32, #tpu.memory_space<vmem>>, vector<1x64xf32>
    tpu.vector_store %arg10[%c1_127, %c384_128], %119 {strides = array<i32>} : memref<2x3136xf32, #tpu.memory_space<vmem>>, vector<1x64xf32>,
    %c56 = arith.constant 56 : index
    %c0_129 = arith.constant 0 : index
    %121 = vector.load %arg9[%c56, %c0_129] : memref<98x64xf32, #tpu.memory_space<vmem>>, vector<1x64xf32>
    %c1_130 = arith.constant 1 : index
    %c448_131 = arith.constant 448 : index
    %122 = vector.load %arg10[%c1_130, %c448_131] : memref<2x3136xf32, #tpu.memory_space<vmem>>, vector<1x64xf32>
    tpu.vector_store %arg10[%c1_130, %c448_131], %121 {strides = array<i32>} : memref<2x3136xf32, #tpu.memory_space<vmem>>, vector<1x64xf32>,
    %c57 = arith.constant 57 : index
    %c0_132 = arith.constant 0 : index
    %123 = vector.load %arg9[%c57, %c0_132] : memref<98x64xf32, #tpu.memory_space<vmem>>, vector<1x64xf32>
    %c1_133 = arith.constant 1 : index
    %c512_134 = arith.constant 512 : index
    %124 = vector.load %arg10[%c1_133, %c512_134] : memref<2x3136xf32, #tpu.memory_space<vmem>>, vector<1x64xf32>
    tpu.vector_store %arg10[%c1_133, %c512_134], %123 {strides = array<i32>} : memref<2x3136xf32, #tpu.memory_space<vmem>>, vector<1x64xf32>,
    %c58 = arith.constant 58 : index
    %c0_135 = arith.constant 0 : index
    %125 = vector.load %arg9[%c58, %c0_135] : memref<98x64xf32, #tpu.memory_space<vmem>>, vector<1x64xf32>
    %c1_136 = arith.constant 1 : index
    %c576_137 = arith.constant 576 : index
    %126 = vector.load %arg10[%c1_136, %c576_137] : memref<2x3136xf32, #tpu.memory_space<vmem>>, vector<1x64xf32>
    tpu.vector_store %arg10[%c1_136, %c576_137], %125 {strides = array<i32>} : memref<2x3136xf32, #tpu.memory_space<vmem>>, vector<1x64xf32>,
    %c59 = arith.constant 59 : index
    %c0_138 = arith.constant 0 : index
    %127 = vector.load %arg9[%c59, %c0_138] : memref<98x64xf32, #tpu.memory_space<vmem>>, vector<1x64xf32>
    %c1_139 = arith.constant 1 : index
    %c640_140 = arith.constant 640 : index
    %128 = vector.load %arg10[%c1_139, %c640_140] : memref<2x3136xf32, #tpu.memory_space<vmem>>, vector<1x64xf32>
    tpu.vector_store %arg10[%c1_139, %c640_140], %127 {strides = array<i32>} : memref<2x3136xf32, #tpu.memory_space<vmem>>, vector<1x64xf32>,
    %c60 = arith.constant 60 : index
    %c0_141 = arith.constant 0 : index
    %129 = vector.load %arg9[%c60, %c0_141] : memref<98x64xf32, #tpu.memory_space<vmem>>, vector<1x64xf32>
    %c1_142 = arith.constant 1 : index
    %c704_143 = arith.constant 704 : index
    %130 = vector.load %arg10[%c1_142, %c704_143] : memref<2x3136xf32, #tpu.memory_space<vmem>>, vector<1x64xf32>
    tpu.vector_store %arg10[%c1_142, %c704_143], %129 {strides = array<i32>} : memref<2x3136xf32, #tpu.memory_space<vmem>>, vector<1x64xf32>,
    %c61 = arith.constant 61 : index
    %c0_144 = arith.constant 0 : index
    %131 = vector.load %arg9[%c61, %c0_144] : memref<98x64xf32, #tpu.memory_space<vmem>>, vector<1x64xf32>
    %c1_145 = arith.constant 1 : index
    %c768_146 = arith.constant 768 : index
    %132 = vector.load %arg10[%c1_145, %c768_146] : memref<2x3136xf32, #tpu.memory_space<vmem>>, vector<1x64xf32>
    tpu.vector_store %arg10[%c1_145, %c768_146], %131 {strides = array<i32>} : memref<2x3136xf32, #tpu.memory_space<vmem>>, vector<1x64xf32>,
    %c62 = arith.constant 62 : index
    %c0_147 = arith.constant 0 : index
    %133 = vector.load %arg9[%c62, %c0_147] : memref<98x64xf32, #tpu.memory_space<vmem>>, vector<1x64xf32>
    %c1_148 = arith.constant 1 : index
    %c832_149 = arith.constant 832 : index
    %134 = vector.load %arg10[%c1_148, %c832_149] : memref<2x3136xf32, #tpu.memory_space<vmem>>, vector<1x64xf32>
    tpu.vector_store %arg10[%c1_148, %c832_149], %133 {strides = array<i32>} : memref<2x3136xf32, #tpu.memory_space<vmem>>, vector<1x64xf32>,
    %c63 = arith.constant 63 : index
    %c0_150 = arith.constant 0 : index
    %135 = vector.load %arg9[%c63, %c0_150] : memref<98x64xf32, #tpu.memory_space<vmem>>, vector<1x64xf32>
    %c1_151 = arith.constant 1 : index
    %c896_152 = arith.constant 896 : index
    %136 = vector.load %arg10[%c1_151, %c896_152] : memref<2x3136xf32, #tpu.memory_space<vmem>>, vector<1x64xf32>
    tpu.vector_store %arg10[%c1_151, %c896_152], %135 {strides = array<i32>} : memref<2x3136xf32, #tpu.memory_space<vmem>>, vector<1x64xf32>,
    %c64_153 = arith.constant 64 : index
    %c0_154 = arith.constant 0 : index
    %137 = vector.load %arg9[%c64_153, %c0_154] : memref<98x64xf32, #tpu.memory_space<vmem>>, vector<1x64xf32>
    %c1_155 = arith.constant 1 : index
    %c960_156 = arith.constant 960 : index
    %138 = vector.load %arg10[%c1_155, %c960_156] : memref<2x3136xf32, #tpu.memory_space<vmem>>, vector<1x64xf32>
    tpu.vector_store %arg10[%c1_155, %c960_156], %137 {strides = array<i32>} : memref<2x3136xf32, #tpu.memory_space<vmem>>, vector<1x64xf32>,
    %c65 = arith.constant 65 : index
    %c0_157 = arith.constant 0 : index
    %139 = vector.load %arg9[%c65, %c0_157] : memref<98x64xf32, #tpu.memory_space<vmem>>, vector<1x64xf32>
    %c1_158 = arith.constant 1 : index
    %c1024_159 = arith.constant 1024 : index
    %140 = vector.load %arg10[%c1_158, %c1024_159] : memref<2x3136xf32, #tpu.memory_space<vmem>>, vector<1x64xf32>
    tpu.vector_store %arg10[%c1_158, %c1024_159], %139 {strides = array<i32>} : memref<2x3136xf32, #tpu.memory_space<vmem>>, vector<1x64xf32>,
    %c66 = arith.constant 66 : index
    %c0_160 = arith.constant 0 : index
    %141 = vector.load %arg9[%c66, %c0_160] : memref<98x64xf32, #tpu.memory_space<vmem>>, vector<1x64xf32>
    %c1_161 = arith.constant 1 : index
    %c1088_162 = arith.constant 1088 : index
    %142 = vector.load %arg10[%c1_161, %c1088_162] : memref<2x3136xf32, #tpu.memory_space<vmem>>, vector<1x64xf32>
    tpu.vector_store %arg10[%c1_161, %c1088_162], %141 {strides = array<i32>} : memref<2x3136xf32, #tpu.memory_space<vmem>>, vector<1x64xf32>,
    %c67 = arith.constant 67 : index
    %c0_163 = arith.constant 0 : index
    %143 = vector.load %arg9[%c67, %c0_163] : memref<98x64xf32, #tpu.memory_space<vmem>>, vector<1x64xf32>
    %c1_164 = arith.constant 1 : index
    %c1152_165 = arith.constant 1152 : index
    %144 = vector.load %arg10[%c1_164, %c1152_165] : memref<2x3136xf32, #tpu.memory_space<vmem>>, vector<1x64xf32>
    tpu.vector_store %arg10[%c1_164, %c1152_165], %143 {strides = array<i32>} : memref<2x3136xf32, #tpu.memory_space<vmem>>, vector<1x64xf32>,
    %c68 = arith.constant 68 : index
    %c0_166 = arith.constant 0 : index
    %145 = vector.load %arg9[%c68, %c0_166] : memref<98x64xf32, #tpu.memory_space<vmem>>, vector<1x64xf32>
    %c1_167 = arith.constant 1 : index
    %c1216_168 = arith.constant 1216 : index
    %146 = vector.load %arg10[%c1_167, %c1216_168] : memref<2x3136xf32, #tpu.memory_space<vmem>>, vector<1x64xf32>
    tpu.vector_store %arg10[%c1_167, %c1216_168], %145 {strides = array<i32>} : memref<2x3136xf32, #tpu.memory_space<vmem>>, vector<1x64xf32>,
    %c69 = arith.constant 69 : index
    %c0_169 = arith.constant 0 : index
    %147 = vector.load %arg9[%c69, %c0_169] : memref<98x64xf32, #tpu.memory_space<vmem>>, vector<1x64xf32>
    %c1_170 = arith.constant 1 : index
    %c1280_171 = arith.constant 1280 : index
    %148 = vector.load %arg10[%c1_170, %c1280_171] : memref<2x3136xf32, #tpu.memory_space<vmem>>, vector<1x64xf32>
    tpu.vector_store %arg10[%c1_170, %c1280_171], %147 {strides = array<i32>} : memref<2x3136xf32, #tpu.memory_space<vmem>>, vector<1x64xf32>,
    %c70 = arith.constant 70 : index
    %c0_172 = arith.constant 0 : index
    %149 = vector.load %arg9[%c70, %c0_172] : memref<98x64xf32, #tpu.memory_space<vmem>>, vector<1x64xf32>
    %c1_173 = arith.constant 1 : index
    %c1344_174 = arith.constant 1344 : index
    %150 = vector.load %arg10[%c1_173, %c1344_174] : memref<2x3136xf32, #tpu.memory_space<vmem>>, vector<1x64xf32>
    tpu.vector_store %arg10[%c1_173, %c1344_174], %149 {strides = array<i32>} : memref<2x3136xf32, #tpu.memory_space<vmem>>, vector<1x64xf32>,
    %c71 = arith.constant 71 : index
    %c0_175 = arith.constant 0 : index
    %151 = vector.load %arg9[%c71, %c0_175] : memref<98x64xf32, #tpu.memory_space<vmem>>, vector<1x64xf32>
    %c1_176 = arith.constant 1 : index
    %c1408_177 = arith.constant 1408 : index
    %152 = vector.load %arg10[%c1_176, %c1408_177] : memref<2x3136xf32, #tpu.memory_space<vmem>>, vector<1x64xf32>
    tpu.vector_store %arg10[%c1_176, %c1408_177], %151 {strides = array<i32>} : memref<2x3136xf32, #tpu.memory_space<vmem>>, vector<1x64xf32>,
    %c72 = arith.constant 72 : index
    %c0_178 = arith.constant 0 : index
    %153 = vector.load %arg9[%c72, %c0_178] : memref<98x64xf32, #tpu.memory_space<vmem>>, vector<1x64xf32>
    %c1_179 = arith.constant 1 : index
    %c1472_180 = arith.constant 1472 : index
    %154 = vector.load %arg10[%c1_179, %c1472_180] : memref<2x3136xf32, #tpu.memory_space<vmem>>, vector<1x64xf32>
    tpu.vector_store %arg10[%c1_179, %c1472_180], %153 {strides = array<i32>} : memref<2x3136xf32, #tpu.memory_space<vmem>>, vector<1x64xf32>,
    %c73 = arith.constant 73 : index
    %c0_181 = arith.constant 0 : index
    %155 = vector.load %arg9[%c73, %c0_181] : memref<98x64xf32, #tpu.memory_space<vmem>>, vector<1x64xf32>
    %c1_182 = arith.constant 1 : index
    %c1536_183 = arith.constant 1536 : index
    %156 = vector.load %arg10[%c1_182, %c1536_183] : memref<2x3136xf32, #tpu.memory_space<vmem>>, vector<1x64xf32>
    tpu.vector_store %arg10[%c1_182, %c1536_183], %155 {strides = array<i32>} : memref<2x3136xf32, #tpu.memory_space<vmem>>, vector<1x64xf32>,
    %c74 = arith.constant 74 : index
    %c0_184 = arith.constant 0 : index
    %157 = vector.load %arg9[%c74, %c0_184] : memref<98x64xf32, #tpu.memory_space<vmem>>, vector<1x64xf32>
    %c1_185 = arith.constant 1 : index
    %c1600_186 = arith.constant 1600 : index
    %158 = vector.load %arg10[%c1_185, %c1600_186] : memref<2x3136xf32, #tpu.memory_space<vmem>>, vector<1x64xf32>
    tpu.vector_store %arg10[%c1_185, %c1600_186], %157 {strides = array<i32>} : memref<2x3136xf32, #tpu.memory_space<vmem>>, vector<1x64xf32>,
    %c75 = arith.constant 75 : index
    %c0_187 = arith.constant 0 : index
    %159 = vector.load %arg9[%c75, %c0_187] : memref<98x64xf32, #tpu.memory_space<vmem>>, vector<1x64xf32>
    %c1_188 = arith.constant 1 : index
    %c1664_189 = arith.constant 1664 : index
    %160 = vector.load %arg10[%c1_188, %c1664_189] : memref<2x3136xf32, #tpu.memory_space<vmem>>, vector<1x64xf32>
    tpu.vector_store %arg10[%c1_188, %c1664_189], %159 {strides = array<i32>} : memref<2x3136xf32, #tpu.memory_space<vmem>>, vector<1x64xf32>,
    %c76 = arith.constant 76 : index
    %c0_190 = arith.constant 0 : index
    %161 = vector.load %arg9[%c76, %c0_190] : memref<98x64xf32, #tpu.memory_space<vmem>>, vector<1x64xf32>
    %c1_191 = arith.constant 1 : index
    %c1728_192 = arith.constant 1728 : index
    %162 = vector.load %arg10[%c1_191, %c1728_192] : memref<2x3136xf32, #tpu.memory_space<vmem>>, vector<1x64xf32>
    tpu.vector_store %arg10[%c1_191, %c1728_192], %161 {strides = array<i32>} : memref<2x3136xf32, #tpu.memory_space<vmem>>, vector<1x64xf32>,
    %c77 = arith.constant 77 : index
    %c0_193 = arith.constant 0 : index
    %163 = vector.load %arg9[%c77, %c0_193] : memref<98x64xf32, #tpu.memory_space<vmem>>, vector<1x64xf32>
    %c1_194 = arith.constant 1 : index
    %c1792_195 = arith.constant 1792 : index
    %164 = vector.load %arg10[%c1_194, %c1792_195] : memref<2x3136xf32, #tpu.memory_space<vmem>>, vector<1x64xf32>
    tpu.vector_store %arg10[%c1_194, %c1792_195], %163 {strides = array<i32>} : memref<2x3136xf32, #tpu.memory_space<vmem>>, vector<1x64xf32>,
    %c78 = arith.constant 78 : index
    %c0_196 = arith.constant 0 : index
    %165 = vector.load %arg9[%c78, %c0_196] : memref<98x64xf32, #tpu.memory_space<vmem>>, vector<1x64xf32>
    %c1_197 = arith.constant 1 : index
    %c1856_198 = arith.constant 1856 : index
    %166 = vector.load %arg10[%c1_197, %c1856_198] : memref<2x3136xf32, #tpu.memory_space<vmem>>, vector<1x64xf32>
    tpu.vector_store %arg10[%c1_197, %c1856_198], %165 {strides = array<i32>} : memref<2x3136xf32, #tpu.memory_space<vmem>>, vector<1x64xf32>,
    %c79 = arith.constant 79 : index
    %c0_199 = arith.constant 0 : index
    %167 = vector.load %arg9[%c79, %c0_199] : memref<98x64xf32, #tpu.memory_space<vmem>>, vector<1x64xf32>
    %c1_200 = arith.constant 1 : index
    %c1920_201 = arith.constant 1920 : index
    %168 = vector.load %arg10[%c1_200, %c1920_201] : memref<2x3136xf32, #tpu.memory_space<vmem>>, vector<1x64xf32>
    tpu.vector_store %arg10[%c1_200, %c1920_201], %167 {strides = array<i32>} : memref<2x3136xf32, #tpu.memory_space<vmem>>, vector<1x64xf32>,
    %c80 = arith.constant 80 : index
    %c0_202 = arith.constant 0 : index
    %169 = vector.load %arg9[%c80, %c0_202] : memref<98x64xf32, #tpu.memory_space<vmem>>, vector<1x64xf32>
    %c1_203 = arith.constant 1 : index
    %c1984_204 = arith.constant 1984 : index
    %170 = vector.load %arg10[%c1_203, %c1984_204] : memref<2x3136xf32, #tpu.memory_space<vmem>>, vector<1x64xf32>
    tpu.vector_store %arg10[%c1_203, %c1984_204], %169 {strides = array<i32>} : memref<2x3136xf32, #tpu.memory_space<vmem>>, vector<1x64xf32>,
    %c81 = arith.constant 81 : index
    %c0_205 = arith.constant 0 : index
    %171 = vector.load %arg9[%c81, %c0_205] : memref<98x64xf32, #tpu.memory_space<vmem>>, vector<1x64xf32>
    %c1_206 = arith.constant 1 : index
    %c2048_207 = arith.constant 2048 : index
    %172 = vector.load %arg10[%c1_206, %c2048_207] : memref<2x3136xf32, #tpu.memory_space<vmem>>, vector<1x64xf32>
    tpu.vector_store %arg10[%c1_206, %c2048_207], %171 {strides = array<i32>} : memref<2x3136xf32, #tpu.memory_space<vmem>>, vector<1x64xf32>,
    %c82 = arith.constant 82 : index
    %c0_208 = arith.constant 0 : index
    %173 = vector.load %arg9[%c82, %c0_208] : memref<98x64xf32, #tpu.memory_space<vmem>>, vector<1x64xf32>
    %c1_209 = arith.constant 1 : index
    %c2112_210 = arith.constant 2112 : index
    %174 = vector.load %arg10[%c1_209, %c2112_210] : memref<2x3136xf32, #tpu.memory_space<vmem>>, vector<1x64xf32>
    tpu.vector_store %arg10[%c1_209, %c2112_210], %173 {strides = array<i32>} : memref<2x3136xf32, #tpu.memory_space<vmem>>, vector<1x64xf32>,
    %c83 = arith.constant 83 : index
    %c0_211 = arith.constant 0 : index
    %175 = vector.load %arg9[%c83, %c0_211] : memref<98x64xf32, #tpu.memory_space<vmem>>, vector<1x64xf32>
    %c1_212 = arith.constant 1 : index
    %c2176_213 = arith.constant 2176 : index
    %176 = vector.load %arg10[%c1_212, %c2176_213] : memref<2x3136xf32, #tpu.memory_space<vmem>>, vector<1x64xf32>
    tpu.vector_store %arg10[%c1_212, %c2176_213], %175 {strides = array<i32>} : memref<2x3136xf32, #tpu.memory_space<vmem>>, vector<1x64xf32>,
    %c84 = arith.constant 84 : index
    %c0_214 = arith.constant 0 : index
    %177 = vector.load %arg9[%c84, %c0_214] : memref<98x64xf32, #tpu.memory_space<vmem>>, vector<1x64xf32>
    %c1_215 = arith.constant 1 : index
    %c2240_216 = arith.constant 2240 : index
    %178 = vector.load %arg10[%c1_215, %c2240_216] : memref<2x3136xf32, #tpu.memory_space<vmem>>, vector<1x64xf32>
    tpu.vector_store %arg10[%c1_215, %c2240_216], %177 {strides = array<i32>} : memref<2x3136xf32, #tpu.memory_space<vmem>>, vector<1x64xf32>,
    %c85 = arith.constant 85 : index
    %c0_217 = arith.constant 0 : index
    %179 = vector.load %arg9[%c85, %c0_217] : memref<98x64xf32, #tpu.memory_space<vmem>>, vector<1x64xf32>
    %c1_218 = arith.constant 1 : index
    %c2304_219 = arith.constant 2304 : index
    %180 = vector.load %arg10[%c1_218, %c2304_219] : memref<2x3136xf32, #tpu.memory_space<vmem>>, vector<1x64xf32>
    tpu.vector_store %arg10[%c1_218, %c2304_219], %179 {strides = array<i32>} : memref<2x3136xf32, #tpu.memory_space<vmem>>, vector<1x64xf32>,
    %c86 = arith.constant 86 : index
    %c0_220 = arith.constant 0 : index
    %181 = vector.load %arg9[%c86, %c0_220] : memref<98x64xf32, #tpu.memory_space<vmem>>, vector<1x64xf32>
    %c1_221 = arith.constant 1 : index
    %c2368_222 = arith.constant 2368 : index
    %182 = vector.load %arg10[%c1_221, %c2368_222] : memref<2x3136xf32, #tpu.memory_space<vmem>>, vector<1x64xf32>
    tpu.vector_store %arg10[%c1_221, %c2368_222], %181 {strides = array<i32>} : memref<2x3136xf32, #tpu.memory_space<vmem>>, vector<1x64xf32>,
    %c87 = arith.constant 87 : index
    %c0_223 = arith.constant 0 : index
    %183 = vector.load %arg9[%c87, %c0_223] : memref<98x64xf32, #tpu.memory_space<vmem>>, vector<1x64xf32>
    %c1_224 = arith.constant 1 : index
    %c2432_225 = arith.constant 2432 : index
    %184 = vector.load %arg10[%c1_224, %c2432_225] : memref<2x3136xf32, #tpu.memory_space<vmem>>, vector<1x64xf32>
    tpu.vector_store %arg10[%c1_224, %c2432_225], %183 {strides = array<i32>} : memref<2x3136xf32, #tpu.memory_space<vmem>>, vector<1x64xf32>,
    %c88 = arith.constant 88 : index
    %c0_226 = arith.constant 0 : index
    %185 = vector.load %arg9[%c88, %c0_226] : memref<98x64xf32, #tpu.memory_space<vmem>>, vector<1x64xf32>
    %c1_227 = arith.constant 1 : index
    %c2496_228 = arith.constant 2496 : index
    %186 = vector.load %arg10[%c1_227, %c2496_228] : memref<2x3136xf32, #tpu.memory_space<vmem>>, vector<1x64xf32>
    tpu.vector_store %arg10[%c1_227, %c2496_228], %185 {strides = array<i32>} : memref<2x3136xf32, #tpu.memory_space<vmem>>, vector<1x64xf32>,
    %c89 = arith.constant 89 : index
    %c0_229 = arith.constant 0 : index
    %187 = vector.load %arg9[%c89, %c0_229] : memref<98x64xf32, #tpu.memory_space<vmem>>, vector<1x64xf32>
    %c1_230 = arith.constant 1 : index
    %c2560_231 = arith.constant 2560 : index
    %188 = vector.load %arg10[%c1_230, %c2560_231] : memref<2x3136xf32, #tpu.memory_space<vmem>>, vector<1x64xf32>
    tpu.vector_store %arg10[%c1_230, %c2560_231], %187 {strides = array<i32>} : memref<2x3136xf32, #tpu.memory_space<vmem>>, vector<1x64xf32>,
    %c90 = arith.constant 90 : index
    %c0_232 = arith.constant 0 : index
    %189 = vector.load %arg9[%c90, %c0_232] : memref<98x64xf32, #tpu.memory_space<vmem>>, vector<1x64xf32>
    %c1_233 = arith.constant 1 : index
    %c2624_234 = arith.constant 2624 : index
    %190 = vector.load %arg10[%c1_233, %c2624_234] : memref<2x3136xf32, #tpu.memory_space<vmem>>, vector<1x64xf32>
    tpu.vector_store %arg10[%c1_233, %c2624_234], %189 {strides = array<i32>} : memref<2x3136xf32, #tpu.memory_space<vmem>>, vector<1x64xf32>,
    %c91 = arith.constant 91 : index
    %c0_235 = arith.constant 0 : index
    %191 = vector.load %arg9[%c91, %c0_235] : memref<98x64xf32, #tpu.memory_space<vmem>>, vector<1x64xf32>
    %c1_236 = arith.constant 1 : index
    %c2688_237 = arith.constant 2688 : index
    %192 = vector.load %arg10[%c1_236, %c2688_237] : memref<2x3136xf32, #tpu.memory_space<vmem>>, vector<1x64xf32>
    tpu.vector_store %arg10[%c1_236, %c2688_237], %191 {strides = array<i32>} : memref<2x3136xf32, #tpu.memory_space<vmem>>, vector<1x64xf32>,
    %c92 = arith.constant 92 : index
    %c0_238 = arith.constant 0 : index
    %193 = vector.load %arg9[%c92, %c0_238] : memref<98x64xf32, #tpu.memory_space<vmem>>, vector<1x64xf32>
    %c1_239 = arith.constant 1 : index
    %c2752_240 = arith.constant 2752 : index
    %194 = vector.load %arg10[%c1_239, %c2752_240] : memref<2x3136xf32, #tpu.memory_space<vmem>>, vector<1x64xf32>
    tpu.vector_store %arg10[%c1_239, %c2752_240], %193 {strides = array<i32>} : memref<2x3136xf32, #tpu.memory_space<vmem>>, vector<1x64xf32>,
    %c93 = arith.constant 93 : index
    %c0_241 = arith.constant 0 : index
    %195 = vector.load %arg9[%c93, %c0_241] : memref<98x64xf32, #tpu.memory_space<vmem>>, vector<1x64xf32>
    %c1_242 = arith.constant 1 : index
    %c2816_243 = arith.constant 2816 : index
    %196 = vector.load %arg10[%c1_242, %c2816_243] : memref<2x3136xf32, #tpu.memory_space<vmem>>, vector<1x64xf32>
    tpu.vector_store %arg10[%c1_242, %c2816_243], %195 {strides = array<i32>} : memref<2x3136xf32, #tpu.memory_space<vmem>>, vector<1x64xf32>,
    %c94 = arith.constant 94 : index
    %c0_244 = arith.constant 0 : index
    %197 = vector.load %arg9[%c94, %c0_244] : memref<98x64xf32, #tpu.memory_space<vmem>>, vector<1x64xf32>
    %c1_245 = arith.constant 1 : index
    %c2880_246 = arith.constant 2880 : index
    %198 = vector.load %arg10[%c1_245, %c2880_246] : memref<2x3136xf32, #tpu.memory_space<vmem>>, vector<1x64xf32>
    tpu.vector_store %arg10[%c1_245, %c2880_246], %197 {strides = array<i32>} : memref<2x3136xf32, #tpu.memory_space<vmem>>, vector<1x64xf32>,
    %c95 = arith.constant 95 : index
    %c0_247 = arith.constant 0 : index
    %199 = vector.load %arg9[%c95, %c0_247] : memref<98x64xf32, #tpu.memory_space<vmem>>, vector<1x64xf32>
    %c1_248 = arith.constant 1 : index
    %c2944_249 = arith.constant 2944 : index
    %200 = vector.load %arg10[%c1_248, %c2944_249] : memref<2x3136xf32, #tpu.memory_space<vmem>>, vector<1x64xf32>
    tpu.vector_store %arg10[%c1_248, %c2944_249], %199 {strides = array<i32>} : memref<2x3136xf32, #tpu.memory_space<vmem>>, vector<1x64xf32>,
    %c96 = arith.constant 96 : index
    %c0_250 = arith.constant 0 : index
    %201 = vector.load %arg9[%c96, %c0_250] : memref<98x64xf32, #tpu.memory_space<vmem>>, vector<1x64xf32>
    %c1_251 = arith.constant 1 : index
    %c3008_252 = arith.constant 3008 : index
    %202 = vector.load %arg10[%c1_251, %c3008_252] : memref<2x3136xf32, #tpu.memory_space<vmem>>, vector<1x64xf32>
    tpu.vector_store %arg10[%c1_251, %c3008_252], %201 {strides = array<i32>} : memref<2x3136xf32, #tpu.memory_space<vmem>>, vector<1x64xf32>,
    %c97 = arith.constant 97 : index
    %c0_253 = arith.constant 0 : index
    %203 = vector.load %arg9[%c97, %c0_253] : memref<98x64xf32, #tpu.memory_space<vmem>>, vector<1x64xf32>
    %c1_254 = arith.constant 1 : index
    %c3072_255 = arith.constant 3072 : index
    %204 = vector.load %arg10[%c1_254, %c3072_255] : memref<2x3136xf32, #tpu.memory_space<vmem>>, vector<1x64xf32>
    tpu.vector_store %arg10[%c1_254, %c3072_255], %203 {strides = array<i32>} : memref<2x3136xf32, #tpu.memory_space<vmem>>, vector<1x64xf32>,
    %c0_256 = arith.constant 0 : index
    %c0_257 = arith.constant 0 : index
    %205 = vector.load %arg10[%c0_256, %c0_257] : memref<2x3136xf32, #tpu.memory_space<vmem>>, vector<2x3136xf32>
    %206 = arith.truncf %205 : vector<2x3136xf32> to vector<2x3136xbf16>
    %c0_258 = arith.constant 0 : index
    %c0_259 = arith.constant 0 : index
    %207 = vector.load %arg4[%c0_258, %c0_259] : memref<3136x512xbf16, #tpu.memory_space<vmem>>, vector<3136x512xbf16>
    %cst_260 = arith.constant dense<0.000000e+00> : vector<2x512xf32>
    %208 = tpu.matmul %206, %207, %cst_260 {dimension_numbers = #tpu.dot_dimension_numbers<[1], [0], [0], [1], [0, 0, 1, 1], [], []>} : vector<2x3136xbf16>, vector<3136x512xbf16>, vector<2x512xf32> -> vector<2x512xf32>
    %c0_261 = arith.constant 0 : index
    %c0_262 = arith.constant 0 : index
    %209 = vector.load %arg5[%c0_261, %c0_262] : memref<1x512xf32, #tpu.memory_space<vmem>>, vector<1x512xf32>
    %210 = vector.broadcast %209 : vector<1x512xf32> to vector<2x512xf32>
    %211 = arith.addf %208, %210 : vector<2x512xf32>
    %cst_263 = arith.constant 0.000000e+00 : f32
    %212 = vector.broadcast %cst_263 : f32 to vector<2x512xf32>
    %213 = arith.maximumf %211, %212 : vector<2x512xf32>
    %214 = arith.truncf %213 : vector<2x512xf32> to vector<2x512xbf16>
    %c0_264 = arith.constant 0 : index
    %c0_265 = arith.constant 0 : index
    %215 = vector.load %arg6[%c0_264, %c0_265] : memref<512x6xbf16, #tpu.memory_space<vmem>>, vector<512x6xbf16>
    %cst_266 = arith.constant dense<0.000000e+00> : vector<2x6xf32>
    %216 = tpu.matmul %214, %215, %cst_266 {dimension_numbers = #tpu.dot_dimension_numbers<[1], [0], [0], [1], [0, 0, 1, 1], [], []>} : vector<2x512xbf16>, vector<512x6xbf16>, vector<2x6xf32> -> vector<2x6xf32>
    %c0_267 = arith.constant 0 : index
    %c0_268 = arith.constant 0 : index
    %217 = vector.load %arg7[%c0_267, %c0_268] : memref<1x6xf32, #tpu.memory_space<vmem>>, vector<1x6xf32>
    %218 = vector.broadcast %217 : vector<1x6xf32> to vector<2x6xf32>
    %219 = arith.addf %216, %218 : vector<2x6xf32>
    %c0_269 = arith.constant 0 : index
    %c0_270 = arith.constant 0 : index
    %220 = vector.load %arg8[%c0_269, %c0_270] : memref<2x6xf32, #tpu.memory_space<vmem>>, vector<2x6xf32>
    tpu.vector_store %arg8[%c0_269, %c0_270], %219 {strides = array<i32>} : memref<2x6xf32, #tpu.memory_space<vmem>>, vector<2x6xf32>,
    return
  }
  func.func @transform_0(%arg0: i32) -> (i32, i32) {
    %c0_i32 = arith.constant 0 : i32
    %c0_i32_0 = arith.constant 0 : i32
    %c0_i32_1 = arith.constant 0 : i32
    return %c0_i32, %c0_i32_0 : i32, i32
  }
  func.func @transform_1(%arg0: i32) -> (i32, i32) {
    %c0_i32 = arith.constant 0 : i32
    %c0_i32_0 = arith.constant 0 : i32
    %c0_i32_1 = arith.constant 0 : i32
    return %c0_i32, %c0_i32_0 : i32, i32
  }
  func.func @transform_2(%arg0: i32) -> (i32, i32) {
    %c0_i32 = arith.constant 0 : i32
    %c0_i32_0 = arith.constant 0 : i32
    %c0_i32_1 = arith.constant 0 : i32
    return %c0_i32, %c0_i32_0 : i32, i32
  }
  func.func @transform_3(%arg0: i32) -> (i32, i32) {
    %c0_i32 = arith.constant 0 : i32
    %c0_i32_0 = arith.constant 0 : i32
    %c0_i32_1 = arith.constant 0 : i32
    return %c0_i32, %c0_i32_0 : i32, i32
  }
  func.func @transform_4(%arg0: i32) -> (i32, i32) {
    %c0_i32 = arith.constant 0 : i32
    %c0_i32_0 = arith.constant 0 : i32
    %c0_i32_1 = arith.constant 0 : i32
    return %c0_i32, %c0_i32_0 : i32, i32
  }
  func.func @transform_5(%arg0: i32) -> (i32, i32) {
    %c0_i32 = arith.constant 0 : i32
    %c0_i32_0 = arith.constant 0 : i32
    %c0_i32_1 = arith.constant 0 : i32
    return %c0_i32, %c0_i32_0 : i32, i32
  }
  func.func @transform_6(%arg0: i32) -> (i32, i32) {
    %c0_i32 = arith.constant 0 : i32
    %c0_i32_0 = arith.constant 0 : i32
    %c0_i32_1 = arith.constant 0 : i32
    return %c0_i32, %c0_i32_0 : i32, i32
  }
  func.func @transform_7(%arg0: i32) -> (i32, i32) {
    %c0_i32 = arith.constant 0 : i32
    %c0_i32_0 = arith.constant 0 : i32
    %c0_i32_1 = arith.constant 0 : i32
    return %c0_i32, %c0_i32_0 : i32, i32
  }
}

</mosaic_0001>

<bundles_post_ra>
// kernel: _net_forward_pallas_jit.3
= control target key start
LH: loop header
LB: loop body
LE: loop exit
PB: predicated region body
PF: predicated region fallthrough
CT: control target
= control target key end

     0   :  { %s1542_s12 = smov 0   ;;  %s1852_s0 = inlined_call_operand.vmem [shape: bf16[800,256], index: 0, kind: input, shape index: {}]   ;;  %s1853_s1 = inlined_call_operand.vmem [shape: bf16[256,32], index: 1, kind: input, shape index: {}]   ;;  %s1854_s2 = inlined_call_operand.vmem [shape: f32[1,32], index: 2, kind: input, shape index: {}]   ;;  %s1855_s3 = inlined_call_operand.vmem [shape: bf16[800,32], index: 3, kind: output, shape index: {}]  }
   0x1 LB: > { %s1203_s13 = sadd.s32 4294967295, %s1519_s12   ;;  %p1207_p0 = scmp.ge.s32.totalorder %s1519_s12, 1  ;;  %s1519_s12 = sphi %s1542_s12, %s13_s12  }
   0x2   : > { %p139_p1 = scmp.lt.s32.totalorder %s1519_s12, 3 }
   0x4   : > { %p140_p2 = pnand %p1207_p0, %p139_p1 }
   0x5   : > { %s164_s16 = smul.u32 (!%p140_p2), 50, %s1203_s13 }
   0x6   : > { %143 = sbr.rel (%p140_p2) target bundleno = 376 (0x178), region = 32 }
   0x7   : > { %p165_p3 = scmp.lt.s32.totalorder (!%p140_p2), %s164_s16, 99 }
   0xb   : > { %v1422_v0 = vld [vmem:[%s1853_s1 + $0x38] sm:$0xff]   ;;  %v1521_v1 = vmov 0   ;;  %v1423_v2 = vld [vmem:[%s1853_s1 + $0x30] sm:$0xff]   ;;  %v1424_v3 = vld [vmem:[%s1853_s1 + $0x28] sm:$0xff]   ;;  %s1857_s16 = smov (!%p165_p3, %s164_s16), 99  ;;  %vm1096_vm0 = vcmask 257024  }
   0xc   : > { %613 = vmatprep.subr.bf16.mxu0 %v1521_v1  ;;  %1381 = vmatprep.subr.bf16.mxu1 %v1521_v1  ;;  %v1425_v4 = vld [vmem:[%s1853_s1 + $0x20] sm:$0xff]   ;;  %s1330_s23 = sshll.u32 %s1857_s16, 3  ;;  %v1426_v5 = vld [vmem:[%s1853_s1 + $0x18] sm:$0xff]   ;;  %v1427_v7 = vld [vmem:[%s1853_s1 + $0x10] sm:$0xff]   ;;  %s1210_s29 = sshll.u32 %s1857_s16, 2 }
   0xd   : > { %614 = vmatpush1.bf16.msra.mxu0 %v1422_v0  ;;  %1397 = vmatpush1.bf16.msra.mxu1 %v1422_v0  ;;  %s1579_s28 = scalar_lea.vmem %s1852_s0, %s1330_s23  ;;  %v1428_v9 = vld [vmem:[%s1853_s1 + $0x8] sm:$0xff]   ;;  %v1429_v10 = vld [vmem:[%s1853_s1] sm:$0xff]   ;;  %v1430_v11 = vld [vmem:[%s1853_s1 + $0x78] sm:$0xff]  }
   0xe   : > { %615 = vmatprep.subr.bf16.mxu0 %v1521_v1  ;;  %1382 = vmatprep.subr.bf16.mxu1 %v1521_v1  ;;  %v1440_v6 = vld [vmem:[%s1579_s28 + $0x4] ss:$8 sps:$4 sm:$0xff]   ;;  %v1443_v8 = vld [vmem:[%s1579_s28 + $0xd4] ss:$8 sps:$4 sm:$0xff]   ;;  %v1438_v19 = vld [vmem:[%s1579_s28] ss:$8 sps:$4 sm:$0xff]  }
   0xf   : > { %645 = vmatprep.mubr.bf16.mxu0 %v1440_v6  ;;  %749 = vmatprep.mubr.bf16.mxu1 %v1443_v8  ;;  %v1431_v12 = vld [vmem:[%s1853_s1 + $0x70] sm:$0xff]   ;;  %v1432_v13 = vld [vmem:[%s1853_s1 + $0x68] sm:$0xff]   ;;  %v1433_v14 = vld [vmem:[%s1853_s1 + $0x60] sm:$0xff]  }
  0x10   : > { %v1434_v15 = vld [vmem:[%s1853_s1 + $0x58] sm:$0xff]   ;;  %v1435_v16 = vld [vmem:[%s1853_s1 + $0x50] sm:$0xff]   ;;  %v1436_v17 = vld [vmem:[%s1853_s1 + $0x48] sm:$0xff]  }
  0x11   : > { %616 = vmatpush1.bf16.msra.mxu0 %v1423_v2  ;;  %1398 = vmatpush1.bf16.msra.mxu1 %v1423_v2  ;;  %v1437_v18 = vld [vmem:[%s1853_s1 + $0x40] sm:$0xff]   ;;  %v1441_v20 = vld [vmem:[%s1579_s28 + $0xd0] ss:$8 sps:$4 sm:$0xff]   ;;  %v1444_v21 = vld [vmem:[%s1579_s28 + $0x14] ss:$8 sps:$4 sm:$0xff]  }
  0x12   : > { %617 = vmatprep.subr.bf16.mxu0 %v1521_v1  ;;  %1383 = vmatprep.subr.bf16.mxu1 %v1521_v1  ;;  %v1447_v22 = vld [vmem:[%s1579_s28 + $0xe4] ss:$8 sps:$4 sm:$0xff]   ;;  %v1446_v23 = vld [vmem:[%s1579_s28 + $0x10] ss:$8 sps:$4 sm:$0xff]   ;;  %v1449_v24 = vld [vmem:[%s1579_s28 + $0xe0] ss:$8 sps:$4 sm:$0xff]  }
  0x13   : > { %v1450_v25 = vld [vmem:[%s1579_s28 + $0x24] ss:$8 sps:$4 sm:$0xff]   ;;  %v1453_v26 = vld [vmem:[%s1579_s28 + $0xf4] ss:$8 sps:$4 sm:$0xff]   ;;  %v1452_v27 = vld [vmem:[%s1579_s28 + $0x20] ss:$8 sps:$4 sm:$0xff]  }
  0x14   : > { %v1455_v28 = vld [vmem:[%s1579_s28 + $0xf0] ss:$8 sps:$4 sm:$0xff]   ;;  %v1456_v29 = vld [vmem:[%s1579_s28 + $0x34] ss:$8 sps:$4 sm:$0xff]   ;;  %v1459_v30 = vld [vmem:[%s1579_s28 + $0x104] ss:$8 sps:$4 sm:$0xff]  }
  0x15   : > { %618 = vmatpush1.bf16.msra.mxu0 %v1424_v3  ;;  %1399 = vmatpush1.bf16.msra.mxu1 %v1424_v3  ;;  %v1458_v31 = vld [vmem:[%s1579_s28 + $0x30] ss:$8 sps:$4 sm:$0xff]   ;;  %v1461_v32 = vld [vmem:[%s1579_s28 + $0x100] ss:$8 sps:$4 sm:$0xff]   ;;  %v1462_v33 = vld [vmem:[%s1579_s28 + $0x44] ss:$8 sps:$4 sm:$0xff]  }
  0x16   : > { %619 = vmatprep.subr.bf16.mxu0 %v1521_v1  ;;  %1384 = vmatprep.subr.bf16.mxu1 %v1521_v1  ;;  %v1465_v34 = vld [vmem:[%s1579_s28 + $0x114] ss:$8 sps:$4 sm:$0xff]   ;;  %v1464_v35 = vld [vmem:[%s1579_s28 + $0x40] ss:$8 sps:$4 sm:$0xff]   ;;  %v1467_v36 = vld [vmem:[%s1579_s28 + $0x110] ss:$8 sps:$4 sm:$0xff]  }
  0x17   : > { %v1468_v37 = vld [vmem:[%s1579_s28 + $0x54] ss:$8 sps:$4 sm:$0xff]   ;;  %v1471_v38 = vld [vmem:[%s1579_s28 + $0x124] ss:$8 sps:$4 sm:$0xff]   ;;  %v1470_v39 = vld [vmem:[%s1579_s28 + $0x50] ss:$8 sps:$4 sm:$0xff]  }
  0x18   : > { %v1473_v40 = vld [vmem:[%s1579_s28 + $0x120] ss:$8 sps:$4 sm:$0xff]   ;;  %v1474_v41 = vld [vmem:[%s1579_s28 + $0x64] ss:$8 sps:$4 sm:$0xff]   ;;  %v1477_v42 = vld [vmem:[%s1579_s28 + $0x134] ss:$8 sps:$4 sm:$0xff]  }
  0x19   : > { %620 = vmatpush1.bf16.msra.mxu0 %v1425_v4  ;;  %1400 = vmatpush1.bf16.msra.mxu1 %v1425_v4  ;;  %v1476_v43 = vld [vmem:[%s1579_s28 + $0x60] ss:$8 sps:$4 sm:$0xff]   ;;  %v1479_v44 = vld [vmem:[%s1579_s28 + $0x130] ss:$8 sps:$4 sm:$0xff]   ;;  %v1480_v45 = vld [vmem:[%s1579_s28 + $0x74] ss:$8 sps:$4 sm:$0xff]  }
  0x1a   : > { %621 = vmatprep.subr.bf16.mxu0 %v1521_v1  ;;  %1385 = vmatprep.subr.bf16.mxu1 %v1521_v1  ;;  %v1483_v46 = vld [vmem:[%s1579_s28 + $0x144] ss:$8 sps:$4 sm:$0xff]   ;;  %v1482_v47 = vld [vmem:[%s1579_s28 + $0x70] ss:$8 sps:$4 sm:$0xff]   ;;  %v1485_v48 = vld [vmem:[%s1579_s28 + $0x140] ss:$8 sps:$4 sm:$0xff]  }
  0x1b   : > { %v1486_v49 = vld [vmem:[%s1579_s28 + $0x84] ss:$8 sps:$4 sm:$0xff]   ;;  %v1489_v50 = vld [vmem:[%s1579_s28 + $0x154] ss:$8 sps:$4 sm:$0xff]   ;;  %v1488_v51 = vld [vmem:[%s1579_s28 + $0x80] ss:$8 sps:$4 sm:$0xff]  }
  0x1c   : > { %v1491_v52 = vld [vmem:[%s1579_s28 + $0x150] ss:$8 sps:$4 sm:$0xff]   ;;  %v1492_v53 = vld [vmem:[%s1579_s28 + $0x94] ss:$8 sps:$4 sm:$0xff]   ;;  %v1495_v54 = vld [vmem:[%s1579_s28 + $0x164] ss:$8 sps:$4 sm:$0xff]  }
  0x1d   : > { %622 = vmatpush1.bf16.msra.mxu0 %v1426_v5  ;;  %1401 = vmatpush1.bf16.msra.mxu1 %v1426_v5  ;;  %v1494_v55 = vld [vmem:[%s1579_s28 + $0x90] ss:$8 sps:$4 sm:$0xff]   ;;  %v1497_v56 = vld [vmem:[%s1579_s28 + $0x160] ss:$8 sps:$4 sm:$0xff]   ;;  %v1498_v57 = vld [vmem:[%s1579_s28 + $0xa4] ss:$8 sps:$4 sm:$0xff]  }
  0x1e   : > { %623 = vmatprep.subr.bf16.mxu0 %v1521_v1  ;;  %1386 = vmatprep.subr.bf16.mxu1 %v1521_v1  ;;  %v1501_v58 = vld [vmem:[%s1579_s28 + $0x174] ss:$8 sps:$4 sm:$0xff]   ;;  %v1500_v59 = vld [vmem:[%s1579_s28 + $0xa0] ss:$8 sps:$4 sm:$0xff]   ;;  %v1503_v60 = vld [vmem:[%s1579_s28 + $0x170] ss:$8 sps:$4 sm:$0xff]  }
  0x1f   : > { %v1504_v61 = vld [vmem:[%s1579_s28 + $0xb4] ss:$8 sps:$4 sm:$0xff]   ;;  %v1507_v62 = vld [vmem:[%s1579_s28 + $0x184] ss:$8 sps:$4 sm:$0xff]   ;;  %v1506_v63 = vld [vmem:[%s1579_s28 + $0xb0] ss:$8 sps:$4 sm:$0xff]  }
  0x20   : > { %v1509_v0 = vld [vmem:[%s1579_s28 + $0x180] ss:$8 sps:$4 sm:$0xff]  }
  0x21   : > { %624 = vmatpush1.bf16.msra.mxu0 %v1427_v7  ;;  %1402 = vmatpush1.bf16.msra.mxu1 %v1427_v7  ;;  %v1512_v2 = vld [vmem:[%s1579_s28 + $0xc0] ss:$8 sps:$4 sm:$0xff]  }
  0x22   : > { %625 = vmatprep.subr.bf16.mxu0 %v1521_v1  ;;  %1387 = vmatprep.subr.bf16.mxu1 %v1521_v1  ;;  %v1691_v3 = vld [vmem:[%s1854_s2] ss:$0 sm:$0xff] }
  0x25   : > { %626 = vmatpush1.bf16.msra.mxu0 %v1428_v9  ;;  %1403 = vmatpush1.bf16.msra.mxu1 %v1428_v9 }
  0x26   : > { %627 = vmatprep.subr.bf16.mxu0 %v1521_v1  ;;  %1388 = vmatprep.subr.bf16.mxu1 %v1521_v1 }
  0x29   : > { %628 = vmatpush1.bf16.msra.mxu0 %v1429_v10  ;;  %1404 = vmatpush1.bf16.msra.mxu1 %v1429_v10 }
  0x2a   : > { %629 = vmatprep.subr.bf16.mxu0 %v1521_v1  ;;  %1389 = vmatprep.subr.bf16.mxu1 %v1521_v1 }
  0x2d   : > { %630 = vmatpush2.bf16.msra.mxu0 %v1430_v11  ;;  %1405 = vmatpush2.bf16.msra.mxu1 %v1430_v11 }
  0x2e   : > { %631 = vmatprep.subr.bf16.mxu0 %v1521_v1  ;;  %1390 = vmatprep.subr.bf16.mxu1 %v1521_v1 }
  0x31   : > { %632 = vmatpush2.bf16.msra.mxu0 %v1431_v12  ;;  %1406 = vmatpush2.bf16.msra.mxu1 %v1431_v12 }
  0x32   : > { %633 = vmatprep.subr.bf16.mxu0 %v1521_v1  ;;  %1391 = vmatprep.subr.bf16.mxu1 %v1521_v1 }
  0x35   : > { %634 = vmatpush2.bf16.msra.mxu0 %v1432_v13  ;;  %1407 = vmatpush2.bf16.msra.mxu1 %v1432_v13 }
  0x36   : > { %635 = vmatprep.subr.bf16.mxu0 %v1521_v1  ;;  %1392 = vmatprep.subr.bf16.mxu1 %v1521_v1 }
  0x39   : > { %636 = vmatpush2.bf16.msra.mxu0 %v1433_v14  ;;  %1408 = vmatpush2.bf16.msra.mxu1 %v1433_v14 }
  0x3a   : > { %637 = vmatprep.subr.bf16.mxu0 %v1521_v1  ;;  %1393 = vmatprep.subr.bf16.mxu1 %v1521_v1 }
  0x3d   : > { %638 = vmatpush2.bf16.msra.mxu0 %v1434_v15  ;;  %1409 = vmatpush2.bf16.msra.mxu1 %v1434_v15 }
  0x3e   : > { %639 = vmatprep.subr.bf16.mxu0 %v1521_v1  ;;  %1394 = vmatprep.subr.bf16.mxu1 %v1521_v1 }
  0x41   : > { %640 = vmatpush2.bf16.msra.mxu0 %v1435_v16  ;;  %1410 = vmatpush2.bf16.msra.mxu1 %v1435_v16 }
  0x42   : > { %641 = vmatprep.subr.bf16.mxu0 %v1521_v1  ;;  %1395 = vmatprep.subr.bf16.mxu1 %v1521_v1 }
  0x45   : > { %642 = vmatpush2.bf16.msra.mxu0 %v1436_v17  ;;  %1411 = vmatpush2.bf16.msra.mxu1 %v1436_v17 }
  0x46   : > { %643 = vmatprep.subr.bf16.mxu0 %v1521_v1  ;;  %1396 = vmatprep.subr.bf16.mxu1 %v1521_v1  ;;  %v1510_v1 = vld [vmem:[%s1579_s28 + $0xc4] ss:$8 sps:$4 sm:$0xff]   ;;  %s1699_s28 = scalar_lea.vmem %s1855_s3, %s1210_s29 }
  0x49   : > { %644 = vmatpush2.bf16.msra.mxu0 %v1437_v18  ;;  %1412 = vmatpush2.bf16.msra.mxu1 %v1437_v18 }
  0x4c   : > { %646 = vmatmul.mubr.bf16.vlgmr.msra.gmra.mxu0 %v1438_v19  ;;  %750 = vmatmul.mubr.bf16.vlgmr.msra.gmra.mxu1 %v1441_v20 }
  0x4d   : > { %653 = vmatprep.mubr.bf16.mxu0 %v1444_v21  ;;  %757 = vmatprep.mubr.bf16.mxu1 %v1447_v22 }
  0x54   : > { %654 = vmatmul.mubr.bf16.gmra.mxu0 %v1446_v23  ;;  %758 = vmatmul.mubr.bf16.gmra.mxu1 %v1449_v24 }
  0x55   : > { %661 = vmatprep.mubr.bf16.mxu0 %v1450_v25  ;;  %765 = vmatprep.mubr.bf16.mxu1 %v1453_v26 }
  0x5c   : > { %662 = vmatmul.mubr.bf16.gmra.mxu0 %v1452_v27  ;;  %766 = vmatmul.mubr.bf16.gmra.mxu1 %v1455_v28 }
  0x5d   : > { %669 = vmatprep.mubr.bf16.mxu0 %v1456_v29  ;;  %773 = vmatprep.mubr.bf16.mxu1 %v1459_v30 }
  0x64   : > { %670 = vmatmul.mubr.bf16.gmra.mxu0 %v1458_v31  ;;  %774 = vmatmul.mubr.bf16.gmra.mxu1 %v1461_v32 }
  0x65   : > { %677 = vmatprep.mubr.bf16.mxu0 %v1462_v33  ;;  %781 = vmatprep.mubr.bf16.mxu1 %v1465_v34 }
  0x6c   : > { %678 = vmatmul.mubr.bf16.gmra.mxu0 %v1464_v35  ;;  %782 = vmatmul.mubr.bf16.gmra.mxu1 %v1467_v36 }
  0x6d   : > { %685 = vmatprep.mubr.bf16.mxu0 %v1468_v37  ;;  %789 = vmatprep.mubr.bf16.mxu1 %v1471_v38 }
  0x74   : > { %686 = vmatmul.mubr.bf16.gmra.mxu0 %v1470_v39  ;;  %790 = vmatmul.mubr.bf16.gmra.mxu1 %v1473_v40 }
  0x75   : > { %693 = vmatprep.mubr.bf16.mxu0 %v1474_v41  ;;  %797 = vmatprep.mubr.bf16.mxu1 %v1477_v42 }
  0x7c   : > { %694 = vmatmul.mubr.bf16.gmra.mxu0 %v1476_v43  ;;  %798 = vmatmul.mubr.bf16.gmra.mxu1 %v1479_v44 }
  0x7d   : > { %701 = vmatprep.mubr.bf16.mxu0 %v1480_v45  ;;  %805 = vmatprep.mubr.bf16.mxu1 %v1483_v46 }
  0x84   : > { %702 = vmatmul.mubr.bf16.gmra.mxu0 %v1482_v47  ;;  %806 = vmatmul.mubr.bf16.gmra.mxu1 %v1485_v48 }
  0x85   : > { %709 = vmatprep.mubr.bf16.mxu0 %v1486_v49  ;;  %813 = vmatprep.mubr.bf16.mxu1 %v1489_v50 }
  0x8c   : > { %710 = vmatmul.mubr.bf16.gmra.mxu0 %v1488_v51  ;;  %814 = vmatmul.mubr.bf16.gmra.mxu1 %v1491_v52 }
  0x8d   : > { %717 = vmatprep.mubr.bf16.mxu0 %v1492_v53  ;;  %821 = vmatprep.mubr.bf16.mxu1 %v1495_v54 }
  0x94   : > { %718 = vmatmul.mubr.bf16.gmra.mxu0 %v1494_v55  ;;  %822 = vmatmul.mubr.bf16.gmra.mxu1 %v1497_v56 }
  0x95   : > { %725 = vmatprep.mubr.bf16.mxu0 %v1498_v57  ;;  %829 = vmatprep.mubr.bf16.mxu1 %v1501_v58 }
  0x9c   : > { %726 = vmatmul.mubr.bf16.gmra.mxu0 %v1500_v59  ;;  %830 = vmatmul.mubr.bf16.gmra.mxu1 %v1503_v60 }
  0x9d   : > { %733 = vmatprep.mubr.bf16.mxu0 %v1504_v61  ;;  %837 = vmatprep.mubr.bf16.mxu1 %v1507_v62 }
  0xa4   : > { %734 = vmatmul.mubr.bf16.gmra.mxu0 %v1506_v63  ;;  %838 = vmatmul.mubr.bf16.gmra.mxu1 %v1509_v0 }
  0xa5   : > { %741 = vmatprep.mubr.bf16.mxu0 %v1510_v1 }
  0xac   : > { %742 = vmatmul.mubr.bf16.gmra.mxu0 %v1512_v2 }
 0x10c   : > { %v647_v4 = vpop.f32.mrf.mxu0  ;;  %v751_v5 = vpop.f32.mrf.mxu1 }
 0x10d   : > { %v648_v6 = vadd.f32 %v1691_v3, %v647_v4  ;;  %v752_v7 = vadd.f32 %v1691_v3, %v751_v5 }
 0x10e   : > { %v649_v8 = vpop.f32.mrf.mxu0  ;;  %v753_v9 = vpop.f32.mrf.mxu1 }
 0x10f   : > { %v846_v10 = vmax.f32 %v648_v6, 0.0  ;;  %v872_v11 = vmax.f32 %v752_v7, 0.0 }
 0x110   : > { %v650_v12 = vpop.f32.mrf.mxu0  ;;  %v754_v13 = vpop.f32.mrf.mxu1 }
 0x111   : > { %v1331_v14 = vpack.c.bf16 %v846_v10, %v846_v10  ;;  %v1357_v15 = vpack.c.bf16 %v872_v11, %v872_v11  ;;  %v651_v16 = vadd.f32 %v1691_v3, %v650_v12  ;;  %v755_v17 = vadd.f32 %v1691_v3, %v754_v13 }
 0x112   : > { %v652_v18 = vpop.f32.mrf.mxu0  ;;  %v756_v19 = vpop.f32.mrf.mxu1 }
 0x113   : > { %1097 = vst.msk [vmem:[%s1699_s28] sm:$0xf] %vm1096_vm0, %v1331_v14  ;;  %1123 = vst.msk [vmem:[%s1699_s28 + $0x68] sm:$0xf] %vm1096_vm0, %v1357_v15  ;;  %v847_v20 = vmax.f32 %v651_v16, 0.0  ;;  %v873_v21 = vmax.f32 %v755_v17, 0.0 }
 0x114   : > { %v655_v22 = vpop.f32.mrf.mxu0  ;;  %v759_v23 = vpop.f32.mrf.mxu1 }
 0x115   : > { %v1332_v24 = vpack.c.bf16 %v847_v20, %v847_v20  ;;  %v1358_v25 = vpack.c.bf16 %v873_v21, %v873_v21  ;;  %v656_v26 = vadd.f32 %v1691_v3, %v655_v22  ;;  %v760_v27 = vadd.f32 %v1691_v3, %v759_v23 }
 0x116   : > { %v657_v28 = vpop.f32.mrf.mxu0  ;;  %v761_v29 = vpop.f32.mrf.mxu1 }
 0x117   : > { %1098 = vst.msk [vmem:[%s1699_s28 + $0x4] sm:$0xf] %vm1096_vm0, %v1332_v24  ;;  %1124 = vst.msk [vmem:[%s1699_s28 + $0x6c] sm:$0xf] %vm1096_vm0, %v1358_v25  ;;  %v848_v30 = vmax.f32 %v656_v26, 0.0  ;;  %v874_v31 = vmax.f32 %v760_v27, 0.0 }
 0x118   : > { %v658_v32 = vpop.f32.mrf.mxu0  ;;  %v762_v33 = vpop.f32.mrf.mxu1 }
 0x119   : > { %v1333_v34 = vpack.c.bf16 %v848_v30, %v848_v30  ;;  %v1359_v35 = vpack.c.bf16 %v874_v31, %v874_v31  ;;  %v659_v36 = vadd.f32 %v1691_v3, %v658_v32  ;;  %v763_v37 = vadd.f32 %v1691_v3, %v762_v33 }
 0x11a   : > { %v660_v38 = vpop.f32.mrf.mxu0  ;;  %v764_v39 = vpop.f32.mrf.mxu1 }
 0x11b   : > { %1099 = vst.msk [vmem:[%s1699_s28 + $0x8] sm:$0xf] %vm1096_vm0, %v1333_v34  ;;  %1125 = vst.msk [vmem:[%s1699_s28 + $0x70] sm:$0xf] %vm1096_vm0, %v1359_v35  ;;  %v849_v40 = vmax.f32 %v659_v36, 0.0  ;;  %v875_v41 = vmax.f32 %v763_v37, 0.0 }
 0x11c   : > { %v663_v42 = vpop.f32.mrf.mxu0  ;;  %v767_v43 = vpop.f32.mrf.mxu1 }
 0x11d   : > { %v1334_v44 = vpack.c.bf16 %v849_v40, %v849_v40  ;;  %v1360_v45 = vpack.c.bf16 %v875_v41, %v875_v41  ;;  %v664_v46 = vadd.f32 %v1691_v3, %v663_v42  ;;  %v768_v47 = vadd.f32 %v1691_v3, %v767_v43 }
 0x11e   : > { %v665_v48 = vpop.f32.mrf.mxu0  ;;  %v769_v49 = vpop.f32.mrf.mxu1 }
 0x11f   : > { %1100 = vst.msk [vmem:[%s1699_s28 + $0xc] sm:$0xf] %vm1096_vm0, %v1334_v44  ;;  %1126 = vst.msk [vmem:[%s1699_s28 + $0x74] sm:$0xf] %vm1096_vm0, %v1360_v45  ;;  %v850_v50 = vmax.f32 %v664_v46, 0.0  ;;  %v876_v51 = vmax.f32 %v768_v47, 0.0 }
 0x120   : > { %v666_v52 = vpop.f32.mrf.mxu0  ;;  %v770_v53 = vpop.f32.mrf.mxu1 }
 0x121   : > { %v1335_v54 = vpack.c.bf16 %v850_v50, %v850_v50  ;;  %v1361_v55 = vpack.c.bf16 %v876_v51, %v876_v51  ;;  %v667_v56 = vadd.f32 %v1691_v3, %v666_v52  ;;  %v771_v57 = vadd.f32 %v1691_v3, %v770_v53 }
 0x122   : > { %v668_v58 = vpop.f32.mrf.mxu0  ;;  %v772_v59 = vpop.f32.mrf.mxu1 }
 0x123   : > { %1101 = vst.msk [vmem:[%s1699_s28 + $0x10] sm:$0xf] %vm1096_vm0, %v1335_v54  ;;  %1127 = vst.msk [vmem:[%s1699_s28 + $0x78] sm:$0xf] %vm1096_vm0, %v1361_v55  ;;  %v851_v60 = vmax.f32 %v667_v56, 0.0  ;;  %v877_v61 = vmax.f32 %v771_v57, 0.0 }
 0x124   : > { %v671_v62 = vpop.f32.mrf.mxu0  ;;  %v775_v63 = vpop.f32.mrf.mxu1 }
 0x125   : > { %v1336_v0 = vpack.c.bf16 %v851_v60, %v851_v60  ;;  %v1362_v1 = vpack.c.bf16 %v877_v61, %v877_v61  ;;  %v672_v2 = vadd.f32 %v1691_v3, %v671_v62  ;;  %v776_v4 = vadd.f32 %v1691_v3, %v775_v63 }
 0x126   : > { %v673_v5 = vpop.f32.mrf.mxu0  ;;  %v777_v6 = vpop.f32.mrf.mxu1 }
 0x127   : > { %1102 = vst.msk [vmem:[%s1699_s28 + $0x14] sm:$0xf] %vm1096_vm0, %v1336_v0  ;;  %1128 = vst.msk [vmem:[%s1699_s28 + $0x7c] sm:$0xf] %vm1096_vm0, %v1362_v1  ;;  %v852_v7 = vmax.f32 %v672_v2, 0.0  ;;  %v878_v8 = vmax.f32 %v776_v4, 0.0 }
 0x128   : > { %v674_v9 = vpop.f32.mrf.mxu0  ;;  %v778_v10 = vpop.f32.mrf.mxu1 }
 0x129   : > { %v1337_v11 = vpack.c.bf16 %v852_v7, %v852_v7  ;;  %v1363_v12 = vpack.c.bf16 %v878_v8, %v878_v8  ;;  %v675_v13 = vadd.f32 %v1691_v3, %v674_v9  ;;  %v779_v14 = vadd.f32 %v1691_v3, %v778_v10 }
 0x12a   : > { %v676_v15 = vpop.f32.mrf.mxu0  ;;  %v780_v16 = vpop.f32.mrf.mxu1 }
 0x12b   : > { %1103 = vst.msk [vmem:[%s1699_s28 + $0x18] sm:$0xf] %vm1096_vm0, %v1337_v11  ;;  %1129 = vst.msk [vmem:[%s1699_s28 + $0x80] sm:$0xf] %vm1096_vm0, %v1363_v12  ;;  %v853_v17 = vmax.f32 %v675_v13, 0.0  ;;  %v879_v18 = vmax.f32 %v779_v14, 0.0 }
 0x12c   : > { %v679_v19 = vpop.f32.mrf.mxu0  ;;  %v783_v20 = vpop.f32.mrf.mxu1 }
 0x12d   : > { %v1338_v21 = vpack.c.bf16 %v853_v17, %v853_v17  ;;  %v1364_v22 = vpack.c.bf16 %v879_v18, %v879_v18  ;;  %v680_v23 = vadd.f32 %v1691_v3, %v679_v19  ;;  %v784_v24 = vadd.f32 %v1691_v3, %v783_v20 }
 0x12e   : > { %v681_v25 = vpop.f32.mrf.mxu0  ;;  %v785_v26 = vpop.f32.mrf.mxu1 }
 0x12f   : > { %1104 = vst.msk [vmem:[%s1699_s28 + $0x1c] sm:$0xf] %vm1096_vm0, %v1338_v21  ;;  %1130 = vst.msk [vmem:[%s1699_s28 + $0x84] sm:$0xf] %vm1096_vm0, %v1364_v22  ;;  %v854_v27 = vmax.f32 %v680_v23, 0.0  ;;  %v880_v28 = vmax.f32 %v784_v24, 0.0 }
 0x130   : > { %v682_v29 = vpop.f32.mrf.mxu0  ;;  %v786_v30 = vpop.f32.mrf.mxu1 }
 0x131   : > { %v1339_v31 = vpack.c.bf16 %v854_v27, %v854_v27  ;;  %v1365_v32 = vpack.c.bf16 %v880_v28, %v880_v28  ;;  %v683_v33 = vadd.f32 %v1691_v3, %v682_v29  ;;  %v787_v34 = vadd.f32 %v1691_v3, %v786_v30 }
 0x132   : > { %v684_v35 = vpop.f32.mrf.mxu0  ;;  %v788_v36 = vpop.f32.mrf.mxu1 }
 0x133   : > { %1105 = vst.msk [vmem:[%s1699_s28 + $0x20] sm:$0xf] %vm1096_vm0, %v1339_v31  ;;  %1131 = vst.msk [vmem:[%s1699_s28 + $0x88] sm:$0xf] %vm1096_vm0, %v1365_v32  ;;  %v855_v37 = vmax.f32 %v683_v33, 0.0  ;;  %v881_v38 = vmax.f32 %v787_v34, 0.0 }
 0x134   : > { %v687_v39 = vpop.f32.mrf.mxu0  ;;  %v791_v40 = vpop.f32.mrf.mxu1 }
 0x135   : > { %v1340_v41 = vpack.c.bf16 %v855_v37, %v855_v37  ;;  %v1366_v42 = vpack.c.bf16 %v881_v38, %v881_v38  ;;  %v688_v43 = vadd.f32 %v1691_v3, %v687_v39  ;;  %v792_v44 = vadd.f32 %v1691_v3, %v791_v40 }
 0x136   : > { %v689_v45 = vpop.f32.mrf.mxu0  ;;  %v793_v46 = vpop.f32.mrf.mxu1 }
 0x137   : > { %1106 = vst.msk [vmem:[%s1699_s28 + $0x24] sm:$0xf] %vm1096_vm0, %v1340_v41  ;;  %1132 = vst.msk [vmem:[%s1699_s28 + $0x8c] sm:$0xf] %vm1096_vm0, %v1366_v42  ;;  %v856_v47 = vmax.f32 %v688_v43, 0.0  ;;  %v882_v48 = vmax.f32 %v792_v44, 0.0 }
 0x138   : > { %v690_v49 = vpop.f32.mrf.mxu0  ;;  %v794_v50 = vpop.f32.mrf.mxu1 }
 0x139   : > { %v1341_v51 = vpack.c.bf16 %v856_v47, %v856_v47  ;;  %v1367_v52 = vpack.c.bf16 %v882_v48, %v882_v48  ;;  %v691_v53 = vadd.f32 %v1691_v3, %v690_v49  ;;  %v795_v54 = vadd.f32 %v1691_v3, %v794_v50 }
 0x13a   : > { %v692_v55 = vpop.f32.mrf.mxu0  ;;  %v796_v56 = vpop.f32.mrf.mxu1 }
 0x13b   : > { %1107 = vst.msk [vmem:[%s1699_s28 + $0x28] sm:$0xf] %vm1096_vm0, %v1341_v51  ;;  %1133 = vst.msk [vmem:[%s1699_s28 + $0x90] sm:$0xf] %vm1096_vm0, %v1367_v52  ;;  %v857_v57 = vmax.f32 %v691_v53, 0.0  ;;  %v883_v58 = vmax.f32 %v795_v54, 0.0 }
 0x13c   : > { %v695_v59 = vpop.f32.mrf.mxu0  ;;  %v799_v60 = vpop.f32.mrf.mxu1 }
 0x13d   : > { %v1342_v61 = vpack.c.bf16 %v857_v57, %v857_v57  ;;  %v1368_v62 = vpack.c.bf16 %v883_v58, %v883_v58  ;;  %v696_v63 = vadd.f32 %v1691_v3, %v695_v59  ;;  %v800_v0 = vadd.f32 %v1691_v3, %v799_v60 }
 0x13e   : > { %v697_v1 = vpop.f32.mrf.mxu0  ;;  %v801_v2 = vpop.f32.mrf.mxu1 }
 0x13f   : > { %1108 = vst.msk [vmem:[%s1699_s28 + $0x2c] sm:$0xf] %vm1096_vm0, %v1342_v61  ;;  %1134 = vst.msk [vmem:[%s1699_s28 + $0x94] sm:$0xf] %vm1096_vm0, %v1368_v62  ;;  %v858_v4 = vmax.f32 %v696_v63, 0.0  ;;  %v884_v5 = vmax.f32 %v800_v0, 0.0 }
 0x140   : > { %v698_v6 = vpop.f32.mrf.mxu0  ;;  %v802_v7 = vpop.f32.mrf.mxu1 }
 0x141   : > { %v1343_v8 = vpack.c.bf16 %v858_v4, %v858_v4  ;;  %v1369_v9 = vpack.c.bf16 %v884_v5, %v884_v5  ;;  %v699_v10 = vadd.f32 %v1691_v3, %v698_v6  ;;  %v803_v11 = vadd.f32 %v1691_v3, %v802_v7 }
 0x142   : > { %v700_v12 = vpop.f32.mrf.mxu0  ;;  %v804_v13 = vpop.f32.mrf.mxu1 }
 0x143   : > { %1109 = vst.msk [vmem:[%s1699_s28 + $0x30] sm:$0xf] %vm1096_vm0, %v1343_v8  ;;  %1135 = vst.msk [vmem:[%s1699_s28 + $0x98] sm:$0xf] %vm1096_vm0, %v1369_v9  ;;  %v859_v14 = vmax.f32 %v699_v10, 0.0  ;;  %v885_v15 = vmax.f32 %v803_v11, 0.0 }
 0x144   : > { %v703_v16 = vpop.f32.mrf.mxu0  ;;  %v807_v17 = vpop.f32.mrf.mxu1 }
 0x145   : > { %v1344_v18 = vpack.c.bf16 %v859_v14, %v859_v14  ;;  %v1370_v19 = vpack.c.bf16 %v885_v15, %v885_v15  ;;  %v704_v20 = vadd.f32 %v1691_v3, %v703_v16  ;;  %v808_v21 = vadd.f32 %v1691_v3, %v807_v17 }
 0x146   : > { %v705_v22 = vpop.f32.mrf.mxu0  ;;  %v809_v23 = vpop.f32.mrf.mxu1 }
 0x147   : > { %1110 = vst.msk [vmem:[%s1699_s28 + $0x34] sm:$0xf] %vm1096_vm0, %v1344_v18  ;;  %1136 = vst.msk [vmem:[%s1699_s28 + $0x9c] sm:$0xf] %vm1096_vm0, %v1370_v19  ;;  %v860_v24 = vmax.f32 %v704_v20, 0.0  ;;  %v886_v25 = vmax.f32 %v808_v21, 0.0 }
 0x148   : > { %v706_v26 = vpop.f32.mrf.mxu0  ;;  %v810_v27 = vpop.f32.mrf.mxu1 }
 0x149   : > { %v1345_v28 = vpack.c.bf16 %v860_v24, %v860_v24  ;;  %v1371_v29 = vpack.c.bf16 %v886_v25, %v886_v25  ;;  %v707_v30 = vadd.f32 %v1691_v3, %v706_v26  ;;  %v811_v31 = vadd.f32 %v1691_v3, %v810_v27 }
 0x14a   : > { %v708_v32 = vpop.f32.mrf.mxu0  ;;  %v812_v33 = vpop.f32.mrf.mxu1 }
 0x14b   : > { %1111 = vst.msk [vmem:[%s1699_s28 + $0x38] sm:$0xf] %vm1096_vm0, %v1345_v28  ;;  %1137 = vst.msk [vmem:[%s1699_s28 + $0xa0] sm:$0xf] %vm1096_vm0, %v1371_v29  ;;  %v861_v34 = vmax.f32 %v707_v30, 0.0  ;;  %v887_v35 = vmax.f32 %v811_v31, 0.0 }
 0x14c   : > { %v711_v36 = vpop.f32.mrf.mxu0  ;;  %v815_v37 = vpop.f32.mrf.mxu1 }
 0x14d   : > { %v1346_v38 = vpack.c.bf16 %v861_v34, %v861_v34  ;;  %v1372_v39 = vpack.c.bf16 %v887_v35, %v887_v35  ;;  %v712_v40 = vadd.f32 %v1691_v3, %v711_v36  ;;  %v816_v41 = vadd.f32 %v1691_v3, %v815_v37 }
 0x14e   : > { %v713_v42 = vpop.f32.mrf.mxu0  ;;  %v817_v43 = vpop.f32.mrf.mxu1 }
 0x14f   : > { %1112 = vst.msk [vmem:[%s1699_s28 + $0x3c] sm:$0xf] %vm1096_vm0, %v1346_v38  ;;  %1138 = vst.msk [vmem:[%s1699_s28 + $0xa4] sm:$0xf] %vm1096_vm0, %v1372_v39  ;;  %v862_v44 = vmax.f32 %v712_v40, 0.0  ;;  %v888_v45 = vmax.f32 %v816_v41, 0.0 }
 0x150   : > { %v714_v46 = vpop.f32.mrf.mxu0  ;;  %v818_v47 = vpop.f32.mrf.mxu1 }
 0x151   : > { %v1347_v48 = vpack.c.bf16 %v862_v44, %v862_v44  ;;  %v1373_v49 = vpack.c.bf16 %v888_v45, %v888_v45  ;;  %v715_v50 = vadd.f32 %v1691_v3, %v714_v46  ;;  %v819_v51 = vadd.f32 %v1691_v3, %v818_v47 }
 0x152   : > { %v716_v52 = vpop.f32.mrf.mxu0  ;;  %v820_v53 = vpop.f32.mrf.mxu1 }
 0x153   : > { %1113 = vst.msk [vmem:[%s1699_s28 + $0x40] sm:$0xf] %vm1096_vm0, %v1347_v48  ;;  %1139 = vst.msk [vmem:[%s1699_s28 + $0xa8] sm:$0xf] %vm1096_vm0, %v1373_v49  ;;  %v863_v54 = vmax.f32 %v715_v50, 0.0  ;;  %v889_v55 = vmax.f32 %v819_v51, 0.0 }
 0x154   : > { %v719_v56 = vpop.f32.mrf.mxu0  ;;  %v823_v57 = vpop.f32.mrf.mxu1 }
 0x155   : > { %v1348_v58 = vpack.c.bf16 %v863_v54, %v863_v54  ;;  %v1374_v59 = vpack.c.bf16 %v889_v55, %v889_v55  ;;  %v720_v60 = vadd.f32 %v1691_v3, %v719_v56  ;;  %v824_v61 = vadd.f32 %v1691_v3, %v823_v57 }
 0x156   : > { %v721_v62 = vpop.f32.mrf.mxu0  ;;  %v825_v63 = vpop.f32.mrf.mxu1 }
 0x157   : > { %1114 = vst.msk [vmem:[%s1699_s28 + $0x44] sm:$0xf] %vm1096_vm0, %v1348_v58  ;;  %1140 = vst.msk [vmem:[%s1699_s28 + $0xac] sm:$0xf] %vm1096_vm0, %v1374_v59  ;;  %v864_v0 = vmax.f32 %v720_v60, 0.0  ;;  %v890_v1 = vmax.f32 %v824_v61, 0.0 }
 0x158   : > { %v722_v2 = vpop.f32.mrf.mxu0  ;;  %v826_v4 = vpop.f32.mrf.mxu1 }
 0x159   : > { %v1349_v5 = vpack.c.bf16 %v864_v0, %v864_v0  ;;  %v1375_v6 = vpack.c.bf16 %v890_v1, %v890_v1  ;;  %v723_v7 = vadd.f32 %v1691_v3, %v722_v2  ;;  %v827_v8 = vadd.f32 %v1691_v3, %v826_v4 }
 0x15a   : > { %v724_v9 = vpop.f32.mrf.mxu0  ;;  %v828_v10 = vpop.f32.mrf.mxu1 }
 0x15b   : > { %1115 = vst.msk [vmem:[%s1699_s28 + $0x48] sm:$0xf] %vm1096_vm0, %v1349_v5  ;;  %1141 = vst.msk [vmem:[%s1699_s28 + $0xb0] sm:$0xf] %vm1096_vm0, %v1375_v6  ;;  %v865_v11 = vmax.f32 %v723_v7, 0.0  ;;  %v891_v12 = vmax.f32 %v827_v8, 0.0 }
 0x15c   : > { %v727_v13 = vpop.f32.mrf.mxu0  ;;  %v831_v14 = vpop.f32.mrf.mxu1 }
 0x15d   : > { %v1350_v15 = vpack.c.bf16 %v865_v11, %v865_v11  ;;  %v1376_v16 = vpack.c.bf16 %v891_v12, %v891_v12  ;;  %v728_v17 = vadd.f32 %v1691_v3, %v727_v13  ;;  %v832_v18 = vadd.f32 %v1691_v3, %v831_v14 }
 0x15e   : > { %v729_v19 = vpop.f32.mrf.mxu0  ;;  %v833_v20 = vpop.f32.mrf.mxu1 }
 0x15f   : > { %1116 = vst.msk [vmem:[%s1699_s28 + $0x4c] sm:$0xf] %vm1096_vm0, %v1350_v15  ;;  %1142 = vst.msk [vmem:[%s1699_s28 + $0xb4] sm:$0xf] %vm1096_vm0, %v1376_v16  ;;  %v866_v21 = vmax.f32 %v728_v17, 0.0  ;;  %v892_v22 = vmax.f32 %v832_v18, 0.0 }
 0x160   : > { %v730_v23 = vpop.f32.mrf.mxu0  ;;  %v834_v24 = vpop.f32.mrf.mxu1 }
 0x161   : > { %v1351_v25 = vpack.c.bf16 %v866_v21, %v866_v21  ;;  %v1377_v26 = vpack.c.bf16 %v892_v22, %v892_v22  ;;  %v731_v27 = vadd.f32 %v1691_v3, %v730_v23  ;;  %v835_v28 = vadd.f32 %v1691_v3, %v834_v24 }
 0x162   : > { %v732_v29 = vpop.f32.mrf.mxu0  ;;  %v836_v30 = vpop.f32.mrf.mxu1 }
 0x163   : > { %1117 = vst.msk [vmem:[%s1699_s28 + $0x50] sm:$0xf] %vm1096_vm0, %v1351_v25  ;;  %1143 = vst.msk [vmem:[%s1699_s28 + $0xb8] sm:$0xf] %vm1096_vm0, %v1377_v26  ;;  %v867_v31 = vmax.f32 %v731_v27, 0.0  ;;  %v893_v32 = vmax.f32 %v835_v28, 0.0 }
 0x164   : > { %v735_v33 = vpop.f32.mrf.mxu0  ;;  %v839_v34 = vpop.f32.mrf.mxu1 }
 0x165   : > { %v1352_v35 = vpack.c.bf16 %v867_v31, %v867_v31  ;;  %v1378_v36 = vpack.c.bf16 %v893_v32, %v893_v32  ;;  %v736_v37 = vadd.f32 %v1691_v3, %v735_v33  ;;  %v840_v38 = vadd.f32 %v1691_v3, %v839_v34 }
 0x166   : > { %v737_v39 = vpop.f32.mrf.mxu0  ;;  %v841_v40 = vpop.f32.mrf.mxu1 }
 0x167   : > { %1118 = vst.msk [vmem:[%s1699_s28 + $0x54] sm:$0xf] %vm1096_vm0, %v1352_v35  ;;  %1144 = vst.msk [vmem:[%s1699_s28 + $0xbc] sm:$0xf] %vm1096_vm0, %v1378_v36  ;;  %v868_v41 = vmax.f32 %v736_v37, 0.0  ;;  %v894_v42 = vmax.f32 %v840_v38, 0.0 }
 0x168   : > { %v738_v43 = vpop.f32.mrf.mxu0  ;;  %v842_v44 = vpop.f32.mrf.mxu1 }
 0x169   : > { %v1353_v45 = vpack.c.bf16 %v868_v41, %v868_v41  ;;  %v1379_v46 = vpack.c.bf16 %v894_v42, %v894_v42  ;;  %v739_v47 = vadd.f32 %v1691_v3, %v738_v43  ;;  %v843_v48 = vadd.f32 %v1691_v3, %v842_v44 }
 0x16a   : > { %v740_v49 = vpop.f32.mrf.mxu0  ;;  %v844_v50 = vpop.f32.mrf.mxu1 }
 0x16b   : > { %1119 = vst.msk [vmem:[%s1699_s28 + $0x58] sm:$0xf] %vm1096_vm0, %v1353_v45  ;;  %1145 = vst.msk [vmem:[%s1699_s28 + $0xc0] sm:$0xf] %vm1096_vm0, %v1379_v46  ;;  %v869_v51 = vmax.f32 %v739_v47, 0.0  ;;  %v895_v52 = vmax.f32 %v843_v48, 0.0 }
 0x16c   : > { %v743_v53 = vpop.f32.mrf.mxu0 }
 0x16d   : > { %v1354_v54 = vpack.c.bf16 %v869_v51, %v869_v51  ;;  %v1380_v55 = vpack.c.bf16 %v895_v52, %v895_v52  ;;  %v744_v56 = vadd.f32 %v1691_v3, %v743_v53 }
 0x16e   : > { %v745_v57 = vpop.f32.mrf.mxu0 }
 0x16f   : > { %1120 = vst.msk [vmem:[%s1699_s28 + $0x5c] sm:$0xf] %vm1096_vm0, %v1354_v54  ;;  %1146 = vst.msk [vmem:[%s1699_s28 + $0xc4] sm:$0xf] %vm1096_vm0, %v1380_v55  ;;  %v870_v58 = vmax.f32 %v744_v56, 0.0 }
 0x170   : > { %v746_v59 = vpop.f32.mrf.mxu0 }
 0x171   : > { %v1355_v60 = vpack.c.bf16 %v870_v58, %v870_v58  ;;  %v747_v61 = vadd.f32 %v1691_v3, %v746_v59 }
 0x172   : > { %v748_v62 = vpop.f32.mrf.mxu0 }
 0x173   : > { %1121 = vst.msk [vmem:[%s1699_s28 + $0x60] sm:$0xf] %vm1096_vm0, %v1355_v60  ;;  %v871_v63 = vmax.f32 %v747_v61, 0.0 }
 0x175   : > { %v1356_v0 = vpack.c.bf16 %v871_v63, %v871_v63 }
 0x177   : > { %1122 = vst.msk [vmem:[%s1699_s28 + $0x64] sm:$0xf] %vm1096_vm0, %v1356_v0 }
 0x178 PF: > { %s13_s12 = sadd.s32 1, %s1519_s12  }
 0x179   : > { %p10_p4 = scmp.ge.s32.totalorder %s13_s12, 4  }
 0x17b   :  { %12 = sbr.rel (!%p10_p4) target bundleno = 1 (0x1), region = 62 }

// kernel: _net_forward_pallas_jit.4
= control target key start
LH: loop header
LB: loop body
LE: loop exit
PB: predicated region body
PF: predicated region fallthrough
CT: control target
= control target key end

     0   :  { %s1176_s12 = smov 0   ;;  %s1364_s0 = inlined_call_operand.vmem [shape: bf16[192,512], index: 0, kind: input, shape index: {}]   ;;  %s1365_s1 = inlined_call_operand.vmem [shape: bf16[512,64], index: 1, kind: input, shape index: {}]   ;;  %s1366_s2 = inlined_call_operand.vmem [shape: f32[1,64], index: 2, kind: input, shape index: {}]   ;;  %s1367_s3 = inlined_call_operand.vmem [shape: bf16[192,64], index: 3, kind: output, shape index: {}]  }
   0x1 LB: > { %s876_s13 = sadd.s32 4294967295, %s1154_s12   ;;  %p880_p0 = scmp.ge.s32.totalorder %s1154_s12, 1  ;;  %s1154_s12 = sphi %s1176_s12, %s13_s12  }
   0x2   : > { %p139_p1 = scmp.lt.s32.totalorder %s1154_s12, 3 }
   0x4   : > { %p140_p2 = pnand %p880_p0, %p139_p1 }
   0x5   : > { %s164_s19 = smul.u32 (!%p140_p2), 12, %s876_s13 }
   0x6   : > { %143 = sbr.rel (%p140_p2) target bundleno = 295 (0x127), region = 32 }
   0x7   : > { %p165_p3 = scmp.lt.s32.totalorder (!%p140_p2), %s164_s19, 23 }
   0xb   : > { %v1080_v0 = vld [vmem:[%s1365_s1 + $0x78] sm:$0xff]   ;;  %v1084_v4 = vld [vmem:[%s1365_s1 + $0x70] sm:$0xff]   ;;  %v1088_v8 = vld [vmem:[%s1365_s1 + $0x68] sm:$0xff]   ;;  %s1369_s19 = smov (!%p165_p3, %s164_s19), 23  ;;  %vm807_vm0 = vcmask 519168  }
   0xc   : > { %v1081_v1 = vld [vmem:[%s1365_s1 + $0xf8] sm:$0xff]   ;;  %968 = vmatprep.subr.bf16.mxu0 %v1080_v0  ;;  %v1085_v5 = vld [vmem:[%s1365_s1 + $0xf0] sm:$0xff]   ;;  %v1089_v9 = vld [vmem:[%s1365_s1 + $0xe8] sm:$0xff]   ;;  %s955_s18 = sshll.u32 %s1369_s19, 4  ;;  %s883_s7 = sshll.u32 %s1369_s19, 2 }
   0xd   : > { %v1082_v2 = vld [vmem:[%s1365_s1 + $0x38] sm:$0xff]   ;;  %1020 = vmatprep.subr.bf16.mxu1 %v1081_v1  ;;  %v1086_v6 = vld [vmem:[%s1365_s1 + $0x30] sm:$0xff]   ;;  %v1090_v10 = vld [vmem:[%s1365_s1 + $0x28] sm:$0xff]   ;;  %s1282_s13 = scalar_lea.vmem %s1364_s0, %s955_s18  ;;  %s1325_s10 = scalar_lea.vmem %s1367_s3, %s883_s7 }
   0xe   : > { %v1083_v3 = vld [vmem:[%s1365_s1 + $0xb8] sm:$0xff]   ;;  %969 = vmatpush3.bf16.msra.mxu0 %v1082_v2  ;;  %v1087_v7 = vld [vmem:[%s1365_s1 + $0xb0] sm:$0xff]   ;;  %v1091_v11 = vld [vmem:[%s1365_s1 + $0xa8] sm:$0xff]  }
   0xf   : > { %1021 = vmatpush3.bf16.msra.mxu1 %v1083_v3  ;;  %970 = vmatprep.subr.bf16.mxu0 %v1084_v4  ;;  %v1092_v12 = vld [vmem:[%s1365_s1 + $0x60] sm:$0xff]   ;;  %v1096_v16 = vld [vmem:[%s1365_s1 + $0x58] sm:$0xff]   ;;  %v1100_v20 = vld [vmem:[%s1365_s1 + $0x50] sm:$0xff]  }
  0x10   : > { %1022 = vmatprep.subr.bf16.mxu1 %v1085_v5  ;;  %v1093_v13 = vld [vmem:[%s1365_s1 + $0xe0] sm:$0xff]   ;;  %v1097_v17 = vld [vmem:[%s1365_s1 + $0xd8] sm:$0xff]   ;;  %v1101_v21 = vld [vmem:[%s1365_s1 + $0xd0] sm:$0xff]  }
  0x11   : > { %v1094_v14 = vld [vmem:[%s1365_s1 + $0x20] sm:$0xff]   ;;  %v1098_v18 = vld [vmem:[%s1365_s1 + $0x18] sm:$0xff]   ;;  %v1102_v22 = vld [vmem:[%s1365_s1 + $0x10] sm:$0xff]  }
  0x12   : > { %971 = vmatpush3.bf16.msra.mxu0 %v1086_v6  ;;  %v1095_v15 = vld [vmem:[%s1365_s1 + $0xa0] sm:$0xff]   ;;  %v1099_v19 = vld [vmem:[%s1365_s1 + $0x98] sm:$0xff]   ;;  %v1103_v23 = vld [vmem:[%s1365_s1 + $0x90] sm:$0xff]  }
  0x13   : > { %1023 = vmatpush3.bf16.msra.mxu1 %v1087_v7  ;;  %972 = vmatprep.subr.bf16.mxu0 %v1088_v8  ;;  %v1104_v24 = vld [vmem:[%s1365_s1 + $0x48] sm:$0xff]   ;;  %v1108_v28 = vld [vmem:[%s1365_s1 + $0x40] sm:$0xff]  }
  0x14   : > { %1024 = vmatprep.subr.bf16.mxu1 %v1089_v9  ;;  %v1105_v25 = vld [vmem:[%s1365_s1 + $0xc8] sm:$0xff]   ;;  %v1109_v29 = vld [vmem:[%s1365_s1 + $0xc0] sm:$0xff]  }
  0x15   : > { %v1106_v26 = vld [vmem:[%s1365_s1 + $0x8] sm:$0xff]   ;;  %v1110_v30 = vld [vmem:[%s1365_s1] sm:$0xff]  }
  0x16   : > { %973 = vmatpush3.bf16.msra.mxu0 %v1090_v10  ;;  %v1107_v27 = vld [vmem:[%s1365_s1 + $0x88] sm:$0xff]   ;;  %v1111_v31 = vld [vmem:[%s1365_s1 + $0x80] sm:$0xff]  }
  0x17   : > { %1025 = vmatpush3.bf16.msra.mxu1 %v1091_v11  ;;  %974 = vmatprep.subr.bf16.mxu0 %v1092_v12  ;;  %v1112_v32 = vld [vmem:[%s1282_s13] ss:$16 sps:$4 sm:$0xff]   ;;  %v1114_v33 = vld [vmem:[%s1282_s13 + $0x4] ss:$16 sps:$4 sm:$0xff]   ;;  %v1115_v34 = vld [vmem:[%s1282_s13 + $0x8] ss:$16 sps:$4 sm:$0xff]  }
  0x18   : > { %1026 = vmatprep.subr.bf16.mxu1 %v1093_v13  ;;  %v1117_v35 = vld [vmem:[%s1282_s13 + $0xc] ss:$16 sps:$4 sm:$0xff]   ;;  %617 = vmatprep.mubr.bf16.mxu0 %v1114_v33  ;;  %v1118_v36 = vld [vmem:[%s1282_s13 + $0x24] ss:$16 sps:$4 sm:$0xff]   ;;  %v1122_v38 = vld [vmem:[%s1282_s13 + $0x20] ss:$16 sps:$4 sm:$0xff]  }
  0x19   : > { %698 = vmatprep.mubr.bf16.mxu1 %v1117_v35  ;;  %v1120_v37 = vld [vmem:[%s1282_s13 + $0x2c] ss:$16 sps:$4 sm:$0xff]   ;;  %v1123_v39 = vld [vmem:[%s1282_s13 + $0x28] ss:$16 sps:$4 sm:$0xff]   ;;  %v1124_v40 = vld [vmem:[%s1282_s13 + $0x44] ss:$16 sps:$4 sm:$0xff]  }
  0x1a   : > { %975 = vmatpush3.bf16.msra.mxu0 %v1094_v14  ;;  %v1126_v41 = vld [vmem:[%s1282_s13 + $0x4c] ss:$16 sps:$4 sm:$0xff]   ;;  %v1128_v42 = vld [vmem:[%s1282_s13 + $0x40] ss:$16 sps:$4 sm:$0xff]   ;;  %v1129_v43 = vld [vmem:[%s1282_s13 + $0x48] ss:$16 sps:$4 sm:$0xff]  }
  0x1b   : > { %1027 = vmatpush3.bf16.msra.mxu1 %v1095_v15  ;;  %976 = vmatprep.subr.bf16.mxu0 %v1096_v16  ;;  %v1130_v44 = vld [vmem:[%s1282_s13 + $0x64] ss:$16 sps:$4 sm:$0xff]   ;;  %v1132_v45 = vld [vmem:[%s1282_s13 + $0x6c] ss:$16 sps:$4 sm:$0xff]   ;;  %v1134_v46 = vld [vmem:[%s1282_s13 + $0x60] ss:$16 sps:$4 sm:$0xff]  }
  0x1c   : > { %1028 = vmatprep.subr.bf16.mxu1 %v1097_v17  ;;  %v1135_v47 = vld [vmem:[%s1282_s13 + $0x68] ss:$16 sps:$4 sm:$0xff]   ;;  %v1136_v48 = vld [vmem:[%s1282_s13 + $0x84] ss:$16 sps:$4 sm:$0xff]   ;;  %v1138_v49 = vld [vmem:[%s1282_s13 + $0x8c] ss:$16 sps:$4 sm:$0xff]  }
  0x1d   : > { %v1140_v50 = vld [vmem:[%s1282_s13 + $0x80] ss:$16 sps:$4 sm:$0xff]   ;;  %v1141_v51 = vld [vmem:[%s1282_s13 + $0x88] ss:$16 sps:$4 sm:$0xff]   ;;  %v1142_v52 = vld [vmem:[%s1282_s13 + $0xa4] ss:$16 sps:$4 sm:$0xff]  }
  0x1e   : > { %977 = vmatpush3.bf16.msra.mxu0 %v1098_v18  ;;  %v1144_v53 = vld [vmem:[%s1282_s13 + $0xac] ss:$16 sps:$4 sm:$0xff]   ;;  %v1146_v54 = vld [vmem:[%s1282_s13 + $0xa0] ss:$16 sps:$4 sm:$0xff]   ;;  %v1147_v55 = vld [vmem:[%s1282_s13 + $0xa8] ss:$16 sps:$4 sm:$0xff]  }
  0x1f   : > { %1029 = vmatpush3.bf16.msra.mxu1 %v1099_v19  ;;  %978 = vmatprep.subr.bf16.mxu0 %v1100_v20  ;;  %v1317_v58 = vld [vmem:[%s1366_s2] ss:$0 sm:$0xff] }
  0x20   : > { %1030 = vmatprep.subr.bf16.mxu1 %v1101_v21 }
  0x22   : > { %979 = vmatpush3.bf16.msra.mxu0 %v1102_v22 }
  0x23   : > { %1031 = vmatpush3.bf16.msra.mxu1 %v1103_v23  ;;  %980 = vmatprep.subr.bf16.mxu0 %v1104_v24 }
  0x24   : > { %1032 = vmatprep.subr.bf16.mxu1 %v1105_v25 }
  0x26   : > { %981 = vmatpush3.bf16.msra.mxu0 %v1106_v26 }
  0x27   : > { %1033 = vmatpush3.bf16.msra.mxu1 %v1107_v27  ;;  %982 = vmatprep.subr.bf16.mxu0 %v1108_v28 }
  0x28   : > { %1034 = vmatprep.subr.bf16.mxu1 %v1109_v29 }
  0x2a   : > { %983 = vmatpush3.bf16.msra.mxu0 %v1110_v30 }
  0x2b   : > { %1035 = vmatpush3.bf16.msra.mxu1 %v1111_v31 }
  0x2d   : > { %618 = vmatmul.mubr.bf16.vlgmr.msra.gmra.mxu0 %v1112_v32 }
  0x2e   : > { %699 = vmatmul.mubr.bf16.vlgmr.msra.gmra.mxu1 %v1115_v34  ;;  %625 = vmatprep.mubr.bf16.mxu0 %v1118_v36 }
  0x2f   : > { %706 = vmatprep.mubr.bf16.mxu1 %v1120_v37 }
  0x35   : > { %626 = vmatmul.mubr.bf16.gmra.mxu0 %v1122_v38 }
  0x36   : > { %707 = vmatmul.mubr.bf16.gmra.mxu1 %v1123_v39  ;;  %633 = vmatprep.mubr.bf16.mxu0 %v1124_v40 }
  0x37   : > { %714 = vmatprep.mubr.bf16.mxu1 %v1126_v41 }
  0x3d   : > { %634 = vmatmul.mubr.bf16.gmra.mxu0 %v1128_v42 }
  0x3e   : > { %715 = vmatmul.mubr.bf16.gmra.mxu1 %v1129_v43  ;;  %641 = vmatprep.mubr.bf16.mxu0 %v1130_v44 }
  0x3f   : > { %722 = vmatprep.mubr.bf16.mxu1 %v1132_v45 }
  0x45   : > { %642 = vmatmul.mubr.bf16.gmra.mxu0 %v1134_v46 }
  0x46   : > { %723 = vmatmul.mubr.bf16.gmra.mxu1 %v1135_v47  ;;  %649 = vmatprep.mubr.bf16.mxu0 %v1136_v48 }
  0x47   : > { %730 = vmatprep.mubr.bf16.mxu1 %v1138_v49 }
  0x4d   : > { %650 = vmatmul.mubr.bf16.gmra.mxu0 %v1140_v50 }
  0x4e   : > { %731 = vmatmul.mubr.bf16.gmra.mxu1 %v1141_v51  ;;  %657 = vmatprep.mubr.bf16.mxu0 %v1142_v52 }
  0x4f   : > { %738 = vmatprep.mubr.bf16.mxu1 %v1144_v53 }
  0x55   : > { %658 = vmatmul.mubr.bf16.gmra.mxu0 %v1146_v54 }
  0x56   : > { %739 = vmatmul.mubr.bf16.gmra.mxu1 %v1147_v55 }
  0xed   : > { %v984_v56 = vpop.f32.mrf.mxu0 }
  0xee   : > { %v1036_v57 = vpop.f32.mrf.mxu1 }
  0xef   : > { %v985_v59 = vpop.f32.mrf.mxu0 }
  0xf0   : > { %v986_v60 = vadd.f32 %v985_v59, %v984_v56  ;;  %v1037_v61 = vpop.f32.mrf.mxu1 }
  0xf1   : > { %v987_v62 = vpop.f32.mrf.mxu0  ;;  %v1038_v0 = vadd.f32 %v1037_v61, %v1036_v57 }
  0xf2   : > { %v620_v63 = vadd.f32 %v986_v60, %v1317_v58  ;;  %v1039_v1 = vpop.f32.mrf.mxu1 }
  0xf3   : > { %v988_v2 = vpop.f32.mrf.mxu0 }
  0xf4   : > { %v701_v3 = vadd.f32 %v1038_v0, %v620_v63  ;;  %v989_v4 = vadd.f32 %v988_v2, %v987_v62  ;;  %v1040_v5 = vpop.f32.mrf.mxu1 }
  0xf5   : > { %v990_v6 = vpop.f32.mrf.mxu0  ;;  %v1041_v9 = vadd.f32 %v1040_v5, %v1039_v1 }
  0xf6   : > { %v747_v7 = vmax.f32 %v701_v3, 0.0  ;;  %v623_v8 = vadd.f32 %v989_v4, %v1317_v58  ;;  %v1042_v10 = vpop.f32.mrf.mxu1 }
  0xf7   : > { %v991_v11 = vpop.f32.mrf.mxu0 }
  0xf8   : > { %v956_v12 = vpack.c.bf16 %v747_v7, %v747_v7  ;;  %v704_v13 = vadd.f32 %v1041_v9, %v623_v8  ;;  %v992_v14 = vadd.f32 %v991_v11, %v990_v6  ;;  %v1043_v15 = vpop.f32.mrf.mxu1 }
  0xf9   : > { %v993_v16 = vpop.f32.mrf.mxu0  ;;  %v1044_v19 = vadd.f32 %v1043_v15, %v1042_v10 }
  0xfa   : > { %808 = vst.msk [vmem:[%s1325_s10] sm:$0xf] %vm807_vm0, %v956_v12  ;;  %v748_v17 = vmax.f32 %v704_v13, 0.0  ;;  %v628_v18 = vadd.f32 %v992_v14, %v1317_v58  ;;  %v1045_v20 = vpop.f32.mrf.mxu1 }
  0xfb   : > { %v994_v21 = vpop.f32.mrf.mxu0 }
  0xfc   : > { %v957_v22 = vpack.c.bf16 %v748_v17, %v748_v17  ;;  %v709_v23 = vadd.f32 %v1044_v19, %v628_v18  ;;  %v995_v24 = vadd.f32 %v994_v21, %v993_v16  ;;  %v1046_v25 = vpop.f32.mrf.mxu1 }
  0xfd   : > { %v996_v26 = vpop.f32.mrf.mxu0  ;;  %v1047_v29 = vadd.f32 %v1046_v25, %v1045_v20 }
  0xfe   : > { %809 = vst.msk [vmem:[%s1325_s10 + $0x4] sm:$0xf] %vm807_vm0, %v957_v22  ;;  %v749_v27 = vmax.f32 %v709_v23, 0.0  ;;  %v631_v28 = vadd.f32 %v995_v24, %v1317_v58  ;;  %v1048_v30 = vpop.f32.mrf.mxu1 }
  0xff   : > { %v997_v31 = vpop.f32.mrf.mxu0 }
 0x100   : > { %v958_v32 = vpack.c.bf16 %v749_v27, %v749_v27  ;;  %v712_v33 = vadd.f32 %v1047_v29, %v631_v28  ;;  %v998_v34 = vadd.f32 %v997_v31, %v996_v26  ;;  %v1049_v35 = vpop.f32.mrf.mxu1 }
 0x101   : > { %v999_v36 = vpop.f32.mrf.mxu0  ;;  %v1050_v39 = vadd.f32 %v1049_v35, %v1048_v30 }
 0x102   : > { %810 = vst.msk [vmem:[%s1325_s10 + $0x8] sm:$0xf] %vm807_vm0, %v958_v32  ;;  %v750_v37 = vmax.f32 %v712_v33, 0.0  ;;  %v636_v38 = vadd.f32 %v998_v34, %v1317_v58  ;;  %v1051_v40 = vpop.f32.mrf.mxu1 }
 0x103   : > { %v1000_v41 = vpop.f32.mrf.mxu0 }
 0x104   : > { %v959_v42 = vpack.c.bf16 %v750_v37, %v750_v37  ;;  %v717_v43 = vadd.f32 %v1050_v39, %v636_v38  ;;  %v1001_v44 = vadd.f32 %v1000_v41, %v999_v36  ;;  %v1052_v45 = vpop.f32.mrf.mxu1 }
 0x105   : > { %v1002_v46 = vpop.f32.mrf.mxu0  ;;  %v1053_v49 = vadd.f32 %v1052_v45, %v1051_v40 }
 0x106   : > { %811 = vst.msk [vmem:[%s1325_s10 + $0xc] sm:$0xf] %vm807_vm0, %v959_v42  ;;  %v751_v47 = vmax.f32 %v717_v43, 0.0  ;;  %v639_v48 = vadd.f32 %v1001_v44, %v1317_v58  ;;  %v1054_v50 = vpop.f32.mrf.mxu1 }
 0x107   : > { %v1003_v51 = vpop.f32.mrf.mxu0 }
 0x108   : > { %v960_v52 = vpack.c.bf16 %v751_v47, %v751_v47  ;;  %v720_v53 = vadd.f32 %v1053_v49, %v639_v48  ;;  %v1004_v54 = vadd.f32 %v1003_v51, %v1002_v46  ;;  %v1055_v55 = vpop.f32.mrf.mxu1 }
 0x109   : > { %v1005_v56 = vpop.f32.mrf.mxu0  ;;  %v1056_v60 = vadd.f32 %v1055_v55, %v1054_v50 }
 0x10a   : > { %812 = vst.msk [vmem:[%s1325_s10 + $0x10] sm:$0xf] %vm807_vm0, %v960_v52  ;;  %v752_v57 = vmax.f32 %v720_v53, 0.0  ;;  %v644_v59 = vadd.f32 %v1004_v54, %v1317_v58  ;;  %v1057_v61 = vpop.f32.mrf.mxu1 }
 0x10b   : > { %v1006_v62 = vpop.f32.mrf.mxu0 }
 0x10c   : > { %v961_v63 = vpack.c.bf16 %v752_v57, %v752_v57  ;;  %v725_v0 = vadd.f32 %v1056_v60, %v644_v59  ;;  %v1007_v1 = vadd.f32 %v1006_v62, %v1005_v56  ;;  %v1058_v2 = vpop.f32.mrf.mxu1 }
 0x10d   : > { %v1008_v3 = vpop.f32.mrf.mxu0  ;;  %v1059_v6 = vadd.f32 %v1058_v2, %v1057_v61 }
 0x10e   : > { %813 = vst.msk [vmem:[%s1325_s10 + $0x14] sm:$0xf] %vm807_vm0, %v961_v63  ;;  %v753_v4 = vmax.f32 %v725_v0, 0.0  ;;  %v647_v5 = vadd.f32 %v1007_v1, %v1317_v58  ;;  %v1060_v7 = vpop.f32.mrf.mxu1 }
 0x10f   : > { %v1009_v8 = vpop.f32.mrf.mxu0 }
 0x110   : > { %v962_v9 = vpack.c.bf16 %v753_v4, %v753_v4  ;;  %v728_v10 = vadd.f32 %v1059_v6, %v647_v5  ;;  %v1010_v11 = vadd.f32 %v1009_v8, %v1008_v3  ;;  %v1061_v12 = vpop.f32.mrf.mxu1 }
 0x111   : > { %v1011_v13 = vpop.f32.mrf.mxu0  ;;  %v1062_v16 = vadd.f32 %v1061_v12, %v1060_v7 }
 0x112   : > { %814 = vst.msk [vmem:[%s1325_s10 + $0x18] sm:$0xf] %vm807_vm0, %v962_v9  ;;  %v754_v14 = vmax.f32 %v728_v10, 0.0  ;;  %v652_v15 = vadd.f32 %v1010_v11, %v1317_v58  ;;  %v1063_v17 = vpop.f32.mrf.mxu1 }
 0x113   : > { %v1012_v18 = vpop.f32.mrf.mxu0 }
 0x114   : > { %v963_v19 = vpack.c.bf16 %v754_v14, %v754_v14  ;;  %v733_v20 = vadd.f32 %v1062_v16, %v652_v15  ;;  %v1013_v21 = vadd.f32 %v1012_v18, %v1011_v13  ;;  %v1064_v22 = vpop.f32.mrf.mxu1 }
 0x115   : > { %v1014_v23 = vpop.f32.mrf.mxu0  ;;  %v1065_v26 = vadd.f32 %v1064_v22, %v1063_v17 }
 0x116   : > { %815 = vst.msk [vmem:[%s1325_s10 + $0x1c] sm:$0xf] %vm807_vm0, %v963_v19  ;;  %v755_v24 = vmax.f32 %v733_v20, 0.0  ;;  %v655_v25 = vadd.f32 %v1013_v21, %v1317_v58  ;;  %v1066_v27 = vpop.f32.mrf.mxu1 }
 0x117   : > { %v1015_v28 = vpop.f32.mrf.mxu0 }
 0x118   : > { %v964_v29 = vpack.c.bf16 %v755_v24, %v755_v24  ;;  %v736_v30 = vadd.f32 %v1065_v26, %v655_v25  ;;  %v1016_v31 = vadd.f32 %v1015_v28, %v1014_v23  ;;  %v1067_v32 = vpop.f32.mrf.mxu1 }
 0x119   : > { %v1017_v33 = vpop.f32.mrf.mxu0  ;;  %v1068_v36 = vadd.f32 %v1067_v32, %v1066_v27 }
 0x11a   : > { %816 = vst.msk [vmem:[%s1325_s10 + $0x20] sm:$0xf] %vm807_vm0, %v964_v29  ;;  %v756_v34 = vmax.f32 %v736_v30, 0.0  ;;  %v660_v35 = vadd.f32 %v1016_v31, %v1317_v58  ;;  %v1069_v37 = vpop.f32.mrf.mxu1 }
 0x11b   : > { %v1018_v38 = vpop.f32.mrf.mxu0 }
 0x11c   : > { %v965_v39 = vpack.c.bf16 %v756_v34, %v756_v34  ;;  %v741_v40 = vadd.f32 %v1068_v36, %v660_v35  ;;  %v1019_v41 = vadd.f32 %v1018_v38, %v1017_v33  ;;  %v1070_v42 = vpop.f32.mrf.mxu1 }
 0x11d   : > { %v1071_v45 = vadd.f32 %v1070_v42, %v1069_v37 }
 0x11e   : > { %817 = vst.msk [vmem:[%s1325_s10 + $0x24] sm:$0xf] %vm807_vm0, %v965_v39  ;;  %v757_v43 = vmax.f32 %v741_v40, 0.0  ;;  %v663_v44 = vadd.f32 %v1019_v41, %v1317_v58 }
 0x120   : > { %v966_v46 = vpack.c.bf16 %v757_v43, %v757_v43  ;;  %v744_v47 = vadd.f32 %v1071_v45, %v663_v44 }
 0x122   : > { %818 = vst.msk [vmem:[%s1325_s10 + $0x28] sm:$0xf] %vm807_vm0, %v966_v46  ;;  %v758_v48 = vmax.f32 %v744_v47, 0.0 }
 0x124   : > { %v967_v49 = vpack.c.bf16 %v758_v48, %v758_v48 }
 0x126   : > { %819 = vst.msk [vmem:[%s1325_s10 + $0x2c] sm:$0xf] %vm807_vm0, %v967_v49 }
 0x127 PF: > { %s13_s12 = sadd.s32 1, %s1154_s12  }
 0x128   : > { %p10_p4 = scmp.ge.s32.totalorder %s13_s12, 4  }
 0x12a   :  { %12 = sbr.rel (!%p10_p4) target bundleno = 1 (0x1), region = 62 }

// kernel: _net_forward_pallas_jit.5
= control target key start
LH: loop header
LB: loop body
LE: loop exit
PB: predicated region body
PF: predicated region fallthrough
CT: control target
= control target key end

     0   :  { %v10381_v33 = vmov 0.0   ;;  %vm10382_vm0 = vmmov 0   ;;  %vm529_vm1 = vcmask 523264   ;;  %vm843_vm2 = vcmask 516096   ;;  %s10383_s22 = smov 64   ;;  %s13687_s0 = inlined_call_operand.vmem [shape: bf16[98,576], index: 0, kind: input, shape index: {}]   ;;  %s13688_s1 = inlined_call_operand.vmem [shape: bf16[576,64], index: 1, kind: input, shape index: {}]   ;;  %s13689_s2 = inlined_call_operand.vmem [shape: f32[1,64], index: 2, kind: input, shape index: {}]   ;;  %s13690_s3 = inlined_call_operand.vmem [shape: bf16[3136,512], index: 3, kind: input, shape index: {}]   ;;  %s13691_s4 = inlined_call_operand.vmem [shape: f32[1,512], index: 4, kind: input, shape index: {}]   ;;  %s13692_s5 = inlined_call_operand.vmem [shape: bf16[512,6], index: 5, kind: input, shape index: {}]   ;;  %s13693_s6 = inlined_call_operand.vmem [shape: f32[1,6], index: 6, kind: input, shape index: {}]   ;;  %s13694_s7 = inlined_call_operand.hbm [shape: f32[2,6], index: 7, kind: output, shape index: {}]  }
   0x1   :  { %v9063_v0 = vld [vmem:[%s13688_s1 + $0x78] sm:$0xff]   ;;  %v9067_v4 = vld [vmem:[%s13688_s1 + $0x70] sm:$0xff]   ;;  %v9071_v8 = vld [vmem:[%s13688_s1 + $0x68] sm:$0xff]   ;;  %vm840_vm3 = vcmask 517120   ;;  %vm857_vm4 = vcmask 1040896  }
   0x2   :  { %v9064_v1 = vld [vmem:[%s13688_s1 + $0x38] sm:$0xff]   ;;  %8850 = vmatprep.subr.bf16.mxu0 %v9063_v0  ;;  %v9068_v5 = vld [vmem:[%s13688_s1 + $0x30] sm:$0xff]   ;;  %v9072_v9 = vld [vmem:[%s13688_s1 + $0x28] sm:$0xff]  }
   0x3   :  { %v9065_v2 = vld [vmem:[%s13688_s1 + $0xf8] sm:$0xff]   ;;  %8851 = vmatpush3.bf16.msra.mxu0 %v9064_v1  ;;  %v9069_v6 = vld [vmem:[%s13688_s1 + $0xf0] sm:$0xff]   ;;  %v9073_v10 = vld [vmem:[%s13688_s1 + $0xe8] sm:$0xff]  }
   0x4   :  { %v9066_v3 = vld [vmem:[%s13688_s1 + $0xb8] sm:$0xff]   ;;  %8908 = vmatprep.subr.bf16.mxu1 %v9065_v2  ;;  %8852 = vmatprep.subr.bf16.mxu0 %v9067_v4  ;;  %v9070_v7 = vld [vmem:[%s13688_s1 + $0xb0] sm:$0xff]   ;;  %v9074_v11 = vld [vmem:[%s13688_s1 + $0xa8] sm:$0xff]  }
   0x5   :  { %8909 = vmatpush3.bf16.msra.mxu1 %v9066_v3  ;;  %v9075_v12 = vld [vmem:[%s13688_s1 + $0x60] sm:$0xff]   ;;  %v9079_v16 = vld [vmem:[%s13688_s1 + $0x58] sm:$0xff]   ;;  %v9083_v20 = vld [vmem:[%s13688_s1 + $0x50] sm:$0xff]  }
   0x6   :  { %8910 = vmatprep.subr.bf16.mxu1 %v9069_v6  ;;  %v9076_v13 = vld [vmem:[%s13688_s1 + $0x20] sm:$0xff]   ;;  %v9080_v17 = vld [vmem:[%s13688_s1 + $0x18] sm:$0xff]   ;;  %v9084_v21 = vld [vmem:[%s13688_s1 + $0x10] sm:$0xff]  }
   0x7   :  { %8853 = vmatpush3.bf16.msra.mxu0 %v9068_v5  ;;  %v9077_v14 = vld [vmem:[%s13688_s1 + $0xe0] sm:$0xff]   ;;  %v9081_v18 = vld [vmem:[%s13688_s1 + $0xd8] sm:$0xff]   ;;  %v9085_v22 = vld [vmem:[%s13688_s1 + $0xd0] sm:$0xff]  }
   0x8   :  { %8854 = vmatprep.subr.bf16.mxu0 %v9071_v8  ;;  %v9078_v15 = vld [vmem:[%s13688_s1 + $0xa0] sm:$0xff]   ;;  %v9082_v19 = vld [vmem:[%s13688_s1 + $0x98] sm:$0xff]   ;;  %v9086_v23 = vld [vmem:[%s13688_s1 + $0x90] sm:$0xff]  }
   0x9   :  { %8911 = vmatpush3.bf16.msra.mxu1 %v9070_v7  ;;  %v9087_v24 = vld [vmem:[%s13688_s1 + $0x48] sm:$0xff]   ;;  %v9091_v28 = vld [vmem:[%s13688_s1 + $0x40] sm:$0xff]   ;;  %v9101_v37 = vld [vmem:[%s13688_s1 + $0x118] sm:$0xff]  }
   0xa   :  { %8912 = vmatprep.subr.bf16.mxu1 %v9073_v10  ;;  %v9088_v25 = vld [vmem:[%s13688_s1 + $0x8] sm:$0xff]   ;;  %v9092_v29 = vld [vmem:[%s13688_s1] sm:$0xff]   ;;  %v9110_v42 = vld [vmem:[%s13688_s1 + $0x110] sm:$0xff]  }
   0xb   :  { %8855 = vmatpush3.bf16.msra.mxu0 %v9072_v9  ;;  %v9089_v26 = vld [vmem:[%s13688_s1 + $0xc8] sm:$0xff]   ;;  %v9093_v30 = vld [vmem:[%s13688_s1 + $0xc0] sm:$0xff]   ;;  %v9112_v44 = vld [vmem:[%s13687_s0 + $0x5c] ss:$20 sps:$4 sm:$0xff]  }
   0xc   :  { %8856 = vmatprep.subr.bf16.mxu0 %v9075_v12  ;;  %v9090_v27 = vld [vmem:[%s13688_s1 + $0x88] sm:$0xff]   ;;  %v9094_v31 = vld [vmem:[%s13687_s0] ss:$20 sps:$4 sm:$0xff]   ;;  %v9096_v32 = vld [vmem:[%s13687_s0 + $0x4] ss:$20 sps:$4 sm:$0xff]  }
   0xd   :  { %8913 = vmatpush3.bf16.msra.mxu1 %v9074_v11  ;;  %v9097_v34 = vld [vmem:[%s13688_s1 + $0x80] sm:$0xff]   ;;  %583 = vmatprep.mubr.bf16.mxu0 %v9096_v32  ;;  %v9098_v35 = vld [vmem:[%s13687_s0 + $0x8] ss:$20 sps:$4 sm:$0xff]   ;;  %v9114_v48 = vld [vmem:[%s13687_s0 + $0x58] ss:$20 sps:$4 sm:$0xff]  }
   0xe   :  { %8914 = vmatprep.subr.bf16.mxu1 %v9077_v14  ;;  %v9100_v36 = vld [vmem:[%s13687_s0 + $0xc] ss:$20 sps:$4 sm:$0xff]   ;;  %v9105_v39 = vld [vmem:[%s13687_s0 + $0x34] ss:$20 sps:$4 sm:$0xff]   ;;  %v9107_v43 = vld [vmem:[%s13687_s0 + $0x30] ss:$20 sps:$4 sm:$0xff]  }
   0xf   :  { %8857 = vmatpush3.bf16.msra.mxu0 %v9076_v13  ;;  %671 = vmatprep.mubr.bf16.mxu1 %v9100_v36  ;;  %v9102_v38 = vld [vmem:[%s13687_s0 + $0x2c] ss:$20 sps:$4 sm:$0xff]   ;;  %v9104_v40 = vld [vmem:[%s13687_s0 + $0x28] ss:$20 sps:$4 sm:$0xff]   ;;  %v9111_v46 = vld [vmem:[%s13687_s0 + $0x50] ss:$20 sps:$4 sm:$0xff]  }
  0x10   :  { %8858 = vmatprep.subr.bf16.mxu0 %v9079_v16  ;;  %v9108_v41 = vld [vmem:[%s13687_s0 + $0x54] ss:$20 sps:$4 sm:$0xff]   ;;  %v9115_v47 = vld [vmem:[%s13687_s0 + $0x7c] ss:$20 sps:$4 sm:$0xff]   ;;  %v9118_v49 = vld [vmem:[%s13687_s0 + $0x84] ss:$20 sps:$4 sm:$0xff]  }
  0x11   :  { %8915 = vmatpush3.bf16.msra.mxu1 %v9078_v15  ;;  %v9121_v45 = vld [vmem:[%s13688_s1 + $0x108] sm:$0xff]   ;;  %v9134_v50 = vld [vmem:[%s13688_s1 + $0x100] sm:$0xff]   ;;  %v64_v59 = vld [vmem:[%s13687_s0 + $0xf0] sm:$0x11] }
  0x12   :  { %8916 = vmatprep.subr.bf16.mxu1 %v9081_v18  ;;  %v9117_v51 = vld [vmem:[%s13687_s0 + $0x78] ss:$20 sps:$4 sm:$0xff]   ;;  %v9120_v53 = vld [vmem:[%s13687_s0 + $0x80] ss:$20 sps:$4 sm:$0xff]   ;;  %v9127_v57 = vld [vmem:[%s13687_s0 + $0xa8] ss:$20 sps:$4 sm:$0xff]   ;;  %v7935_v63 = vcombine.high %v64_v59, %v64_v59  ;;  %v7934_v1 = vcombine.low %v64_v59, %v64_v59 }
  0x13   :  { %8859 = vmatpush3.bf16.msra.mxu0 %v9080_v17  ;;  %v9122_v52 = vld [vmem:[%s13687_s0 + $0xa4] ss:$20 sps:$4 sm:$0xff]   ;;  %v9125_v54 = vld [vmem:[%s13687_s0 + $0xac] ss:$20 sps:$4 sm:$0xff]   ;;  %v9131_v58 = vld [vmem:[%s13687_s0 + $0xd4] ss:$20 sps:$4 sm:$0xff]  }
  0x14   :  { %8860 = vmatprep.subr.bf16.mxu0 %v9083_v20  ;;  %v9124_v55 = vld [vmem:[%s13687_s0 + $0xa0] ss:$20 sps:$4 sm:$0xff]   ;;  %v9130_v60 = vld [vmem:[%s13687_s0 + $0xc8] ss:$20 sps:$4 sm:$0xff]   ;;  %v9133_v62 = vld [vmem:[%s13687_s0 + $0xd0] ss:$20 sps:$4 sm:$0xff]  }
  0x15   :  { %8917 = vmatpush3.bf16.msra.mxu1 %v9082_v19  ;;  %v9128_v56 = vld [vmem:[%s13687_s0 + $0xcc] ss:$20 sps:$4 sm:$0xff]   ;;  %v65_v61 = vld [vmem:[%s13687_s0 + $0xf8] sm:$0x11]  ;;  %v9139_v3 = vld [vmem:[%s13687_s0 + $0x10] ss:$20 sps:$4 sm:$0xff]  }
  0x16   :  { %8918 = vmatprep.subr.bf16.mxu1 %v9085_v22  ;;  %v7937_v0 = vcombine.high %v65_v61, %v65_v61  ;;  %v7936_v2 = vcombine.low %v65_v61, %v65_v61  ;;  %v9140_v4 = vld [vmem:[%s13687_s0 + $0x38] ss:$20 sps:$4 sm:$0xff]   ;;  %v9141_v5 = vld [vmem:[%s13687_s0 + $0x60] ss:$20 sps:$4 sm:$0xff]   ;;  %v9142_v6 = vld [vmem:[%s13687_s0 + $0x88] ss:$20 sps:$4 sm:$0xff]  }
  0x17   :  { %8861 = vmatpush3.bf16.msra.mxu0 %v9084_v21  ;;  %v9143_v7 = vld [vmem:[%s13687_s0 + $0xb0] ss:$20 sps:$4 sm:$0xff]   ;;  %v9144_v8 = vld [vmem:[%s13687_s0 + $0xd8] ss:$20 sps:$4 sm:$0xff]  }
  0x18   :  { %8862 = vmatprep.subr.bf16.mxu0 %v9087_v24  ;;  %v9145_v9 = vld [vmem:[%s13687_s0 + $0x100] ss:$0 sps:$4 sm:$0x11]   ;;  %v9160_v61 = vld [vmem:[%s13690_s3 + $0xa4] ss:$16 sps:$4 sm:$0xff]  }
  0x19   :  { %8919 = vmatpush3.bf16.msra.mxu1 %v9086_v23 }
  0x1a   :  { %8920 = vmatprep.subr.bf16.mxu1 %v9089_v26 }
  0x1b   :  { %8863 = vmatpush3.bf16.msra.mxu0 %v9088_v25 }
  0x1c   :  { %8864 = vmatprep.subr.bf16.mxu0 %v9091_v28 }
  0x1d   :  { %8921 = vmatpush3.bf16.msra.mxu1 %v9090_v27 }
  0x1e   :  { %8922 = vmatprep.subr.bf16.mxu1 %v9093_v30 }
  0x1f   :  { %8865 = vmatpush3.bf16.msra.mxu0 %v9092_v29 }
  0x20   :  { %9021 = vmatprep.subr.bf16.mxu0 %v10381_v33 }
  0x21   :  { %8923 = vmatpush3.bf16.msra.mxu1 %v9097_v34 }
  0x22   :  { %584 = vmatmul.mubr.bf16.vlgmr.msra.gmra.mxu0 %v9094_v31 }
  0x23   :  { %9022 = vmatpush3.bf16.msra.mxu0 %v9101_v37  ;;  %591 = vmatprep.mubr.bf16.mxu0 %v9102_v38 }
  0x24   :  { %672 = vmatmul.mubr.bf16.vlgmr.msra.gmra.mxu1 %v9098_v35  ;;  %9023 = vmatprep.subr.bf16.mxu0 %v10381_v33 }
  0x25   :  { %679 = vmatprep.mubr.bf16.mxu1 %v9105_v39 }
  0x27   :  { %9024 = vmatpush3.bf16.msra.mxu0 %v9110_v42 }
  0x28   :  { %9025 = vmatprep.subr.bf16.mxu0 %v10381_v33 }
  0x2a   :  { %592 = vmatmul.mubr.bf16.gmra.mxu0 %v9104_v40 }
  0x2b   :  { %599 = vmatprep.mubr.bf16.mxu0 %v9108_v41  ;;  %9026 = vmatpush3.bf16.msra.mxu0 %v9121_v45  ;;  %v9148_v45 = vld [vmem:[%s13690_s3 + $0xe4] ss:$16 sps:$4 sm:$0xff]  }
  0x2c   :  { %680 = vmatmul.mubr.bf16.gmra.mxu1 %v9107_v43  ;;  %9027 = vmatprep.subr.bf16.mxu0 %v10381_v33 }
  0x2d   :  { %687 = vmatprep.mubr.bf16.mxu1 %v9112_v44  ;;  %v9146_v44 = vld [vmem:[%s13690_s3 + $0xe0] ss:$16 sps:$4 sm:$0xff]   ;;  %6470 = vmatprep.subr.bf16.mxu1 %v9148_v45 }
  0x2e   :  { %6471 = vmatpush1.bf16.msra.mxu1 %v9146_v44  ;;  %v9169_v44 = vld [vmem:[%s13690_s3 + $0x284] ss:$16 sps:$4 sm:$0xff]  }
  0x2f   :  { %9028 = vmatpush3.bf16.msra.mxu0 %v9134_v50 }
  0x32   :  { %600 = vmatmul.mubr.bf16.gmra.mxu0 %v9111_v46  ;;  %v9149_v46 = vld [vmem:[%s13690_s3 + $0x2e0] ss:$16 sps:$4 sm:$0xff]  }
  0x33   :  { %607 = vmatprep.mubr.bf16.mxu0 %v9115_v47 }
  0x34   :  { %688 = vmatmul.mubr.bf16.gmra.mxu1 %v9114_v48  ;;  %v9151_v48 = vld [vmem:[%s13690_s3 + $0x2e4] ss:$16 sps:$4 sm:$0xff]  }
  0x35   :  { %695 = vmatprep.mubr.bf16.mxu1 %v9118_v49  ;;  %6511 = vmatprep.subr.bf16.mxu0 %v9151_v48 }
  0x3a   :  { %608 = vmatmul.mubr.bf16.gmra.mxu0 %v9117_v51 }
  0x3b   :  { %615 = vmatprep.mubr.bf16.mxu0 %v9122_v52  ;;  %v9152_v52 = vld [vmem:[%s13690_s3 + $0xc0] ss:$16 sps:$4 sm:$0xff]  }
  0x3c   :  { %696 = vmatmul.mubr.bf16.gmra.mxu1 %v9120_v53  ;;  %v9154_v53 = vld [vmem:[%s13690_s3 + $0xc4] ss:$16 sps:$4 sm:$0xff]  }
  0x3d   :  { %703 = vmatprep.mubr.bf16.mxu1 %v9125_v54  ;;  %v9155_v54 = vld [vmem:[%s13690_s3 + $0x2c0] ss:$16 sps:$4 sm:$0xff]   ;;  %6472 = vmatprep.subr.bf16.mxu1 %v9154_v53 }
  0x3e   :  { %6473 = vmatpush1.bf16.msra.mxu1 %v9152_v52  ;;  %v9173_v53 = vld [vmem:[%s13690_s3 + $0x260] ss:$16 sps:$4 sm:$0xff]  }
  0x3f   :  { %6474 = vmatprep.subr.bf16.mxu1 %v9160_v61  ;;  %v9178_v61 = vld [vmem:[%s13690_s3 + $0x44] ss:$16 sps:$4 sm:$0xff]  }
  0x42   :  { %616 = vmatmul.mubr.bf16.gmra.mxu0 %v9124_v55 }
  0x43   :  { %623 = vmatprep.mubr.bf16.mxu0 %v9128_v56  ;;  %v9157_v56 = vld [vmem:[%s13690_s3 + $0x2c4] ss:$16 sps:$4 sm:$0xff]  }
  0x44   :  { %704 = vmatmul.mubr.bf16.gmra.mxu1 %v9127_v57 }
  0x45   :  { %711 = vmatprep.mubr.bf16.mxu1 %v9131_v58 }
  0x4a   :  { %624 = vmatmul.mubr.bf16.gmra.mxu0 %v9130_v60  ;;  %v9158_v60 = vld [vmem:[%s13690_s3 + $0xa0] ss:$16 sps:$4 sm:$0xff]  }
  0x4b   :  { %631 = vmatprep.mubr.bf16.mxu0 %v7935_v63  ;;  %6475 = vmatpush1.bf16.msra.mxu1 %v9158_v60  ;;  %v9176_v60 = vld [vmem:[%s13690_s3 + $0x40] ss:$16 sps:$4 sm:$0xff]  }
  0x4c   :  { %712 = vmatmul.mubr.bf16.gmra.mxu1 %v9133_v62  ;;  %v9161_v62 = vld [vmem:[%s13690_s3 + $0x2a0] ss:$16 sps:$4 sm:$0xff]  }
  0x4d   :  { %719 = vmatprep.mubr.bf16.mxu1 %v7937_v0  ;;  %v9163_v0 = vld [vmem:[%s13690_s3 + $0x2a4] ss:$16 sps:$4 sm:$0xff]  }
  0x52   :  { %632 = vmatmul.mubr.bf16.gmra.mxu0 %v7934_v1 }
  0x53   :  { %9029 = vmatprep.mubr.msk.bf16.mxu0 %vm10382_vm0, %v10381_v33 }
  0x54   :  { %720 = vmatmul.mubr.bf16.gmra.mxu1 %v7936_v2 }
  0x5a   :  { %9030 = vmatmul.mubr.msk.bf16.vlgmr.msra.gmra.mxu0 %vm529_vm1, %v9139_v3  ;;  %v10788_v3 = vld [vmem:[%s13689_s2] ss:$0 sm:$0xff] }
  0x5b   :  { %9033 = vmatprep.mubr.msk.bf16.mxu0 %vm10382_vm0, %v10381_v33  ;;  %6512 = vmatpush1.bf16.msra.mxu0 %v9149_v46 }
  0x5c   :  { %6513 = vmatprep.subr.bf16.mxu0 %v9157_v56  ;;  %v9175_v56 = vld [vmem:[%s13690_s3 + $0x264] ss:$16 sps:$4 sm:$0xff]  }
  0x5f   :  { %6514 = vmatpush1.bf16.msra.mxu0 %v9155_v54 }
  0x60   :  { %6515 = vmatprep.subr.bf16.mxu0 %v9163_v0 }
  0x62   :  { %9034 = vmatmul.mubr.msk.bf16.gmra.mxu0 %vm529_vm1, %v9140_v4 }
  0x63   :  { %9037 = vmatprep.mubr.msk.bf16.mxu0 %vm10382_vm0, %v10381_v33  ;;  %6516 = vmatpush1.bf16.msra.mxu0 %v9161_v62 }
  0x64   :  { %6517 = vmatprep.subr.bf16.mxu0 %v9169_v44 }
  0x6a   :  { %9038 = vmatmul.mubr.msk.bf16.gmra.mxu0 %vm529_vm1, %v9141_v5  ;;  %v9164_v5 = vld [vmem:[%s13690_s3 + $0x80] ss:$16 sps:$4 sm:$0xff]  }
  0x6b   :  { %9041 = vmatprep.mubr.msk.bf16.mxu0 %vm10382_vm0, %v10381_v33 }
  0x72   :  { %9042 = vmatmul.mubr.msk.bf16.gmra.mxu0 %vm529_vm1, %v9142_v6  ;;  %v9166_v6 = vld [vmem:[%s13690_s3 + $0x84] ss:$16 sps:$4 sm:$0xff]  }
  0x73   :  { %9045 = vmatprep.mubr.msk.bf16.mxu0 %vm10382_vm0, %v10381_v33  ;;  %6476 = vmatprep.subr.bf16.mxu1 %v9166_v6 }
  0x74   :  { %6477 = vmatpush1.bf16.msra.mxu1 %v9164_v5 }
  0x7a   :  { %9046 = vmatmul.mubr.msk.bf16.gmra.mxu0 %vm529_vm1, %v9143_v7  ;;  %v9167_v7 = vld [vmem:[%s13690_s3 + $0x280] ss:$16 sps:$4 sm:$0xff]  }
  0x7b   :  { %9049 = vmatprep.mubr.msk.bf16.mxu0 %vm10382_vm0, %v10381_v33  ;;  %6518 = vmatpush1.bf16.msra.mxu0 %v9167_v7 }
  0x7c   :  { %6519 = vmatprep.subr.bf16.mxu0 %v9175_v56 }
  0x7f   :  { %6520 = vmatpush1.bf16.msra.mxu0 %v9173_v53 }
  0x82   :  { %9050 = vmatmul.mubr.msk.bf16.gmra.mxu0 %vm529_vm1, %v9144_v8 }
  0x83   :  { %9053 = vmatprep.mubr.msk.bf16.mxu0 %vm10382_vm0, %v10381_v33 }
  0x8a   :  { %9054 = vmatmul.mubr.msk.bf16.gmra.mxu0 %vm529_vm1, %v9145_v9 }
  0xe2   :  { %v10659_v10 = vpop.f32.mrf.mxu0 }
  0xe4   :  { %v10661_v11 = vpop.f32.mrf.mxu0  ;;  %v10663_v12 = vpop.f32.mrf.mxu1 }
  0xe5   :  { %v8868_v8 = vadd.f32 %v10661_v11, %v10659_v10  ;;  %v9170_v10 = vld [vmem:[%s13690_s3 + $0x60] ss:$16 sps:$4 sm:$0xff]   ;;  %v9172_v11 = vld [vmem:[%s13690_s3 + $0x64] ss:$16 sps:$4 sm:$0xff]  }
  0xe6   :  { %v10665_v13 = vpop.f32.mrf.mxu0  ;;  %v10667_v14 = vpop.f32.mrf.mxu1  ;;  %6478 = vmatprep.subr.bf16.mxu1 %v9172_v11 }
  0xe7   :  { %v586_v54 = vadd.f32 %v8868_v8, %v10788_v3  ;;  %6479 = vmatpush1.bf16.msra.mxu1 %v9170_v10  ;;  %v9179_v10 = vld [vmem:[%s13690_s3 + $0x240] ss:$16 sps:$4 sm:$0xff]  }
  0xe8   :  { %v10669_v15 = vpop.f32.mrf.mxu0  ;;  %v10671_v16 = vpop.f32.mrf.mxu1  ;;  %6480 = vmatprep.subr.bf16.mxu1 %v9178_v61 }
  0xe9   :  { %v8871_v48 = vadd.f32 %v10669_v15, %v10665_v13  ;;  %v8926_v13 = vadd.f32 %v10667_v14, %v10663_v12 }
  0xea   :  { %v10673_v17 = vpop.f32.mrf.mxu0  ;;  %v10675_v18 = vpop.f32.mrf.mxu1 }
  0xeb   :  { %v589_v12 = vadd.f32 %v8871_v48, %v10788_v3  ;;  %v8929_v14 = vadd.f32 %v10675_v18, %v10671_v16  ;;  %v674_v7 = vadd.f32 %v8926_v13, %v586_v54  ;;  %6481 = vmatpush1.bf16.msra.mxu1 %v9176_v60  ;;  %v9181_v48 = vld [vmem:[%s13690_s3 + $0x244] ss:$16 sps:$4 sm:$0xff]   ;;  %v9182_v16 = vld [vmem:[%s13690_s3 + $0x20] ss:$16 sps:$4 sm:$0xff]  }
  0xec   :  { %v10677_v19 = vpop.f32.mrf.mxu0  ;;  %v10679_v20 = vpop.f32.mrf.mxu1  ;;  %6521 = vmatprep.subr.bf16.mxu0 %v9181_v48 }
  0xed   :  { %v8874_v6 = vadd.f32 %v10677_v19, %v10673_v17  ;;  %v677_v17 = vadd.f32 %v8929_v14, %v589_v12  ;;  %v9184_v19 = vld [vmem:[%s13690_s3 + $0x24] ss:$16 sps:$4 sm:$0xff]   ;;  %6522 = vmatpush1.bf16.msra.mxu0 %v9179_v10  ;;  %v9185_v12 = vld [vmem:[%s13690_s3 + $0x220] ss:$16 sps:$4 sm:$0xff]  }
  0xee   :  { %v10681_v21 = vpop.f32.mrf.mxu0  ;;  %v10683_v22 = vpop.f32.mrf.mxu1  ;;  %6482 = vmatprep.subr.bf16.mxu1 %v9184_v19  ;;  %v9190_v14 = vld [vmem:[%s13690_s3 + $0x4] ss:$16 sps:$4 sm:$0xff]  }
  0xef   :  { %v594_v53 = vadd.f32 %v8874_v6, %v10788_v3  ;;  %v8932_v54 = vadd.f32 %v10683_v22, %v10679_v20  ;;  %6483 = vmatpush1.bf16.msra.mxu1 %v9182_v16  ;;  %v9187_v20 = vld [vmem:[%s13690_s3 + $0x224] ss:$16 sps:$4 sm:$0xff]  }
  0xf0   :  { %v10685_v23 = vpop.f32.mrf.mxu0  ;;  %v10687_v24 = vpop.f32.mrf.mxu1  ;;  %6523 = vmatprep.subr.bf16.mxu0 %v9187_v20  ;;  %6484 = vmatprep.subr.bf16.mxu1 %v9190_v14 }
  0xf1   :  { %v8877_v13 = vadd.f32 %v10685_v23, %v10681_v21  ;;  %v9188_v21 = vld [vmem:[%s13690_s3] ss:$16 sps:$4 sm:$0xff]   ;;  %6524 = vmatpush1.bf16.msra.mxu0 %v9185_v12 }
  0xf2   :  { %v10689_v25 = vpop.f32.mrf.mxu0  ;;  %v10691_v26 = vpop.f32.mrf.mxu1 }
  0xf3   :  { %v597_v6 = vadd.f32 %v8877_v13, %v10788_v3  ;;  %6485 = vmatpush1.bf16.msra.mxu1 %v9188_v21  ;;  %v9203_v21 = vld [vmem:[%s13690_s3 + $0x3c0] ss:$16 sps:$4 sm:$0xff]  }
  0xf4   :  { %v10693_v27 = vpop.f32.mrf.mxu0  ;;  %v10695_v28 = vpop.f32.mrf.mxu1 }
  0xf5   :  { %v8880_v22 = vadd.f32 %v10693_v27, %v10689_v25  ;;  %v9196_v25 = vld [vmem:[%s13690_s3 + $0x1e4] ss:$16 sps:$4 sm:$0xff]  }
  0xf6   :  { %v10697_v29 = vpop.f32.mrf.mxu0  ;;  %v10699_v30 = vpop.f32.mrf.mxu1  ;;  %6486 = vmatprep.subr.bf16.mxu1 %v9196_v25 }
  0xf7   :  { %v8938_v48 = vadd.f32 %v10699_v30, %v10695_v28  ;;  %v9200_v28 = vld [vmem:[%s13690_s3 + $0x1c0] ss:$16 sps:$4 sm:$0xff]   ;;  %v9202_v30 = vld [vmem:[%s13690_s3 + $0x1c4] ss:$16 sps:$4 sm:$0xff]  }
  0xf8   :  { %v10701_v31 = vpop.f32.mrf.mxu0  ;;  %v10703_v32 = vpop.f32.mrf.mxu1 }
  0xfa   :  { %v10705_v33 = vpop.f32.mrf.mxu0  ;;  %v10707_v34 = vpop.f32.mrf.mxu1 }
  0xfb   :  { %v8941_v14 = vadd.f32 %v10707_v34, %v10703_v32  ;;  %v9211_v34 = vld [vmem:[%s13690_s3 + $0x3a4] ss:$16 sps:$4 sm:$0xff]  }
  0xfc   :  { %v10709_v35 = vpop.f32.mrf.mxu0  ;;  %v10711_v36 = vpop.f32.mrf.mxu1 }
  0xfe   :  { %v10713_v37 = vpop.f32.mrf.mxu0  ;;  %v10715_v38 = vpop.f32.mrf.mxu1 }
 0x100   :  { %v10717_v39 = vpop.f32.mrf.mxu0  ;;  %v10719_v40 = vpop.f32.mrf.mxu1 }
 0x102   :  { %v10721_v41 = vpop.f32.mrf.mxu0  ;;  %v10723_v42 = vpop.f32.mrf.mxu1 }
 0x104   :  { %v10725_v43 = vpop.f32.mrf.mxu0  ;;  %v10736_v47 = vpop.f32.mrf.mxu1 }
 0x106   :  { %v10741_v49 = vpop.f32.mrf.mxu0  ;;  %v10743_v50 = vpop.f32.mrf.mxu1 }
 0x108   :  { %v10745_v51 = vpop.f32.mrf.mxu0  ;;  %v10756_v55 = vpop.f32.mrf.mxu1 }
 0x10a   :  { %v10761_v57 = vpop.f32.mrf.mxu0  ;;  %v10763_v58 = vpop.f32.mrf.mxu1 }
 0x10c   :  { %v10765_v59 = vpop.f32.mrf.mxu0  ;;  %v10776_v63 = vpop.f32.mrf.mxu1 }
 0x10e   :  { %v10781_v1 = vpop.f32.mrf.mxu0  ;;  %v10783_v2 = vpop.f32.mrf.mxu1 }
 0x110   :  { %v10790_v4 = vpop.f32.mrf.mxu0  ;;  %v10803_v9 = vpop.f32.mrf.mxu1 }
 0x112   :  { %v10808_v45 = vpop.f32.mrf.mxu0  ;;  %v10810_v46 = vpop.f32.mrf.mxu1 }
 0x114   :  { %v10814_v52 = vpop.f32.mrf.mxu0  ;;  %v10828_v15 = vpop.f32.mrf.mxu1 }
 0x116   :  { %v8905_v62 = vpop.f32.mrf.mxu0  ;;  %v10839_v0 = vpop.f32.mrf.mxu1 }
 0x118   :  { %v8906_v5 = vpop.f32.mrf.mxu0  ;;  %v8963_v8 = vpop.f32.mrf.mxu1 }
 0x119   :  { %v9193_v5 = vld [vmem:[%s13690_s3 + $0x204] ss:$16 sps:$4 sm:$0xff]  }
 0x11a   :  { %v761_v44 = vpop.f32.mrf.mxu0  ;;  %v8964_v18 = vpop.f32.mrf.mxu1  ;;  %6525 = vmatprep.subr.bf16.mxu0 %v9193_v5  ;;  %v8886_v5 = vadd.f32 %v10709_v35, %v10705_v33  ;;  %v8889_v35 = vadd.f32 %v10717_v39, %v10713_v37  ;;  %v9209_v39 = vld [vmem:[%s13690_s3 + $0x3a0] ss:$16 sps:$4 sm:$0xff]  }
 0x11b   :  { %v762_v62 = vadd.f32 %v761_v44, %v674_v7  ;;  %v8935_v7 = vadd.f32 %v10691_v26, %v10687_v24  ;;  %v682_v44 = vadd.f32 %v8932_v54, %v594_v53  ;;  %v9194_v24 = vld [vmem:[%s13690_s3 + $0x1e0] ss:$16 sps:$4 sm:$0xff]   ;;  %v602_v26 = vadd.f32 %v8880_v22, %v10788_v3  ;;  %v9205_v22 = vld [vmem:[%s13690_s3 + $0x3c4] ss:$16 sps:$4 sm:$0xff]  }
 0x11c   :  { %v9031_v11 = vpop.f32.mrf.mxu0  ;;  %v9197_v18 = vld [vmem:[%s13690_s3 + $0x3e0] ss:$16 sps:$4 sm:$0xff]   ;;  %6487 = vmatpush2.bf16.msra.mxu1 %v9194_v24 }
 0x11d   :  { %v815_v56 = vmax.f32 %v762_v62, 0.0  ;;  %v9191_v62 = vld [vmem:[%s13690_s3 + $0x200] ss:$16 sps:$4 sm:$0xff]   ;;  %v9199_v11 = vld [vmem:[%s13690_s3 + $0x3e4] ss:$16 sps:$4 sm:$0xff]   ;;  %v685_v53 = vadd.f32 %v8935_v7, %v597_v6  ;;  %v690_v12 = vadd.f32 %v8938_v48, %v602_v26  ;;  %6488 = vmatprep.subr.bf16.mxu1 %v9202_v30  ;;  %v610_v26 = vadd.f32 %v8886_v5, %v10788_v3 }
 0x11e   :  { %v764_v60 = vpop.f32.mrf.mxu0  ;;  %6526 = vmatpush1.bf16.msra.mxu0 %v9191_v62  ;;  %v9206_v7 = vld [vmem:[%s13690_s3 + $0x1a0] ss:$16 sps:$4 sm:$0xff]   ;;  %v8944_v48 = vadd.f32 %v10715_v38, %v10711_v36  ;;  %v9220_v5 = vld [vmem:[%s13690_s3 + $0x164] ss:$16 sps:$4 sm:$0xff]  }
 0x11f   :  { %828 = vst.msk [vmem:[#allocation2] sm:$0xff] %vm529_vm1, %v815_v56  ;;  %v765_v61 = vadd.f32 %v764_v60, %v677_v17  ;;  %v8883_v17 = vadd.f32 %v10701_v31, %v10697_v29  ;;  %6527 = vmatprep.subr.bf16.mxu0 %v9199_v11  ;;  %v9212_v36 = vld [vmem:[%s13690_s3 + $0x180] ss:$16 sps:$4 sm:$0xff]  }
 0x120   :  { %v9032_v23 = vpop.f32.mrf.mxu0  ;;  %6489 = vmatpush2.bf16.msra.mxu1 %v9200_v28 }
 0x121   :  { %v816_v8 = vmax.f32 %v765_v61, 0.0  ;;  %v605_v23 = vadd.f32 %v8883_v17, %v10788_v3 }
 0x122   :  { %v769_v27 = vpop.f32.mrf.mxu0  ;;  %6528 = vmatpush2.bf16.msra.mxu0 %v9197_v18 }
 0x123   :  { %829 = vst.msk [vmem:[#allocation2 + $0x8] sm:$0xff] %vm529_vm1, %v816_v8  ;;  %v770_v10 = vadd.f32 %v769_v27, %v682_v44  ;;  %v9208_v8 = vld [vmem:[%s13690_s3 + $0x1a4] ss:$16 sps:$4 sm:$0xff]   ;;  %6529 = vmatprep.subr.bf16.mxu0 %v9205_v22  ;;  %v693_v18 = vadd.f32 %v8941_v14, %v605_v23  ;;  %v9218_v23 = vld [vmem:[%s13690_s3 + $0x160] ss:$16 sps:$4 sm:$0xff]  }
 0x124   :  { %v9035_v16 = vpop.f32.mrf.mxu0  ;;  %6490 = vmatprep.subr.bf16.mxu1 %v9208_v8  ;;  %v9221_v8 = vld [vmem:[%s13690_s3 + $0x360] ss:$16 sps:$4 sm:$0xff]  }
 0x125   :  { %v817_v19 = vmax.f32 %v770_v10, 0.0  ;;  %v9214_v10 = vld [vmem:[%s13690_s3 + $0x184] ss:$16 sps:$4 sm:$0xff]   ;;  %6491 = vmatpush2.bf16.msra.mxu1 %v9206_v7 }
 0x126   :  { %v772_v54 = vpop.f32.mrf.mxu0  ;;  %v7984_v13 = vld.sshfl [vmem:[#allocation2 + $0x5] sm:$0x1 pattern:$0x76325410]  ;;  %v874_v56 = vld [vmem:[#allocation2 + $0x4] sm:$0x1]  ;;  %6530 = vmatpush2.bf16.msra.mxu0 %v9203_v21  ;;  %6492 = vmatprep.subr.bf16.mxu1 %v9214_v10 }
 0x127   :  { %830 = vst.msk [vmem:[#allocation2 + $0x10] sm:$0xff] %vm529_vm1, %v817_v19  ;;  %v773_v60 = vadd.f32 %v772_v54, %v685_v53  ;;  %885 = vrot.lane.b32.xlu1 %v7984_v13, %s10383_s22  ;;  %v7982_v29 = vld.sshfl [vmem:[#allocation2 + $0x1] sm:$0x1 pattern:$0x76325410]  ;;  %6531 = vmatprep.subr.bf16.mxu0 %v9211_v34  ;;  %v613_v19 = vadd.f32 %v8889_v35, %v10788_v3 }
 0x128   :  { %875 = vst.msk [vmem:[#allocation3 + $0x4] sm:$0x1] %vm843_vm2, %v874_v56  ;;  %v842_v31 = vld [vmem:[#allocation2] sm:$0x1]  ;;  %854 = vrot.lane.b32.xlu0 %v7982_v29, %s10383_s22  ;;  %v9036_v61 = vpop.f32.mrf.mxu0  ;;  %v889_v20 = vld [vmem:[#allocation2 + $0x6] sm:$0x1]  ;;  %v8947_v53 = vadd.f32 %v10723_v42, %v10719_v40  ;;  %v8892_v54 = vadd.f32 %v10725_v43, %v10721_v41  ;;  %v698_v56 = vadd.f32 %v8944_v48, %v610_v26 }
 0x129   :  { %844 = vst.msk [vmem:[#allocation3] sm:$0x1] %vm843_vm2, %v842_v31  ;;  %v818_v6 = vmax.f32 %v773_v60, 0.0  ;;  %890 = vst.msk [vmem:[#allocation3 + $0x6] sm:$0x1] %vm843_vm2, %v889_v20  ;;  %6493 = vmatpush2.bf16.msra.mxu1 %v9212_v36  ;;  %v8895_v20 = vadd.f32 %v10745_v51, %v10741_v49  ;;  %v8953_v51 = vadd.f32 %v10763_v58, %v10756_v55 }
 0x12a   :  { %v777_v44 = vpop.f32.mrf.mxu0  ;;  %v7985_v25 = vld.sshfl [vmem:[#allocation2 + $0x7] sm:$0x1 pattern:$0x76325410]  ;;  %v859_v27 = vld [vmem:[#allocation2 + $0x2] sm:$0x1]  ;;  %6532 = vmatpush2.bf16.msra.mxu0 %v9209_v39  ;;  %v701_v61 = vadd.f32 %v8947_v53, %v613_v19  ;;  %v618_v43 = vadd.f32 %v8892_v54, %v10788_v3  ;;  %6494 = vmatprep.subr.bf16.mxu1 %v9220_v5 }
 0x12b   :  { %831 = vst.msk [vmem:[#allocation2 + $0x18] sm:$0xff] %vm529_vm1, %v818_v6  ;;  %v778_v32 = vadd.f32 %v777_v44, %v690_v12  ;;  %900 = vrot.lane.b32.xlu1 %v7985_v25, %s10383_s22  ;;  %v7983_v33 = vld.sshfl [vmem:[#allocation2 + $0x3] sm:$0x1 pattern:$0x76325410]  ;;  %v8950_v12 = vadd.f32 %v10743_v50, %v10736_v47  ;;  %v8898_v47 = vadd.f32 %v10765_v59, %v10761_v57 }
 0x12c   :  { %860 = vst.msk [vmem:[#allocation3 + $0x2] sm:$0x1] %vm843_vm2, %v859_v27  ;;  %870 = vrot.lane.b32.xlu0 %v7983_v33, %s10383_s22  ;;  %v9039_v62 = vpop.f32.mrf.mxu0  ;;  %v919_v24 = vld [vmem:[#allocation2 + $0xa] sm:$0x1]  ;;  %v904_v11 = vld [vmem:[#allocation2 + $0x8] sm:$0x1]  ;;  %v621_v49 = vadd.f32 %v8895_v20, %v10788_v3  ;;  %v8956_v59 = vadd.f32 %v10783_v2, %v10776_v63  ;;  %v8901_v33 = vadd.f32 %v10790_v4, %v10781_v1 }
 0x12d   :  { %v819_v16 = vmax.f32 %v778_v32, 0.0  ;;  %920 = vst.msk [vmem:[#allocation3 + $0xa] sm:$0x1] %vm843_vm2, %v919_v24  ;;  %905 = vst.msk [vmem:[#allocation3 + $0x8] sm:$0x1] %vm843_vm2, %v904_v11  ;;  %v706_v7 = vadd.f32 %v8950_v12, %v618_v43  ;;  %6495 = vmatpush2.bf16.msra.mxu1 %v9218_v23  ;;  %v626_v58 = vadd.f32 %v8898_v47, %v10788_v3 }
 0x12e   :  { %v780_v37 = vpop.f32.mrf.mxu0  ;;  %v949_v38 = vld [vmem:[#allocation2 + $0xe] sm:$0x1]  ;;  %v934_v30 = vld [vmem:[#allocation2 + $0xc] sm:$0x1]  ;;  %v979_v29 = vld [vmem:[#allocation2 + $0x12] sm:$0x1]  ;;  %v709_v35 = vadd.f32 %v8953_v51, %v621_v49 }
 0x12f   :  { %832 = vst.msk [vmem:[#allocation2 + $0x20] sm:$0xff] %vm529_vm1, %v819_v16  ;;  %v781_v17 = vadd.f32 %v780_v37, %v693_v18  ;;  %v9215_v40 = vld [vmem:[%s13690_s3 + $0x380] ss:$16 sps:$4 sm:$0xff]   ;;  %v9217_v41 = vld [vmem:[%s13690_s3 + $0x384] ss:$16 sps:$4 sm:$0xff]   ;;  %v714_v4 = vadd.f32 %v8956_v59, %v626_v58  ;;  %v629_v16 = vadd.f32 %v8901_v33, %v10788_v3  ;;  %v8959_v18 = vadd.f32 %v10810_v46, %v10803_v9 }
 0x130   :  { %v9040_v28 = vpop.f32.mrf.mxu0  ;;  %950 = vst.msk [vmem:[#allocation3 + $0xe] sm:$0x1] %vm843_vm2, %v949_v38  ;;  %935 = vst.msk [vmem:[#allocation3 + $0xc] sm:$0x1] %vm843_vm2, %v934_v30  ;;  %6533 = vmatprep.subr.bf16.mxu0 %v9217_v41  ;;  %v9223_v25 = vld [vmem:[%s13690_s3 + $0x364] ss:$16 sps:$4 sm:$0xff]   ;;  %v8904_v37 = vadd.f32 %v10814_v52, %v10808_v45 }
 0x131   :  { %v820_v13 = vmax.f32 %v781_v17, 0.0  ;;  %980 = vst.msk [vmem:[#allocation3 + $0x12] sm:$0x1] %vm843_vm2, %v979_v29  ;;  %6534 = vmatpush2.bf16.msra.mxu0 %v9215_v40  ;;  %v9224_v55 = vld [vmem:[%s13690_s3 + $0x140] ss:$16 sps:$4 sm:$0xff]   ;;  %v8962_v28 = vadd.f32 %v10839_v0, %v10828_v15  ;;  %v717_v54 = vadd.f32 %v8959_v18, %v629_v16 }
 0x132   :  { %v785_v60 = vpop.f32.mrf.mxu0  ;;  %6535 = vmatprep.subr.bf16.mxu0 %v9223_v25  ;;  %v9226_v32 = vld [vmem:[%s13690_s3 + $0x144] ss:$16 sps:$4 sm:$0xff]   ;;  %v9227_v19 = vld [vmem:[%s13690_s3 + $0x340] ss:$16 sps:$4 sm:$0xff]   ;;  %v634_v53 = vadd.f32 %v8904_v37, %v10788_v3  ;;  %v1039_v16 = vld [vmem:[#allocation2 + $0x1a] sm:$0x1] }
 0x133   :  { %833 = vst.msk [vmem:[#allocation2 + $0x28] sm:$0xff] %vm529_vm1, %v820_v13  ;;  %v786_v31 = vadd.f32 %v785_v60, %v698_v56  ;;  %6496 = vmatprep.subr.bf16.mxu1 %v9226_v32  ;;  %v9229_v46 = vld [vmem:[%s13690_s3 + $0x344] ss:$16 sps:$4 sm:$0xff]   ;;  %v9230_v13 = vld [vmem:[%s13690_s3 + $0x120] ss:$16 sps:$4 sm:$0xff]  }
 0x134   :  { %v9043_v42 = vpop.f32.mrf.mxu0  ;;  %6497 = vmatpush2.bf16.msra.mxu1 %v9224_v55  ;;  %v7987_v60 = vld.sshfl [vmem:[#allocation2 + $0xb] sm:$0x1 pattern:$0x76325410]  ;;  %v9232_v29 = vld [vmem:[%s13690_s3 + $0x124] ss:$16 sps:$4 sm:$0xff]  }
 0x135   :  { %v821_v21 = vmax.f32 %v786_v31, 0.0  ;;  %6536 = vmatpush2.bf16.msra.mxu0 %v9221_v8  ;;  %v7986_v15 = vld.sshfl [vmem:[#allocation2 + $0x9] sm:$0x1 pattern:$0x76325410]  ;;  %6498 = vmatprep.subr.bf16.mxu1 %v9232_v29 }
 0x136   :  { %v788_v22 = vpop.f32.mrf.mxu0  ;;  %6537 = vmatprep.subr.bf16.mxu0 %v9229_v46  ;;  %v9233_v0 = vld [vmem:[%s13690_s3 + $0x320] ss:$16 sps:$4 sm:$0xff]   ;;  %v9235_v40 = vld [vmem:[%s13690_s3 + $0x324] ss:$16 sps:$4 sm:$0xff]   ;;  %v1024_v18 = vld [vmem:[#allocation2 + $0x18] sm:$0x1] }
 0x137   :  { %834 = vst.msk [vmem:[#allocation2 + $0x30] sm:$0xff] %vm529_vm1, %v821_v21  ;;  %v789_v14 = vadd.f32 %v788_v22, %v701_v61  ;;  %v722_v61 = vadd.f32 %v8962_v28, %v634_v53  ;;  %v7989_v43 = vld.sshfl [vmem:[#allocation2 + $0xf] sm:$0x1 pattern:$0x76325410] }
 0x138   :  { %v9044_v50 = vpop.f32.mrf.mxu0  ;;  %6499 = vmatpush2.bf16.msra.mxu1 %v9230_v13  ;;  %v9236_v12 = vld [vmem:[%s13690_s3 + $0x100] ss:$16 sps:$4 sm:$0xff]   ;;  %v7988_v21 = vld.sshfl [vmem:[#allocation2 + $0xd] sm:$0x1 pattern:$0x76325410] }
 0x139   :  { %v822_v6 = vmax.f32 %v789_v14, 0.0  ;;  %6538 = vmatpush2.bf16.msra.mxu0 %v9227_v19  ;;  %v9238_v22 = vld [vmem:[%s13690_s3 + $0x104] ss:$16 sps:$4 sm:$0xff]   ;;  %1040 = vst.msk [vmem:[#allocation3 + $0x1a] sm:$0x1] %vm843_vm2, %v1039_v16 }
 0x13a   :  { %v793_v44 = vpop.f32.mrf.mxu0  ;;  %6539 = vmatprep.subr.bf16.mxu0 %v9235_v40  ;;  %6500 = vmatprep.subr.bf16.mxu1 %v9238_v22  ;;  %v7990_v32 = vld.sshfl [vmem:[#allocation2 + $0x11] sm:$0x1 pattern:$0x76325410]  ;;  %v9247_v33 = vld [vmem:[%s13690_s3 + $0x6e4] ss:$16 sps:$4 sm:$0xff]  }
 0x13b   :  { %835 = vst.msk [vmem:[#allocation2 + $0x38] sm:$0xff] %vm529_vm1, %v822_v6  ;;  %v794_v57 = vadd.f32 %v793_v44, %v706_v7  ;;  %v9239_v6 = vld [vmem:[%s13690_s3 + $0x300] ss:$16 sps:$4 sm:$0xff]   ;;  %v9241_v7 = vld [vmem:[%s13690_s3 + $0x304] ss:$16 sps:$4 sm:$0xff]  }
 0x13c   :  { %v9047_v27 = vpop.f32.mrf.mxu0  ;;  %6501 = vmatpush2.bf16.msra.mxu1 %v9236_v12  ;;  %1025 = vst.msk [vmem:[#allocation3 + $0x18] sm:$0x1] %vm843_vm2, %v1024_v18  ;;  %v7995_v19 = vld.sshfl [vmem:[#allocation2 + $0x1b] sm:$0x1 pattern:$0x76325410] }
 0x13d   :  { %v823_v34 = vmax.f32 %v794_v57, 0.0  ;;  %6540 = vmatpush2.bf16.msra.mxu0 %v9233_v0  ;;  %v9244_v57 = vld [vmem:[%s13690_s3 + $0x4e4] ss:$16 sps:$4 sm:$0xff]   ;;  %v1099_v46 = vld [vmem:[#allocation2 + $0x22] sm:$0x1] }
 0x13e   :  { %v1204_v62 = vld [vmem:[#allocation2 + $0x30] sm:$0x1]  ;;  %v796_v10 = vpop.f32.mrf.mxu0  ;;  %v8007_v24 = vld.sshfl [vmem:[#allocation2 + $0x34] sm:$0x1 pattern:$0x76325410]  ;;  %6541 = vmatprep.subr.bf16.mxu0 %v9241_v7  ;;  %6552 = vmatprep.subr.bf16.mxu1 %v9244_v57 }
 0x13f   :  { %1205 = vst.msk [vmem:[#allocation3 + $0x30] sm:$0x1] %vm843_vm2, %v1204_v62  ;;  %v797_v63 = vadd.f32 %v796_v10, %v709_v35  ;;  %1232 = vrot.lane.b32.xlu1 %v8007_v24, %s10383_s22  ;;  %v8006_v2 = vld.sshfl [vmem:[#allocation2 + $0x32] sm:$0x1 pattern:$0x76325410] }
 0x140   :  { %836 = vst.msk [vmem:[#allocation2 + $0x40] sm:$0xff] %vm529_vm1, %v823_v34  ;;  %v1221_v26 = vld [vmem:[#allocation2 + $0x33] sm:$0x1]  ;;  %1217 = vrot.lane.b32.xlu0 %v8006_v2, %s10383_s22  ;;  %v9048_v1 = vpop.f32.mrf.mxu0  ;;  %v1206_v48 = vld [vmem:[#allocation2 + $0x31] sm:$0x1] }
 0x141   :  { %1222 = vst.msk [vmem:[#allocation3 + $0x3] sm:$0x1] %vm843_vm2, %v1221_v26  ;;  %v824_v39 = vmax.f32 %v797_v63, 0.0  ;;  %1207 = vst.msk [vmem:[#allocation3 + $0x1] sm:$0x1] %vm843_vm2, %v1206_v48  ;;  %6542 = vmatpush2.bf16.msra.mxu0 %v9239_v6 }
 0x142   :  { %v1251_v11 = vld [vmem:[#allocation2 + $0x37] sm:$0x1]  ;;  %v1236_v17 = vld [vmem:[#allocation2 + $0x35] sm:$0x1]  ;;  %v801_v36 = vpop.f32.mrf.mxu0  ;;  %v1281_v23 = vld [vmem:[#allocation2 + $0x3b] sm:$0x1]  ;;  %6593 = vmatprep.subr.bf16.mxu0 %v9247_v33 }
 0x143   :  { %v8009_v38 = vld.sshfl [vmem:[#allocation2 + $0x38] sm:$0x1 pattern:$0x76325410]  ;;  %1252 = vst.msk [vmem:[#allocation3 + $0x7] sm:$0x1] %vm843_vm2, %v1251_v11  ;;  %v802_v9 = vadd.f32 %v801_v36, %v714_v4 }
 0x144   :  { %1237 = vst.msk [vmem:[#allocation3 + $0x5] sm:$0x1] %vm843_vm2, %v1236_v17  ;;  %1262 = vrot.lane.b32.xlu1 %v8009_v38, %s10383_s22  ;;  %v8008_v45 = vld.sshfl [vmem:[#allocation2 + $0x36] sm:$0x1 pattern:$0x76325410]  ;;  %v9051_v52 = vpop.f32.mrf.mxu0 }
 0x145   :  { %837 = vst.msk [vmem:[#allocation2 + $0x48] sm:$0xff] %vm529_vm1, %v824_v39  ;;  %1247 = vrot.lane.b32.xlu0 %v8008_v45, %s10383_s22  ;;  %v825_v30 = vmax.f32 %v802_v9, 0.0  ;;  %v8011_v47 = vld.sshfl [vmem:[#allocation2 + $0x3c] sm:$0x1 pattern:$0x76325410] }
 0x146   :  { %v804_v56 = vpop.f32.mrf.mxu0  ;;  %1282 = vst.msk [vmem:[#allocation3 + $0xb] sm:$0x1] %vm843_vm2, %v1281_v23  ;;  %v1266_v50 = vld [vmem:[#allocation2 + $0x39] sm:$0x1]  ;;  %v1311_v55 = vld [vmem:[#allocation2 + $0x3f] sm:$0x1] }
 0x147   :  { %838 = vst.msk [vmem:[#allocation2 + $0x50] sm:$0xff] %vm529_vm1, %v825_v30  ;;  %v805_v3 = vadd.f32 %v804_v56, %v717_v54  ;;  %v8010_v51 = vld.sshfl [vmem:[#allocation2 + $0x3a] sm:$0x1 pattern:$0x76325410] }
 0x148   :  { %930 = vrot.lane.b32.xlu1 %v7987_v60, %s10383_s22  ;;  %v9052_v31 = vpop.f32.mrf.mxu0  ;;  %1267 = vst.msk [vmem:[#allocation3 + $0x9] sm:$0x1] %vm843_vm2, %v1266_v50  ;;  %v8013_v44 = vld.sshfl [vmem:[#allocation2 + $0x40] sm:$0x1 pattern:$0x76325410] }
 0x149   :  { %915 = vrot.lane.b32.xlu0 %v7986_v15, %s10383_s22  ;;  %v826_v42 = vmax.f32 %v805_v3, 0.0  ;;  %v8012_v25 = vld.sshfl [vmem:[#allocation2 + $0x3e] sm:$0x1 pattern:$0x76325410] }
 0x14a   :  { %v809_v41 = vpop.f32.mrf.mxu0  ;;  %1312 = vst.msk [vmem:[#allocation3 + $0xf] sm:$0x1] %vm843_vm2, %v1311_v55  ;;  %v1296_v58 = vld [vmem:[#allocation2 + $0x3d] sm:$0x1]  ;;  %v964_v34 = vld [vmem:[#allocation2 + $0x10] sm:$0x1] }
 0x14b   :  { %839 = vst.msk [vmem:[#allocation2 + $0x58] sm:$0xff] %vm529_vm1, %v826_v42  ;;  %v810_v20 = vadd.f32 %v809_v41, %v722_v61  ;;  %v7991_v27 = vld.sshfl [vmem:[#allocation2 + $0x13] sm:$0x1 pattern:$0x76325410] }
 0x14c   :  { %960 = vrot.lane.b32.xlu1 %v7989_v43, %s10383_s22  ;;  %v9055_v14 = vpop.f32.mrf.mxu0  ;;  %1297 = vst.msk [vmem:[#allocation3 + $0xd] sm:$0x1] %vm843_vm2, %v1296_v58  ;;  %v7993_v35 = vld.sshfl [vmem:[#allocation2 + $0x17] sm:$0x1 pattern:$0x76325410] }
 0x14d   :  { %945 = vrot.lane.b32.xlu0 %v7988_v21, %s10383_s22  ;;  %v827_v5 = vmax.f32 %v810_v20, 0.0  ;;  %965 = vst.msk [vmem:[#allocation3 + $0x10] sm:$0x1] %vm843_vm2, %v964_v34  ;;  %v1009_v62 = vld [vmem:[#allocation2 + $0x16] sm:$0x1] }
 0x14e   :  { %v812_v49 = vpop.f32.mrf.mxu0  ;;  %v994_v10 = vld [vmem:[#allocation2 + $0x14] sm:$0x1]  ;;  %v7992_v24 = vld.sshfl [vmem:[#allocation2 + $0x15] sm:$0x1 pattern:$0x76325410] }
 0x14f   :  { %841 = vst.msk [vmem:[#allocation2 + $0x60] sm:$0x3] %vm840_vm3, %v827_v5  ;;  %v1341_v63 = vld [vmem:[#allocation2 + $0x43] sm:$0x1]  ;;  %v1326_v2 = vld [vmem:[#allocation2 + $0x41] sm:$0x1] }
 0x150   :  { %1292 = vrot.lane.b32.xlu1 %v8011_v47, %s10383_s22  ;;  %v9056_v8 = vpop.f32.mrf.mxu0  ;;  %1010 = vst.msk [vmem:[#allocation3 + $0x16] sm:$0x1] %vm843_vm2, %v1009_v62  ;;  %995 = vst.msk [vmem:[#allocation3 + $0x14] sm:$0x1] %vm843_vm2, %v994_v10  ;;  %v1371_v1 = vld [vmem:[#allocation2 + $0x47] sm:$0x1] }
 0x151   :  { %1277 = vrot.lane.b32.xlu0 %v8010_v51, %s10383_s22  ;;  %v8015_v26 = vld.sshfl [vmem:[#allocation2 + $0x44] sm:$0x1 pattern:$0x76325410]  ;;  %1342 = vst.msk [vmem:[#allocation3 + $0x13] sm:$0x1] %vm843_vm2, %v1341_v63  ;;  %v1586_v63 = vlaneseq }
 0x152   :  { %1327 = vst.msk [vmem:[#allocation3 + $0x11] sm:$0x1] %vm843_vm2, %v1326_v2  ;;  %v1356_v4 = vld [vmem:[#allocation2 + $0x45] sm:$0x1]  ;;  %1372 = vst.msk [vmem:[#allocation3 + $0x17] sm:$0x1] %vm843_vm2, %v1371_v1 }
 0x153   :  { %v8014_v48 = vld.sshfl [vmem:[#allocation2 + $0x42] sm:$0x1 pattern:$0x76325410]  ;;  %1357 = vst.msk [vmem:[#allocation3 + $0x15] sm:$0x1] %vm843_vm2, %v1356_v4 }
 0x154   :  { %1322 = vrot.lane.b32.xlu1 %v8013_v44, %s10383_s22  ;;  %v8017_v37 = vld.sshfl [vmem:[#allocation2 + $0x48] sm:$0x1 pattern:$0x76325410]  ;;  %v1069_v39 = vld [vmem:[#allocation2 + $0x1e] sm:$0x1] }
 0x155   :  { %1307 = vrot.lane.b32.xlu0 %v8012_v25, %s10383_s22  ;;  %v1054_v11 = vld [vmem:[#allocation2 + $0x1c] sm:$0x1]  ;;  %v8016_v17 = vld.sshfl [vmem:[#allocation2 + $0x46] sm:$0x1 pattern:$0x76325410] }
 0x156   :  { %v1566_v59 = vld [vmem:[#allocation2 + $0x61] sm:$0x1]  ;;  %1070 = vst.msk [vmem:[#allocation3 + $0x1e] sm:$0x1] %vm843_vm2, %v1069_v39  ;;  %1055 = vst.msk [vmem:[#allocation3 + $0x1c] sm:$0x1] %vm843_vm2, %v1054_v11 }
 0x157   :  { %1567 = vst.msk [vmem:[#allocation3 + $0x31] sm:$0x1] %vm843_vm2, %v1566_v59  ;;  %v1401_v36 = vld [vmem:[#allocation2 + $0x4b] sm:$0x1]  ;;  %v1386_v38 = vld [vmem:[#allocation2 + $0x49] sm:$0x1] }
 0x158   :  { %990 = vrot.lane.b32.xlu1 %v7991_v27, %s10383_s22  ;;  %1402 = vst.msk [vmem:[#allocation3 + $0x1b] sm:$0x1] %vm843_vm2, %v1401_v36  ;;  %1387 = vst.msk [vmem:[#allocation3 + $0x19] sm:$0x1] %vm843_vm2, %v1386_v38  ;;  %v1431_v9 = vld [vmem:[#allocation2 + $0x4f] sm:$0x1] }
 0x159   :  { %975 = vrot.lane.b32.xlu0 %v7990_v32, %s10383_s22  ;;  %v1416_v45 = vld [vmem:[#allocation2 + $0x4d] sm:$0x1]  ;;  %v7994_v52 = vld.sshfl [vmem:[#allocation2 + $0x19] sm:$0x1 pattern:$0x76325410] }
 0x15a   :  { %1432 = vst.msk [vmem:[#allocation3 + $0x1f] sm:$0x1] %vm843_vm2, %v1431_v9  ;;  %1417 = vst.msk [vmem:[#allocation3 + $0x1d] sm:$0x1] %vm843_vm2, %v1416_v45  ;;  %v1084_v53 = vld [vmem:[#allocation2 + $0x20] sm:$0x1] }
 0x15b   :  { %1100 = vst.msk [vmem:[#allocation3 + $0x22] sm:$0x1] %vm843_vm2, %v1099_v46  ;;  %1085 = vst.msk [vmem:[#allocation3 + $0x20] sm:$0x1] %vm843_vm2, %v1084_v53  ;;  %v1129_v28 = vld [vmem:[#allocation2 + $0x26] sm:$0x1] }
 0x15c   :  { %1020 = vrot.lane.b32.xlu1 %v7993_v35, %s10383_s22  ;;  %v1114_v30 = vld [vmem:[#allocation2 + $0x24] sm:$0x1]  ;;  %v1461_v54 = vld [vmem:[#allocation2 + $0x53] sm:$0x1]  ;;  %1130 = vst.msk [vmem:[#allocation3 + $0x26] sm:$0x1] %vm843_vm2, %v1129_v28 }
 0x15d   :  { %1005 = vrot.lane.b32.xlu0 %v7992_v24, %s10383_s22  ;;  %v7997_v13 = vld.sshfl [vmem:[#allocation2 + $0x1f] sm:$0x1 pattern:$0x76325410]  ;;  %1115 = vst.msk [vmem:[#allocation3 + $0x24] sm:$0x1] %vm843_vm2, %v1114_v30 }
 0x15e   :  { %1462 = vst.msk [vmem:[#allocation3 + $0x23] sm:$0x1] %vm843_vm2, %v1461_v54  ;;  %v1446_v56 = vld [vmem:[#allocation2 + $0x51] sm:$0x1]  ;;  %v1491_v60 = vld [vmem:[#allocation2 + $0x57] sm:$0x1] }
 0x15f   :  { %1447 = vst.msk [vmem:[#allocation3 + $0x21] sm:$0x1] %vm843_vm2, %v1446_v56  ;;  %v1476_v29 = vld [vmem:[#allocation2 + $0x55] sm:$0x1]  ;;  %v1159_v3 = vld [vmem:[#allocation2 + $0x2a] sm:$0x1] }
 0x160   :  { %1352 = vrot.lane.b32.xlu1 %v8015_v26, %s10383_s22  ;;  %v7996_v15 = vld.sshfl [vmem:[#allocation2 + $0x1d] sm:$0x1 pattern:$0x76325410]  ;;  %1492 = vst.msk [vmem:[#allocation3 + $0x27] sm:$0x1] %vm843_vm2, %v1491_v60 }
 0x161   :  { %1337 = vrot.lane.b32.xlu0 %v8014_v48, %s10383_s22  ;;  %1477 = vst.msk [vmem:[#allocation3 + $0x25] sm:$0x1] %vm843_vm2, %v1476_v29  ;;  %1160 = vst.msk [vmem:[#allocation3 + $0x2a] sm:$0x1] %vm843_vm2, %v1159_v3  ;;  %v1144_v0 = vld [vmem:[#allocation2 + $0x28] sm:$0x1] }
 0x162   :  { %1145 = vst.msk [vmem:[#allocation3 + $0x28] sm:$0x1] %vm843_vm2, %v1144_v0  ;;  %v1189_v31 = vld [vmem:[#allocation2 + $0x2e] sm:$0x1]  ;;  %v1174_v40 = vld [vmem:[#allocation2 + $0x2c] sm:$0x1] }
 0x163   :  { %v1521_v42 = vld [vmem:[#allocation2 + $0x5b] sm:$0x1]  ;;  %v8019_v61 = vld.sshfl [vmem:[#allocation2 + $0x4c] sm:$0x1 pattern:$0x76325410] }
 0x164   :  { %1382 = vrot.lane.b32.xlu1 %v8017_v37, %s10383_s22  ;;  %1190 = vst.msk [vmem:[#allocation3 + $0x2e] sm:$0x1] %vm843_vm2, %v1189_v31  ;;  %1175 = vst.msk [vmem:[#allocation3 + $0x2c] sm:$0x1] %vm843_vm2, %v1174_v40  ;;  %v1506_v41 = vld [vmem:[#allocation2 + $0x59] sm:$0x1] }
 0x165   :  { %1367 = vrot.lane.b32.xlu0 %v8016_v17, %s10383_s22  ;;  %1522 = vst.msk [vmem:[#allocation3 + $0x2b] sm:$0x1] %vm843_vm2, %v1521_v42  ;;  %1507 = vst.msk [vmem:[#allocation3 + $0x29] sm:$0x1] %vm843_vm2, %v1506_v41  ;;  %v1551_v43 = vld [vmem:[#allocation2 + $0x5f] sm:$0x1] }
 0x166   :  { %v1536_v12 = vld [vmem:[#allocation2 + $0x5d] sm:$0x1]  ;;  %v8018_v20 = vld.sshfl [vmem:[#allocation2 + $0x4a] sm:$0x1 pattern:$0x76325410] }
 0x167   :  { %1552 = vst.msk [vmem:[#allocation3 + $0x2f] sm:$0x1] %vm843_vm2, %v1551_v43  ;;  %1537 = vst.msk [vmem:[#allocation3 + $0x2d] sm:$0x1] %vm843_vm2, %v1536_v12  ;;  %v10384_v10 = vmov 1983009808  }
 0x168   :  { %1050 = vrot.lane.b32.xlu1 %v7995_v19, %s10383_s22  ;;  %v8021_v21 = vld.sshfl [vmem:[#allocation2 + $0x50] sm:$0x1 pattern:$0x76325410]  ;;  %v1584_v24 = vunpack.c.l.s4 %v10384_v10  ;;  %v11149_v4 = vshrl.u32 %v1586_v63, 7 }
 0x169   :  { %1035 = vrot.lane.b32.xlu0 %v7994_v52, %s10383_s22  ;;  %v8020_v22 = vld.sshfl [vmem:[#allocation2 + $0x4e] sm:$0x1 pattern:$0x76325410]  ;;  %v9242_v9 = vld [vmem:[%s13690_s3 + $0x4e0] ss:$16 sps:$4 sm:$0xff]  }
 0x16a   :  { %v7999_v23 = vld.sshfl [vmem:[#allocation2 + $0x23] sm:$0x1 pattern:$0x76325410]  ;;  %v1585_v1 = vunpack.c.0.s8 %v1584_v24  ;;  %v9250_v30 = vld [vmem:[%s13690_s3 + $0x4c4] ss:$16 sps:$4 sm:$0xff]  }
 0x16b   :  { %v7998_v14 = vld.sshfl [vmem:[#allocation2 + $0x21] sm:$0x1 pattern:$0x76325410]  ;;  %v9256_v0 = vld [vmem:[%s13690_s3 + $0x4a4] ss:$16 sps:$4 sm:$0xff]  }
 0x16c   :  { %1080 = vrot.lane.b32.xlu1 %v7997_v13, %s10383_s22  ;;  %v8001_v5 = vld.sshfl [vmem:[#allocation2 + $0x27] sm:$0x1 pattern:$0x76325410]  ;;  %v11154_v18 = vsub.s32 %v1585_v1, %v11149_v4  ;;  %v9245_v28 = vld [vmem:[%s13690_s3 + $0x6e0] ss:$16 sps:$4 sm:$0xff]  }
 0x16d   :  { %1065 = vrot.lane.b32.xlu0 %v7996_v15, %s10383_s22  ;;  %v8000_v47 = vld.sshfl [vmem:[#allocation2 + $0x25] sm:$0x1 pattern:$0x76325410]  ;;  %v9248_v3 = vld [vmem:[%s13690_s3 + $0x4c0] ss:$16 sps:$4 sm:$0xff]  }
 0x16e   :  { %v8023_v50 = vld.sshfl [vmem:[#allocation2 + $0x54] sm:$0x1 pattern:$0x76325410] }
 0x16f   :  { %v8022_v49 = vld.sshfl [vmem:[#allocation2 + $0x52] sm:$0x1 pattern:$0x76325410]  ;;  %v9253_v15 = vld [vmem:[%s13690_s3 + $0x6c4] ss:$16 sps:$4 sm:$0xff]  }
 0x170   :  { %1412 = vrot.lane.b32.xlu1 %v8019_v61, %s10383_s22  ;;  %v8025_v51 = vld.sshfl [vmem:[#allocation2 + $0x58] sm:$0x1 pattern:$0x76325410] }
 0x171   :  { %1397 = vrot.lane.b32.xlu0 %v8018_v20, %s10383_s22  ;;  %v8024_v6 = vld.sshfl [vmem:[#allocation2 + $0x56] sm:$0x1 pattern:$0x76325410] }
 0x172   :  { %v8003_v7 = vld.sshfl [vmem:[#allocation2 + $0x2b] sm:$0x1 pattern:$0x76325410] }
 0x173   :  { %v8002_v8 = vld.sshfl [vmem:[#allocation2 + $0x29] sm:$0x1 pattern:$0x76325410] }
 0x174   :  { %1442 = vrot.lane.b32.xlu1 %v8021_v21, %s10383_s22  ;;  %v8005_v44 = vld.sshfl [vmem:[#allocation2 + $0x2f] sm:$0x1 pattern:$0x76325410] }
 0x175   :  { %1427 = vrot.lane.b32.xlu0 %v8020_v22, %s10383_s22  ;;  %v8004_v25 = vld.sshfl [vmem:[#allocation2 + $0x2d] sm:$0x1 pattern:$0x76325410] }
 0x176   :  { %v8027_v57 = vld.sshfl [vmem:[#allocation2 + $0x5c] sm:$0x1 pattern:$0x76325410] }
 0x177   :  { %v8026_v55 = vld.sshfl [vmem:[#allocation2 + $0x5a] sm:$0x1 pattern:$0x76325410] }
 0x178   :  { %1110 = vrot.lane.b32.xlu1 %v7999_v23, %s10383_s22  ;;  %v8029_v58 = vld.sshfl [vmem:[#allocation2 + $0x60] sm:$0x1 pattern:$0x76325410] }
 0x179   :  { %1095 = vrot.lane.b32.xlu0 %v7998_v14, %s10383_s22  ;;  %v8028_v59 = vld.sshfl [vmem:[#allocation2 + $0x5e] sm:$0x1 pattern:$0x76325410] }
 0x17c   :  { %1140 = vrot.lane.b32.xlu1 %v8001_v5, %s10383_s22 }
 0x17d   :  { %1125 = vrot.lane.b32.xlu0 %v8000_v47, %s10383_s22 }
 0x180   :  { %1472 = vrot.lane.b32.xlu1 %v8023_v50, %s10383_s22 }
 0x181   :  { %1457 = vrot.lane.b32.xlu0 %v8022_v49, %s10383_s22 }
 0x184   :  { %1502 = vrot.lane.b32.xlu1 %v8025_v51, %s10383_s22 }
 0x185   :  { %1487 = vrot.lane.b32.xlu0 %v8024_v6, %s10383_s22 }
 0x188   :  { %1170 = vrot.lane.b32.xlu1 %v8003_v7, %s10383_s22 }
 0x189   :  { %1155 = vrot.lane.b32.xlu0 %v8002_v8, %s10383_s22 }
 0x18c   :  { %1200 = vrot.lane.b32.xlu1 %v8005_v44, %s10383_s22 }
 0x18d   :  { %1185 = vrot.lane.b32.xlu0 %v8004_v25, %s10383_s22 }
 0x190   :  { %1532 = vrot.lane.b32.xlu1 %v8027_v57, %s10383_s22 }
 0x191   :  { %1517 = vrot.lane.b32.xlu0 %v8026_v55, %s10383_s22 }
 0x194   :  { %1562 = vrot.lane.b32.xlu1 %v8029_v58, %s10383_s22 }
 0x195   :  { %1547 = vrot.lane.b32.xlu0 %v8028_v59, %s10383_s22 }
 0x199   :  { %v886_v27 = vpop.permute.xlu1 %885 }
 0x19a   :  { %888 = vst.msk [vmem:[#allocation3 + $0x4] sm:$0x1] %vm857_vm4, %v886_v27  ;;  %v855_v32 = vpop.permute.xlu0 %854 }
 0x19b   :  { %858 = vst.msk [vmem:[#allocation3] sm:$0x1] %vm857_vm4, %v855_v32 }
 0x19d   :  { %v901_v33 = vpop.permute.xlu1 %900 }
 0x19e   :  { %903 = vst.msk [vmem:[#allocation3 + $0x6] sm:$0x1] %vm857_vm4, %v901_v33  ;;  %v871_v34 = vpop.permute.xlu0 %870 }
 0x19f   :  { %873 = vst.msk [vmem:[#allocation3 + $0x2] sm:$0x1] %vm857_vm4, %v871_v34 }
 0x1b1   :  { %v1233_v35 = vpop.permute.xlu1 %1232 }
 0x1b2   :  { %1235 = vst.msk [vmem:[#allocation3 + $0x3] sm:$0x1] %vm857_vm4, %v1233_v35  ;;  %v1218_v62 = vpop.permute.xlu0 %1217 }
 0x1b3   :  { %1220 = vst.msk [vmem:[#allocation3 + $0x1] sm:$0x1] %vm857_vm4, %v1218_v62 }
 0x1b6   :  { %v1263_v2 = vpop.permute.xlu1 %1262 }
 0x1b7   :  { %1265 = vst.msk [vmem:[#allocation3 + $0x7] sm:$0x1] %vm857_vm4, %v1263_v2  ;;  %v1248_v26 = vpop.permute.xlu0 %1247 }
 0x1b8   :  { %1250 = vst.msk [vmem:[#allocation3 + $0x5] sm:$0x1] %vm857_vm4, %v1248_v26 }
 0x1ba   :  { %v931_v48 = vpop.permute.xlu1 %930 }
 0x1bb   :  { %933 = vst.msk [vmem:[#allocation3 + $0xa] sm:$0x1] %vm857_vm4, %v931_v48  ;;  %v916_v16 = vpop.permute.xlu0 %915 }
 0x1bc   :  { %918 = vst.msk [vmem:[#allocation3 + $0x8] sm:$0x1] %vm857_vm4, %v916_v16 }
 0x1be   :  { %v961_v37 = vpop.permute.xlu1 %960 }
 0x1bf   :  { %963 = vst.msk [vmem:[#allocation3 + $0xe] sm:$0x1] %vm857_vm4, %v961_v37  ;;  %v946_v39 = vpop.permute.xlu0 %945  ;;  %v1568_v11 = vld [vmem:[#allocation3] sm:$0xff] }
 0x1c0   :  { %948 = vst.msk [vmem:[#allocation3 + $0xc] sm:$0x1] %vm857_vm4, %v946_v39  ;;  %v1589_v17 = vrot.slane %v1568_v11, %v11154_v18  ;;  %v1582_v36 = vcombine.high %v1568_v11, %v1568_v11 }
 0x1c2   :  { %v1293_v38 = vpop.permute.xlu1 %1292  ;;  %v1597_v19 = vcombine.high %v1589_v17, %v1589_v17  ;;  %v1596_v45 = vrot.slane %v1582_v36, %v11154_v18  ;;  %v11173_v54 = vpack.c.bf16 %v1589_v17, %v1589_v17 }
 0x1c3   :  { %1295 = vst.msk [vmem:[#allocation3 + $0xb] sm:$0x1] %vm857_vm4, %v1293_v38  ;;  %v1278_v46 = vpop.permute.xlu0 %1277 }
 0x1c4   :  { %1280 = vst.msk [vmem:[#allocation3 + $0x9] sm:$0x1] %vm857_vm4, %v1278_v46  ;;  %v11165_v52 = vpack.c.bf16 %v1597_v19, %v1597_v19  ;;  %v1598_v53 = vcombine.high %v1596_v45, %v1596_v45  ;;  %v11180_v29 = vpack.c.bf16 %v1596_v45, %v1596_v45 }
 0x1c6   :  { %6502 = vmatprep.mubr.bf16.mxu1 %v11165_v52  ;;  %v1323_v13 = vpop.permute.xlu1 %1322  ;;  %v11176_v56 = vpack.c.bf16 %v1598_v53, %v1598_v53 }
 0x1c7   :  { %1325 = vst.msk [vmem:[#allocation3 + $0xf] sm:$0x1] %vm857_vm4, %v1323_v13  ;;  %v1308_v60 = vpop.permute.xlu0 %1307  ;;  %6503 = vmatmul.mubr.bf16.vlgmr.msra.gmra.mxu1 %v11173_v54 }
 0x1c8   :  { %1310 = vst.msk [vmem:[#allocation3 + $0xd] sm:$0x1] %vm857_vm4, %v1308_v60  ;;  %6553 = vmatpush1.bf16.msra.mxu1 %v9242_v9  ;;  %6543 = vmatprep.mubr.bf16.mxu0 %v11176_v56 }
 0x1c9   :  { %6544 = vmatmul.mubr.bf16.vlgmr.msra.gmra.mxu0 %v11180_v29  ;;  %6554 = vmatprep.subr.bf16.mxu1 %v9250_v30 }
 0x1ca   :  { %12 = vsyncpa [#allocation5], 0  ;;  %6594 = vmatpush1.bf16.msra.mxu0 %v9245_v28  ;;  %v991_v31 = vpop.permute.xlu1 %990  ;;  %v9251_v40 = vld [vmem:[%s13690_s3 + $0x6c0] ss:$16 sps:$4 sm:$0xff]   ;;  %v9259_v61 = vld [vmem:[%s13690_s3 + $0x6a4] ss:$16 sps:$4 sm:$0xff]  }
 0x1cb   :  { %993 = vst.msk [vmem:[#allocation3 + $0x12] sm:$0x1] %vm857_vm4, %v991_v31  ;;  %v976_v42 = vpop.permute.xlu0 %975  ;;  %6595 = vmatprep.subr.bf16.mxu0 %v9253_v15  ;;  %v9254_v41 = vld [vmem:[%s13690_s3 + $0x4a0] ss:$16 sps:$4 sm:$0xff]   ;;  %v9262_v43 = vld [vmem:[%s13690_s3 + $0x484] ss:$16 sps:$4 sm:$0xff]  }
 0x1cc   :  { %978 = vst.msk [vmem:[#allocation3 + $0x10] sm:$0x1] %vm857_vm4, %v976_v42  ;;  %6555 = vmatpush1.bf16.msra.mxu1 %v9248_v3  ;;  %v9257_v20 = vld [vmem:[%s13690_s3 + $0x6a0] ss:$16 sps:$4 sm:$0xff]   ;;  %v9265_v22 = vld [vmem:[%s13690_s3 + $0x684] ss:$16 sps:$4 sm:$0xff]  }
 0x1cd   :  { %6556 = vmatprep.subr.bf16.mxu1 %v9256_v0  ;;  %v9260_v14 = vld [vmem:[%s13690_s3 + $0x480] ss:$16 sps:$4 sm:$0xff]   ;;  %v9268_v50 = vld [vmem:[%s13690_s3 + $0x464] ss:$16 sps:$4 sm:$0xff]   ;;  %s10386_s12 = smov [#allocation4]   ;;  %vm7887_vm5 = vcmask 41984  }
 0x1ce   :  { %6596 = vmatpush1.bf16.msra.mxu0 %v9251_v40  ;;  %v1021_v12 = vpop.permute.xlu1 %1020  ;;  %v9263_v51 = vld [vmem:[%s13690_s3 + $0x680] ss:$16 sps:$4 sm:$0xff]   ;;  %v9271_v44 = vld [vmem:[%s13690_s3 + $0x664] ss:$16 sps:$4 sm:$0xff]   ;;  %s7895_s13 = sshll.u32 %s10386_s12, 4  ;;  %s7896_s13 = int_to_ptr.vmem [resolvable:$true] %s7895_s13 }
 0x1cf   :  { %1023 = vst.msk [vmem:[#allocation3 + $0x16] sm:$0x1] %vm857_vm4, %v1021_v12  ;;  %v1006_v21 = vpop.permute.xlu0 %1005  ;;  %6597 = vmatprep.subr.bf16.mxu0 %v9259_v61  ;;  %v1569_v23 = vld [vmem:[#allocation3 + $0x8] sm:$0xff]  ;;  %s10359_s14 = scalar_lea.vmem %s7896_s13, 32  ;;  %p10364_p1 = scmp.lt.s32.totalorder %s7896_s13, %s7896_s13 }
 0x1d0   :  { %1008 = vst.msk [vmem:[#allocation3 + $0x14] sm:$0x1] %vm857_vm4, %v1006_v21  ;;  %6557 = vmatpush1.bf16.msra.mxu1 %v9254_v41  ;;  %v11220_v5 = vrot.slane %v1569_v23, %v11154_v18  ;;  %v1599_v47 = vcombine.high %v1569_v23, %v1569_v23  ;;  %v9266_v25 = vld [vmem:[%s13690_s3 + $0x460] ss:$16 sps:$4 sm:$0xff]   ;;  %v9274_v58 = vld [vmem:[%s13690_s3 + $0x444] ss:$16 sps:$4 sm:$0xff]   ;;  %p10360_p0 = scmp.ne.s32.totalorder %s7896_s13, %s10359_s14  ;;  %p10365_p2 = scmp.lt.s32.totalorder %s10359_s14, %s10359_s14 }
 0x1d1   :  { %6558 = vmatprep.subr.bf16.mxu1 %v9262_v43  ;;  %v9269_v27 = vld [vmem:[%s13690_s3 + $0x660] ss:$16 sps:$4 sm:$0xff]   ;;  %v9277_v34 = vld [vmem:[%s13690_s3 + $0x644] ss:$16 sps:$4 sm:$0xff]  }
 0x1d2   :  { %6598 = vmatpush1.bf16.msra.mxu0 %v9257_v20  ;;  %v1353_v49 = vpop.permute.xlu1 %1352  ;;  %v1614_v6 = vcombine.high %v11220_v5, %v11220_v5  ;;  %v11231_v7 = vrot.slane %v1599_v47, %v11154_v18  ;;  %v9272_v35 = vld [vmem:[%s13690_s3 + $0x440] ss:$16 sps:$4 sm:$0xff]   ;;  %v9280_v62 = vld [vmem:[%s13690_s3 + $0x424] ss:$16 sps:$4 sm:$0xff]   ;;  %p10366_p3 = por %p10365_p2, %p10364_p1 }
 0x1d3   :  { %1355 = vst.msk [vmem:[#allocation3 + $0x13] sm:$0x1] %vm857_vm4, %v1353_v49  ;;  %v1338_v8 = vpop.permute.xlu0 %1337  ;;  %6599 = vmatprep.subr.bf16.mxu0 %v9265_v22  ;;  %v9275_v24 = vld [vmem:[%s13690_s3 + $0x640] ss:$16 sps:$4 sm:$0xff]   ;;  %v9283_v2 = vld [vmem:[%s13690_s3 + $0x624] ss:$16 sps:$4 sm:$0xff]  }
 0x1d4   :  { %1340 = vst.msk [vmem:[#allocation3 + $0x11] sm:$0x1] %vm857_vm4, %v1338_v8  ;;  %6559 = vmatpush1.bf16.msra.mxu1 %v9260_v14  ;;  %v11241_v57 = vpack.c.bf16 %v1614_v6, %v1614_v6  ;;  %v1615_v55 = vcombine.high %v11231_v7, %v11231_v7  ;;  %v9278_v26 = vld [vmem:[%s13690_s3 + $0x420] ss:$16 sps:$4 sm:$0xff]   ;;  %v9286_v1 = vld [vmem:[%s13690_s3 + $0x404] ss:$16 sps:$4 sm:$0xff]   ;;  %p10367_p4 = pnand %p10366_p3, %p10360_p0 }
 0x1d5   :  { %6560 = vmatprep.subr.bf16.mxu1 %v9268_v50  ;;  %v9281_v16 = vld [vmem:[%s13690_s3 + $0x620] ss:$16 sps:$4 sm:$0xff]   ;;  %v9289_v39 = vld [vmem:[%s13690_s3 + $0x604] ss:$16 sps:$4 sm:$0xff]  }
 0x1d6   :  { %6600 = vmatpush1.bf16.msra.mxu0 %v9263_v51  ;;  %6584 = vmatprep.mubr.bf16.mxu1 %v11241_v57  ;;  %v1383_v59 = vpop.permute.xlu1 %1382  ;;  %v11252_v32 = vpack.c.bf16 %v1615_v55, %v1615_v55  ;;  %v9284_v11 = vld [vmem:[%s13690_s3 + $0x400] ss:$16 sps:$4 sm:$0xff]   ;;  %v9292_v17 = vld [vmem:[%s13690_s3 + $0x5e4] ss:$16 sps:$4 sm:$0xff]  }
 0x1d7   :  { %1385 = vst.msk [vmem:[#allocation3 + $0x17] sm:$0x1] %vm857_vm4, %v1383_v59  ;;  %v1368_v33 = vpop.permute.xlu0 %1367  ;;  %6601 = vmatprep.subr.bf16.mxu0 %v9271_v44  ;;  %v9287_v38 = vld [vmem:[%s13690_s3 + $0x600] ss:$16 sps:$4 sm:$0xff]   ;;  %v9295_v9 = vld [vmem:[%s13690_s3 + $0x7e4] ss:$16 sps:$4 sm:$0xff]  }
 0x1d8   :  { %1370 = vst.msk [vmem:[#allocation3 + $0x15] sm:$0x1] %vm857_vm4, %v1368_v33  ;;  %6561 = vmatpush1.bf16.msra.mxu1 %v9266_v25  ;;  %6625 = vmatprep.mubr.bf16.mxu0 %v11252_v32  ;;  %v9290_v45 = vld [vmem:[%s13690_s3 + $0x5e0] ss:$16 sps:$4 sm:$0xff]   ;;  %v9298_v46 = vld [vmem:[%s13690_s3 + $0x5c4] ss:$16 sps:$4 sm:$0xff]  }
 0x1d9   :  { %6562 = vmatprep.subr.bf16.mxu1 %v9274_v58  ;;  %v9293_v28 = vld [vmem:[%s13690_s3 + $0x7e0] ss:$16 sps:$4 sm:$0xff]   ;;  %v9301_v13 = vld [vmem:[%s13690_s3 + $0x7c4] ss:$16 sps:$4 sm:$0xff]  }
 0x1da   :  { %6602 = vmatpush1.bf16.msra.mxu0 %v9269_v27  ;;  %v1051_v10 = vpop.permute.xlu1 %1050  ;;  %v9296_v60 = vld [vmem:[%s13690_s3 + $0x5c0] ss:$16 sps:$4 sm:$0xff]   ;;  %v9304_v3 = vld [vmem:[%s13690_s3 + $0x5a4] ss:$16 sps:$4 sm:$0xff]  }
 0x1db   :  { %1053 = vst.msk [vmem:[#allocation3 + $0x1a] sm:$0x1] %vm857_vm4, %v1051_v10  ;;  %v1036_v63 = vpop.permute.xlu0 %1035  ;;  %6603 = vmatprep.subr.bf16.mxu0 %v9277_v34  ;;  %v9299_v0 = vld [vmem:[%s13690_s3 + $0x7c0] ss:$16 sps:$4 sm:$0xff]   ;;  %v9307_v40 = vld [vmem:[%s13690_s3 + $0x7a4] ss:$16 sps:$4 sm:$0xff]  }
 0x1dc   :  { %1038 = vst.msk [vmem:[#allocation3 + $0x18] sm:$0x1] %vm857_vm4, %v1036_v63  ;;  %6563 = vmatpush1.bf16.msra.mxu1 %v9272_v35  ;;  %v9302_v42 = vld [vmem:[%s13690_s3 + $0x5a0] ss:$16 sps:$4 sm:$0xff]   ;;  %v9310_v61 = vld [vmem:[%s13690_s3 + $0x584] ss:$16 sps:$4 sm:$0xff]  }
 0x1dd   :  { %6564 = vmatprep.subr.bf16.mxu1 %v9280_v62  ;;  %v9305_v43 = vld [vmem:[%s13690_s3 + $0x7a0] ss:$16 sps:$4 sm:$0xff]   ;;  %v9313_v20 = vld [vmem:[%s13690_s3 + $0x784] ss:$16 sps:$4 sm:$0xff]  }
 0x1de   :  { %6604 = vmatpush1.bf16.msra.mxu0 %v9275_v24  ;;  %v1081_v48 = vpop.permute.xlu1 %1080  ;;  %v9308_v21 = vld [vmem:[%s13690_s3 + $0x580] ss:$16 sps:$4 sm:$0xff]   ;;  %v9316_v22 = vld [vmem:[%s13690_s3 + $0x564] ss:$16 sps:$4 sm:$0xff]  }
 0x1df   :  { %1083 = vst.msk [vmem:[#allocation3 + $0x1e] sm:$0x1] %vm857_vm4, %v1081_v48  ;;  %v1066_v37 = vpop.permute.xlu0 %1065  ;;  %6605 = vmatprep.subr.bf16.mxu0 %v9283_v2  ;;  %v9311_v14 = vld [vmem:[%s13690_s3 + $0x780] ss:$16 sps:$4 sm:$0xff]   ;;  %v9319_v50 = vld [vmem:[%s13690_s3 + $0x764] ss:$16 sps:$4 sm:$0xff]  }
 0x1e0   :  { %1068 = vst.msk [vmem:[#allocation3 + $0x1c] sm:$0x1] %vm857_vm4, %v1066_v37  ;;  %6565 = vmatpush1.bf16.msra.mxu1 %v9278_v26  ;;  %v9314_v49 = vld [vmem:[%s13690_s3 + $0x560] ss:$16 sps:$4 sm:$0xff]   ;;  %v9322_v51 = vld [vmem:[%s13690_s3 + $0x544] ss:$16 sps:$4 sm:$0xff]  }
 0x1e1   :  { %6566 = vmatprep.subr.bf16.mxu1 %v9286_v1  ;;  %v9317_v8 = vld [vmem:[%s13690_s3 + $0x760] ss:$16 sps:$4 sm:$0xff]   ;;  %v9325_v25 = vld [vmem:[%s13690_s3 + $0x744] ss:$16 sps:$4 sm:$0xff]   ;;  %v1570_v59 = vld [vmem:[#allocation3 + $0x10] sm:$0xff] }
 0x1e2   :  { %6606 = vmatpush1.bf16.msra.mxu0 %v9281_v16  ;;  %v1413_v36 = vpop.permute.xlu1 %1412  ;;  %v9320_v55 = vld [vmem:[%s13690_s3 + $0x540] ss:$16 sps:$4 sm:$0xff]   ;;  %v9328_v58 = vld [vmem:[%s13690_s3 + $0x524] ss:$16 sps:$4 sm:$0xff]   ;;  %v1616_v10 = vcombine.high %v1570_v59, %v1570_v59  ;;  %v11396_v26 = vrot.slane %v1570_v59, %v11154_v18 }
 0x1e3   :  { %1415 = vst.msk [vmem:[#allocation3 + $0x1b] sm:$0x1] %vm857_vm4, %v1413_v36  ;;  %v1398_v19 = vpop.permute.xlu0 %1397  ;;  %6607 = vmatprep.subr.bf16.mxu0 %v9289_v39  ;;  %v9323_v33 = vld [vmem:[%s13690_s3 + $0x740] ss:$16 sps:$4 sm:$0xff]   ;;  %v9331_v35 = vld [vmem:[%s13690_s3 + $0x724] ss:$16 sps:$4 sm:$0xff]  }
 0x1e4   :  { %1400 = vst.msk [vmem:[#allocation3 + $0x19] sm:$0x1] %vm857_vm4, %v1398_v19  ;;  %6567 = vmatpush1.bf16.msra.mxu1 %v9284_v11  ;;  %v9326_v62 = vld [vmem:[%s13690_s3 + $0x520] ss:$16 sps:$4 sm:$0xff]   ;;  %v9334_v24 = vld [vmem:[%s13690_s3 + $0x504] ss:$16 sps:$4 sm:$0xff]   ;;  %v11407_v37 = vrot.slane %v1616_v10, %v11154_v18  ;;  %v1631_v36 = vcombine.high %v11396_v26, %v11396_v26 }
 0x1e5   :  { %6568 = vmatprep.subr.bf16.mxu1 %v9292_v17  ;;  %v9329_v2 = vld [vmem:[%s13690_s3 + $0x720] ss:$16 sps:$4 sm:$0xff]   ;;  %v9337_v48 = vld [vmem:[%s13690_s3 + $0x704] ss:$16 sps:$4 sm:$0xff]  }
 0x1e6   :  { %6608 = vmatpush1.bf16.msra.mxu0 %v9287_v38  ;;  %v1443_v53 = vpop.permute.xlu1 %1442  ;;  %v9332_v16 = vld [vmem:[%s13690_s3 + $0x500] ss:$16 sps:$4 sm:$0xff]   ;;  %v9340_v39 = vld [vmem:[%s13690_s3 + $0x8e4] ss:$16 sps:$4 sm:$0xff]  }
 0x1e7   :  { %1445 = vst.msk [vmem:[#allocation3 + $0x1f] sm:$0x1] %vm857_vm4, %v1443_v53  ;;  %v1428_v30 = vpop.permute.xlu0 %1427  ;;  %6609 = vmatprep.subr.bf16.mxu0 %v9295_v9  ;;  %v9335_v17 = vld [vmem:[%s13690_s3 + $0x700] ss:$16 sps:$4 sm:$0xff]   ;;  %v9343_v19 = vld [vmem:[%s13690_s3 + $0xae4] ss:$16 sps:$4 sm:$0xff]  }
 0x1e8   :  { %1430 = vst.msk [vmem:[#allocation3 + $0x1d] sm:$0x1] %vm857_vm4, %v1428_v30  ;;  %6569 = vmatpush2.bf16.msra.mxu1 %v9290_v45  ;;  %v9338_v9 = vld [vmem:[%s13690_s3 + $0x8e0] ss:$16 sps:$4 sm:$0xff]   ;;  %v1632_v45 = vcombine.high %v11407_v37, %v11407_v37  ;;  %v9347_v53 = vld [vmem:[%s13690_s3 + $0x8c4] ss:$16 sps:$4 sm:$0xff]   ;;  %v11434_v30 = vpack.c.bf16 %v1631_v36, %v1631_v36 }
 0x1e9   :  { %6570 = vmatprep.subr.bf16.mxu1 %v9298_v46  ;;  %v11429_v46 = vpack.c.bf16 %v11220_v5, %v11220_v5  ;;  %v11443_v5 = vpack.c.bf16 %v11231_v7, %v11231_v7  ;;  %v9353_v7 = vld [vmem:[%s13690_s3 + $0x8a4] ss:$16 sps:$4 sm:$0xff]   ;;  %v9381_v59 = vld [vmem:[%s13690_s3 + $0x800] ss:$16 sps:$4 sm:$0xff]  }
 0x1ea   :  { %6610 = vmatpush2.bf16.msra.mxu0 %v9293_v28  ;;  %v1111_v15 = vpop.permute.xlu1 %1110  ;;  %v9390_v10 = vld [vmem:[%s13690_s3 + $0xbe0] ss:$16 sps:$4 sm:$0xff]  }
 0x1eb   :  { %1113 = vst.msk [vmem:[#allocation3 + $0x22] sm:$0x1] %vm857_vm4, %v1111_v15  ;;  %v1096_v31 = vpop.permute.xlu0 %1095  ;;  %6611 = vmatprep.subr.bf16.mxu0 %v9301_v13  ;;  %v9341_v13 = vld [vmem:[%s13690_s3 + $0xae0] ss:$16 sps:$4 sm:$0xff]   ;;  %v11450_v15 = vpack.c.bf16 %v1632_v45, %v1632_v45 }
 0x1ec   :  { %1098 = vst.msk [vmem:[#allocation3 + $0x20] sm:$0x1] %vm857_vm4, %v1096_v31  ;;  %6571 = vmatpush2.bf16.msra.mxu1 %v9296_v60  ;;  %v9348_v31 = vld [vmem:[%s13690_s3 + $0xac0] ss:$16 sps:$4 sm:$0xff]  }
 0x1ed   :  { %6572 = vmatprep.subr.bf16.mxu1 %v9304_v3  ;;  %v9350_v3 = vld [vmem:[%s13690_s3 + $0xac4] ss:$16 sps:$4 sm:$0xff]   ;;  %v9405_v36 = vld [vmem:[%s13690_s3 + $0x980] ss:$16 sps:$4 sm:$0xff]  }
 0x1ee   :  { %6612 = vmatpush2.bf16.msra.mxu0 %v9299_v0  ;;  %v1141_v41 = vpop.permute.xlu1 %1140  ;;  %v9345_v0 = vld [vmem:[%s13690_s3 + $0x8c0] ss:$16 sps:$4 sm:$0xff]  }
 0x1ef   :  { %1143 = vst.msk [vmem:[#allocation3 + $0x26] sm:$0x1] %vm857_vm4, %v1141_v41  ;;  %v1126_v12 = vpop.permute.xlu0 %1125  ;;  %6613 = vmatprep.subr.bf16.mxu0 %v9307_v40  ;;  %v9356_v40 = vld [vmem:[%s13690_s3 + $0xaa4] ss:$16 sps:$4 sm:$0xff]   ;;  %v9354_v41 = vld [vmem:[%s13690_s3 + $0xaa0] ss:$16 sps:$4 sm:$0xff]  }
 0x1f0   :  { %1128 = vst.msk [vmem:[#allocation3 + $0x24] sm:$0x1] %vm857_vm4, %v1126_v12  ;;  %6573 = vmatpush2.bf16.msra.mxu1 %v9302_v42  ;;  %v9351_v42 = vld [vmem:[%s13690_s3 + $0x8a0] ss:$16 sps:$4 sm:$0xff]  }
 0x1f1   :  { %6574 = vmatprep.subr.bf16.mxu1 %v9310_v61  ;;  %v9359_v61 = vld [vmem:[%s13690_s3 + $0x884] ss:$16 sps:$4 sm:$0xff]   ;;  %v9357_v12 = vld [vmem:[%s13690_s3 + $0x880] ss:$16 sps:$4 sm:$0xff]  }
 0x1f2   :  { %6614 = vmatpush2.bf16.msra.mxu0 %v9305_v43  ;;  %v1473_v23 = vpop.permute.xlu1 %1472  ;;  %v9362_v43 = vld [vmem:[%s13690_s3 + $0xa84] ss:$16 sps:$4 sm:$0xff]   ;;  %v9411_v45 = vld [vmem:[%s13690_s3 + $0x960] ss:$16 sps:$4 sm:$0xff]  }
 0x1f3   :  { %1475 = vst.msk [vmem:[#allocation3 + $0x23] sm:$0x1] %vm857_vm4, %v1473_v23  ;;  %v1458_v47 = vpop.permute.xlu0 %1457  ;;  %6615 = vmatprep.subr.bf16.mxu0 %v9313_v20  ;;  %v9365_v20 = vld [vmem:[%s13690_s3 + $0x864] ss:$16 sps:$4 sm:$0xff]   ;;  %v9363_v23 = vld [vmem:[%s13690_s3 + $0x860] ss:$16 sps:$4 sm:$0xff]  }
 0x1f4   :  { %1460 = vst.msk [vmem:[#allocation3 + $0x21] sm:$0x1] %vm857_vm4, %v1458_v47  ;;  %6575 = vmatpush2.bf16.msra.mxu1 %v9308_v21  ;;  %v9360_v21 = vld [vmem:[%s13690_s3 + $0xa80] ss:$16 sps:$4 sm:$0xff]  }
 0x1f5   :  { %6576 = vmatprep.subr.bf16.mxu1 %v9316_v22  ;;  %v9368_v22 = vld [vmem:[%s13690_s3 + $0xa64] ss:$16 sps:$4 sm:$0xff]   ;;  %v9366_v47 = vld [vmem:[%s13690_s3 + $0xa60] ss:$16 sps:$4 sm:$0xff]  }
 0x1f6   :  { %6616 = vmatpush2.bf16.msra.mxu0 %v9311_v14  ;;  %v1503_v6 = vpop.permute.xlu1 %1502  ;;  %v9371_v14 = vld [vmem:[%s13690_s3 + $0x844] ss:$16 sps:$4 sm:$0xff]  }
 0x1f7   :  { %1505 = vst.msk [vmem:[#allocation3 + $0x27] sm:$0x1] %vm857_vm4, %v1503_v6  ;;  %v1488_v44 = vpop.permute.xlu0 %1487  ;;  %6617 = vmatprep.subr.bf16.mxu0 %v9319_v50  ;;  %v9374_v50 = vld [vmem:[%s13690_s3 + $0xa44] ss:$16 sps:$4 sm:$0xff]   ;;  %v9372_v6 = vld [vmem:[%s13690_s3 + $0xa40] ss:$16 sps:$4 sm:$0xff]  }
 0x1f8   :  { %1490 = vst.msk [vmem:[#allocation3 + $0x25] sm:$0x1] %vm857_vm4, %v1488_v44  ;;  %6577 = vmatpush2.bf16.msra.mxu1 %v9314_v49  ;;  %v9369_v49 = vld [vmem:[%s13690_s3 + $0x840] ss:$16 sps:$4 sm:$0xff]  }
 0x1f9   :  { %6578 = vmatprep.subr.bf16.mxu1 %v9322_v51  ;;  %v9377_v51 = vld [vmem:[%s13690_s3 + $0x824] ss:$16 sps:$4 sm:$0xff]   ;;  %v9375_v44 = vld [vmem:[%s13690_s3 + $0x820] ss:$16 sps:$4 sm:$0xff]  }
 0x1fa   :  { %6618 = vmatpush2.bf16.msra.mxu0 %v9317_v8  ;;  %v1171_v27 = vpop.permute.xlu1 %1170  ;;  %v9380_v8 = vld [vmem:[%s13690_s3 + $0xa24] ss:$16 sps:$4 sm:$0xff]  }
 0x1fb   :  { %1173 = vst.msk [vmem:[#allocation3 + $0x2a] sm:$0x1] %vm857_vm4, %v1171_v27  ;;  %v1156_v34 = vpop.permute.xlu0 %1155  ;;  %6619 = vmatprep.subr.bf16.mxu0 %v9325_v25  ;;  %v9383_v25 = vld [vmem:[%s13690_s3 + $0x804] ss:$16 sps:$4 sm:$0xff]  }
 0x1fc   :  { %1158 = vst.msk [vmem:[#allocation3 + $0x28] sm:$0x1] %vm857_vm4, %v1156_v34  ;;  %6579 = vmatpush2.bf16.msra.mxu1 %v9320_v55  ;;  %v9378_v55 = vld [vmem:[%s13690_s3 + $0xa20] ss:$16 sps:$4 sm:$0xff]   ;;  %v9389_v27 = vld [vmem:[%s13690_s3 + $0x9e4] ss:$16 sps:$4 sm:$0xff]  }
 0x1fd   :  { %6580 = vmatprep.subr.bf16.mxu1 %v9328_v58  ;;  %v9386_v58 = vld [vmem:[%s13690_s3 + $0xa04] ss:$16 sps:$4 sm:$0xff]  }
 0x1fe   :  { %6620 = vmatpush2.bf16.msra.mxu0 %v9323_v33  ;;  %v1201_v63 = vpop.permute.xlu1 %1200  ;;  %v9384_v33 = vld [vmem:[%s13690_s3 + $0xa00] ss:$16 sps:$4 sm:$0xff]   ;;  %v9392_v34 = vld [vmem:[%s13690_s3 + $0xbe4] ss:$16 sps:$4 sm:$0xff]  }
 0x1ff   :  { %1203 = vst.msk [vmem:[#allocation3 + $0x2e] sm:$0x1] %vm857_vm4, %v1201_v63  ;;  %v1186_v1 = vpop.permute.xlu0 %1185  ;;  %6621 = vmatprep.subr.bf16.mxu0 %v9331_v35  ;;  %v9387_v35 = vld [vmem:[%s13690_s3 + $0x9e0] ss:$16 sps:$4 sm:$0xff]  }
 0x200   :  { %1188 = vst.msk [vmem:[#allocation3 + $0x2c] sm:$0x1] %vm857_vm4, %v1186_v1  ;;  %6581 = vmatpush2.bf16.msra.mxu1 %v9326_v62  ;;  %v9395_v62 = vld [vmem:[%s13690_s3 + $0x9c4] ss:$16 sps:$4 sm:$0xff]   ;;  %v9393_v63 = vld [vmem:[%s13690_s3 + $0x9c0] ss:$16 sps:$4 sm:$0xff]  }
 0x201   :  { %6582 = vmatprep.subr.bf16.mxu1 %v9334_v24  ;;  %v9398_v24 = vld [vmem:[%s13690_s3 + $0xbc4] ss:$16 sps:$4 sm:$0xff]   ;;  %v9396_v1 = vld [vmem:[%s13690_s3 + $0xbc0] ss:$16 sps:$4 sm:$0xff]  }
 0x202   :  { %6622 = vmatpush2.bf16.msra.mxu0 %v9329_v2  ;;  %v1533_v11 = vpop.permute.xlu1 %1532  ;;  %v9401_v2 = vld [vmem:[%s13690_s3 + $0x9a4] ss:$16 sps:$4 sm:$0xff]  }
 0x203   :  { %1535 = vst.msk [vmem:[#allocation3 + $0x2b] sm:$0x1] %vm857_vm4, %v1533_v11  ;;  %v1518_v38 = vpop.permute.xlu0 %1517  ;;  %6623 = vmatprep.subr.bf16.mxu0 %v9337_v48  ;;  %v9404_v48 = vld [vmem:[%s13690_s3 + $0xba4] ss:$16 sps:$4 sm:$0xff]   ;;  %v9402_v11 = vld [vmem:[%s13690_s3 + $0xba0] ss:$16 sps:$4 sm:$0xff]  }
 0x204   :  { %1520 = vst.msk [vmem:[#allocation3 + $0x29] sm:$0x1] %vm857_vm4, %v1518_v38  ;;  %6583 = vmatpush2.bf16.msra.mxu1 %v9332_v16  ;;  %v9399_v16 = vld [vmem:[%s13690_s3 + $0x9a0] ss:$16 sps:$4 sm:$0xff]   ;;  %v9413_v38 = vld [vmem:[%s13690_s3 + $0x964] ss:$16 sps:$4 sm:$0xff]  }
 0x205   :  { %6634 = vmatprep.subr.bf16.mxu1 %v9340_v39  ;;  %v9407_v39 = vld [vmem:[%s13690_s3 + $0x984] ss:$16 sps:$4 sm:$0xff]  }
 0x206   :  { %6624 = vmatpush2.bf16.msra.mxu0 %v9335_v17  ;;  %v1563_v28 = vpop.permute.xlu1 %1562  ;;  %v9410_v17 = vld [vmem:[%s13690_s3 + $0xb84] ss:$16 sps:$4 sm:$0xff]  }
 0x207   :  { %6585 = vmatmul.mubr.bf16.vlgmr.msra.gmra.mxu1 %v11429_v46  ;;  %1565 = vst.msk [vmem:[#allocation3 + $0x2f] sm:$0x1] %vm857_vm4, %v1563_v28  ;;  %v1548_v60 = vpop.permute.xlu0 %1547  ;;  %6675 = vmatprep.subr.bf16.mxu0 %v9343_v19  ;;  %v9408_v19 = vld [vmem:[%s13690_s3 + $0xb80] ss:$16 sps:$4 sm:$0xff]  }
 0x208   :  { %1550 = vst.msk [vmem:[#allocation3 + $0x2d] sm:$0x1] %vm857_vm4, %v1548_v60  ;;  %6635 = vmatpush1.bf16.msra.mxu1 %v9338_v9  ;;  %6666 = vmatprep.mubr.bf16.mxu1 %v11434_v30  ;;  %v9416_v9 = vld [vmem:[%s13690_s3 + $0xb64] ss:$16 sps:$4 sm:$0xff]   ;;  %v9414_v28 = vld [vmem:[%s13690_s3 + $0xb60] ss:$16 sps:$4 sm:$0xff]  }
 0x209   :  { %6626 = vmatmul.mubr.bf16.vlgmr.msra.gmra.mxu0 %v11443_v5  ;;  %6636 = vmatprep.subr.bf16.mxu1 %v9347_v53  ;;  %v9419_v53 = vld [vmem:[%s13690_s3 + $0x944] ss:$16 sps:$4 sm:$0xff]   ;;  %v9417_v60 = vld [vmem:[%s13690_s3 + $0x940] ss:$16 sps:$4 sm:$0xff]  }
 0x20a   :  { %6676 = vmatpush1.bf16.msra.mxu0 %v9341_v13  ;;  %6707 = vmatprep.mubr.bf16.mxu0 %v11450_v15  ;;  %v9422_v13 = vld [vmem:[%s13690_s3 + $0xb44] ss:$16 sps:$4 sm:$0xff]  }
 0x20b   :  { %6677 = vmatprep.subr.bf16.mxu0 %v9350_v3  ;;  %v9425_v3 = vld [vmem:[%s13690_s3 + $0x924] ss:$16 sps:$4 sm:$0xff]  }
 0x20c   :  { %6637 = vmatpush1.bf16.msra.mxu1 %v9345_v0  ;;  %v1571_v0 = vld [vmem:[#allocation3 + $0x18] sm:$0xff] }
 0x20d   :  { %6638 = vmatprep.subr.bf16.mxu1 %v9353_v7  ;;  %v9420_v7 = vld [vmem:[%s13690_s3 + $0xb40] ss:$16 sps:$4 sm:$0xff]  }
 0x20e   :  { %6678 = vmatpush1.bf16.msra.mxu0 %v9348_v31  ;;  %v9428_v31 = vld [vmem:[%s13690_s3 + $0xb24] ss:$16 sps:$4 sm:$0xff]  }
 0x20f   :  { %6679 = vmatprep.subr.bf16.mxu0 %v9356_v40  ;;  %v9423_v40 = vld [vmem:[%s13690_s3 + $0x920] ss:$16 sps:$4 sm:$0xff]  }
 0x210   :  { %6639 = vmatpush1.bf16.msra.mxu1 %v9351_v42  ;;  %v1633_v42 = vcombine.high %v1571_v0, %v1571_v0 }
 0x211   :  { %6640 = vmatprep.subr.bf16.mxu1 %v9359_v61  ;;  %v9431_v61 = vld [vmem:[%s13690_s3 + $0x904] ss:$16 sps:$4 sm:$0xff]  }
 0x212   :  { %6680 = vmatpush1.bf16.msra.mxu0 %v9354_v41  ;;  %v9426_v41 = vld [vmem:[%s13690_s3 + $0xb20] ss:$16 sps:$4 sm:$0xff]  }
 0x213   :  { %6681 = vmatprep.subr.bf16.mxu0 %v9362_v43  ;;  %v11620_v43 = vrot.slane %v1571_v0, %v11154_v18  ;;  %v9484_v0 = vld [vmem:[%s13690_s3 + $0xde0] ss:$16 sps:$4 sm:$0xff]  }
 0x214   :  { %6641 = vmatpush1.bf16.msra.mxu1 %v9357_v12  ;;  %v9434_v12 = vld [vmem:[%s13690_s3 + $0xb04] ss:$16 sps:$4 sm:$0xff]  }
 0x215   :  { %6642 = vmatprep.subr.bf16.mxu1 %v9365_v20  ;;  %v9429_v20 = vld [vmem:[%s13690_s3 + $0x900] ss:$16 sps:$4 sm:$0xff]  }
 0x216   :  { %6682 = vmatpush1.bf16.msra.mxu0 %v9360_v21  ;;  %v11629_v21 = vrot.slane %v1633_v42, %v11154_v18  ;;  %v9490_v42 = vld [vmem:[%s13690_s3 + $0xdc0] ss:$16 sps:$4 sm:$0xff]  }
 0x217   :  { %6683 = vmatprep.subr.bf16.mxu0 %v9368_v22  ;;  %v9437_v22 = vld [vmem:[%s13690_s3 + $0xce4] ss:$16 sps:$4 sm:$0xff]  }
 0x218   :  { %6643 = vmatpush1.bf16.msra.mxu1 %v9363_v23  ;;  %v9432_v23 = vld [vmem:[%s13690_s3 + $0xb00] ss:$16 sps:$4 sm:$0xff]  }
 0x219   :  { %6644 = vmatprep.subr.bf16.mxu1 %v9371_v14  ;;  %v1648_v14 = vcombine.high %v11620_v43, %v11620_v43 }
 0x21a   :  { %6684 = vmatpush1.bf16.msra.mxu0 %v9366_v47  ;;  %v9440_v47 = vld [vmem:[%s13690_s3 + $0xee4] ss:$16 sps:$4 sm:$0xff]  }
 0x21b   :  { %6685 = vmatprep.subr.bf16.mxu0 %v9374_v50  ;;  %v9435_v50 = vld [vmem:[%s13690_s3 + $0xce0] ss:$16 sps:$4 sm:$0xff]  }
 0x21c   :  { %6645 = vmatpush1.bf16.msra.mxu1 %v9369_v49  ;;  %v1649_v49 = vcombine.high %v11629_v21, %v11629_v21 }
 0x21d   :  { %6646 = vmatprep.subr.bf16.mxu1 %v9377_v51  ;;  %v11649_v51 = vpack.c.bf16 %v11396_v26, %v11396_v26  ;;  %v9447_v26 = vld [vmem:[%s13690_s3 + $0xec4] ss:$16 sps:$4 sm:$0xff]  }
 0x21e   :  { %6686 = vmatpush1.bf16.msra.mxu0 %v9372_v6  ;;  %v9444_v6 = vld [vmem:[%s13690_s3 + $0xcc4] ss:$16 sps:$4 sm:$0xff]  }
 0x21f   :  { %6687 = vmatprep.subr.bf16.mxu0 %v9380_v8  ;;  %v11654_v8 = vpack.c.bf16 %v1648_v14, %v1648_v14  ;;  %v9507_v14 = vld [vmem:[%s13690_s3 + $0xf84] ss:$16 sps:$4 sm:$0xff]  }
 0x220   :  { %6647 = vmatpush1.bf16.msra.mxu1 %v9375_v44  ;;  %v9438_v44 = vld [vmem:[%s13690_s3 + $0xee0] ss:$16 sps:$4 sm:$0xff]  }
 0x221   :  { %6648 = vmatprep.subr.bf16.mxu1 %v9383_v25  ;;  %v11662_v25 = vpack.c.bf16 %v11407_v37, %v11407_v37  ;;  %v9450_v37 = vld [vmem:[%s13690_s3 + $0xca4] ss:$16 sps:$4 sm:$0xff]  }
 0x222   :  { %6688 = vmatpush1.bf16.msra.mxu0 %v9378_v55  ;;  %v11668_v55 = vpack.c.bf16 %v1649_v49, %v1649_v49  ;;  %v9505_v49 = vld [vmem:[%s13690_s3 + $0xf80] ss:$16 sps:$4 sm:$0xff]  }
 0x223   :  { %6689 = vmatprep.subr.bf16.mxu0 %v9386_v58  ;;  %v9442_v58 = vld [vmem:[%s13690_s3 + $0xcc0] ss:$16 sps:$4 sm:$0xff]  }
 0x224   :  { %6649 = vmatpush1.bf16.msra.mxu1 %v9381_v59  ;;  %v9445_v59 = vld [vmem:[%s13690_s3 + $0xec0] ss:$16 sps:$4 sm:$0xff]  }
 0x225   :  { %6650 = vmatprep.subr.bf16.mxu1 %v9389_v27  ;;  %v9453_v27 = vld [vmem:[%s13690_s3 + $0xea4] ss:$16 sps:$4 sm:$0xff]  }
 0x226   :  { %6690 = vmatpush1.bf16.msra.mxu0 %v9384_v33  ;;  %v9448_v33 = vld [vmem:[%s13690_s3 + $0xca0] ss:$16 sps:$4 sm:$0xff]  }
 0x227   :  { %6691 = vmatprep.subr.bf16.mxu0 %v9392_v34  ;;  %v9456_v34 = vld [vmem:[%s13690_s3 + $0xc84] ss:$16 sps:$4 sm:$0xff]  }
 0x228   :  { %6651 = vmatpush2.bf16.msra.mxu1 %v9387_v35  ;;  %v9451_v35 = vld [vmem:[%s13690_s3 + $0xea0] ss:$16 sps:$4 sm:$0xff]  }
 0x229   :  { %6652 = vmatprep.subr.bf16.mxu1 %v9395_v62  ;;  %v9459_v62 = vld [vmem:[%s13690_s3 + $0xe84] ss:$16 sps:$4 sm:$0xff]  }
 0x22a   :  { %6692 = vmatpush2.bf16.msra.mxu0 %v9390_v10  ;;  %v9454_v10 = vld [vmem:[%s13690_s3 + $0xc80] ss:$16 sps:$4 sm:$0xff]  }
 0x22b   :  { %6693 = vmatprep.subr.bf16.mxu0 %v9398_v24  ;;  %v9462_v24 = vld [vmem:[%s13690_s3 + $0xc64] ss:$16 sps:$4 sm:$0xff]  }
 0x22c   :  { %6653 = vmatpush2.bf16.msra.mxu1 %v9393_v63  ;;  %v9457_v63 = vld [vmem:[%s13690_s3 + $0xe80] ss:$16 sps:$4 sm:$0xff]  }
 0x22d   :  { %6654 = vmatprep.subr.bf16.mxu1 %v9401_v2  ;;  %v9465_v2 = vld [vmem:[%s13690_s3 + $0xe64] ss:$16 sps:$4 sm:$0xff]  }
 0x22e   :  { %6694 = vmatpush2.bf16.msra.mxu0 %v9396_v1  ;;  %v9460_v1 = vld [vmem:[%s13690_s3 + $0xc60] ss:$16 sps:$4 sm:$0xff]  }
 0x22f   :  { %6695 = vmatprep.subr.bf16.mxu0 %v9404_v48  ;;  %v9468_v48 = vld [vmem:[%s13690_s3 + $0xc44] ss:$16 sps:$4 sm:$0xff]  }
 0x230   :  { %6655 = vmatpush2.bf16.msra.mxu1 %v9399_v16  ;;  %v9463_v16 = vld [vmem:[%s13690_s3 + $0xe60] ss:$16 sps:$4 sm:$0xff]  }
 0x231   :  { %6656 = vmatprep.subr.bf16.mxu1 %v9407_v39  ;;  %v9471_v39 = vld [vmem:[%s13690_s3 + $0xe44] ss:$16 sps:$4 sm:$0xff]  }
 0x232   :  { %6696 = vmatpush2.bf16.msra.mxu0 %v9402_v11  ;;  %v9466_v11 = vld [vmem:[%s13690_s3 + $0xc40] ss:$16 sps:$4 sm:$0xff]  }
 0x233   :  { %6697 = vmatprep.subr.bf16.mxu0 %v9410_v17  ;;  %v9474_v17 = vld [vmem:[%s13690_s3 + $0xc24] ss:$16 sps:$4 sm:$0xff]  }
 0x234   :  { %6657 = vmatpush2.bf16.msra.mxu1 %v9405_v36  ;;  %v9469_v36 = vld [vmem:[%s13690_s3 + $0xe40] ss:$16 sps:$4 sm:$0xff]  }
 0x235   :  { %6658 = vmatprep.subr.bf16.mxu1 %v9413_v38  ;;  %v9477_v38 = vld [vmem:[%s13690_s3 + $0xe24] ss:$16 sps:$4 sm:$0xff]  }
 0x236   :  { %6698 = vmatpush2.bf16.msra.mxu0 %v9408_v19  ;;  %v9472_v19 = vld [vmem:[%s13690_s3 + $0xc20] ss:$16 sps:$4 sm:$0xff]  }
 0x237   :  { %6699 = vmatprep.subr.bf16.mxu0 %v9416_v9  ;;  %v9480_v9 = vld [vmem:[%s13690_s3 + $0xc04] ss:$16 sps:$4 sm:$0xff]  }
 0x238   :  { %6659 = vmatpush2.bf16.msra.mxu1 %v9411_v45  ;;  %v9475_v45 = vld [vmem:[%s13690_s3 + $0xe20] ss:$16 sps:$4 sm:$0xff]  }
 0x239   :  { %6660 = vmatprep.subr.bf16.mxu1 %v9419_v53  ;;  %v9483_v53 = vld [vmem:[%s13690_s3 + $0xe04] ss:$16 sps:$4 sm:$0xff]  }
 0x23a   :  { %6700 = vmatpush2.bf16.msra.mxu0 %v9414_v28  ;;  %v9478_v28 = vld [vmem:[%s13690_s3 + $0xc00] ss:$16 sps:$4 sm:$0xff]  }
 0x23b   :  { %6701 = vmatprep.subr.bf16.mxu0 %v9422_v13  ;;  %v9486_v13 = vld [vmem:[%s13690_s3 + $0xde4] ss:$16 sps:$4 sm:$0xff]  }
 0x23c   :  { %6661 = vmatpush2.bf16.msra.mxu1 %v9417_v60  ;;  %v9481_v60 = vld [vmem:[%s13690_s3 + $0xe00] ss:$16 sps:$4 sm:$0xff]  }
 0x23d   :  { %6662 = vmatprep.subr.bf16.mxu1 %v9425_v3  ;;  %v9489_v3 = vld [vmem:[%s13690_s3 + $0xfe4] ss:$16 sps:$4 sm:$0xff]  }
 0x23e   :  { %6702 = vmatpush2.bf16.msra.mxu0 %v9420_v7  ;;  %v9492_v7 = vld [vmem:[%s13690_s3 + $0xdc4] ss:$16 sps:$4 sm:$0xff]  }
 0x23f   :  { %6703 = vmatprep.subr.bf16.mxu0 %v9428_v31  ;;  %v9487_v31 = vld [vmem:[%s13690_s3 + $0xfe0] ss:$16 sps:$4 sm:$0xff]  }
 0x240   :  { %6663 = vmatpush2.bf16.msra.mxu1 %v9423_v40  ;;  %v9495_v40 = vld [vmem:[%s13690_s3 + $0xfc4] ss:$16 sps:$4 sm:$0xff]  }
 0x241   :  { %6664 = vmatprep.subr.bf16.mxu1 %v9431_v61  ;;  %v9498_v61 = vld [vmem:[%s13690_s3 + $0xda4] ss:$16 sps:$4 sm:$0xff]  }
 0x242   :  { %6704 = vmatpush2.bf16.msra.mxu0 %v9426_v41  ;;  %v9493_v41 = vld [vmem:[%s13690_s3 + $0xfc0] ss:$16 sps:$4 sm:$0xff]  }
 0x243   :  { %6705 = vmatprep.subr.bf16.mxu0 %v9434_v12  ;;  %v9501_v12 = vld [vmem:[%s13690_s3 + $0xfa4] ss:$16 sps:$4 sm:$0xff]  }
 0x244   :  { %6665 = vmatpush2.bf16.msra.mxu1 %v9429_v20  ;;  %v9496_v20 = vld [vmem:[%s13690_s3 + $0xda0] ss:$16 sps:$4 sm:$0xff]  }
 0x245   :  { %6716 = vmatprep.subr.bf16.mxu1 %v9437_v22  ;;  %v9504_v22 = vld [vmem:[%s13690_s3 + $0xd84] ss:$16 sps:$4 sm:$0xff]  }
 0x246   :  { %6706 = vmatpush2.bf16.msra.mxu0 %v9432_v23  ;;  %v9499_v23 = vld [vmem:[%s13690_s3 + $0xfa0] ss:$16 sps:$4 sm:$0xff]  }
 0x247   :  { %6667 = vmatmul.mubr.bf16.vlgmr.msra.gmra.mxu1 %v11649_v51  ;;  %6757 = vmatprep.subr.bf16.mxu0 %v9440_v47  ;;  %v9502_v47 = vld [vmem:[%s13690_s3 + $0xd80] ss:$16 sps:$4 sm:$0xff]  }
 0x248   :  { %6717 = vmatpush1.bf16.msra.mxu1 %v9435_v50  ;;  %6748 = vmatprep.mubr.bf16.mxu1 %v11654_v8  ;;  %v9510_v50 = vld [vmem:[%s13690_s3 + $0xd64] ss:$16 sps:$4 sm:$0xff]  }
 0x249   :  { %6708 = vmatmul.mubr.bf16.vlgmr.msra.gmra.mxu0 %v11662_v25  ;;  %6718 = vmatprep.subr.bf16.mxu1 %v9444_v6  ;;  %v9513_v6 = vld [vmem:[%s13690_s3 + $0xf64] ss:$16 sps:$4 sm:$0xff]  }
 0x24a   :  { %6758 = vmatpush1.bf16.msra.mxu0 %v9438_v44  ;;  %6789 = vmatprep.mubr.bf16.mxu0 %v11668_v55  ;;  %v9508_v44 = vld [vmem:[%s13690_s3 + $0xd60] ss:$16 sps:$4 sm:$0xff]  }
 0x24b   :  { %6759 = vmatprep.subr.bf16.mxu0 %v9447_v26  ;;  %v9516_v26 = vld [vmem:[%s13690_s3 + $0xd44] ss:$16 sps:$4 sm:$0xff]  }
 0x24c   :  { %6719 = vmatpush1.bf16.msra.mxu1 %v9442_v58  ;;  %v9511_v58 = vld [vmem:[%s13690_s3 + $0xf60] ss:$16 sps:$4 sm:$0xff]  }
 0x24d   :  { %6720 = vmatprep.subr.bf16.mxu1 %v9450_v37  ;;  %v9519_v37 = vld [vmem:[%s13690_s3 + $0xf44] ss:$16 sps:$4 sm:$0xff]  }
 0x24e   :  { %6760 = vmatpush1.bf16.msra.mxu0 %v9445_v59  ;;  %v9514_v59 = vld [vmem:[%s13690_s3 + $0xd40] ss:$16 sps:$4 sm:$0xff]  }
 0x24f   :  { %6761 = vmatprep.subr.bf16.mxu0 %v9453_v27  ;;  %v9522_v27 = vld [vmem:[%s13690_s3 + $0xd24] ss:$16 sps:$4 sm:$0xff]  }
 0x250   :  { %6721 = vmatpush1.bf16.msra.mxu1 %v9448_v33  ;;  %v1572_v33 = vld [vmem:[#allocation3 + $0x20] sm:$0xff] }
 0x251   :  { %6722 = vmatprep.subr.bf16.mxu1 %v9456_v34  ;;  %v9517_v34 = vld [vmem:[%s13690_s3 + $0xf40] ss:$16 sps:$4 sm:$0xff]  }
 0x252   :  { %6762 = vmatpush1.bf16.msra.mxu0 %v9451_v35  ;;  %v9525_v35 = vld [vmem:[%s13690_s3 + $0xf24] ss:$16 sps:$4 sm:$0xff]  }
 0x253   :  { %6763 = vmatprep.subr.bf16.mxu0 %v9459_v62  ;;  %v9520_v62 = vld [vmem:[%s13690_s3 + $0xd20] ss:$16 sps:$4 sm:$0xff]  }
 0x254   :  { %6723 = vmatpush1.bf16.msra.mxu1 %v9454_v10  ;;  %v1650_v10 = vcombine.high %v1572_v33, %v1572_v33 }
 0x255   :  { %6724 = vmatprep.subr.bf16.mxu1 %v9462_v24  ;;  %v9528_v24 = vld [vmem:[%s13690_s3 + $0xd04] ss:$16 sps:$4 sm:$0xff]  }
 0x256   :  { %6764 = vmatpush1.bf16.msra.mxu0 %v9457_v63  ;;  %v9523_v63 = vld [vmem:[%s13690_s3 + $0xf20] ss:$16 sps:$4 sm:$0xff]  }
 0x257   :  { %6765 = vmatprep.subr.bf16.mxu0 %v9465_v2  ;;  %v11838_v2 = vrot.slane %v1572_v33, %v11154_v18  ;;  %v9556_v33 = vld [vmem:[%s13690_s3 + $0x1284] ss:$16 sps:$4 sm:$0xff]  }
 0x258   :  { %6725 = vmatpush1.bf16.msra.mxu1 %v9460_v1  ;;  %v9531_v1 = vld [vmem:[%s13690_s3 + $0xf04] ss:$16 sps:$4 sm:$0xff]  }
 0x259   :  { %6726 = vmatprep.subr.bf16.mxu1 %v9468_v48  ;;  %v9526_v48 = vld [vmem:[%s13690_s3 + $0xd00] ss:$16 sps:$4 sm:$0xff]  }
 0x25a   :  { %6766 = vmatpush1.bf16.msra.mxu0 %v9463_v16  ;;  %v2529_v16 = vsub.s32 0, %v11149_v4 }
 0x25b   :  { %6767 = vmatprep.subr.bf16.mxu0 %v9471_v39  ;;  %v11848_v39 = vrot.slane %v1650_v10, %v11154_v18  ;;  %v9562_v10 = vld [vmem:[%s13690_s3 + $0x1264] ss:$16 sps:$4 sm:$0xff]  }
 0x25c   :  { %6727 = vmatpush1.bf16.msra.mxu1 %v9466_v11  ;;  %v9534_v11 = vld [vmem:[%s13690_s3 + $0x10e4] ss:$16 sps:$4 sm:$0xff]  }
 0x25d   :  { %6728 = vmatprep.subr.bf16.mxu1 %v9474_v17  ;;  %v2525_v17 = vld [vmem:[%s13691_s4] sm:$0xf] }
 0x25e   :  { %6768 = vmatpush1.bf16.msra.mxu0 %v9469_v36  ;;  %v9529_v36 = vld [vmem:[%s13690_s3 + $0xf00] ss:$16 sps:$4 sm:$0xff]  }
 0x25f   :  { %6769 = vmatprep.subr.bf16.mxu0 %v9477_v38  ;;  %v1665_v38 = vcombine.high %v11838_v2, %v11838_v2 }
 0x260   :  { %6729 = vmatpush1.bf16.msra.mxu1 %v9472_v19  ;;  %v2533_v19 = vsub.s32 1, %v11149_v4 }
 0x261   :  { %6730 = vmatprep.subr.bf16.mxu1 %v9480_v9  ;;  %v9537_v9 = vld [vmem:[%s13690_s3 + $0x12e4] ss:$16 sps:$4 sm:$0xff]  }
 0x262   :  { %6770 = vmatpush1.bf16.msra.mxu0 %v9475_v45  ;;  %v9532_v45 = vld [vmem:[%s13690_s3 + $0x10e0] ss:$16 sps:$4 sm:$0xff]  }
 0x263   :  { %6771 = vmatprep.subr.bf16.mxu0 %v9483_v53  ;;  %v2530_v53 = vrot.slane %v2525_v17, %v2529_v16  ;;  %v9563_v16 = vld [vmem:[%s13690_s3 + $0x1040] ss:$16 sps:$4 sm:$0xff]  }
 0x264   :  { %6731 = vmatpush1.bf16.msra.mxu1 %v9478_v28  ;;  %v1666_v28 = vcombine.high %v11848_v39, %v11848_v39 }
 0x265   :  { %6732 = vmatprep.subr.bf16.mxu1 %v9486_v13  ;;  %v11872_v13 = vpack.c.bf16 %v11620_v43, %v11620_v43  ;;  %v11885_v43 = vpack.c.bf16 %v11629_v21, %v11629_v21 }
 0x266   :  { %6772 = vmatpush1.bf16.msra.mxu0 %v9481_v60  ;;  %v9541_v60 = vld [vmem:[%s13690_s3 + $0x10c4] ss:$16 sps:$4 sm:$0xff]  }
 0x267   :  { %6773 = vmatprep.subr.bf16.mxu0 %v9489_v3  ;;  %v11877_v3 = vpack.c.bf16 %v1665_v38, %v1665_v38  ;;  %v9569_v38 = vld [vmem:[%s13690_s3 + $0x1020] ss:$16 sps:$4 sm:$0xff]  }
 0x268   :  { %6733 = vmatpush2.bf16.msra.mxu1 %v9484_v0  ;;  %v9535_v0 = vld [vmem:[%s13690_s3 + $0x12e0] ss:$16 sps:$4 sm:$0xff]  }
 0x269   :  { %6734 = vmatprep.subr.bf16.mxu1 %v9492_v7  ;;  %v2534_v7 = vrot.slane %v2525_v17, %v2533_v19  ;;  %v9566_v17 = vld [vmem:[%s13690_s3 + $0x1240] ss:$16 sps:$4 sm:$0xff]   ;;  %v9577_v19 = vld [vmem:[%s13690_s3 + $0x1004] ss:$16 sps:$4 sm:$0xff]  }
 0x26a   :  { %6774 = vmatpush2.bf16.msra.mxu0 %v9487_v31 }
 0x26b   :  { %6775 = vmatprep.subr.bf16.mxu0 %v9495_v40  ;;  %v9544_v40 = vld [vmem:[%s13690_s3 + $0x12c4] ss:$16 sps:$4 sm:$0xff]  }
 0x26c   :  { %6735 = vmatpush2.bf16.msra.mxu1 %v9490_v42 }
 0x26d   :  { %6736 = vmatprep.subr.bf16.mxu1 %v9498_v61  ;;  %v11891_v61 = vpack.c.bf16 %v1666_v28, %v1666_v28  ;;  %v9583_v28 = vld [vmem:[%s13690_s3 + $0x11e4] ss:$16 sps:$4 sm:$0xff]  }
 0x26e   :  { %6776 = vmatpush2.bf16.msra.mxu0 %v9493_v41  ;;  %v9539_v41 = vld [vmem:[%s13690_s3 + $0x10c0] ss:$16 sps:$4 sm:$0xff]  }
 0x26f   :  { %6777 = vmatprep.subr.bf16.mxu0 %v9501_v12 }
 0x270   :  { %6737 = vmatpush2.bf16.msra.mxu1 %v9496_v20  ;;  %v9547_v20 = vld [vmem:[%s13690_s3 + $0x10a4] ss:$16 sps:$4 sm:$0xff]  }
 0x271   :  { %6738 = vmatprep.subr.bf16.mxu1 %v9504_v22 }
 0x272   :  { %6778 = vmatpush2.bf16.msra.mxu0 %v9499_v23 }
 0x273   :  { %6779 = vmatprep.subr.bf16.mxu0 %v9507_v14  ;;  %v9542_v14 = vld [vmem:[%s13690_s3 + $0x12c0] ss:$16 sps:$4 sm:$0xff]  }
 0x274   :  { %6739 = vmatpush2.bf16.msra.mxu1 %v9502_v47 }
 0x275   :  { %6740 = vmatprep.subr.bf16.mxu1 %v9510_v50 }
 0x276   :  { %6780 = vmatpush2.bf16.msra.mxu0 %v9505_v49  ;;  %v9550_v49 = vld [vmem:[%s13690_s3 + $0x12a4] ss:$16 sps:$4 sm:$0xff]  }
 0x277   :  { %6781 = vmatprep.subr.bf16.mxu0 %v9513_v6 }
 0x278   :  { %6741 = vmatpush2.bf16.msra.mxu1 %v9508_v44  ;;  %v9545_v44 = vld [vmem:[%s13690_s3 + $0x10a0] ss:$16 sps:$4 sm:$0xff]  }
 0x279   :  { %6742 = vmatprep.subr.bf16.mxu1 %v9516_v26 }
 0x27a   :  { %6782 = vmatpush2.bf16.msra.mxu0 %v9511_v58 }
 0x27b   :  { %6783 = vmatprep.subr.bf16.mxu0 %v9519_v37  ;;  %v9553_v37 = vld [vmem:[%s13690_s3 + $0x1084] ss:$16 sps:$4 sm:$0xff]  }
 0x27c   :  { %6743 = vmatpush2.bf16.msra.mxu1 %v9514_v59  ;;  %v9548_v59 = vld [vmem:[%s13690_s3 + $0x12a0] ss:$16 sps:$4 sm:$0xff]  }
 0x27d   :  { %6744 = vmatprep.subr.bf16.mxu1 %v9522_v27 }
 0x27e   :  { %6784 = vmatpush2.bf16.msra.mxu0 %v9517_v34  ;;  %v9551_v34 = vld [vmem:[%s13690_s3 + $0x1080] ss:$16 sps:$4 sm:$0xff]  }
 0x27f   :  { %6785 = vmatprep.subr.bf16.mxu0 %v9525_v35  ;;  %v9559_v35 = vld [vmem:[%s13690_s3 + $0x1064] ss:$16 sps:$4 sm:$0xff]  }
 0x280   :  { %6745 = vmatpush2.bf16.msra.mxu1 %v9520_v62  ;;  %v9554_v62 = vld [vmem:[%s13690_s3 + $0x1280] ss:$16 sps:$4 sm:$0xff]  }
 0x281   :  { %6746 = vmatprep.subr.bf16.mxu1 %v9528_v24  ;;  %v9557_v24 = vld [vmem:[%s13690_s3 + $0x1060] ss:$16 sps:$4 sm:$0xff]  }
 0x282   :  { %6786 = vmatpush2.bf16.msra.mxu0 %v9523_v63  ;;  %v9565_v63 = vld [vmem:[%s13690_s3 + $0x1044] ss:$16 sps:$4 sm:$0xff]  }
 0x283   :  { %6787 = vmatprep.subr.bf16.mxu0 %v9531_v1  ;;  %v9560_v1 = vld [vmem:[%s13690_s3 + $0x1260] ss:$16 sps:$4 sm:$0xff]  }
 0x284   :  { %6747 = vmatpush2.bf16.msra.mxu1 %v9526_v48  ;;  %v9568_v48 = vld [vmem:[%s13690_s3 + $0x1244] ss:$16 sps:$4 sm:$0xff]  }
 0x285   :  { %6798 = vmatprep.subr.bf16.mxu1 %v9534_v11  ;;  %v9571_v11 = vld [vmem:[%s13690_s3 + $0x1024] ss:$16 sps:$4 sm:$0xff]  }
 0x286   :  { %6788 = vmatpush2.bf16.msra.mxu0 %v9529_v36  ;;  %v9574_v36 = vld [vmem:[%s13690_s3 + $0x1224] ss:$16 sps:$4 sm:$0xff]  }
 0x287   :  { %6749 = vmatmul.mubr.bf16.vlgmr.msra.gmra.mxu1 %v11872_v13  ;;  %v6504_v31 = vpop.f32.mrf.mxu1  ;;  %6839 = vmatprep.subr.bf16.mxu0 %v9537_v9  ;;  %v9572_v9 = vld [vmem:[%s13690_s3 + $0x1220] ss:$16 sps:$4 sm:$0xff]  }
 0x288   :  { %v6505_v42 = vadd.f32 %v6504_v31, %v2530_v53  ;;  %6799 = vmatpush1.bf16.msra.mxu1 %v9532_v45  ;;  %6830 = vmatprep.mubr.bf16.mxu1 %v11877_v3  ;;  %v9580_v45 = vld [vmem:[%s13690_s3 + $0x1204] ss:$16 sps:$4 sm:$0xff]   ;;  %v9575_v53 = vld [vmem:[%s13690_s3 + $0x1000] ss:$16 sps:$4 sm:$0xff]  }
 0x289   :  { %6790 = vmatmul.mubr.bf16.vlgmr.msra.gmra.mxu0 %v11885_v43  ;;  %v6506_v12 = vpop.f32.mrf.mxu1  ;;  %v6545_v21 = vpop.f32.mrf.mxu0  ;;  %6800 = vmatprep.subr.bf16.mxu1 %v9541_v60  ;;  %v9578_v60 = vld [vmem:[%s13690_s3 + $0x1200] ss:$16 sps:$4 sm:$0xff]   ;;  %v9589_v31 = vld [vmem:[%s13690_s3 + $0x11c4] ss:$16 sps:$4 sm:$0xff]  }
 0x28a   :  { %v6507_v22 = vadd.f32 %v6506_v12, %v2534_v7  ;;  %v11900_v23 = vadd.f32 %v6545_v21, %v6505_v42  ;;  %6840 = vmatpush1.bf16.msra.mxu0 %v9535_v0  ;;  %6871 = vmatprep.mubr.bf16.mxu0 %v11891_v61  ;;  %v9586_v0 = vld [vmem:[%s13690_s3 + $0x13e4] ss:$16 sps:$4 sm:$0xff]   ;;  %v9581_v7 = vld [vmem:[%s13690_s3 + $0x11e0] ss:$16 sps:$4 sm:$0xff]  }
 0x28b   :  { %v6508_v47 = vpop.f32.mrf.mxu1  ;;  %v6547_v50 = vpop.f32.mrf.mxu0  ;;  %6841 = vmatprep.subr.bf16.mxu0 %v9544_v40  ;;  %v9584_v40 = vld [vmem:[%s13690_s3 + $0x13e0] ss:$16 sps:$4 sm:$0xff]   ;;  %v9592_v42 = vld [vmem:[%s13690_s3 + $0x13c4] ss:$16 sps:$4 sm:$0xff]  }
 0x28c   :  { %v11909_v6 = vadd.f32 %v6547_v50, %v6507_v22  ;;  %6801 = vmatpush1.bf16.msra.mxu1 %v9539_v41  ;;  %v9587_v41 = vld [vmem:[%s13690_s3 + $0x11c0] ss:$16 sps:$4 sm:$0xff]   ;;  %v9595_v12 = vld [vmem:[%s13690_s3 + $0x11a4] ss:$16 sps:$4 sm:$0xff]  }
 0x28d   :  { %v6509_v26 = vpop.f32.mrf.mxu1  ;;  %v6549_v58 = vpop.f32.mrf.mxu0  ;;  %6802 = vmatprep.subr.bf16.mxu1 %v9547_v20  ;;  %v9590_v21 = vld [vmem:[%s13690_s3 + $0x13c0] ss:$16 sps:$4 sm:$0xff]   ;;  %v9598_v20 = vld [vmem:[%s13690_s3 + $0x13a4] ss:$16 sps:$4 sm:$0xff]  }
 0x28e   :  { %6842 = vmatpush1.bf16.msra.mxu0 %v9542_v14  ;;  %v9593_v22 = vld [vmem:[%s13690_s3 + $0x11a0] ss:$16 sps:$4 sm:$0xff]   ;;  %v9601_v14 = vld [vmem:[%s13690_s3 + $0x1184] ss:$16 sps:$4 sm:$0xff]  }
 0x28f   :  { %v6550_v27 = vpop.f32.mrf.mxu0  ;;  %6843 = vmatprep.subr.bf16.mxu0 %v9550_v49  ;;  %v9596_v47 = vld [vmem:[%s13690_s3 + $0x13a0] ss:$16 sps:$4 sm:$0xff]   ;;  %v9604_v50 = vld [vmem:[%s13690_s3 + $0x1384] ss:$16 sps:$4 sm:$0xff]  }
 0x290   :  { %6803 = vmatpush1.bf16.msra.mxu1 %v9545_v44  ;;  %v9599_v49 = vld [vmem:[%s13690_s3 + $0x1180] ss:$16 sps:$4 sm:$0xff]   ;;  %v9607_v44 = vld [vmem:[%s13690_s3 + $0x1164] ss:$16 sps:$4 sm:$0xff]  }
 0x291   :  { %6804 = vmatprep.subr.bf16.mxu1 %v9553_v37  ;;  %v9602_v26 = vld [vmem:[%s13690_s3 + $0x1380] ss:$16 sps:$4 sm:$0xff]   ;;  %v9610_v58 = vld [vmem:[%s13690_s3 + $0x1364] ss:$16 sps:$4 sm:$0xff]  }
 0x292   :  { %6844 = vmatpush1.bf16.msra.mxu0 %v9548_v59  ;;  %v9605_v37 = vld [vmem:[%s13690_s3 + $0x1160] ss:$16 sps:$4 sm:$0xff]   ;;  %v9613_v59 = vld [vmem:[%s13690_s3 + $0x1144] ss:$16 sps:$4 sm:$0xff]  }
 0x293   :  { %6845 = vmatprep.subr.bf16.mxu0 %v9556_v33  ;;  %v9608_v27 = vld [vmem:[%s13690_s3 + $0x1360] ss:$16 sps:$4 sm:$0xff]   ;;  %v9616_v33 = vld [vmem:[%s13690_s3 + $0x1344] ss:$16 sps:$4 sm:$0xff]  }
 0x294   :  { %6805 = vmatpush1.bf16.msra.mxu1 %v9551_v34  ;;  %v9611_v34 = vld [vmem:[%s13690_s3 + $0x1140] ss:$16 sps:$4 sm:$0xff]  }
 0x295   :  { %6806 = vmatprep.subr.bf16.mxu1 %v9559_v35  ;;  %v9619_v35 = vld [vmem:[%s13690_s3 + $0x1124] ss:$16 sps:$4 sm:$0xff]  }
 0x296   :  { %6846 = vmatpush1.bf16.msra.mxu0 %v9554_v62  ;;  %v1573_v62 = vld [vmem:[#allocation3 + $0x28] sm:$0xff] }
 0x297   :  { %6847 = vmatprep.subr.bf16.mxu0 %v9562_v10  ;;  %v9614_v10 = vld [vmem:[%s13690_s3 + $0x1340] ss:$16 sps:$4 sm:$0xff]  }
 0x298   :  { %6807 = vmatpush1.bf16.msra.mxu1 %v9557_v24  ;;  %v9622_v24 = vld [vmem:[%s13690_s3 + $0x1324] ss:$16 sps:$4 sm:$0xff]  }
 0x299   :  { %6808 = vmatprep.subr.bf16.mxu1 %v9565_v63  ;;  %v9617_v63 = vld [vmem:[%s13690_s3 + $0x1120] ss:$16 sps:$4 sm:$0xff]  }
 0x29a   :  { %6848 = vmatpush1.bf16.msra.mxu0 %v9560_v1  ;;  %v1667_v1 = vcombine.high %v1573_v62, %v1573_v62 }
 0x29b   :  { %6849 = vmatprep.subr.bf16.mxu0 %v9568_v48  ;;  %v9625_v48 = vld [vmem:[%s13690_s3 + $0x1104] ss:$16 sps:$4 sm:$0xff]  }
 0x29c   :  { %6809 = vmatpush1.bf16.msra.mxu1 %v9563_v16  ;;  %v9620_v16 = vld [vmem:[%s13690_s3 + $0x1320] ss:$16 sps:$4 sm:$0xff]  }
 0x29d   :  { %6810 = vmatprep.subr.bf16.mxu1 %v9571_v11  ;;  %v12065_v11 = vrot.slane %v1573_v62, %v11154_v18  ;;  %v9656_v62 = vld [vmem:[%s13690_s3 + $0x1464] ss:$16 sps:$4 sm:$0xff]  }
 0x29e   :  { %6850 = vmatpush1.bf16.msra.mxu0 %v9566_v17  ;;  %v9628_v17 = vld [vmem:[%s13690_s3 + $0x1304] ss:$16 sps:$4 sm:$0xff]  }
 0x29f   :  { %6851 = vmatprep.subr.bf16.mxu0 %v9574_v36  ;;  %v9623_v36 = vld [vmem:[%s13690_s3 + $0x1100] ss:$16 sps:$4 sm:$0xff]  }
 0x2a0   :  { %6811 = vmatpush1.bf16.msra.mxu1 %v9569_v38  ;;  %v12074_v38 = vrot.slane %v1667_v1, %v11154_v18  ;;  %v9629_v18 = vld [vmem:[%s13690_s3 + $0x14e0] ss:$16 sps:$4 sm:$0xff]   ;;  %v9662_v1 = vld [vmem:[%s13690_s3 + $0x1444] ss:$16 sps:$4 sm:$0xff]  }
 0x2a1   :  { %6812 = vmatprep.subr.bf16.mxu1 %v9577_v19  ;;  %v9631_v19 = vld [vmem:[%s13690_s3 + $0x14e4] ss:$16 sps:$4 sm:$0xff]  }
 0x2a2   :  { %6852 = vmatpush1.bf16.msra.mxu0 %v9572_v9  ;;  %v9626_v9 = vld [vmem:[%s13690_s3 + $0x1300] ss:$16 sps:$4 sm:$0xff]  }
 0x2a3   :  { %6853 = vmatprep.subr.bf16.mxu0 %v9580_v45  ;;  %v1682_v45 = vcombine.high %v12065_v11, %v12065_v11 }
 0x2a4   :  { %6813 = vmatpush1.bf16.msra.mxu1 %v9575_v53  ;;  %v9634_v53 = vld [vmem:[%s13690_s3 + $0x16e4] ss:$16 sps:$4 sm:$0xff]  }
 0x2a5   :  { %6814 = vmatprep.subr.bf16.mxu1 %v9583_v28  ;;  %v1683_v28 = vcombine.high %v12074_v38, %v12074_v38 }
 0x2a6   :  { %6854 = vmatpush1.bf16.msra.mxu0 %v9578_v60  ;;  %v12094_v60 = vpack.c.bf16 %v11838_v2, %v11838_v2  ;;  %v9641_v2 = vld [vmem:[%s13690_s3 + $0x16c4] ss:$16 sps:$4 sm:$0xff]  }
 0x2a7   :  { %6855 = vmatprep.subr.bf16.mxu0 %v9586_v0  ;;  %v9638_v0 = vld [vmem:[%s13690_s3 + $0x14c4] ss:$16 sps:$4 sm:$0xff]  }
 0x2a8   :  { %6815 = vmatpush2.bf16.msra.mxu1 %v9581_v7  ;;  %v12099_v7 = vpack.c.bf16 %v1682_v45, %v1682_v45  ;;  %v9666_v45 = vld [vmem:[%s13690_s3 + $0x1420] ss:$16 sps:$4 sm:$0xff]  }
 0x2a9   :  { %6816 = vmatprep.subr.bf16.mxu1 %v9589_v31  ;;  %v9632_v31 = vld [vmem:[%s13690_s3 + $0x16e0] ss:$16 sps:$4 sm:$0xff]  }
 0x2aa   :  { %6856 = vmatpush2.bf16.msra.mxu0 %v9584_v40 }
 0x2ab   :  { %6857 = vmatprep.subr.bf16.mxu0 %v9592_v42  ;;  %v12107_v42 = vpack.c.bf16 %v11848_v39, %v11848_v39  ;;  %v9644_v39 = vld [vmem:[%s13690_s3 + $0x14a4] ss:$16 sps:$4 sm:$0xff]  }
 0x2ac   :  { %6817 = vmatpush2.bf16.msra.mxu1 %v9587_v41 }
 0x2ad   :  { %6818 = vmatprep.subr.bf16.mxu1 %v9595_v12  ;;  %v12114_v12 = vpack.c.bf16 %v1683_v28, %v1683_v28  ;;  %v9677_v28 = vld [vmem:[%s13690_s3 + $0x1604] ss:$16 sps:$4 sm:$0xff]  }
 0x2ae   :  { %6858 = vmatpush2.bf16.msra.mxu0 %v9590_v21  ;;  %v9636_v21 = vld [vmem:[%s13690_s3 + $0x14c0] ss:$16 sps:$4 sm:$0xff]  }
 0x2af   :  { %6859 = vmatprep.subr.bf16.mxu0 %v9598_v20 }
 0x2b0   :  { %6819 = vmatpush2.bf16.msra.mxu1 %v9593_v22 }
 0x2b1   :  { %6820 = vmatprep.subr.bf16.mxu1 %v9601_v14 }
 0x2b2   :  { %6860 = vmatpush2.bf16.msra.mxu0 %v9596_v47  ;;  %v9639_v47 = vld [vmem:[%s13690_s3 + $0x16c0] ss:$16 sps:$4 sm:$0xff]  }
 0x2b3   :  { %6861 = vmatprep.subr.bf16.mxu0 %v9604_v50 }
 0x2b4   :  { %6821 = vmatpush2.bf16.msra.mxu1 %v9599_v49 }
 0x2b5   :  { %6822 = vmatprep.subr.bf16.mxu1 %v9607_v44  ;;  %v9647_v44 = vld [vmem:[%s13690_s3 + $0x16a4] ss:$16 sps:$4 sm:$0xff]  }
 0x2b6   :  { %6862 = vmatpush2.bf16.msra.mxu0 %v9602_v26 }
 0x2b7   :  { %6863 = vmatprep.subr.bf16.mxu0 %v9610_v58 }
 0x2b8   :  { %6823 = vmatpush2.bf16.msra.mxu1 %v9605_v37 }
 0x2b9   :  { %6824 = vmatprep.subr.bf16.mxu1 %v9613_v59  ;;  %v9650_v59 = vld [vmem:[%s13690_s3 + $0x1484] ss:$16 sps:$4 sm:$0xff]  }
 0x2ba   :  { %6864 = vmatpush2.bf16.msra.mxu0 %v9608_v27  ;;  %v9645_v27 = vld [vmem:[%s13690_s3 + $0x16a0] ss:$16 sps:$4 sm:$0xff]  }
 0x2bb   :  { %6865 = vmatprep.subr.bf16.mxu0 %v9616_v33 }
 0x2bc   :  { %6825 = vmatpush2.bf16.msra.mxu1 %v9611_v34  ;;  %v9653_v34 = vld [vmem:[%s13690_s3 + $0x1684] ss:$16 sps:$4 sm:$0xff]  }
 0x2bd   :  { %6826 = vmatprep.subr.bf16.mxu1 %v9619_v35  ;;  %v9648_v35 = vld [vmem:[%s13690_s3 + $0x1480] ss:$16 sps:$4 sm:$0xff]  }
 0x2be   :  { %6866 = vmatpush2.bf16.msra.mxu0 %v9614_v10  ;;  %v9651_v10 = vld [vmem:[%s13690_s3 + $0x1680] ss:$16 sps:$4 sm:$0xff]  }
 0x2bf   :  { %6867 = vmatprep.subr.bf16.mxu0 %v9622_v24  ;;  %v9659_v24 = vld [vmem:[%s13690_s3 + $0x1664] ss:$16 sps:$4 sm:$0xff]  }
 0x2c0   :  { %6827 = vmatpush2.bf16.msra.mxu1 %v9617_v63  ;;  %v9654_v63 = vld [vmem:[%s13690_s3 + $0x1460] ss:$16 sps:$4 sm:$0xff]  }
 0x2c1   :  { %6828 = vmatprep.subr.bf16.mxu1 %v9625_v48  ;;  %v9657_v48 = vld [vmem:[%s13690_s3 + $0x1660] ss:$16 sps:$4 sm:$0xff]  }
 0x2c2   :  { %6868 = vmatpush2.bf16.msra.mxu0 %v9620_v16  ;;  %v9665_v16 = vld [vmem:[%s13690_s3 + $0x1644] ss:$16 sps:$4 sm:$0xff]  }
 0x2c3   :  { %6869 = vmatprep.subr.bf16.mxu0 %v9628_v17  ;;  %v9660_v17 = vld [vmem:[%s13690_s3 + $0x1440] ss:$16 sps:$4 sm:$0xff]  }
 0x2c4   :  { %6829 = vmatpush2.bf16.msra.mxu1 %v9623_v36  ;;  %v9668_v36 = vld [vmem:[%s13690_s3 + $0x1424] ss:$16 sps:$4 sm:$0xff]  }
 0x2c5   :  { %6880 = vmatprep.subr.bf16.mxu1 %v9631_v19  ;;  %v9663_v19 = vld [vmem:[%s13690_s3 + $0x1640] ss:$16 sps:$4 sm:$0xff]  }
 0x2c6   :  { %6870 = vmatpush2.bf16.msra.mxu0 %v9626_v9  ;;  %v9671_v9 = vld [vmem:[%s13690_s3 + $0x1624] ss:$16 sps:$4 sm:$0xff]  }
 0x2c7   :  { %v6586_v40 = vpop.f32.mrf.mxu1  ;;  %6831 = vmatmul.mubr.bf16.vlgmr.msra.gmra.mxu1 %v12094_v60  ;;  %6921 = vmatprep.subr.bf16.mxu0 %v9634_v53  ;;  %v9674_v53 = vld [vmem:[%s13690_s3 + $0x1404] ss:$16 sps:$4 sm:$0xff]  }
 0x2c8   :  { %v6587_v41 = vadd.f32 %v6586_v40, %v11900_v23  ;;  %6881 = vmatpush1.bf16.msra.mxu1 %v9629_v18  ;;  %6912 = vmatprep.mubr.bf16.mxu1 %v12099_v7  ;;  %v9669_v18 = vld [vmem:[%s13690_s3 + $0x1620] ss:$16 sps:$4 sm:$0xff]  }
 0x2c9   :  { %v6588_v20 = vpop.f32.mrf.mxu1  ;;  %v6627_v22 = vpop.f32.mrf.mxu0  ;;  %6872 = vmatmul.mubr.bf16.vlgmr.msra.gmra.mxu0 %v12107_v42  ;;  %6882 = vmatprep.subr.bf16.mxu1 %v9638_v0  ;;  %v9672_v0 = vld [vmem:[%s13690_s3 + $0x1400] ss:$16 sps:$4 sm:$0xff]  }
 0x2ca   :  { %v6589_v23 = vadd.f32 %v6588_v20, %v11909_v6  ;;  %v12124_v14 = vadd.f32 %v6627_v22, %v6587_v41  ;;  %6922 = vmatpush1.bf16.msra.mxu0 %v9632_v31  ;;  %6953 = vmatprep.mubr.bf16.mxu0 %v12114_v12  ;;  %v9642_v6 = vld [vmem:[%s13690_s3 + $0x14a0] ss:$16 sps:$4 sm:$0xff]   ;;  %v9680_v31 = vld [vmem:[%s13690_s3 + $0x15e4] ss:$16 sps:$4 sm:$0xff]  }
 0x2cb   :  { %v6590_v50 = vpop.f32.mrf.mxu1  ;;  %v6629_v49 = vpop.f32.mrf.mxu0  ;;  %6923 = vmatprep.subr.bf16.mxu0 %v9641_v2  ;;  %v9675_v40 = vld [vmem:[%s13690_s3 + $0x1600] ss:$16 sps:$4 sm:$0xff]   ;;  %v9683_v2 = vld [vmem:[%s13690_s3 + $0x17e4] ss:$16 sps:$4 sm:$0xff]  }
 0x2cc   :  { %v12133_v26 = vadd.f32 %v6629_v49, %v6589_v23  ;;  %6883 = vmatpush1.bf16.msra.mxu1 %v9636_v21  ;;  %v9678_v41 = vld [vmem:[%s13690_s3 + $0x15e0] ss:$16 sps:$4 sm:$0xff]   ;;  %v9686_v21 = vld [vmem:[%s13690_s3 + $0x15c4] ss:$16 sps:$4 sm:$0xff]  }
 0x2cd   :  { %v6591_v58 = vpop.f32.mrf.mxu1  ;;  %v6631_v37 = vpop.f32.mrf.mxu0  ;;  %6884 = vmatprep.subr.bf16.mxu1 %v9644_v39  ;;  %v9681_v20 = vld [vmem:[%s13690_s3 + $0x17e0] ss:$16 sps:$4 sm:$0xff]   ;;  %v9689_v22 = vld [vmem:[%s13690_s3 + $0x17c4] ss:$16 sps:$4 sm:$0xff]  }
 0x2ce   :  { %6924 = vmatpush1.bf16.msra.mxu0 %v9639_v47  ;;  %v9684_v39 = vld [vmem:[%s13690_s3 + $0x15c0] ss:$16 sps:$4 sm:$0xff]   ;;  %v9692_v23 = vld [vmem:[%s13690_s3 + $0x15a4] ss:$16 sps:$4 sm:$0xff]  }
 0x2cf   :  { %v6632_v33 = vpop.f32.mrf.mxu0  ;;  %6925 = vmatprep.subr.bf16.mxu0 %v9647_v44  ;;  %v9687_v47 = vld [vmem:[%s13690_s3 + $0x17c0] ss:$16 sps:$4 sm:$0xff]   ;;  %v9695_v50 = vld [vmem:[%s13690_s3 + $0x17a4] ss:$16 sps:$4 sm:$0xff]  }
 0x2d0   :  { %6885 = vmatpush1.bf16.msra.mxu1 %v9642_v6  ;;  %v9690_v49 = vld [vmem:[%s13690_s3 + $0x15a0] ss:$16 sps:$4 sm:$0xff]   ;;  %v9698_v44 = vld [vmem:[%s13690_s3 + $0x1584] ss:$16 sps:$4 sm:$0xff]  }
 0x2d1   :  { %6886 = vmatprep.subr.bf16.mxu1 %v9650_v59  ;;  %v9693_v6 = vld [vmem:[%s13690_s3 + $0x17a0] ss:$16 sps:$4 sm:$0xff]   ;;  %v9701_v58 = vld [vmem:[%s13690_s3 + $0x1784] ss:$16 sps:$4 sm:$0xff]  }
 0x2d2   :  { %6926 = vmatpush1.bf16.msra.mxu0 %v9645_v27  ;;  %v9696_v37 = vld [vmem:[%s13690_s3 + $0x1580] ss:$16 sps:$4 sm:$0xff]   ;;  %v9704_v59 = vld [vmem:[%s13690_s3 + $0x1564] ss:$16 sps:$4 sm:$0xff]  }
 0x2d3   :  { %6927 = vmatprep.subr.bf16.mxu0 %v9653_v34  ;;  %v9699_v27 = vld [vmem:[%s13690_s3 + $0x1780] ss:$16 sps:$4 sm:$0xff]   ;;  %v9707_v33 = vld [vmem:[%s13690_s3 + $0x1764] ss:$16 sps:$4 sm:$0xff]  }
 0x2d4   :  { %6887 = vmatpush1.bf16.msra.mxu1 %v9648_v35  ;;  %v9702_v34 = vld [vmem:[%s13690_s3 + $0x1560] ss:$16 sps:$4 sm:$0xff]   ;;  %v9710_v35 = vld [vmem:[%s13690_s3 + $0x1544] ss:$16 sps:$4 sm:$0xff]  }
 0x2d5   :  { %6888 = vmatprep.subr.bf16.mxu1 %v9656_v62  ;;  %v9705_v62 = vld [vmem:[%s13690_s3 + $0x1760] ss:$16 sps:$4 sm:$0xff]  }
 0x2d6   :  { %6928 = vmatpush1.bf16.msra.mxu0 %v9651_v10  ;;  %v9713_v10 = vld [vmem:[%s13690_s3 + $0x1744] ss:$16 sps:$4 sm:$0xff]  }
 0x2d7   :  { %6929 = vmatprep.subr.bf16.mxu0 %v9659_v24  ;;  %v9708_v24 = vld [vmem:[%s13690_s3 + $0x1540] ss:$16 sps:$4 sm:$0xff]  }
 0x2d8   :  { %6889 = vmatpush1.bf16.msra.mxu1 %v9654_v63  ;;  %v9716_v63 = vld [vmem:[%s13690_s3 + $0x1524] ss:$16 sps:$4 sm:$0xff]  }
 0x2d9   :  { %6890 = vmatprep.subr.bf16.mxu1 %v9662_v1  ;;  %v9711_v1 = vld [vmem:[%s13690_s3 + $0x1740] ss:$16 sps:$4 sm:$0xff]  }
 0x2da   :  { %6930 = vmatpush1.bf16.msra.mxu0 %v9657_v48  ;;  %v9719_v48 = vld [vmem:[%s13690_s3 + $0x1724] ss:$16 sps:$4 sm:$0xff]  }
 0x2db   :  { %6931 = vmatprep.subr.bf16.mxu0 %v9665_v16  ;;  %v9714_v16 = vld [vmem:[%s13690_s3 + $0x1520] ss:$16 sps:$4 sm:$0xff]  }
 0x2dc   :  { %6891 = vmatpush1.bf16.msra.mxu1 %v9660_v17  ;;  %v9722_v17 = vld [vmem:[%s13690_s3 + $0x1504] ss:$16 sps:$4 sm:$0xff]  }
 0x2dd   :  { %6892 = vmatprep.subr.bf16.mxu1 %v9668_v36  ;;  %v9717_v36 = vld [vmem:[%s13690_s3 + $0x1720] ss:$16 sps:$4 sm:$0xff]  }
 0x2de   :  { %6932 = vmatpush1.bf16.msra.mxu0 %v9663_v19  ;;  %v9725_v19 = vld [vmem:[%s13690_s3 + $0x1704] ss:$16 sps:$4 sm:$0xff]  }
 0x2df   :  { %6933 = vmatprep.subr.bf16.mxu0 %v9671_v9  ;;  %v9720_v9 = vld [vmem:[%s13690_s3 + $0x1500] ss:$16 sps:$4 sm:$0xff]  }
 0x2e0   :  { %6893 = vmatpush1.bf16.msra.mxu1 %v9666_v45  ;;  %v9728_v45 = vld [vmem:[%s13690_s3 + $0x1864] ss:$16 sps:$4 sm:$0xff]  }
 0x2e1   :  { %6894 = vmatprep.subr.bf16.mxu1 %v9674_v53  ;;  %v9723_v53 = vld [vmem:[%s13690_s3 + $0x1700] ss:$16 sps:$4 sm:$0xff]  }
 0x2e2   :  { %6934 = vmatpush1.bf16.msra.mxu0 %v9669_v18  ;;  %v9731_v18 = vld [vmem:[%s13690_s3 + $0x2ec] ss:$16 sps:$4 sm:$0xff]  }
 0x2e3   :  { %6935 = vmatprep.subr.bf16.mxu0 %v9677_v28  ;;  %v9726_v28 = vld [vmem:[%s13690_s3 + $0x1860] ss:$16 sps:$4 sm:$0xff]  }
 0x2e4   :  { %6895 = vmatpush1.bf16.msra.mxu1 %v9672_v0  ;;  %v12308_v0 = vpack.c.bf16 %v12065_v11, %v12065_v11  ;;  %v9737_v11 = vld [vmem:[%s13690_s3 + $0x2cc] ss:$16 sps:$4 sm:$0xff]  }
 0x2e5   :  { %6896 = vmatprep.subr.bf16.mxu1 %v9680_v31  ;;  %v9734_v31 = vld [vmem:[%s13690_s3 + $0x1844] ss:$16 sps:$4 sm:$0xff]  }
 0x2e6   :  { %6936 = vmatpush1.bf16.msra.mxu0 %v9675_v40  ;;  %v9729_v40 = vld [vmem:[%s13690_s3 + $0x2e8] ss:$16 sps:$4 sm:$0xff]  }
 0x2e7   :  { %6937 = vmatprep.subr.bf16.mxu0 %v9683_v2 }
 0x2e8   :  { %6897 = vmatpush2.bf16.msra.mxu1 %v9678_v41  ;;  %v12319_v41 = vpack.c.bf16 %v12074_v38, %v12074_v38  ;;  %v9740_v38 = vld [vmem:[%s13690_s3 + $0x1824] ss:$16 sps:$4 sm:$0xff]  }
 0x2e9   :  { %6898 = vmatprep.subr.bf16.mxu1 %v9686_v21 }
 0x2ea   :  { %6938 = vmatpush2.bf16.msra.mxu0 %v9681_v20  ;;  %v9732_v20 = vld [vmem:[%s13690_s3 + $0x1840] ss:$16 sps:$4 sm:$0xff]  }
 0x2eb   :  { %6939 = vmatprep.subr.bf16.mxu0 %v9689_v22  ;;  %v10385_v22 = vmov 0  }
 0x2ec   :  { %6899 = vmatpush2.bf16.msra.mxu1 %v9684_v39 }
 0x2ed   :  { %6900 = vmatprep.subr.bf16.mxu1 %v9692_v23 }
 0x2ee   :  { %6940 = vmatpush2.bf16.msra.mxu0 %v9687_v47 }
 0x2ef   :  { %6941 = vmatprep.subr.bf16.mxu0 %v9695_v50  ;;  %v9735_v50 = vld [vmem:[%s13690_s3 + $0x2c8] ss:$16 sps:$4 sm:$0xff]  }
 0x2f0   :  { %6901 = vmatpush2.bf16.msra.mxu1 %v9690_v49 }
 0x2f1   :  { %6902 = vmatprep.subr.bf16.mxu1 %v9698_v44 }
 0x2f2   :  { %6942 = vmatpush2.bf16.msra.mxu0 %v9693_v6  ;;  %v9743_v6 = vld [vmem:[%s13690_s3 + $0x2ac] ss:$16 sps:$4 sm:$0xff]  }
 0x2f3   :  { %6943 = vmatprep.subr.bf16.mxu0 %v9701_v58 }
 0x2f4   :  { %6903 = vmatpush2.bf16.msra.mxu1 %v9696_v37 }
 0x2f5   :  { %6904 = vmatprep.subr.bf16.mxu1 %v9704_v59  ;;  %v9746_v59 = vld [vmem:[%s13690_s3 + $0x1804] ss:$16 sps:$4 sm:$0xff]  }
 0x2f6   :  { %6944 = vmatpush2.bf16.msra.mxu0 %v9699_v27  ;;  %v9741_v27 = vld [vmem:[%s13690_s3 + $0x2a8] ss:$16 sps:$4 sm:$0xff]  }
 0x2f7   :  { %6945 = vmatprep.subr.bf16.mxu0 %v9707_v33 }
 0x2f8   :  { %6905 = vmatpush2.bf16.msra.mxu1 %v9702_v34  ;;  %v9749_v34 = vld [vmem:[%s13690_s3 + $0x28c] ss:$16 sps:$4 sm:$0xff]  }
 0x2f9   :  { %6906 = vmatprep.subr.bf16.mxu1 %v9710_v35  ;;  %v9744_v35 = vld [vmem:[%s13690_s3 + $0x1800] ss:$16 sps:$4 sm:$0xff]  }
 0x2fa   :  { %6946 = vmatpush2.bf16.msra.mxu0 %v9705_v62  ;;  %v9752_v62 = vld [vmem:[%s13690_s3 + $0xec] ss:$16 sps:$4 sm:$0xff]  }
 0x2fb   :  { %6947 = vmatprep.subr.bf16.mxu0 %v9713_v10  ;;  %v9747_v10 = vld [vmem:[%s13690_s3 + $0x288] ss:$16 sps:$4 sm:$0xff]  }
 0x2fc   :  { %6907 = vmatpush2.bf16.msra.mxu1 %v9708_v24  ;;  %v8030_v24 = vld.sshfl [vmem:[#allocation3 + $0x30] sm:$0x3 pattern:$0x76325410] }
 0x2fd   :  { %6908 = vmatprep.subr.bf16.mxu1 %v9716_v63  ;;  %v9755_v63 = vld [vmem:[%s13690_s3 + $0x26c] ss:$16 sps:$4 sm:$0xff]  }
 0x2fe   :  { %6948 = vmatpush2.bf16.msra.mxu0 %v9711_v1  ;;  %v9750_v1 = vld [vmem:[%s13690_s3 + $0xe8] ss:$16 sps:$4 sm:$0xff]  }
 0x2ff   :  { %6949 = vmatprep.subr.bf16.mxu0 %v9719_v48  ;;  %v12372_v48 = vpack.c.bf16 %v8030_v24, %v8030_v24  ;;  %v9809_v24 = vld [vmem:[%s13690_s3 + $0x34c] ss:$16 sps:$4 sm:$0xff]  }
 0x300   :  { %6909 = vmatpush2.bf16.msra.mxu1 %v9714_v16  ;;  %v9758_v16 = vld [vmem:[%s13690_s3 + $0xcc] ss:$16 sps:$4 sm:$0xff]  }
 0x301   :  { %6910 = vmatprep.subr.bf16.mxu1 %v9722_v17  ;;  %v9753_v17 = vld [vmem:[%s13690_s3 + $0x268] ss:$16 sps:$4 sm:$0xff]  }
 0x302   :  { %6950 = vmatpush2.bf16.msra.mxu0 %v9717_v36  ;;  %v9761_v36 = vld [vmem:[%s13690_s3 + $0x24c] ss:$16 sps:$4 sm:$0xff]  }
 0x303   :  { %6951 = vmatprep.subr.bf16.mxu0 %v9725_v19  ;;  %v9756_v19 = vld [vmem:[%s13690_s3 + $0xc8] ss:$16 sps:$4 sm:$0xff]  }
 0x304   :  { %6911 = vmatpush2.bf16.msra.mxu1 %v9720_v9  ;;  %v9764_v9 = vld [vmem:[%s13690_s3 + $0xac] ss:$16 sps:$4 sm:$0xff]  }
 0x305   :  { %6970 = vmatprep.subr.bf16.mxu1 %v9728_v45  ;;  %v9759_v45 = vld [vmem:[%s13690_s3 + $0x248] ss:$16 sps:$4 sm:$0xff]  }
 0x306   :  { %6952 = vmatpush2.bf16.msra.mxu0 %v9723_v53  ;;  %v9767_v53 = vld [vmem:[%s13690_s3 + $0x22c] ss:$16 sps:$4 sm:$0xff]  }
 0x307   :  { %v6668_v2 = vpop.f32.mrf.mxu1  ;;  %6913 = vmatmul.mubr.bf16.vlgmr.msra.gmra.mxu1 %v12308_v0  ;;  %7044 = vmatprep.subr.bf16.mxu0 %v9731_v18  ;;  %v9770_v18 = vld [vmem:[%s13690_s3 + $0x8c] ss:$16 sps:$4 sm:$0xff]  }
 0x308   :  { %v6669_v21 = vadd.f32 %v6668_v2, %v12124_v14  ;;  %6971 = vmatpush1.bf16.msra.mxu1 %v9726_v28  ;;  %6994 = vmatprep.mubr.bf16.mxu1 %v10385_v22  ;;  %v9765_v28 = vld [vmem:[%s13690_s3 + $0x228] ss:$16 sps:$4 sm:$0xff]   ;;  %v9776_v2 = vld [vmem:[%s13690_s3 + $0x6c] ss:$16 sps:$4 sm:$0xff]  }
 0x309   :  { %v6670_v39 = vpop.f32.mrf.mxu1  ;;  %v6709_v23 = vpop.f32.mrf.mxu0  ;;  %6954 = vmatmul.mubr.bf16.vlgmr.msra.gmra.mxu0 %v12319_v41  ;;  %6972 = vmatprep.subr.bf16.mxu1 %v9734_v31  ;;  %v9773_v31 = vld [vmem:[%s13690_s3 + $0x20c] ss:$16 sps:$4 sm:$0xff]  }
 0x30a   :  { %v6671_v47 = vadd.f32 %v6670_v39, %v12133_v26  ;;  %v12334_v14 = vadd.f32 %v6709_v23, %v6669_v21  ;;  %7045 = vmatpush1.bf16.msra.mxu0 %v9729_v40  ;;  %7076 = vmatprep.mubr.bf16.mxu0 %v11176_v56  ;;  %v9738_v26 = vld [vmem:[%s13690_s3 + $0x1820] ss:$16 sps:$4 sm:$0xff]   ;;  %v9768_v40 = vld [vmem:[%s13690_s3 + $0x88] ss:$16 sps:$4 sm:$0xff]   ;;  %v9779_v21 = vld [vmem:[%s13690_s3 + $0x3ec] ss:$16 sps:$4 sm:$0xff]  }
 0x30b   :  { %v6672_v49 = vpop.f32.mrf.mxu1  ;;  %v6711_v44 = vpop.f32.mrf.mxu0  ;;  %7046 = vmatprep.subr.bf16.mxu0 %v9737_v11  ;;  %v9771_v11 = vld [vmem:[%s13690_s3 + $0x208] ss:$16 sps:$4 sm:$0xff]   ;;  %v9782_v39 = vld [vmem:[%s13690_s3 + $0x4c] ss:$16 sps:$4 sm:$0xff]  }
 0x30c   :  { %v12343_v58 = vadd.f32 %v6711_v44, %v6671_v47  ;;  %6973 = vmatpush1.bf16.msra.mxu1 %v9732_v20  ;;  %v9774_v20 = vld [vmem:[%s13690_s3 + $0x68] ss:$16 sps:$4 sm:$0xff]   ;;  %v9791_v44 = vld [vmem:[%s13690_s3 + $0x3ac] ss:$16 sps:$4 sm:$0xff]  }
 0x30d   :  { %v6673_v37 = vpop.f32.mrf.mxu1  ;;  %v6713_v56 = vpop.f32.mrf.mxu0  ;;  %6974 = vmatprep.subr.bf16.mxu1 %v9740_v38  ;;  %v9777_v23 = vld [vmem:[%s13690_s3 + $0x3e8] ss:$16 sps:$4 sm:$0xff]   ;;  %v9785_v38 = vld [vmem:[%s13690_s3 + $0x3cc] ss:$16 sps:$4 sm:$0xff]  }
 0x30e   :  { %7047 = vmatpush1.bf16.msra.mxu0 %v9735_v50  ;;  %v9780_v47 = vld [vmem:[%s13690_s3 + $0x48] ss:$16 sps:$4 sm:$0xff]   ;;  %v9788_v50 = vld [vmem:[%s13690_s3 + $0x2c] ss:$16 sps:$4 sm:$0xff]  }
 0x30f   :  { %v6714_v33 = vpop.f32.mrf.mxu0  ;;  %7048 = vmatprep.subr.bf16.mxu0 %v9743_v6  ;;  %v9783_v49 = vld [vmem:[%s13690_s3 + $0x3c8] ss:$16 sps:$4 sm:$0xff]   ;;  %v9797_v56 = vld [vmem:[%s13690_s3 + $0x38c] ss:$16 sps:$4 sm:$0xff]  }
 0x310   :  { %6975 = vmatpush1.bf16.msra.mxu1 %v9738_v26  ;;  %v9786_v6 = vld [vmem:[%s13690_s3 + $0x28] ss:$16 sps:$4 sm:$0xff]   ;;  %v9794_v26 = vld [vmem:[%s13690_s3 + $0xc] ss:$16 sps:$4 sm:$0xff]  }
 0x311   :  { %6976 = vmatprep.subr.bf16.mxu1 %v9746_v59  ;;  %v9789_v37 = vld [vmem:[%s13690_s3 + $0x3a8] ss:$16 sps:$4 sm:$0xff]  }
 0x312   :  { %7049 = vmatpush1.bf16.msra.mxu0 %v9741_v27  ;;  %v9792_v59 = vld [vmem:[%s13690_s3 + $0x8] ss:$16 sps:$4 sm:$0xff]   ;;  %v9800_v27 = vld [vmem:[%s13690_s3 + $0x1ec] ss:$16 sps:$4 sm:$0xff]  }
 0x313   :  { %7050 = vmatprep.subr.bf16.mxu0 %v9749_v34  ;;  %v9795_v33 = vld [vmem:[%s13690_s3 + $0x388] ss:$16 sps:$4 sm:$0xff]   ;;  %v9803_v34 = vld [vmem:[%s13690_s3 + $0x36c] ss:$16 sps:$4 sm:$0xff]  }
 0x314   :  { %6977 = vmatpush1.bf16.msra.mxu1 %v9744_v35  ;;  %v9798_v35 = vld [vmem:[%s13690_s3 + $0x1e8] ss:$16 sps:$4 sm:$0xff]  }
 0x315   :  { %7003 = vmatprep.subr.bf16.mxu1 %v9752_v62  ;;  %v9806_v62 = vld [vmem:[%s13690_s3 + $0x1cc] ss:$16 sps:$4 sm:$0xff]  }
 0x316   :  { %7051 = vmatpush1.bf16.msra.mxu0 %v9747_v10  ;;  %v9801_v10 = vld [vmem:[%s13690_s3 + $0x368] ss:$16 sps:$4 sm:$0xff]  }
 0x317   :  { %8815 = vmatmul.mubr.msk.bf16.vlgmr.msra.gmra.mxu1 %vm529_vm1, %v12372_v48  ;;  %7052 = vmatprep.subr.bf16.mxu0 %v9755_v63  ;;  %v9804_v63 = vld [vmem:[%s13690_s3 + $0x1c8] ss:$16 sps:$4 sm:$0xff]  }
 0x318   :  { %7004 = vmatpush1.bf16.msra.mxu1 %v9750_v1  ;;  %7035 = vmatprep.mubr.bf16.mxu1 %v11165_v52  ;;  %v9762_v52 = vld [vmem:[%s13690_s3 + $0xa8] ss:$16 sps:$4 sm:$0xff]   ;;  %v9812_v1 = vld [vmem:[%s13690_s3 + $0x1ac] ss:$16 sps:$4 sm:$0xff]  }
 0x319   :  { %7005 = vmatprep.subr.bf16.mxu1 %v9758_v16  ;;  %v9807_v16 = vld [vmem:[%s13690_s3 + $0x348] ss:$16 sps:$4 sm:$0xff]  }
 0x31a   :  { %7053 = vmatpush1.bf16.msra.mxu0 %v9753_v17  ;;  %v9815_v17 = vld [vmem:[%s13690_s3 + $0x32c] ss:$16 sps:$4 sm:$0xff]  }
 0x31b   :  { %7054 = vmatprep.subr.bf16.mxu0 %v9761_v36  ;;  %v9810_v36 = vld [vmem:[%s13690_s3 + $0x1a8] ss:$16 sps:$4 sm:$0xff]  }
 0x31c   :  { %7006 = vmatpush1.bf16.msra.mxu1 %v9756_v19  ;;  %v9818_v19 = vld [vmem:[%s13690_s3 + $0x18c] ss:$16 sps:$4 sm:$0xff]  }
 0x31d   :  { %7007 = vmatprep.subr.bf16.mxu1 %v9764_v9  ;;  %v9813_v9 = vld [vmem:[%s13690_s3 + $0x328] ss:$16 sps:$4 sm:$0xff]  }
 0x31e   :  { %7055 = vmatpush1.bf16.msra.mxu0 %v9759_v45  ;;  %v9821_v45 = vld [vmem:[%s13690_s3 + $0x30c] ss:$16 sps:$4 sm:$0xff]  }
 0x31f   :  { %7056 = vmatprep.subr.bf16.mxu0 %v9767_v53  ;;  %v9816_v53 = vld [vmem:[%s13690_s3 + $0x188] ss:$16 sps:$4 sm:$0xff]  }
 0x320   :  { %7008 = vmatpush1.bf16.msra.mxu1 %v9762_v52  ;;  %v9824_v52 = vld [vmem:[%s13690_s3 + $0x16c] ss:$16 sps:$4 sm:$0xff]  }
 0x321   :  { %7009 = vmatprep.subr.bf16.mxu1 %v9770_v18  ;;  %v9819_v18 = vld [vmem:[%s13690_s3 + $0x308] ss:$16 sps:$4 sm:$0xff]  }
 0x322   :  { %7057 = vmatpush1.bf16.msra.mxu0 %v9765_v28  ;;  %v9827_v28 = vld [vmem:[%s13690_s3 + $0x6ec] ss:$16 sps:$4 sm:$0xff]  }
 0x323   :  { %7058 = vmatprep.subr.bf16.mxu0 %v9773_v31  ;;  %v9822_v31 = vld [vmem:[%s13690_s3 + $0x168] ss:$16 sps:$4 sm:$0xff]  }
 0x324   :  { %7010 = vmatpush1.bf16.msra.mxu1 %v9768_v40  ;;  %v9830_v40 = vld [vmem:[%s13690_s3 + $0x14c] ss:$16 sps:$4 sm:$0xff]  }
 0x325   :  { %7011 = vmatprep.subr.bf16.mxu1 %v9776_v2  ;;  %v9825_v2 = vld [vmem:[%s13690_s3 + $0x6e8] ss:$16 sps:$4 sm:$0xff]  }
 0x326   :  { %7059 = vmatpush1.bf16.msra.mxu0 %v9771_v11 }
 0x327   :  { %7060 = vmatprep.subr.bf16.mxu0 %v9779_v21  ;;  %v9833_v21 = vld [vmem:[%s13690_s3 + $0x6cc] ss:$16 sps:$4 sm:$0xff]  }
 0x328   :  { %7012 = vmatpush1.bf16.msra.mxu1 %v9774_v20 }
 0x329   :  { %7013 = vmatprep.subr.bf16.mxu1 %v9782_v39  ;;  %v9828_v39 = vld [vmem:[%s13690_s3 + $0x148] ss:$16 sps:$4 sm:$0xff]  }
 0x32a   :  { %7061 = vmatpush2.bf16.msra.mxu0 %v9777_v23 }
 0x32b   :  { %7062 = vmatprep.subr.bf16.mxu0 %v9785_v38 }
 0x32c   :  { %7014 = vmatpush1.bf16.msra.mxu1 %v9780_v47  ;;  %v9836_v47 = vld [vmem:[%s13690_s3 + $0x12c] ss:$16 sps:$4 sm:$0xff]  }
 0x32d   :  { %7015 = vmatprep.subr.bf16.mxu1 %v9788_v50 }
 0x32e   :  { %7063 = vmatpush2.bf16.msra.mxu0 %v9783_v49 }
 0x32f   :  { %7064 = vmatprep.subr.bf16.mxu0 %v9791_v44 }
 0x330   :  { %7016 = vmatpush1.bf16.msra.mxu1 %v9786_v6 }
 0x331   :  { %7017 = vmatprep.subr.bf16.mxu1 %v9794_v26 }
 0x332   :  { %7065 = vmatpush2.bf16.msra.mxu0 %v9789_v37 }
 0x333   :  { %7066 = vmatprep.subr.bf16.mxu0 %v9797_v56  ;;  %v9842_v56 = vld [vmem:[%s13690_s3 + $0x10c] ss:$16 sps:$4 sm:$0xff]  }
 0x334   :  { %7018 = vmatpush1.bf16.msra.mxu1 %v9792_v59  ;;  %v9837_v59 = vld [vmem:[%s13690_s3 + $0x6a8] ss:$16 sps:$4 sm:$0xff]  }
 0x335   :  { %7019 = vmatprep.subr.bf16.mxu1 %v9800_v27 }
 0x336   :  { %7067 = vmatpush2.bf16.msra.mxu0 %v9795_v33  ;;  %v9845_v33 = vld [vmem:[%s13690_s3 + $0x68c] ss:$16 sps:$4 sm:$0xff]  }
 0x337   :  { %7068 = vmatprep.subr.bf16.mxu0 %v9803_v34  ;;  %v9840_v34 = vld [vmem:[%s13690_s3 + $0x108] ss:$16 sps:$4 sm:$0xff]  }
 0x338   :  { %7020 = vmatpush2.bf16.msra.mxu1 %v9798_v35  ;;  %v9848_v35 = vld [vmem:[%s13690_s3 + $0x4ec] ss:$16 sps:$4 sm:$0xff]  }
 0x339   :  { %7021 = vmatprep.subr.bf16.mxu1 %v9806_v62  ;;  %v9843_v62 = vld [vmem:[%s13690_s3 + $0x688] ss:$16 sps:$4 sm:$0xff]  }
 0x33a   :  { %7069 = vmatpush2.bf16.msra.mxu0 %v9801_v10  ;;  %v9851_v10 = vld [vmem:[%s13690_s3 + $0x66c] ss:$16 sps:$4 sm:$0xff]  }
 0x33b   :  { %7070 = vmatprep.subr.bf16.mxu0 %v9809_v24  ;;  %v9846_v24 = vld [vmem:[%s13690_s3 + $0x4e8] ss:$16 sps:$4 sm:$0xff]  }
 0x33c   :  { %7022 = vmatpush2.bf16.msra.mxu1 %v9804_v63  ;;  %v9854_v63 = vld [vmem:[%s13690_s3 + $0x4cc] ss:$16 sps:$4 sm:$0xff]  }
 0x33d   :  { %7023 = vmatprep.subr.bf16.mxu1 %v9812_v1  ;;  %v9849_v1 = vld [vmem:[%s13690_s3 + $0x668] ss:$16 sps:$4 sm:$0xff]  }
 0x33e   :  { %7071 = vmatpush2.bf16.msra.mxu0 %v9807_v16  ;;  %v9857_v16 = vld [vmem:[%s13690_s3 + $0x64c] ss:$16 sps:$4 sm:$0xff]  }
 0x33f   :  { %7072 = vmatprep.subr.bf16.mxu0 %v9815_v17  ;;  %v9852_v17 = vld [vmem:[%s13690_s3 + $0x4c8] ss:$16 sps:$4 sm:$0xff]  }
 0x340   :  { %7024 = vmatpush2.bf16.msra.mxu1 %v9810_v36  ;;  %v9860_v36 = vld [vmem:[%s13690_s3 + $0x4ac] ss:$16 sps:$4 sm:$0xff]  }
 0x341   :  { %7025 = vmatprep.subr.bf16.mxu1 %v9818_v19  ;;  %v9863_v19 = vld [vmem:[%s13690_s3 + $0x62c] ss:$16 sps:$4 sm:$0xff]  }
 0x342   :  { %7073 = vmatpush2.bf16.msra.mxu0 %v9813_v9  ;;  %v9866_v9 = vld [vmem:[%s13690_s3 + $0x48c] ss:$16 sps:$4 sm:$0xff]  }
 0x343   :  { %7074 = vmatprep.subr.bf16.mxu0 %v9821_v45  ;;  %v9861_v45 = vld [vmem:[%s13690_s3 + $0x628] ss:$16 sps:$4 sm:$0xff]  }
 0x344   :  { %7026 = vmatpush2.bf16.msra.mxu1 %v9816_v53  ;;  %v9869_v53 = vld [vmem:[%s13690_s3 + $0x60c] ss:$16 sps:$4 sm:$0xff]  }
 0x345   :  { %7027 = vmatprep.subr.bf16.mxu1 %v9824_v52  ;;  %v9864_v52 = vld [vmem:[%s13690_s3 + $0x488] ss:$16 sps:$4 sm:$0xff]  }
 0x346   :  { %7075 = vmatpush2.bf16.msra.mxu0 %v9819_v18  ;;  %v9872_v18 = vld [vmem:[%s13690_s3 + $0x46c] ss:$16 sps:$4 sm:$0xff]  }
 0x347   :  { %v6750_v11 = vpop.f32.mrf.mxu1  ;;  %7126 = vmatprep.subr.bf16.mxu0 %v9827_v28  ;;  %v9867_v28 = vld [vmem:[%s13690_s3 + $0x608] ss:$16 sps:$4 sm:$0xff]  }
 0x348   :  { %v6751_v20 = vadd.f32 %v6750_v11, %v12334_v14  ;;  %7028 = vmatpush2.bf16.msra.mxu1 %v9822_v31  ;;  %v9831_v14 = vld [vmem:[%s13690_s3 + $0x6c8] ss:$16 sps:$4 sm:$0xff]   ;;  %v9875_v31 = vld [vmem:[%s13690_s3 + $0x7ec] ss:$16 sps:$4 sm:$0xff]  }
 0x349   :  { %v6752_v23 = vpop.f32.mrf.mxu1  ;;  %v6791_v38 = vpop.f32.mrf.mxu0  ;;  %7077 = vmatmul.mubr.bf16.vlgmr.msra.gmra.mxu0 %v11180_v29  ;;  %7029 = vmatprep.subr.bf16.mxu1 %v9830_v40  ;;  %v9839_v29 = vld [vmem:[%s13690_s3 + $0x6ac] ss:$16 sps:$4 sm:$0xff]   ;;  %v9870_v40 = vld [vmem:[%s13690_s3 + $0x468] ss:$16 sps:$4 sm:$0xff]  }
 0x34a   :  { %v6753_v50 = vadd.f32 %v6752_v23, %v12343_v58  ;;  %v12539_v49 = vadd.f32 %v6791_v38, %v6751_v20  ;;  %7127 = vmatpush1.bf16.msra.mxu0 %v9825_v2  ;;  %7158 = vmatprep.mubr.bf16.mxu0 %v11252_v32  ;;  %v9834_v58 = vld [vmem:[%s13690_s3 + $0x128] ss:$16 sps:$4 sm:$0xff]   ;;  %v9878_v2 = vld [vmem:[%s13690_s3 + $0x44c] ss:$16 sps:$4 sm:$0xff]  }
 0x34b   :  { %v6754_v44 = vpop.f32.mrf.mxu1  ;;  %v6793_v6 = vpop.f32.mrf.mxu0  ;;  %7128 = vmatprep.subr.bf16.mxu0 %v9833_v21  ;;  %v9873_v11 = vld [vmem:[%s13690_s3 + $0x7e8] ss:$16 sps:$4 sm:$0xff]   ;;  %v9881_v21 = vld [vmem:[%s13690_s3 + $0x7cc] ss:$16 sps:$4 sm:$0xff]  }
 0x34c   :  { %v12548_v26 = vadd.f32 %v6793_v6, %v6753_v50  ;;  %7030 = vmatpush2.bf16.msra.mxu1 %v9828_v39  ;;  %v9876_v20 = vld [vmem:[%s13690_s3 + $0x448] ss:$16 sps:$4 sm:$0xff]   ;;  %v9884_v39 = vld [vmem:[%s13690_s3 + $0x42c] ss:$16 sps:$4 sm:$0xff]  }
 0x34d   :  { %v6755_v37 = vpop.f32.mrf.mxu1  ;;  %v6795_v32 = vpop.f32.mrf.mxu0  ;;  %7031 = vmatprep.subr.bf16.mxu1 %v9836_v47  ;;  %v9879_v23 = vld [vmem:[%s13690_s3 + $0x7c8] ss:$16 sps:$4 sm:$0xff]   ;;  %v9887_v38 = vld [vmem:[%s13690_s3 + $0x7ac] ss:$16 sps:$4 sm:$0xff]  }
 0x34e   :  { %7129 = vmatpush1.bf16.msra.mxu0 %v9831_v14  ;;  %v9882_v47 = vld [vmem:[%s13690_s3 + $0x428] ss:$16 sps:$4 sm:$0xff]   ;;  %v9890_v50 = vld [vmem:[%s13690_s3 + $0x40c] ss:$16 sps:$4 sm:$0xff]  }
 0x34f   :  { %v6796_v27 = vpop.f32.mrf.mxu0  ;;  %7130 = vmatprep.subr.bf16.mxu0 %v9839_v29  ;;  %v9885_v14 = vld [vmem:[%s13690_s3 + $0x7a8] ss:$16 sps:$4 sm:$0xff]   ;;  %v9893_v44 = vld [vmem:[%s13690_s3 + $0x78c] ss:$16 sps:$4 sm:$0xff]  }
 0x350   :  { %7032 = vmatpush2.bf16.msra.mxu1 %v9834_v58  ;;  %v9888_v6 = vld [vmem:[%s13690_s3 + $0x408] ss:$16 sps:$4 sm:$0xff]   ;;  %v9896_v29 = vld [vmem:[%s13690_s3 + $0x5ec] ss:$16 sps:$4 sm:$0xff]  }
 0x351   :  { %7033 = vmatprep.subr.bf16.mxu1 %v9842_v56  ;;  %v9891_v58 = vld [vmem:[%s13690_s3 + $0x788] ss:$16 sps:$4 sm:$0xff]   ;;  %v9899_v37 = vld [vmem:[%s13690_s3 + $0x76c] ss:$16 sps:$4 sm:$0xff]  }
 0x352   :  { %7131 = vmatpush1.bf16.msra.mxu0 %v9837_v59  ;;  %v9894_v32 = vld [vmem:[%s13690_s3 + $0x5e8] ss:$16 sps:$4 sm:$0xff]   ;;  %v9902_v56 = vld [vmem:[%s13690_s3 + $0x5cc] ss:$16 sps:$4 sm:$0xff]  }
 0x353   :  { %7132 = vmatprep.subr.bf16.mxu0 %v9845_v33  ;;  %v9897_v59 = vld [vmem:[%s13690_s3 + $0x768] ss:$16 sps:$4 sm:$0xff]   ;;  %v9905_v27 = vld [vmem:[%s13690_s3 + $0x74c] ss:$16 sps:$4 sm:$0xff]  }
 0x354   :  { %7034 = vmatpush2.bf16.msra.mxu1 %v9840_v34  ;;  %v9900_v33 = vld [vmem:[%s13690_s3 + $0x5c8] ss:$16 sps:$4 sm:$0xff]   ;;  %v9908_v34 = vld [vmem:[%s13690_s3 + $0x5ac] ss:$16 sps:$4 sm:$0xff]  }
 0x355   :  { %7085 = vmatprep.subr.bf16.mxu1 %v9848_v35  ;;  %v9903_v35 = vld [vmem:[%s13690_s3 + $0x748] ss:$16 sps:$4 sm:$0xff]  }
 0x356   :  { %7133 = vmatpush1.bf16.msra.mxu0 %v9843_v62  ;;  %v9911_v62 = vld [vmem:[%s13690_s3 + $0x72c] ss:$16 sps:$4 sm:$0xff]  }
 0x357   :  { %7036 = vmatmul.mubr.bf16.vlgmr.msra.gmra.mxu1 %v11173_v54  ;;  %7134 = vmatprep.subr.bf16.mxu0 %v9851_v10  ;;  %v9855_v54 = vld [vmem:[%s13690_s3 + $0x648] ss:$16 sps:$4 sm:$0xff]  }
 0x358   :  { %7086 = vmatpush1.bf16.msra.mxu1 %v9846_v24  ;;  %7117 = vmatprep.mubr.bf16.mxu1 %v11241_v57  ;;  %v9858_v57 = vld [vmem:[%s13690_s3 + $0x4a8] ss:$16 sps:$4 sm:$0xff]   ;;  %v9914_v24 = vld [vmem:[%s13690_s3 + $0x58c] ss:$16 sps:$4 sm:$0xff]  }
 0x359   :  { %7087 = vmatprep.subr.bf16.mxu1 %v9854_v63  ;;  %v9906_v10 = vld [vmem:[%s13690_s3 + $0x5a8] ss:$16 sps:$4 sm:$0xff]  }
 0x35a   :  { %7135 = vmatpush1.bf16.msra.mxu0 %v9849_v1  ;;  %v9909_v63 = vld [vmem:[%s13690_s3 + $0x728] ss:$16 sps:$4 sm:$0xff]   ;;  %v9917_v1 = vld [vmem:[%s13690_s3 + $0x70c] ss:$16 sps:$4 sm:$0xff]  }
 0x35b   :  { %7136 = vmatprep.subr.bf16.mxu0 %v9857_v16  ;;  %v9912_v16 = vld [vmem:[%s13690_s3 + $0x588] ss:$16 sps:$4 sm:$0xff]  }
 0x35c   :  { %7088 = vmatpush1.bf16.msra.mxu1 %v9852_v17  ;;  %v9920_v17 = vld [vmem:[%s13690_s3 + $0x56c] ss:$16 sps:$4 sm:$0xff]  }
 0x35d   :  { %7089 = vmatprep.subr.bf16.mxu1 %v9860_v36  ;;  %v9915_v36 = vld [vmem:[%s13690_s3 + $0x708] ss:$16 sps:$4 sm:$0xff]  }
 0x35e   :  { %7137 = vmatpush1.bf16.msra.mxu0 %v9855_v54  ;;  %v9923_v54 = vld [vmem:[%s13690_s3 + $0xaec] ss:$16 sps:$4 sm:$0xff]  }
 0x35f   :  { %7138 = vmatprep.subr.bf16.mxu0 %v9863_v19  ;;  %v9918_v19 = vld [vmem:[%s13690_s3 + $0x568] ss:$16 sps:$4 sm:$0xff]  }
 0x360   :  { %7090 = vmatpush1.bf16.msra.mxu1 %v9858_v57  ;;  %v9926_v57 = vld [vmem:[%s13690_s3 + $0x54c] ss:$16 sps:$4 sm:$0xff]  }
 0x361   :  { %7091 = vmatprep.subr.bf16.mxu1 %v9866_v9  ;;  %v9921_v9 = vld [vmem:[%s13690_s3 + $0xae8] ss:$16 sps:$4 sm:$0xff]  }
 0x362   :  { %7139 = vmatpush1.bf16.msra.mxu0 %v9861_v45 }
 0x363   :  { %7140 = vmatprep.subr.bf16.mxu0 %v9869_v53  ;;  %v9929_v53 = vld [vmem:[%s13690_s3 + $0xacc] ss:$16 sps:$4 sm:$0xff]  }
 0x364   :  { %7092 = vmatpush1.bf16.msra.mxu1 %v9864_v52 }
 0x365   :  { %7093 = vmatprep.subr.bf16.mxu1 %v9872_v18  ;;  %v9924_v18 = vld [vmem:[%s13690_s3 + $0x548] ss:$16 sps:$4 sm:$0xff]  }
 0x366   :  { %7141 = vmatpush1.bf16.msra.mxu0 %v9867_v28 }
 0x367   :  { %7142 = vmatprep.subr.bf16.mxu0 %v9875_v31 }
 0x368   :  { %7094 = vmatpush1.bf16.msra.mxu1 %v9870_v40  ;;  %v9932_v40 = vld [vmem:[%s13690_s3 + $0x52c] ss:$16 sps:$4 sm:$0xff]  }
 0x369   :  { %7095 = vmatprep.subr.bf16.mxu1 %v9878_v2 }
 0x36a   :  { %7143 = vmatpush2.bf16.msra.mxu0 %v9873_v11 }
 0x36b   :  { %7144 = vmatprep.subr.bf16.mxu0 %v9881_v21 }
 0x36c   :  { %7096 = vmatpush1.bf16.msra.mxu1 %v9876_v20 }
 0x36d   :  { %7097 = vmatprep.subr.bf16.mxu1 %v9884_v39 }
 0x36e   :  { %7145 = vmatpush2.bf16.msra.mxu0 %v9879_v23 }
 0x36f   :  { %7146 = vmatprep.subr.bf16.mxu0 %v9887_v38  ;;  %v9938_v38 = vld [vmem:[%s13690_s3 + $0x50c] ss:$16 sps:$4 sm:$0xff]  }
 0x370   :  { %7098 = vmatpush1.bf16.msra.mxu1 %v9882_v47  ;;  %v9933_v47 = vld [vmem:[%s13690_s3 + $0xaa8] ss:$16 sps:$4 sm:$0xff]  }
 0x371   :  { %7099 = vmatprep.subr.bf16.mxu1 %v9890_v50 }
 0x372   :  { %7147 = vmatpush2.bf16.msra.mxu0 %v9885_v14  ;;  %v9941_v14 = vld [vmem:[%s13690_s3 + $0xa8c] ss:$16 sps:$4 sm:$0xff]  }
 0x373   :  { %7148 = vmatprep.subr.bf16.mxu0 %v9893_v44  ;;  %v9936_v44 = vld [vmem:[%s13690_s3 + $0x508] ss:$16 sps:$4 sm:$0xff]  }
 0x374   :  { %7100 = vmatpush1.bf16.msra.mxu1 %v9888_v6  ;;  %v9944_v6 = vld [vmem:[%s13690_s3 + $0x8ec] ss:$16 sps:$4 sm:$0xff]  }
 0x375   :  { %7101 = vmatprep.subr.bf16.mxu1 %v9896_v29  ;;  %v9939_v29 = vld [vmem:[%s13690_s3 + $0xa88] ss:$16 sps:$4 sm:$0xff]  }
 0x376   :  { %7149 = vmatpush2.bf16.msra.mxu0 %v9891_v58  ;;  %v9947_v58 = vld [vmem:[%s13690_s3 + $0xa6c] ss:$16 sps:$4 sm:$0xff]  }
 0x377   :  { %7150 = vmatprep.subr.bf16.mxu0 %v9899_v37  ;;  %v9942_v37 = vld [vmem:[%s13690_s3 + $0x8e8] ss:$16 sps:$4 sm:$0xff]  }
 0x378   :  { %7102 = vmatpush2.bf16.msra.mxu1 %v9894_v32  ;;  %v9950_v32 = vld [vmem:[%s13690_s3 + $0x8cc] ss:$16 sps:$4 sm:$0xff]  }
 0x379   :  { %7103 = vmatprep.subr.bf16.mxu1 %v9902_v56  ;;  %v9945_v56 = vld [vmem:[%s13690_s3 + $0xa68] ss:$16 sps:$4 sm:$0xff]  }
 0x37a   :  { %7151 = vmatpush2.bf16.msra.mxu0 %v9897_v59  ;;  %v9953_v59 = vld [vmem:[%s13690_s3 + $0xa4c] ss:$16 sps:$4 sm:$0xff]  }
 0x37b   :  { %7152 = vmatprep.subr.bf16.mxu0 %v9905_v27  ;;  %v9948_v27 = vld [vmem:[%s13690_s3 + $0x8c8] ss:$16 sps:$4 sm:$0xff]  }
 0x37c   :  { %7104 = vmatpush2.bf16.msra.mxu1 %v9900_v33  ;;  %v9956_v33 = vld [vmem:[%s13690_s3 + $0x8ac] ss:$16 sps:$4 sm:$0xff]  }
 0x37d   :  { %7105 = vmatprep.subr.bf16.mxu1 %v9908_v34  ;;  %v9959_v34 = vld [vmem:[%s13690_s3 + $0xa2c] ss:$16 sps:$4 sm:$0xff]  }
 0x37e   :  { %7153 = vmatpush2.bf16.msra.mxu0 %v9903_v35  ;;  %v9962_v35 = vld [vmem:[%s13690_s3 + $0x88c] ss:$16 sps:$4 sm:$0xff]  }
 0x37f   :  { %7154 = vmatprep.subr.bf16.mxu0 %v9911_v62  ;;  %v9957_v62 = vld [vmem:[%s13690_s3 + $0xa28] ss:$16 sps:$4 sm:$0xff]  }
 0x380   :  { %7106 = vmatpush2.bf16.msra.mxu1 %v9906_v10  ;;  %v9965_v10 = vld [vmem:[%s13690_s3 + $0xa0c] ss:$16 sps:$4 sm:$0xff]  }
 0x381   :  { %7107 = vmatprep.subr.bf16.mxu1 %v9914_v24  ;;  %v9960_v24 = vld [vmem:[%s13690_s3 + $0x888] ss:$16 sps:$4 sm:$0xff]  }
 0x382   :  { %7155 = vmatpush2.bf16.msra.mxu0 %v9909_v63  ;;  %v9968_v63 = vld [vmem:[%s13690_s3 + $0x86c] ss:$16 sps:$4 sm:$0xff]  }
 0x383   :  { %7156 = vmatprep.subr.bf16.mxu0 %v9917_v1  ;;  %v9963_v1 = vld [vmem:[%s13690_s3 + $0xa08] ss:$16 sps:$4 sm:$0xff]  }
 0x384   :  { %7108 = vmatpush2.bf16.msra.mxu1 %v9912_v16  ;;  %v9971_v16 = vld [vmem:[%s13690_s3 + $0xbec] ss:$16 sps:$4 sm:$0xff]  }
 0x385   :  { %7109 = vmatprep.subr.bf16.mxu1 %v9920_v17  ;;  %v9966_v17 = vld [vmem:[%s13690_s3 + $0x868] ss:$16 sps:$4 sm:$0xff]  }
 0x386   :  { %7157 = vmatpush2.bf16.msra.mxu0 %v9915_v36  ;;  %v9974_v36 = vld [vmem:[%s13690_s3 + $0x84c] ss:$16 sps:$4 sm:$0xff]  }
 0x387   :  { %v6832_v45 = vpop.f32.mrf.mxu1  ;;  %7208 = vmatprep.subr.bf16.mxu0 %v9923_v54  ;;  %v9969_v54 = vld [vmem:[%s13690_s3 + $0xbe8] ss:$16 sps:$4 sm:$0xff]  }
 0x388   :  { %v6833_v52 = vadd.f32 %v6832_v45, %v12539_v49  ;;  %7110 = vmatpush2.bf16.msra.mxu1 %v9918_v19  ;;  %v9927_v49 = vld [vmem:[%s13690_s3 + $0xac8] ss:$16 sps:$4 sm:$0xff]   ;;  %v9977_v19 = vld [vmem:[%s13690_s3 + $0xbcc] ss:$16 sps:$4 sm:$0xff]  }
 0x389   :  { %v6834_v28 = vpop.f32.mrf.mxu1  ;;  %v6873_v31 = vpop.f32.mrf.mxu0  ;;  %7159 = vmatmul.mubr.bf16.vlgmr.msra.gmra.mxu0 %v11443_v5  ;;  %7111 = vmatprep.subr.bf16.mxu1 %v9926_v57  ;;  %v9935_v5 = vld [vmem:[%s13690_s3 + $0xaac] ss:$16 sps:$4 sm:$0xff]   ;;  %v9972_v57 = vld [vmem:[%s13690_s3 + $0x848] ss:$16 sps:$4 sm:$0xff]  }
 0x38a   :  { %v6835_v2 = vadd.f32 %v6834_v28, %v12548_v26  ;;  %v12741_v11 = vadd.f32 %v6873_v31, %v6833_v52  ;;  %7209 = vmatpush1.bf16.msra.mxu0 %v9921_v9  ;;  %7240 = vmatprep.mubr.bf16.mxu0 %v11450_v15  ;;  %v9930_v26 = vld [vmem:[%s13690_s3 + $0x528] ss:$16 sps:$4 sm:$0xff]   ;;  %v9980_v9 = vld [vmem:[%s13690_s3 + $0x82c] ss:$16 sps:$4 sm:$0xff]  }
 0x38b   :  { %v6836_v21 = vpop.f32.mrf.mxu1  ;;  %v6875_v20 = vpop.f32.mrf.mxu0  ;;  %7210 = vmatprep.subr.bf16.mxu0 %v9929_v53  ;;  %v9975_v45 = vld [vmem:[%s13690_s3 + $0xbc8] ss:$16 sps:$4 sm:$0xff]   ;;  %v9983_v53 = vld [vmem:[%s13690_s3 + $0xbac] ss:$16 sps:$4 sm:$0xff]  }
 0x38c   :  { %v12750_v39 = vadd.f32 %v6875_v20, %v6835_v2  ;;  %7112 = vmatpush2.bf16.msra.mxu1 %v9924_v18  ;;  %v9978_v52 = vld [vmem:[%s13690_s3 + $0x828] ss:$16 sps:$4 sm:$0xff]   ;;  %v9986_v18 = vld [vmem:[%s13690_s3 + $0x80c] ss:$16 sps:$4 sm:$0xff]  }
 0x38d   :  { %v6837_v23 = vpop.f32.mrf.mxu1  ;;  %v6877_v15 = vpop.f32.mrf.mxu0  ;;  %7113 = vmatprep.subr.bf16.mxu1 %v9932_v40  ;;  %v9981_v28 = vld [vmem:[%s13690_s3 + $0xba8] ss:$16 sps:$4 sm:$0xff]   ;;  %v9989_v31 = vld [vmem:[%s13690_s3 + $0xb8c] ss:$16 sps:$4 sm:$0xff]  }
 0x38e   :  { %7211 = vmatpush1.bf16.msra.mxu0 %v9927_v49  ;;  %v9984_v40 = vld [vmem:[%s13690_s3 + $0x808] ss:$16 sps:$4 sm:$0xff]   ;;  %v9992_v2 = vld [vmem:[%s13690_s3 + $0x9ec] ss:$16 sps:$4 sm:$0xff]  }
 0x38f   :  { %v6878_v50 = vpop.f32.mrf.mxu0  ;;  %7212 = vmatprep.subr.bf16.mxu0 %v9935_v5  ;;  %v9987_v49 = vld [vmem:[%s13690_s3 + $0xb88] ss:$16 sps:$4 sm:$0xff]   ;;  %v9995_v21 = vld [vmem:[%s13690_s3 + $0xb6c] ss:$16 sps:$4 sm:$0xff]  }
 0x390   :  { %7114 = vmatpush2.bf16.msra.mxu1 %v9930_v26  ;;  %v9990_v20 = vld [vmem:[%s13690_s3 + $0x9e8] ss:$16 sps:$4 sm:$0xff]   ;;  %v9998_v5 = vld [vmem:[%s13690_s3 + $0x9cc] ss:$16 sps:$4 sm:$0xff]  }
 0x391   :  { %7115 = vmatprep.subr.bf16.mxu1 %v9938_v38  ;;  %v9993_v26 = vld [vmem:[%s13690_s3 + $0xb68] ss:$16 sps:$4 sm:$0xff]   ;;  %v10001_v23 = vld [vmem:[%s13690_s3 + $0xb4c] ss:$16 sps:$4 sm:$0xff]  }
 0x392   :  { %7213 = vmatpush1.bf16.msra.mxu0 %v9933_v47  ;;  %v9996_v15 = vld [vmem:[%s13690_s3 + $0x9c8] ss:$16 sps:$4 sm:$0xff]   ;;  %v10004_v38 = vld [vmem:[%s13690_s3 + $0x9ac] ss:$16 sps:$4 sm:$0xff]  }
 0x393   :  { %7214 = vmatprep.subr.bf16.mxu0 %v9941_v14  ;;  %v9999_v47 = vld [vmem:[%s13690_s3 + $0xb48] ss:$16 sps:$4 sm:$0xff]   ;;  %v10007_v50 = vld [vmem:[%s13690_s3 + $0xb2c] ss:$16 sps:$4 sm:$0xff]  }
 0x394   :  { %7116 = vmatpush2.bf16.msra.mxu1 %v9936_v44  ;;  %v10002_v14 = vld [vmem:[%s13690_s3 + $0x9a8] ss:$16 sps:$4 sm:$0xff]   ;;  %v10010_v44 = vld [vmem:[%s13690_s3 + $0x98c] ss:$16 sps:$4 sm:$0xff]  }
 0x395   :  { %7167 = vmatprep.subr.bf16.mxu1 %v9944_v6  ;;  %v10005_v6 = vld [vmem:[%s13690_s3 + $0xb28] ss:$16 sps:$4 sm:$0xff]  }
 0x396   :  { %7215 = vmatpush1.bf16.msra.mxu0 %v9939_v29  ;;  %v10013_v29 = vld [vmem:[%s13690_s3 + $0xb0c] ss:$16 sps:$4 sm:$0xff]  }
 0x397   :  { %7118 = vmatmul.mubr.bf16.vlgmr.msra.gmra.mxu1 %v11429_v46  ;;  %7216 = vmatprep.subr.bf16.mxu0 %v9947_v58  ;;  %v9951_v46 = vld [vmem:[%s13690_s3 + $0xa48] ss:$16 sps:$4 sm:$0xff]  }
 0x398   :  { %7168 = vmatpush1.bf16.msra.mxu1 %v9942_v37  ;;  %7199 = vmatprep.mubr.bf16.mxu1 %v11434_v30  ;;  %v9954_v30 = vld [vmem:[%s13690_s3 + $0x8a8] ss:$16 sps:$4 sm:$0xff]   ;;  %v10016_v37 = vld [vmem:[%s13690_s3 + $0x96c] ss:$16 sps:$4 sm:$0xff]  }
 0x399   :  { %7169 = vmatprep.subr.bf16.mxu1 %v9950_v32  ;;  %v10008_v58 = vld [vmem:[%s13690_s3 + $0x988] ss:$16 sps:$4 sm:$0xff]  }
 0x39a   :  { %7217 = vmatpush1.bf16.msra.mxu0 %v9945_v56  ;;  %v10011_v32 = vld [vmem:[%s13690_s3 + $0xb08] ss:$16 sps:$4 sm:$0xff]   ;;  %v10019_v56 = vld [vmem:[%s13690_s3 + $0xeec] ss:$16 sps:$4 sm:$0xff]  }
 0x39b   :  { %7218 = vmatprep.subr.bf16.mxu0 %v9953_v59  ;;  %v10014_v59 = vld [vmem:[%s13690_s3 + $0x968] ss:$16 sps:$4 sm:$0xff]  }
 0x39c   :  { %7170 = vmatpush1.bf16.msra.mxu1 %v9948_v27  ;;  %v10022_v27 = vld [vmem:[%s13690_s3 + $0x94c] ss:$16 sps:$4 sm:$0xff]  }
 0x39d   :  { %7171 = vmatprep.subr.bf16.mxu1 %v9956_v33  ;;  %v10017_v33 = vld [vmem:[%s13690_s3 + $0xee8] ss:$16 sps:$4 sm:$0xff]  }
 0x39e   :  { %7219 = vmatpush1.bf16.msra.mxu0 %v9951_v46 }
 0x39f   :  { %7220 = vmatprep.subr.bf16.mxu0 %v9959_v34  ;;  %v10025_v34 = vld [vmem:[%s13690_s3 + $0xecc] ss:$16 sps:$4 sm:$0xff]  }
 0x3a0   :  { %7172 = vmatpush1.bf16.msra.mxu1 %v9954_v30 }
 0x3a1   :  { %7173 = vmatprep.subr.bf16.mxu1 %v9962_v35  ;;  %v10020_v35 = vld [vmem:[%s13690_s3 + $0x948] ss:$16 sps:$4 sm:$0xff]  }
 0x3a2   :  { %7221 = vmatpush1.bf16.msra.mxu0 %v9957_v62 }
 0x3a3   :  { %7222 = vmatprep.subr.bf16.mxu0 %v9965_v10 }
 0x3a4   :  { %7174 = vmatpush1.bf16.msra.mxu1 %v9960_v24  ;;  %v10028_v24 = vld [vmem:[%s13690_s3 + $0x92c] ss:$16 sps:$4 sm:$0xff]  }
 0x3a5   :  { %7175 = vmatprep.subr.bf16.mxu1 %v9968_v63 }
 0x3a6   :  { %7223 = vmatpush1.bf16.msra.mxu0 %v9963_v1 }
 0x3a7   :  { %7224 = vmatprep.subr.bf16.mxu0 %v9971_v16 }
 0x3a8   :  { %7176 = vmatpush1.bf16.msra.mxu1 %v9966_v17 }
 0x3a9   :  { %7177 = vmatprep.subr.bf16.mxu1 %v9974_v36 }
 0x3aa   :  { %7225 = vmatpush2.bf16.msra.mxu0 %v9969_v54 }
 0x3ab   :  { %7226 = vmatprep.subr.bf16.mxu0 %v9977_v19 }
 0x3ac   :  { %7178 = vmatpush1.bf16.msra.mxu1 %v9972_v57  ;;  %v10029_v57 = vld [vmem:[%s13690_s3 + $0xea8] ss:$16 sps:$4 sm:$0xff]  }
 0x3ad   :  { %7179 = vmatprep.subr.bf16.mxu1 %v9980_v9 }
 0x3ae   :  { %7227 = vmatpush2.bf16.msra.mxu0 %v9975_v45  ;;  %v10037_v45 = vld [vmem:[%s13690_s3 + $0xe8c] ss:$16 sps:$4 sm:$0xff]  }
 0x3af   :  { %7228 = vmatprep.subr.bf16.mxu0 %v9983_v53  ;;  %v10032_v53 = vld [vmem:[%s13690_s3 + $0x908] ss:$16 sps:$4 sm:$0xff]  }
 0x3b0   :  { %7180 = vmatpush1.bf16.msra.mxu1 %v9978_v52  ;;  %v10040_v52 = vld [vmem:[%s13690_s3 + $0xcec] ss:$16 sps:$4 sm:$0xff]  }
 0x3b1   :  { %7181 = vmatprep.subr.bf16.mxu1 %v9986_v18  ;;  %v10035_v18 = vld [vmem:[%s13690_s3 + $0xe88] ss:$16 sps:$4 sm:$0xff]  }
 0x3b2   :  { %7229 = vmatpush2.bf16.msra.mxu0 %v9981_v28  ;;  %v10043_v28 = vld [vmem:[%s13690_s3 + $0xe6c] ss:$16 sps:$4 sm:$0xff]  }
 0x3b3   :  { %7230 = vmatprep.subr.bf16.mxu0 %v9989_v31  ;;  %v10038_v31 = vld [vmem:[%s13690_s3 + $0xce8] ss:$16 sps:$4 sm:$0xff]  }
 0x3b4   :  { %7182 = vmatpush1.bf16.msra.mxu1 %v9984_v40  ;;  %v10046_v40 = vld [vmem:[%s13690_s3 + $0xccc] ss:$16 sps:$4 sm:$0xff]  }
 0x3b5   :  { %7183 = vmatprep.subr.bf16.mxu1 %v9992_v2  ;;  %v10041_v2 = vld [vmem:[%s13690_s3 + $0xe68] ss:$16 sps:$4 sm:$0xff]  }
 0x3b6   :  { %7231 = vmatpush2.bf16.msra.mxu0 %v9987_v49 }
 0x3b7   :  { %7232 = vmatprep.subr.bf16.mxu0 %v9995_v21  ;;  %v10049_v21 = vld [vmem:[%s13690_s3 + $0xe4c] ss:$16 sps:$4 sm:$0xff]  }
 0x3b8   :  { %7184 = vmatpush2.bf16.msra.mxu1 %v9990_v20 }
 0x3b9   :  { %7185 = vmatprep.subr.bf16.mxu1 %v9998_v5  ;;  %v10044_v5 = vld [vmem:[%s13690_s3 + $0xcc8] ss:$16 sps:$4 sm:$0xff]  }
 0x3ba   :  { %7233 = vmatpush2.bf16.msra.mxu0 %v9993_v26 }
 0x3bb   :  { %7234 = vmatprep.subr.bf16.mxu0 %v10001_v23 }
 0x3bc   :  { %7186 = vmatpush2.bf16.msra.mxu1 %v9996_v15  ;;  %v10047_v15 = vld [vmem:[%s13690_s3 + $0xe48] ss:$16 sps:$4 sm:$0xff]  }
 0x3bd   :  { %7187 = vmatprep.subr.bf16.mxu1 %v10004_v38 }
 0x3be   :  { %7235 = vmatpush2.bf16.msra.mxu0 %v9999_v47  ;;  %v10050_v47 = vld [vmem:[%s13690_s3 + $0xca8] ss:$16 sps:$4 sm:$0xff]  }
 0x3bf   :  { %7236 = vmatprep.subr.bf16.mxu0 %v10007_v50 }
 0x3c0   :  { %7188 = vmatpush2.bf16.msra.mxu1 %v10002_v14  ;;  %v10058_v14 = vld [vmem:[%s13690_s3 + $0xc8c] ss:$16 sps:$4 sm:$0xff]  }
 0x3c1   :  { %7189 = vmatprep.subr.bf16.mxu1 %v10010_v44  ;;  %v10053_v44 = vld [vmem:[%s13690_s3 + $0xe28] ss:$16 sps:$4 sm:$0xff]  }
 0x3c2   :  { %7237 = vmatpush2.bf16.msra.mxu0 %v10005_v6  ;;  %v10061_v6 = vld [vmem:[%s13690_s3 + $0xe0c] ss:$16 sps:$4 sm:$0xff]  }
 0x3c3   :  { %7238 = vmatprep.subr.bf16.mxu0 %v10013_v29  ;;  %v10056_v29 = vld [vmem:[%s13690_s3 + $0xc88] ss:$16 sps:$4 sm:$0xff]  }
 0x3c4   :  { %7190 = vmatpush2.bf16.msra.mxu1 %v10008_v58  ;;  %v10064_v58 = vld [vmem:[%s13690_s3 + $0xc6c] ss:$16 sps:$4 sm:$0xff]  }
 0x3c5   :  { %7191 = vmatprep.subr.bf16.mxu1 %v10016_v37  ;;  %v10059_v37 = vld [vmem:[%s13690_s3 + $0xe08] ss:$16 sps:$4 sm:$0xff]  }
 0x3c6   :  { %7239 = vmatpush2.bf16.msra.mxu0 %v10011_v32  ;;  %v10067_v32 = vld [vmem:[%s13690_s3 + $0xfec] ss:$16 sps:$4 sm:$0xff]  }
 0x3c7   :  { %v6914_v46 = vpop.f32.mrf.mxu1  ;;  %7290 = vmatprep.subr.bf16.mxu0 %v10019_v56  ;;  %v10062_v56 = vld [vmem:[%s13690_s3 + $0xc68] ss:$16 sps:$4 sm:$0xff]  }
 0x3c8   :  { %v6915_v30 = vadd.f32 %v6914_v46, %v12741_v11  ;;  %7192 = vmatpush2.bf16.msra.mxu1 %v10014_v59  ;;  %v10023_v11 = vld [vmem:[%s13690_s3 + $0xec8] ss:$16 sps:$4 sm:$0xff]   ;;  %v10070_v59 = vld [vmem:[%s13690_s3 + $0xc4c] ss:$16 sps:$4 sm:$0xff]  }
 0x3c9   :  { %v6916_v62 = vpop.f32.mrf.mxu1  ;;  %v6955_v10 = vpop.f32.mrf.mxu0  ;;  %7241 = vmatmul.mubr.bf16.vlgmr.msra.gmra.mxu0 %v11662_v25  ;;  %7193 = vmatprep.subr.bf16.mxu1 %v10022_v27  ;;  %v10031_v25 = vld [vmem:[%s13690_s3 + $0xeac] ss:$16 sps:$4 sm:$0xff]   ;;  %v10065_v27 = vld [vmem:[%s13690_s3 + $0xfe8] ss:$16 sps:$4 sm:$0xff]  }
 0x3ca   :  { %v6917_v63 = vadd.f32 %v6916_v62, %v12750_v39  ;;  %v6956_v1 = vadd.f32 %v6955_v10, %v6915_v30  ;;  %7291 = vmatpush1.bf16.msra.mxu0 %v10017_v33  ;;  %7322 = vmatprep.mubr.bf16.mxu0 %v11668_v55  ;;  %v10026_v39 = vld [vmem:[%s13690_s3 + $0x928] ss:$16 sps:$4 sm:$0xff]   ;;  %v10034_v55 = vld [vmem:[%s13690_s3 + $0x90c] ss:$16 sps:$4 sm:$0xff]  }
 0x3cb   :  { %v6918_v16 = vpop.f32.mrf.mxu1  ;;  %v6957_v17 = vpop.f32.mrf.mxu0  ;;  %7292 = vmatprep.subr.bf16.mxu0 %v10025_v34  ;;  %v10073_v33 = vld [vmem:[%s13690_s3 + $0xfcc] ss:$16 sps:$4 sm:$0xff]   ;;  %v10068_v46 = vld [vmem:[%s13690_s3 + $0xc48] ss:$16 sps:$4 sm:$0xff]  }
 0x3cc   :  { %v6958_v36 = vadd.f32 %v6957_v17, %v6917_v63  ;;  %7194 = vmatpush2.bf16.msra.mxu1 %v10020_v35  ;;  %v10076_v34 = vld [vmem:[%s13690_s3 + $0xc2c] ss:$16 sps:$4 sm:$0xff]   ;;  %v10071_v30 = vld [vmem:[%s13690_s3 + $0xfc8] ss:$16 sps:$4 sm:$0xff]  }
 0x3cd   :  { %v6919_v54 = vpop.f32.mrf.mxu1  ;;  %v6959_v19 = vpop.f32.mrf.mxu0  ;;  %7195 = vmatprep.subr.bf16.mxu1 %v10028_v24  ;;  %v10079_v35 = vld [vmem:[%s13690_s3 + $0xfac] ss:$16 sps:$4 sm:$0xff]   ;;  %v10074_v62 = vld [vmem:[%s13690_s3 + $0xc28] ss:$16 sps:$4 sm:$0xff]  }
 0x3ce   :  { %7293 = vmatpush1.bf16.msra.mxu0 %v10023_v11  ;;  %v10082_v10 = vld [vmem:[%s13690_s3 + $0xc0c] ss:$16 sps:$4 sm:$0xff]   ;;  %v10077_v24 = vld [vmem:[%s13690_s3 + $0xfa8] ss:$16 sps:$4 sm:$0xff]  }
 0x3cf   :  { %v6960_v9 = vpop.f32.mrf.mxu0  ;;  %7294 = vmatprep.subr.bf16.mxu0 %v10031_v25  ;;  %v10085_v63 = vld [vmem:[%s13690_s3 + $0xf8c] ss:$16 sps:$4 sm:$0xff]   ;;  %v10083_v16 = vld [vmem:[%s13690_s3 + $0xf88] ss:$16 sps:$4 sm:$0xff]  }
 0x3d0   :  { %7196 = vmatpush2.bf16.msra.mxu1 %v10026_v39  ;;  %v10088_v11 = vld [vmem:[%s13690_s3 + $0xdec] ss:$16 sps:$4 sm:$0xff]   ;;  %v10086_v25 = vld [vmem:[%s13690_s3 + $0xde8] ss:$16 sps:$4 sm:$0xff]  }
 0x3d1   :  { %7197 = vmatprep.subr.bf16.mxu1 %v10034_v55  ;;  %v10091_v17 = vld [vmem:[%s13690_s3 + $0xf6c] ss:$16 sps:$4 sm:$0xff]   ;;  %v10089_v39 = vld [vmem:[%s13690_s3 + $0xf68] ss:$16 sps:$4 sm:$0xff]  }
 0x3d2   :  { %7295 = vmatpush1.bf16.msra.mxu0 %v10029_v57  ;;  %v10097_v54 = vld [vmem:[%s13690_s3 + $0xf4c] ss:$16 sps:$4 sm:$0xff]   ;;  %v10092_v19 = vld [vmem:[%s13690_s3 + $0xdc8] ss:$16 sps:$4 sm:$0xff]  }
 0x3d3   :  { %7296 = vmatprep.subr.bf16.mxu0 %v10037_v45  ;;  %v10100_v55 = vld [vmem:[%s13690_s3 + $0xdac] ss:$16 sps:$4 sm:$0xff]   ;;  %v10095_v57 = vld [vmem:[%s13690_s3 + $0xf48] ss:$16 sps:$4 sm:$0xff]  }
 0x3d4   :  { %7198 = vmatpush2.bf16.msra.mxu1 %v10032_v53  ;;  %v10103_v9 = vld [vmem:[%s13690_s3 + $0xf2c] ss:$16 sps:$4 sm:$0xff]   ;;  %v10098_v45 = vld [vmem:[%s13690_s3 + $0xda8] ss:$16 sps:$4 sm:$0xff]  }
 0x3d5   :  { %7249 = vmatprep.subr.bf16.mxu1 %v10040_v52  ;;  %v10106_v53 = vld [vmem:[%s13690_s3 + $0xd8c] ss:$16 sps:$4 sm:$0xff]   ;;  %v10101_v52 = vld [vmem:[%s13690_s3 + $0xf28] ss:$16 sps:$4 sm:$0xff]  }
 0x3d6   :  { %7297 = vmatpush1.bf16.msra.mxu0 %v10035_v18  ;;  %v10109_v18 = vld [vmem:[%s13690_s3 + $0xf0c] ss:$16 sps:$4 sm:$0xff]  }
 0x3d7   :  { %v6996_v49 = vpop.f32.mrf.mxu1  ;;  %7200 = vmatmul.mubr.bf16.vlgmr.msra.gmra.mxu1 %v11649_v51  ;;  %7298 = vmatprep.subr.bf16.mxu0 %v10043_v28  ;;  %v10052_v51 = vld [vmem:[%s13690_s3 + $0xcac] ss:$16 sps:$4 sm:$0xff]   ;;  %v10104_v28 = vld [vmem:[%s13690_s3 + $0xd88] ss:$16 sps:$4 sm:$0xff]  }
 0x3d8   :  { %v12987_v20 = vadd.f32 %v6996_v49, %v6956_v1  ;;  %7250 = vmatpush1.bf16.msra.mxu1 %v10038_v31  ;;  %7281 = vmatprep.mubr.bf16.mxu1 %v11654_v8  ;;  %v10055_v8 = vld [vmem:[%s13690_s3 + $0xe2c] ss:$16 sps:$4 sm:$0xff]   ;;  %v10080_v1 = vld [vmem:[%s13690_s3 + $0xc08] ss:$16 sps:$4 sm:$0xff]  }
 0x3d9   :  { %v6998_v26 = vpop.f32.mrf.mxu1  ;;  %7251 = vmatprep.subr.bf16.mxu1 %v10046_v40  ;;  %v10112_v31 = vld [vmem:[%s13690_s3 + $0xd6c] ss:$16 sps:$4 sm:$0xff]   ;;  %v10107_v40 = vld [vmem:[%s13690_s3 + $0xf08] ss:$16 sps:$4 sm:$0xff]  }
 0x3da   :  { %v12996_v23 = vadd.f32 %v6998_v26, %v6958_v36  ;;  %7299 = vmatpush1.bf16.msra.mxu0 %v10041_v2  ;;  %v10094_v36 = vld [vmem:[%s13690_s3 + $0xdcc] ss:$16 sps:$4 sm:$0xff]   ;;  %v10110_v49 = vld [vmem:[%s13690_s3 + $0xd68] ss:$16 sps:$4 sm:$0xff]  }
 0x3db   :  { %v7000_v38 = vpop.f32.mrf.mxu1  ;;  %7300 = vmatprep.subr.bf16.mxu0 %v10049_v21  ;;  %v10115_v2 = vld [vmem:[%s13690_s3 + $0x12ec] ss:$16 sps:$4 sm:$0xff]  }
 0x3dc   :  { %7252 = vmatpush1.bf16.msra.mxu1 %v10044_v5  ;;  %v10118_v21 = vld [vmem:[%s13690_s3 + $0xd4c] ss:$16 sps:$4 sm:$0xff]   ;;  %v10113_v5 = vld [vmem:[%s13690_s3 + $0x12e8] ss:$16 sps:$4 sm:$0xff]  }
 0x3dd   :  { %v7001_v50 = vpop.f32.mrf.mxu1  ;;  %7253 = vmatprep.subr.bf16.mxu1 %v10052_v51  ;;  %v10121_v26 = vld [vmem:[%s13690_s3 + $0x12cc] ss:$16 sps:$4 sm:$0xff]   ;;  %v10116_v51 = vld [vmem:[%s13690_s3 + $0xd48] ss:$16 sps:$4 sm:$0xff]  }
 0x3de   :  { %7301 = vmatpush1.bf16.msra.mxu0 %v10047_v15  ;;  %v10124_v38 = vld [vmem:[%s13690_s3 + $0xd2c] ss:$16 sps:$4 sm:$0xff]  }
 0x3df   :  { %7302 = vmatprep.subr.bf16.mxu0 %v10055_v8  ;;  %v10119_v8 = vld [vmem:[%s13690_s3 + $0x12c8] ss:$16 sps:$4 sm:$0xff]   ;;  %v10127_v50 = vld [vmem:[%s13690_s3 + $0x12ac] ss:$16 sps:$4 sm:$0xff]  }
 0x3e0   :  { %7254 = vmatpush1.bf16.msra.mxu1 %v10050_v47 }
 0x3e1   :  { %7255 = vmatprep.subr.bf16.mxu1 %v10058_v14 }
 0x3e2   :  { %7303 = vmatpush1.bf16.msra.mxu0 %v10053_v44  ;;  %v10125_v44 = vld [vmem:[%s13690_s3 + $0x12a8] ss:$16 sps:$4 sm:$0xff]  }
 0x3e3   :  { %7304 = vmatprep.subr.bf16.mxu0 %v10061_v6 }
 0x3e4   :  { %7256 = vmatpush1.bf16.msra.mxu1 %v10056_v29  ;;  %v10133_v29 = vld [vmem:[%s13690_s3 + $0x128c] ss:$16 sps:$4 sm:$0xff]  }
 0x3e5   :  { %7257 = vmatprep.subr.bf16.mxu1 %v10064_v58  ;;  %v10128_v58 = vld [vmem:[%s13690_s3 + $0xd08] ss:$16 sps:$4 sm:$0xff]  }
 0x3e6   :  { %7305 = vmatpush1.bf16.msra.mxu0 %v10059_v37  ;;  %v2537_v37 = vsub.s32 2, %v11149_v4 }
 0x3e7   :  { %7306 = vmatprep.subr.bf16.mxu0 %v10067_v32  ;;  %v10136_v32 = vld [vmem:[%s13690_s3 + $0x10ec] ss:$16 sps:$4 sm:$0xff]  }
 0x3e8   :  { %7258 = vmatpush1.bf16.msra.mxu1 %v10062_v56  ;;  %v10131_v56 = vld [vmem:[%s13690_s3 + $0x1288] ss:$16 sps:$4 sm:$0xff]  }
 0x3e9   :  { %7259 = vmatprep.subr.bf16.mxu1 %v10070_v59  ;;  %v2541_v59 = vsub.s32 3, %v11149_v4  ;;  %v10142_v4 = vld [vmem:[%s13690_s3 + $0x10cc] ss:$16 sps:$4 sm:$0xff]  }
 0x3ea   :  { %7307 = vmatpush2.bf16.msra.mxu0 %v10065_v27  ;;  %v10139_v27 = vld [vmem:[%s13690_s3 + $0x126c] ss:$16 sps:$4 sm:$0xff]  }
 0x3eb   :  { %7308 = vmatprep.subr.bf16.mxu0 %v10073_v33  ;;  %v10358_v33 = vld [vmem:[%s13691_s4] sm:$0xf] }
 0x3ec   :  { %7260 = vmatpush1.bf16.msra.mxu1 %v10068_v46  ;;  %v2538_v46 = vrot.slane %v10358_v33, %v2537_v37  ;;  %v10191_v37 = vld [vmem:[%s13690_s3 + $0x1348] ss:$16 sps:$4 sm:$0xff]  }
 0x3ed   :  { %7261 = vmatprep.subr.bf16.mxu1 %v10076_v34  ;;  %v10134_v34 = vld [vmem:[%s13690_s3 + $0x10e8] ss:$16 sps:$4 sm:$0xff]  }
 0x3ee   :  { %7309 = vmatpush2.bf16.msra.mxu0 %v10071_v30  ;;  %v2542_v30 = vrot.slane %v10358_v33, %v2541_v59  ;;  %v10202_v59 = vld [vmem:[%s13690_s3 + $0x118c] ss:$16 sps:$4 sm:$0xff]  }
 0x3ef   :  { %7310 = vmatprep.subr.bf16.mxu0 %v10079_v35  ;;  %v10137_v35 = vld [vmem:[%s13690_s3 + $0x1268] ss:$16 sps:$4 sm:$0xff]   ;;  %v10205_v33 = vld [vmem:[%s13690_s3 + $0x130c] ss:$16 sps:$4 sm:$0xff]  }
 0x3f0   :  { %7262 = vmatpush1.bf16.msra.mxu1 %v10074_v62 }
 0x3f1   :  { %7263 = vmatprep.subr.bf16.mxu1 %v10082_v10  ;;  %v10145_v10 = vld [vmem:[%s13690_s3 + $0x124c] ss:$16 sps:$4 sm:$0xff]  }
 0x3f2   :  { %7311 = vmatpush2.bf16.msra.mxu0 %v10077_v24 }
 0x3f3   :  { %7312 = vmatprep.subr.bf16.mxu0 %v10085_v63  ;;  %v10140_v63 = vld [vmem:[%s13690_s3 + $0x10c8] ss:$16 sps:$4 sm:$0xff]  }
 0x3f4   :  { %7264 = vmatpush1.bf16.msra.mxu1 %v10080_v1 }
 0x3f5   :  { %7265 = vmatprep.subr.bf16.mxu1 %v10088_v11  ;;  %v10148_v11 = vld [vmem:[%s13690_s3 + $0x10ac] ss:$16 sps:$4 sm:$0xff]  }
 0x3f6   :  { %7313 = vmatpush2.bf16.msra.mxu0 %v10083_v16  ;;  %v10143_v16 = vld [vmem:[%s13690_s3 + $0x1248] ss:$16 sps:$4 sm:$0xff]  }
 0x3f7   :  { %7314 = vmatprep.subr.bf16.mxu0 %v10091_v17 }
 0x3f8   :  { %7266 = vmatpush2.bf16.msra.mxu1 %v10086_v25 }
 0x3f9   :  { %7267 = vmatprep.subr.bf16.mxu1 %v10094_v36  ;;  %v10146_v36 = vld [vmem:[%s13690_s3 + $0x10a8] ss:$16 sps:$4 sm:$0xff]  }
 0x3fa   :  { %7315 = vmatpush2.bf16.msra.mxu0 %v10089_v39 }
 0x3fb   :  { %7316 = vmatprep.subr.bf16.mxu0 %v10097_v54 }
 0x3fc   :  { %7268 = vmatpush2.bf16.msra.mxu1 %v10092_v19  ;;  %v10154_v19 = vld [vmem:[%s13690_s3 + $0x108c] ss:$16 sps:$4 sm:$0xff]  }
 0x3fd   :  { %7269 = vmatprep.subr.bf16.mxu1 %v10100_v55  ;;  %v10149_v55 = vld [vmem:[%s13690_s3 + $0x1228] ss:$16 sps:$4 sm:$0xff]  }
 0x3fe   :  { %7317 = vmatpush2.bf16.msra.mxu0 %v10095_v57  ;;  %v10157_v57 = vld [vmem:[%s13690_s3 + $0x120c] ss:$16 sps:$4 sm:$0xff]  }
 0x3ff   :  { %7318 = vmatprep.subr.bf16.mxu0 %v10103_v9  ;;  %v10152_v9 = vld [vmem:[%s13690_s3 + $0x1088] ss:$16 sps:$4 sm:$0xff]  }
 0x400   :  { %7270 = vmatpush2.bf16.msra.mxu1 %v10098_v45  ;;  %v10160_v45 = vld [vmem:[%s13690_s3 + $0x106c] ss:$16 sps:$4 sm:$0xff]  }
 0x401   :  { %7271 = vmatprep.subr.bf16.mxu1 %v10106_v53  ;;  %v10155_v53 = vld [vmem:[%s13690_s3 + $0x1208] ss:$16 sps:$4 sm:$0xff]  }
 0x402   :  { %7319 = vmatpush2.bf16.msra.mxu0 %v10101_v52  ;;  %v10163_v52 = vld [vmem:[%s13690_s3 + $0x13ec] ss:$16 sps:$4 sm:$0xff]  }
 0x403   :  { %7320 = vmatprep.subr.bf16.mxu0 %v10109_v18  ;;  %v10158_v18 = vld [vmem:[%s13690_s3 + $0x1068] ss:$16 sps:$4 sm:$0xff]  }
 0x404   :  { %7272 = vmatpush2.bf16.msra.mxu1 %v10104_v28  ;;  %v10166_v28 = vld [vmem:[%s13690_s3 + $0x104c] ss:$16 sps:$4 sm:$0xff]  }
 0x405   :  { %7273 = vmatprep.subr.bf16.mxu1 %v10112_v31  ;;  %v10161_v31 = vld [vmem:[%s13690_s3 + $0x13e8] ss:$16 sps:$4 sm:$0xff]  }
 0x406   :  { %7321 = vmatpush2.bf16.msra.mxu0 %v10107_v40  ;;  %v10169_v40 = vld [vmem:[%s13690_s3 + $0x13cc] ss:$16 sps:$4 sm:$0xff]  }
 0x407   :  { %7372 = vmatprep.subr.bf16.mxu0 %v10115_v2  ;;  %v10164_v2 = vld [vmem:[%s13690_s3 + $0x1048] ss:$16 sps:$4 sm:$0xff]  }
 0x408   :  { %7274 = vmatpush2.bf16.msra.mxu1 %v10110_v49  ;;  %v10172_v49 = vld [vmem:[%s13690_s3 + $0x102c] ss:$16 sps:$4 sm:$0xff]  }
 0x409   :  { %v7078_v15 = vpop.f32.mrf.mxu0  ;;  %7323 = vmatmul.mubr.bf16.vlgmr.msra.gmra.mxu0 %v11885_v43  ;;  %7275 = vmatprep.subr.bf16.mxu1 %v10118_v21  ;;  %v10122_v43 = vld [vmem:[%s13690_s3 + $0xd28] ss:$16 sps:$4 sm:$0xff]  }
 0x40a   :  { %7373 = vmatpush1.bf16.msra.mxu0 %v10113_v5  ;;  %7404 = vmatprep.mubr.bf16.mxu0 %v11891_v61  ;;  %v10130_v61 = vld [vmem:[%s13690_s3 + $0xd0c] ss:$16 sps:$4 sm:$0xff]   ;;  %v10167_v21 = vld [vmem:[%s13690_s3 + $0x13c8] ss:$16 sps:$4 sm:$0xff]  }
 0x40b   :  { %v7080_v47 = vpop.f32.mrf.mxu0  ;;  %7374 = vmatprep.subr.bf16.mxu0 %v10121_v26  ;;  %v10175_v5 = vld [vmem:[%s13690_s3 + $0x13ac] ss:$16 sps:$4 sm:$0xff]   ;;  %v10170_v26 = vld [vmem:[%s13690_s3 + $0x1028] ss:$16 sps:$4 sm:$0xff]  }
 0x40c   :  { %7276 = vmatpush2.bf16.msra.mxu1 %v10116_v51  ;;  %v10178_v51 = vld [vmem:[%s13690_s3 + $0x100c] ss:$16 sps:$4 sm:$0xff]  }
 0x40d   :  { %v7082_v14 = vpop.f32.mrf.mxu0  ;;  %7277 = vmatprep.subr.bf16.mxu1 %v10124_v38  ;;  %v10181_v38 = vld [vmem:[%s13690_s3 + $0x138c] ss:$16 sps:$4 sm:$0xff]  }
 0x40e   :  { %7375 = vmatpush1.bf16.msra.mxu0 %v10119_v8  ;;  %v10176_v8 = vld [vmem:[%s13690_s3 + $0x1008] ss:$16 sps:$4 sm:$0xff]  }
 0x40f   :  { %v7083_v6 = vpop.f32.mrf.mxu0  ;;  %7376 = vmatprep.subr.bf16.mxu0 %v10127_v50  ;;  %v10179_v50 = vld [vmem:[%s13690_s3 + $0x1388] ss:$16 sps:$4 sm:$0xff]  }
 0x410   :  { %7278 = vmatpush2.bf16.msra.mxu1 %v10122_v43  ;;  %v10187_v43 = vld [vmem:[%s13690_s3 + $0x136c] ss:$16 sps:$4 sm:$0xff]   ;;  %v10182_v14 = vld [vmem:[%s13690_s3 + $0x11e8] ss:$16 sps:$4 sm:$0xff]  }
 0x411   :  { %7279 = vmatprep.subr.bf16.mxu1 %v10130_v61  ;;  %v10190_v61 = vld [vmem:[%s13690_s3 + $0x11cc] ss:$16 sps:$4 sm:$0xff]  }
 0x412   :  { %7377 = vmatpush1.bf16.msra.mxu0 %v10125_v44  ;;  %v10185_v44 = vld [vmem:[%s13690_s3 + $0x1368] ss:$16 sps:$4 sm:$0xff]   ;;  %v10193_v6 = vld [vmem:[%s13690_s3 + $0x134c] ss:$16 sps:$4 sm:$0xff]  }
 0x413   :  { %7378 = vmatprep.subr.bf16.mxu0 %v10133_v29  ;;  %v10188_v29 = vld [vmem:[%s13690_s3 + $0x11c8] ss:$16 sps:$4 sm:$0xff]  }
 0x414   :  { %7280 = vmatpush2.bf16.msra.mxu1 %v10128_v58  ;;  %v10196_v58 = vld [vmem:[%s13690_s3 + $0x11ac] ss:$16 sps:$4 sm:$0xff]  }
 0x415   :  { %7331 = vmatprep.subr.bf16.mxu1 %v10136_v32  ;;  %v10199_v32 = vld [vmem:[%s13690_s3 + $0x132c] ss:$16 sps:$4 sm:$0xff]  }
 0x416   :  { %7379 = vmatpush1.bf16.msra.mxu0 %v10131_v56  ;;  %v10194_v56 = vld [vmem:[%s13690_s3 + $0x11a8] ss:$16 sps:$4 sm:$0xff]  }
 0x417   :  { %v7037_v62 = vpop.f32.mrf.mxu1  ;;  %7282 = vmatmul.mubr.bf16.vlgmr.msra.gmra.mxu1 %v11872_v13  ;;  %7380 = vmatprep.subr.bf16.mxu0 %v10139_v27  ;;  %v10197_v27 = vld [vmem:[%s13690_s3 + $0x1328] ss:$16 sps:$4 sm:$0xff]  }
 0x418   :  { %v7038_v24 = vadd.f32 %v7037_v62, %v2538_v46  ;;  %7332 = vmatpush1.bf16.msra.mxu1 %v10134_v34  ;;  %7363 = vmatprep.mubr.bf16.mxu1 %v11877_v3  ;;  %v10151_v3 = vld [vmem:[%s13690_s3 + $0x122c] ss:$16 sps:$4 sm:$0xff]   ;;  %v10200_v46 = vld [vmem:[%s13690_s3 + $0x1188] ss:$16 sps:$4 sm:$0xff]  }
 0x419   :  { %v7039_v1 = vpop.f32.mrf.mxu1  ;;  %7333 = vmatprep.subr.bf16.mxu1 %v10142_v4  ;;  %v10208_v34 = vld [vmem:[%s13690_s3 + $0x116c] ss:$16 sps:$4 sm:$0xff]   ;;  %v10203_v4 = vld [vmem:[%s13690_s3 + $0x1308] ss:$16 sps:$4 sm:$0xff]  }
 0x41a   :  { %v7040_v13 = vadd.f32 %v7039_v1, %v2542_v30  ;;  %7381 = vmatpush1.bf16.msra.mxu0 %v10137_v35  ;;  %v13202_v17 = vadd.f32 %v7078_v15, %v7038_v24  ;;  %v10173_v15 = vld [vmem:[%s13690_s3 + $0x13a8] ss:$16 sps:$4 sm:$0xff]   ;;  %v10211_v30 = vld [vmem:[%s13690_s3 + $0x16ec] ss:$16 sps:$4 sm:$0xff]  }
 0x41b   :  { %v7041_v25 = vpop.f32.mrf.mxu1  ;;  %7382 = vmatprep.subr.bf16.mxu0 %v10145_v10  ;;  %v10206_v35 = vld [vmem:[%s13690_s3 + $0x1168] ss:$16 sps:$4 sm:$0xff]   ;;  %v10214_v62 = vld [vmem:[%s13690_s3 + $0x114c] ss:$16 sps:$4 sm:$0xff]  }
 0x41c   :  { %7334 = vmatpush1.bf16.msra.mxu1 %v10140_v63  ;;  %v13210_v39 = vadd.f32 %v7080_v47, %v7040_v13  ;;  %v10184_v47 = vld [vmem:[%s13690_s3 + $0x11ec] ss:$16 sps:$4 sm:$0xff]   ;;  %v10209_v10 = vld [vmem:[%s13690_s3 + $0x16e8] ss:$16 sps:$4 sm:$0xff]  }
 0x41d   :  { %v7042_v54 = vpop.f32.mrf.mxu1  ;;  %7335 = vmatprep.subr.bf16.mxu1 %v10148_v11  ;;  %v10217_v24 = vld [vmem:[%s13690_s3 + $0x16cc] ss:$16 sps:$4 sm:$0xff]   ;;  %v10212_v63 = vld [vmem:[%s13690_s3 + $0x1148] ss:$16 sps:$4 sm:$0xff]  }
 0x41e   :  { %7383 = vmatpush1.bf16.msra.mxu0 %v10143_v16  ;;  %v10220_v11 = vld [vmem:[%s13690_s3 + $0x112c] ss:$16 sps:$4 sm:$0xff]   ;;  %v10215_v13 = vld [vmem:[%s13690_s3 + $0x16c8] ss:$16 sps:$4 sm:$0xff]  }
 0x41f   :  { %7384 = vmatprep.subr.bf16.mxu0 %v10151_v3  ;;  %v10223_v25 = vld [vmem:[%s13690_s3 + $0x16ac] ss:$16 sps:$4 sm:$0xff]  }
 0x420   :  { %7336 = vmatpush1.bf16.msra.mxu1 %v10146_v36  ;;  %v10221_v36 = vld [vmem:[%s13690_s3 + $0x16a8] ss:$16 sps:$4 sm:$0xff]  }
 0x421   :  { %7337 = vmatprep.subr.bf16.mxu1 %v10154_v19  ;;  %v10229_v19 = vld [vmem:[%s13690_s3 + $0x168c] ss:$16 sps:$4 sm:$0xff]  }
 0x422   :  { %7385 = vmatpush1.bf16.msra.mxu0 %v10149_v55  ;;  %v10224_v55 = vld [vmem:[%s13690_s3 + $0x1108] ss:$16 sps:$4 sm:$0xff]  }
 0x423   :  { %7386 = vmatprep.subr.bf16.mxu0 %v10157_v57  ;;  %v10232_v57 = vld [vmem:[%s13690_s3 + $0x14ec] ss:$16 sps:$4 sm:$0xff]  }
 0x424   :  { %7338 = vmatpush1.bf16.msra.mxu1 %v10152_v9  ;;  %v10227_v9 = vld [vmem:[%s13690_s3 + $0x1688] ss:$16 sps:$4 sm:$0xff]  }
 0x425   :  { %7339 = vmatprep.subr.bf16.mxu1 %v10160_v45  ;;  %v10235_v45 = vld [vmem:[%s13690_s3 + $0x166c] ss:$16 sps:$4 sm:$0xff]  }
 0x426   :  { %7387 = vmatpush1.bf16.msra.mxu0 %v10155_v53  ;;  %v10230_v53 = vld [vmem:[%s13690_s3 + $0x14e8] ss:$16 sps:$4 sm:$0xff]  }
 0x427   :  { %7388 = vmatprep.subr.bf16.mxu0 %v10163_v52  ;;  %v10238_v52 = vld [vmem:[%s13690_s3 + $0x14cc] ss:$16 sps:$4 sm:$0xff]  }
 0x428   :  { %7340 = vmatpush1.bf16.msra.mxu1 %v10158_v18  ;;  %v10233_v18 = vld [vmem:[%s13690_s3 + $0x1668] ss:$16 sps:$4 sm:$0xff]  }
 0x429   :  { %7341 = vmatprep.subr.bf16.mxu1 %v10166_v28 }
 0x42a   :  { %7389 = vmatpush2.bf16.msra.mxu0 %v10161_v31  ;;  %v10241_v31 = vld [vmem:[%s13690_s3 + $0x164c] ss:$16 sps:$4 sm:$0xff]  }
 0x42b   :  { %7390 = vmatprep.subr.bf16.mxu0 %v10169_v40 }
 0x42c   :  { %7342 = vmatpush1.bf16.msra.mxu1 %v10164_v2  ;;  %v10236_v2 = vld [vmem:[%s13690_s3 + $0x14c8] ss:$16 sps:$4 sm:$0xff]  }
 0x42d   :  { %7343 = vmatprep.subr.bf16.mxu1 %v10172_v49 }
 0x42e   :  { %7391 = vmatpush2.bf16.msra.mxu0 %v10167_v21 }
 0x42f   :  { %7392 = vmatprep.subr.bf16.mxu0 %v10175_v5 }
 0x430   :  { %7344 = vmatpush1.bf16.msra.mxu1 %v10170_v26  ;;  %v10247_v26 = vld [vmem:[%s13690_s3 + $0x162c] ss:$16 sps:$4 sm:$0xff]  }
 0x431   :  { %7345 = vmatprep.subr.bf16.mxu1 %v10178_v51  ;;  %v10242_v51 = vld [vmem:[%s13690_s3 + $0x14a8] ss:$16 sps:$4 sm:$0xff]  }
 0x432   :  { %7393 = vmatpush2.bf16.msra.mxu0 %v10173_v15 }
 0x433   :  { %7394 = vmatprep.subr.bf16.mxu0 %v10181_v38  ;;  %v10250_v38 = vld [vmem:[%s13690_s3 + $0x148c] ss:$16 sps:$4 sm:$0xff]  }
 0x434   :  { %7346 = vmatpush1.bf16.msra.mxu1 %v10176_v8  ;;  %v10245_v8 = vld [vmem:[%s13690_s3 + $0x1628] ss:$16 sps:$4 sm:$0xff]  }
 0x435   :  { %7347 = vmatprep.subr.bf16.mxu1 %v10184_v47  ;;  %v10253_v47 = vld [vmem:[%s13690_s3 + $0x160c] ss:$16 sps:$4 sm:$0xff]  }
 0x436   :  { %7395 = vmatpush2.bf16.msra.mxu0 %v10179_v50  ;;  %v10248_v50 = vld [vmem:[%s13690_s3 + $0x1488] ss:$16 sps:$4 sm:$0xff]  }
 0x437   :  { %7396 = vmatprep.subr.bf16.mxu0 %v10187_v43  ;;  %v10256_v43 = vld [vmem:[%s13690_s3 + $0x146c] ss:$16 sps:$4 sm:$0xff]  }
 0x438   :  { %7348 = vmatpush2.bf16.msra.mxu1 %v10182_v14  ;;  %v10251_v14 = vld [vmem:[%s13690_s3 + $0x1608] ss:$16 sps:$4 sm:$0xff]  }
 0x439   :  { %7349 = vmatprep.subr.bf16.mxu1 %v10190_v61  ;;  %v10259_v61 = vld [vmem:[%s13690_s3 + $0x17ec] ss:$16 sps:$4 sm:$0xff]  }
 0x43a   :  { %7397 = vmatpush2.bf16.msra.mxu0 %v10185_v44  ;;  %v10254_v44 = vld [vmem:[%s13690_s3 + $0x1468] ss:$16 sps:$4 sm:$0xff]  }
 0x43b   :  { %7398 = vmatprep.subr.bf16.mxu0 %v10193_v6  ;;  %v10262_v6 = vld [vmem:[%s13690_s3 + $0x144c] ss:$16 sps:$4 sm:$0xff]  }
 0x43c   :  { %7350 = vmatpush2.bf16.msra.mxu1 %v10188_v29  ;;  %v10257_v29 = vld [vmem:[%s13690_s3 + $0x17e8] ss:$16 sps:$4 sm:$0xff]  }
 0x43d   :  { %7351 = vmatprep.subr.bf16.mxu1 %v10196_v58  ;;  %v10265_v58 = vld [vmem:[%s13690_s3 + $0x17cc] ss:$16 sps:$4 sm:$0xff]  }
 0x43e   :  { %7399 = vmatpush2.bf16.msra.mxu0 %v10191_v37  ;;  %v10260_v37 = vld [vmem:[%s13690_s3 + $0x1448] ss:$16 sps:$4 sm:$0xff]  }
 0x43f   :  { %7400 = vmatprep.subr.bf16.mxu0 %v10199_v32  ;;  %v10268_v32 = vld [vmem:[%s13690_s3 + $0x142c] ss:$16 sps:$4 sm:$0xff]  }
 0x440   :  { %7352 = vmatpush2.bf16.msra.mxu1 %v10194_v56  ;;  %v10263_v56 = vld [vmem:[%s13690_s3 + $0x17c8] ss:$16 sps:$4 sm:$0xff]  }
 0x441   :  { %7353 = vmatprep.subr.bf16.mxu1 %v10202_v59  ;;  %v10271_v59 = vld [vmem:[%s13690_s3 + $0x17ac] ss:$16 sps:$4 sm:$0xff]  }
 0x442   :  { %7401 = vmatpush2.bf16.msra.mxu0 %v10197_v27  ;;  %v10266_v27 = vld [vmem:[%s13690_s3 + $0x1428] ss:$16 sps:$4 sm:$0xff]  }
 0x443   :  { %7402 = vmatprep.subr.bf16.mxu0 %v10205_v33  ;;  %v10274_v33 = vld [vmem:[%s13690_s3 + $0x140c] ss:$16 sps:$4 sm:$0xff]  }
 0x444   :  { %7354 = vmatpush2.bf16.msra.mxu1 %v10200_v46  ;;  %v10269_v46 = vld [vmem:[%s13690_s3 + $0x17a8] ss:$16 sps:$4 sm:$0xff]  }
 0x445   :  { %7355 = vmatprep.subr.bf16.mxu1 %v10208_v34  ;;  %v10277_v34 = vld [vmem:[%s13690_s3 + $0x178c] ss:$16 sps:$4 sm:$0xff]  }
 0x446   :  { %7403 = vmatpush2.bf16.msra.mxu0 %v10203_v4  ;;  %v10272_v4 = vld [vmem:[%s13690_s3 + $0x1408] ss:$16 sps:$4 sm:$0xff]  }
 0x447   :  { %7454 = vmatprep.subr.bf16.mxu0 %v10211_v30  ;;  %v10280_v30 = vld [vmem:[%s13690_s3 + $0x15ec] ss:$16 sps:$4 sm:$0xff]  }
 0x448   :  { %7356 = vmatpush2.bf16.msra.mxu1 %v10206_v35  ;;  %v10275_v35 = vld [vmem:[%s13690_s3 + $0x1788] ss:$16 sps:$4 sm:$0xff]  }
 0x449   :  { %v7160_v1 = vpop.f32.mrf.mxu0  ;;  %7405 = vmatmul.mubr.bf16.vlgmr.msra.gmra.mxu0 %v12107_v42  ;;  %7357 = vmatprep.subr.bf16.mxu1 %v10214_v62  ;;  %v10218_v42 = vld [vmem:[%s13690_s3 + $0x1128] ss:$16 sps:$4 sm:$0xff]   ;;  %v10283_v62 = vld [vmem:[%s13690_s3 + $0x176c] ss:$16 sps:$4 sm:$0xff]  }
 0x44a   :  { %7455 = vmatpush1.bf16.msra.mxu0 %v10209_v10  ;;  %7486 = vmatprep.mubr.bf16.mxu0 %v12114_v12  ;;  %v10226_v12 = vld [vmem:[%s13690_s3 + $0x110c] ss:$16 sps:$4 sm:$0xff]   ;;  %v10278_v10 = vld [vmem:[%s13690_s3 + $0x15e8] ss:$16 sps:$4 sm:$0xff]  }
 0x44b   :  { %v7162_v16 = vpop.f32.mrf.mxu0  ;;  %7456 = vmatprep.subr.bf16.mxu0 %v10217_v24  ;;  %v10286_v24 = vld [vmem:[%s13690_s3 + $0x15cc] ss:$16 sps:$4 sm:$0xff]  }
 0x44c   :  { %7358 = vmatpush2.bf16.msra.mxu1 %v10212_v63  ;;  %v10281_v63 = vld [vmem:[%s13690_s3 + $0x1768] ss:$16 sps:$4 sm:$0xff]  }
 0x44d   :  { %v7164_v3 = vpop.f32.mrf.mxu0  ;;  %7359 = vmatprep.subr.bf16.mxu1 %v10220_v11  ;;  %v10284_v11 = vld [vmem:[%s13690_s3 + $0x15c8] ss:$16 sps:$4 sm:$0xff]  }
 0x44e   :  { %7457 = vmatpush1.bf16.msra.mxu0 %v10215_v13  ;;  %v10292_v13 = vld [vmem:[%s13690_s3 + $0x15ac] ss:$16 sps:$4 sm:$0xff]  }
 0x44f   :  { %v7165_v54 = vpop.f32.mrf.mxu0  ;;  %7458 = vmatprep.subr.bf16.mxu0 %v10223_v25  ;;  %v10295_v25 = vld [vmem:[%s13690_s3 + $0x172c] ss:$16 sps:$4 sm:$0xff]  }
 0x450   :  { %7360 = vmatpush2.bf16.msra.mxu1 %v10218_v42  ;;  %v10290_v42 = vld [vmem:[%s13690_s3 + $0x15a8] ss:$16 sps:$4 sm:$0xff]   ;;  %v10298_v3 = vld [vmem:[%s13690_s3 + $0x158c] ss:$16 sps:$4 sm:$0xff]  }
 0x451   :  { %7361 = vmatprep.subr.bf16.mxu1 %v10226_v12  ;;  %v10293_v12 = vld [vmem:[%s13690_s3 + $0x1728] ss:$16 sps:$4 sm:$0xff]  }
 0x452   :  { %7459 = vmatpush1.bf16.msra.mxu0 %v10221_v36  ;;  %v10301_v36 = vld [vmem:[%s13690_s3 + $0x170c] ss:$16 sps:$4 sm:$0xff]   ;;  %v10296_v54 = vld [vmem:[%s13690_s3 + $0x1588] ss:$16 sps:$4 sm:$0xff]  }
 0x453   :  { %7460 = vmatprep.subr.bf16.mxu0 %v10229_v19  ;;  %v10304_v19 = vld [vmem:[%s13690_s3 + $0x156c] ss:$16 sps:$4 sm:$0xff]  }
 0x454   :  { %7362 = vmatpush2.bf16.msra.mxu1 %v10224_v55  ;;  %v10299_v55 = vld [vmem:[%s13690_s3 + $0x1708] ss:$16 sps:$4 sm:$0xff]  }
 0x455   :  { %7413 = vmatprep.subr.bf16.mxu1 %v10232_v57  ;;  %v10302_v57 = vld [vmem:[%s13690_s3 + $0x1568] ss:$16 sps:$4 sm:$0xff]  }
 0x456   :  { %7461 = vmatpush1.bf16.msra.mxu0 %v10227_v9  ;;  %v10307_v9 = vld [vmem:[%s13690_s3 + $0x154c] ss:$16 sps:$4 sm:$0xff]  }
 0x457   :  { %v7119_v28 = vpop.f32.mrf.mxu1  ;;  %7364 = vmatmul.mubr.bf16.vlgmr.msra.gmra.mxu1 %v12094_v60  ;;  %7462 = vmatprep.subr.bf16.mxu0 %v10235_v45  ;;  %v10244_v60 = vld [vmem:[%s13690_s3 + $0x14ac] ss:$16 sps:$4 sm:$0xff]   ;;  %v10305_v45 = vld [vmem:[%s13690_s3 + $0x1548] ss:$16 sps:$4 sm:$0xff]  }
 0x458   :  { %v7120_v40 = vadd.f32 %v7119_v28, %v13202_v17  ;;  %7414 = vmatpush1.bf16.msra.mxu1 %v10230_v53  ;;  %7445 = vmatprep.mubr.bf16.mxu1 %v12099_v7  ;;  %v10239_v17 = vld [vmem:[%s13690_s3 + $0x1648] ss:$16 sps:$4 sm:$0xff]  }
 0x459   :  { %v7121_v49 = vpop.f32.mrf.mxu1  ;;  %7415 = vmatprep.subr.bf16.mxu1 %v10238_v52  ;;  %v10310_v52 = vld [vmem:[%s13690_s3 + $0x152c] ss:$16 sps:$4 sm:$0xff]   ;;  %v10308_v28 = vld [vmem:[%s13690_s3 + $0x1528] ss:$16 sps:$4 sm:$0xff]  }
 0x45a   :  { %v7122_v21 = vadd.f32 %v7121_v49, %v13210_v39  ;;  %7463 = vmatpush1.bf16.msra.mxu0 %v10233_v18  ;;  %v13404_v5 = vadd.f32 %v7160_v1, %v7120_v40  ;;  %v10289_v1 = vld [vmem:[%s13690_s3 + $0x174c] ss:$16 sps:$4 sm:$0xff]  }
 0x45b   :  { %v7123_v7 = vpop.f32.mrf.mxu1  ;;  %7464 = vmatprep.subr.bf16.mxu0 %v10241_v31  ;;  %v10313_v40 = vld [vmem:[%s13690_s3 + $0x150c] ss:$16 sps:$4 sm:$0xff]  }
 0x45c   :  { %7416 = vmatpush1.bf16.msra.mxu1 %v10236_v2  ;;  %v13412_v15 = vadd.f32 %v7162_v16, %v7122_v21  ;;  %v10287_v16 = vld [vmem:[%s13690_s3 + $0x1748] ss:$16 sps:$4 sm:$0xff]   ;;  %v10316_v49 = vld [vmem:[%s13690_s3 + $0x186c] ss:$16 sps:$4 sm:$0xff]  }
 0x45d   :  { %v7124_v39 = vpop.f32.mrf.mxu1  ;;  %7417 = vmatprep.subr.bf16.mxu1 %v10244_v60  ;;  %v10314_v60 = vld [vmem:[%s13690_s3 + $0x1868] ss:$16 sps:$4 sm:$0xff]   ;;  %v10319_v21 = vld [vmem:[%s13690_s3 + $0x184c] ss:$16 sps:$4 sm:$0xff]  }
 0x45e   :  { %7465 = vmatpush1.bf16.msra.mxu0 %v10239_v17  ;;  %v10322_v39 = vld [vmem:[%s13690_s3 + $0x182c] ss:$16 sps:$4 sm:$0xff]  }
 0x45f   :  { %7466 = vmatprep.subr.bf16.mxu0 %v10247_v26  ;;  %v10317_v26 = vld [vmem:[%s13690_s3 + $0x1848] ss:$16 sps:$4 sm:$0xff]  }
 0x460   :  { %7418 = vmatpush1.bf16.msra.mxu1 %v10242_v51 }
 0x461   :  { %7419 = vmatprep.subr.bf16.mxu1 %v10250_v38 }
 0x462   :  { %7467 = vmatpush1.bf16.msra.mxu0 %v10245_v8 }
 0x463   :  { %7468 = vmatprep.subr.bf16.mxu0 %v10253_v47 }
 0x464   :  { %7420 = vmatpush1.bf16.msra.mxu1 %v10248_v50 }
 0x465   :  { %7421 = vmatprep.subr.bf16.mxu1 %v10256_v43  ;;  %v10326_v43 = vld [vmem:[%s13692_s5 + $0x78] sm:$0xff]  }
 0x466   :  { %7469 = vmatpush1.bf16.msra.mxu0 %v10251_v14  ;;  %v7537_v14 = vmax.f32 %v12996_v23, 0.0  ;;  %v10329_v23 = vld [vmem:[%s13692_s5 + $0x30] sm:$0xff]  }
 0x467   :  { %7470 = vmatprep.subr.bf16.mxu0 %v10259_v61  ;;  %v10327_v61 = vld [vmem:[%s13692_s5 + $0x38] sm:$0xff]  }
 0x468   :  { %7422 = vmatpush1.bf16.msra.mxu1 %v10254_v44  ;;  %v10328_v44 = vld [vmem:[%s13692_s5 + $0x70] sm:$0xff]  }
 0x469   :  { %7423 = vmatprep.subr.bf16.mxu1 %v10262_v6  ;;  %v7541_v6 = vpack.c.bf16 %v7537_v14, %v7537_v14 }
 0x46a   :  { %7471 = vmatpush2.bf16.msra.mxu0 %v10257_v29  ;;  %v10330_v29 = vld [vmem:[%s13692_s5 + $0x68] sm:$0xff]  }
 0x46b   :  { %7472 = vmatprep.subr.bf16.mxu0 %v10265_v58  ;;  %v10331_v58 = vld [vmem:[%s13692_s5 + $0x28] sm:$0xff]  }
 0x46c   :  { %7424 = vmatpush1.bf16.msra.mxu1 %v10260_v37  ;;  %v10333_v37 = vld [vmem:[%s13692_s5 + $0x20] sm:$0xff]  }
 0x46d   :  { %7425 = vmatprep.subr.bf16.mxu1 %v10268_v32  ;;  %v10334_v32 = vld [vmem:[%s13692_s5 + $0x58] sm:$0xff]  }
 0x46e   :  { %7473 = vmatpush2.bf16.msra.mxu0 %v10263_v56  ;;  %v10335_v56 = vld [vmem:[%s13692_s5 + $0x18] sm:$0xff]  }
 0x46f   :  { %7474 = vmatprep.subr.bf16.mxu0 %v10271_v59  ;;  %v10336_v59 = vld [vmem:[%s13692_s5 + $0x50] sm:$0xff]  }
 0x470   :  { %7426 = vmatpush1.bf16.msra.mxu1 %v10266_v27  ;;  %v10337_v27 = vld [vmem:[%s13692_s5 + $0x10] sm:$0xff]  }
 0x471   :  { %7427 = vmatprep.subr.bf16.mxu1 %v10274_v33  ;;  %v10338_v33 = vld [vmem:[%s13692_s5 + $0x48] sm:$0xff]  }
 0x472   :  { %7475 = vmatpush2.bf16.msra.mxu0 %v10269_v46  ;;  %v10339_v46 = vld [vmem:[%s13692_s5 + $0x8] sm:$0xff]  }
 0x473   :  { %7476 = vmatprep.subr.bf16.mxu0 %v10277_v34  ;;  %v10340_v34 = vld [vmem:[%s13692_s5 + $0x40] sm:$0xff]  }
 0x474   :  { %7428 = vmatpush1.bf16.msra.mxu1 %v10272_v4  ;;  %v10341_v4 = vld [vmem:[%s13692_s5] sm:$0xff]  }
 0x475   :  { %7429 = vmatprep.subr.bf16.mxu1 %v10280_v30  ;;  %v7536_v30 = vmax.f32 %v12987_v20, 0.0  ;;  %v10344_v20 = vld [vmem:[%s13692_s5 + $0xf0] sm:$0xff]  }
 0x476   :  { %7477 = vmatpush2.bf16.msra.mxu0 %v10275_v35 }
 0x477   :  { %7478 = vmatprep.subr.bf16.mxu0 %v10283_v62  ;;  %v7540_v35 = vpack.c.bf16 %v7536_v30, %v7536_v30 }
 0x478   :  { %7430 = vmatpush2.bf16.msra.mxu1 %v10278_v10 }
 0x479   :  { %7431 = vmatprep.subr.bf16.mxu1 %v10286_v24 }
 0x47a   :  { %7479 = vmatpush2.bf16.msra.mxu0 %v10281_v63 }
 0x47b   :  { %7480 = vmatprep.subr.bf16.mxu0 %v10289_v1  ;;  %v10342_v1 = vld [vmem:[%s13692_s5 + $0xf8] sm:$0xff]  }
 0x47c   :  { %7432 = vmatpush2.bf16.msra.mxu1 %v10284_v11  ;;  %v10343_v11 = vld [vmem:[%s13692_s5 + $0xb8] sm:$0xff]  }
 0x47d   :  { %7433 = vmatprep.subr.bf16.mxu1 %v10292_v13  ;;  %v10345_v13 = vld [vmem:[%s13692_s5 + $0xb0] sm:$0xff]  }
 0x47e   :  { %7481 = vmatpush2.bf16.msra.mxu0 %v10287_v16 }
 0x47f   :  { %7482 = vmatprep.subr.bf16.mxu0 %v10295_v25 }
 0x480   :  { %7434 = vmatpush2.bf16.msra.mxu1 %v10290_v42 }
 0x481   :  { %7435 = vmatprep.subr.bf16.mxu1 %v10298_v3 }
 0x482   :  { %7483 = vmatpush2.bf16.msra.mxu0 %v10293_v12 }
 0x483   :  { %7484 = vmatprep.subr.bf16.mxu0 %v10301_v36  ;;  %v10346_v36 = vld [vmem:[%s13692_s5 + $0xe8] sm:$0xff]  }
 0x484   :  { %7436 = vmatpush2.bf16.msra.mxu1 %v10296_v54  ;;  %v10347_v54 = vld [vmem:[%s13692_s5 + $0xa8] sm:$0xff]  }
 0x485   :  { %7437 = vmatprep.subr.bf16.mxu1 %v10304_v19 }
 0x486   :  { %7485 = vmatpush2.bf16.msra.mxu0 %v10299_v55 }
 0x487   :  { %8999 = vmatprep.subr.bf16.mxu0 %v10342_v1 }
 0x488   :  { %7438 = vmatpush2.bf16.msra.mxu1 %v10302_v57 }
 0x489   :  { %v7242_v53 = vpop.f32.mrf.mxu0  ;;  %7487 = vmatmul.mubr.bf16.vlgmr.msra.gmra.mxu0 %v12319_v41  ;;  %7439 = vmatprep.subr.bf16.mxu1 %v10307_v9  ;;  %v10311_v41 = vld [vmem:[%s13690_s3 + $0x1508] ss:$16 sps:$4 sm:$0xff]   ;;  %v10348_v9 = vld [vmem:[%s13692_s5 + $0xe0] sm:$0xff]  }
 0x48a   :  { %9000 = vmatpush3.bf16.msra.mxu0 %v10343_v11 }
 0x48b   :  { %v7244_v18 = vpop.f32.mrf.mxu0  ;;  %9001 = vmatprep.subr.bf16.mxu0 %v10344_v20 }
 0x48c   :  { %7440 = vmatpush2.bf16.msra.mxu1 %v10305_v45  ;;  %v10349_v45 = vld [vmem:[%s13692_s5 + $0xa0] sm:$0xff]  }
 0x48d   :  { %v7246_v31 = vpop.f32.mrf.mxu0  ;;  %7441 = vmatprep.subr.bf16.mxu1 %v10310_v52  ;;  %v10351_v52 = vld [vmem:[%s13692_s5 + $0x98] sm:$0xff]  }
 0x48e   :  { %9002 = vmatpush3.bf16.msra.mxu0 %v10345_v13  ;;  %v10354_v31 = vld [vmem:[%s13692_s5 + $0xc8] sm:$0xff]  }
 0x48f   :  { %v7247_v2 = vpop.f32.mrf.mxu0  ;;  %9003 = vmatprep.subr.bf16.mxu0 %v10346_v36 }
 0x490   :  { %7442 = vmatpush2.bf16.msra.mxu1 %v10308_v28  ;;  %v10353_v28 = vld [vmem:[%s13692_s5 + $0x90] sm:$0xff]   ;;  %v10356_v2 = vld [vmem:[%s13692_s5 + $0xc0] sm:$0xff]  }
 0x491   :  { %7443 = vmatprep.subr.bf16.mxu1 %v10313_v40  ;;  %v10355_v40 = vld [vmem:[%s13692_s5 + $0x88] sm:$0xff]  }
 0x492   :  { %9004 = vmatpush3.bf16.msra.mxu0 %v10347_v54 }
 0x493   :  { %9005 = vmatprep.subr.bf16.mxu0 %v10348_v9 }
 0x494   :  { %7444 = vmatpush2.bf16.msra.mxu1 %v10311_v41  ;;  %v10357_v41 = vld [vmem:[%s13692_s5 + $0x80] sm:$0xff]  }
 0x495   :  { %7503 = vmatprep.subr.bf16.mxu1 %v10316_v49 }
 0x496   :  { %9006 = vmatpush3.bf16.msra.mxu0 %v10349_v45 }
 0x497   :  { %v7201_v17 = vpop.f32.mrf.mxu1  ;;  %7446 = vmatmul.mubr.bf16.vlgmr.msra.gmra.mxu1 %v12308_v0 }
 0x498   :  { %v7202_v7 = vadd.f32 %v7201_v17, %v13404_v5  ;;  %7504 = vmatpush1.bf16.msra.mxu1 %v10314_v60  ;;  %7527 = vmatprep.mubr.bf16.mxu1 %v10385_v22  ;;  %v10320_v5 = vld [vmem:[%s13690_s3 + $0x1828] ss:$16 sps:$4 sm:$0xff]   ;;  %v10325_v22 = vld [vmem:[%s13690_s3 + $0x180c] ss:$16 sps:$4 sm:$0xff]  }
 0x499   :  { %v7203_v51 = vpop.f32.mrf.mxu1  ;;  %7505 = vmatprep.subr.bf16.mxu1 %v10319_v21 }
 0x49a   :  { %v7204_v38 = vadd.f32 %v7203_v51, %v13412_v15  ;;  %v13569_v8 = vadd.f32 %v7242_v53, %v7202_v7  ;;  %v10323_v15 = vld [vmem:[%s13690_s3 + $0x1808] ss:$16 sps:$4 sm:$0xff]  }
 0x49b   :  { %v7205_v0 = vpop.f32.mrf.mxu1  ;;  %v10350_v53 = vld [vmem:[%s13692_s5 + $0xd8] sm:$0xff]  }
 0x49c   :  { %7506 = vmatpush1.bf16.msra.mxu1 %v10317_v26  ;;  %v7245_v47 = vadd.f32 %v7244_v18, %v7204_v38  ;;  %9007 = vmatprep.subr.bf16.mxu0 %v10350_v53  ;;  %v10352_v18 = vld [vmem:[%s13692_s5 + $0xd0] sm:$0xff]  }
 0x49d   :  { %v7206_v50 = vpop.f32.mrf.mxu1  ;;  %7507 = vmatprep.subr.bf16.mxu1 %v10322_v39  ;;  %9008 = vmatpush3.bf16.msra.mxu0 %v10351_v52 }
 0x49e   :  { %9009 = vmatprep.subr.bf16.mxu0 %v10352_v18 }
 0x4a0   :  { %7508 = vmatpush1.bf16.msra.mxu1 %v10320_v5 }
 0x4a1   :  { %7509 = vmatprep.subr.bf16.mxu1 %v10325_v22  ;;  %9010 = vmatpush3.bf16.msra.mxu0 %v10353_v28 }
 0x4a2   :  { %9011 = vmatprep.subr.bf16.mxu0 %v10354_v31 }
 0x4a4   :  { %7510 = vmatpush1.bf16.msra.mxu1 %v10323_v15 }
 0x4a5   :  { %8977 = vmatprep.subr.bf16.mxu1 %v10326_v43  ;;  %9012 = vmatpush3.bf16.msra.mxu0 %v10355_v40 }
 0x4a6   :  { %9013 = vmatprep.subr.bf16.mxu0 %v10356_v2 }
 0x4a7   :  { %8816 = vmatmul.mubr.msk.bf16.vlgmr.msra.gmra.mxu1 %vm529_vm1, %v12372_v48  ;;  %v10332_v48 = vld [vmem:[%s13692_s5 + $0x60] sm:$0xff]  }
 0x4a8   :  { %8978 = vmatpush3.bf16.msra.mxu1 %v10327_v61  ;;  %7839 = vmatprep.mubr.bf16.mxu1 %v7541_v6 }
 0x4a9   :  { %8979 = vmatprep.subr.bf16.mxu1 %v10328_v44  ;;  %9014 = vmatpush3.bf16.msra.mxu0 %v10357_v41 }
 0x4ac   :  { %8980 = vmatpush3.bf16.msra.mxu1 %v10329_v23 }
 0x4ad   :  { %8981 = vmatprep.subr.bf16.mxu1 %v10330_v29 }
 0x4b0   :  { %8982 = vmatpush3.bf16.msra.mxu1 %v10331_v58 }
 0x4b1   :  { %8983 = vmatprep.subr.bf16.mxu1 %v10332_v48 }
 0x4b4   :  { %8984 = vmatpush3.bf16.msra.mxu1 %v10333_v37 }
 0x4b5   :  { %8985 = vmatprep.subr.bf16.mxu1 %v10334_v32 }
 0x4b8   :  { %8986 = vmatpush3.bf16.msra.mxu1 %v10335_v56 }
 0x4b9   :  { %8987 = vmatprep.subr.bf16.mxu1 %v10336_v59 }
 0x4bc   :  { %8988 = vmatpush3.bf16.msra.mxu1 %v10337_v27 }
 0x4bd   :  { %8989 = vmatprep.subr.bf16.mxu1 %v10338_v33 }
 0x4c0   :  { %8990 = vmatpush3.bf16.msra.mxu1 %v10339_v46 }
 0x4c1   :  { %8991 = vmatprep.subr.bf16.mxu1 %v10340_v34 }
 0x4c4   :  { %8992 = vmatpush3.bf16.msra.mxu1 %v10341_v4 }
 0x4c7   :  { %7840 = vmatmul.mubr.bf16.vlgmr.msra.gmra.mxu1 %v7540_v35 }
 0x4c9   :  { %v7324_v62 = vpop.f32.mrf.mxu0 }
 0x4cb   :  { %v7326_v10 = vpop.f32.mrf.mxu0 }
 0x4cd   :  { %v7328_v24 = vpop.f32.mrf.mxu0 }
 0x4cf   :  { %v7329_v63 = vpop.f32.mrf.mxu0 }
 0x4d0   :  { %v8817_v63 = vld [vmem:[%s13693_s6] ss:$0 sm:$0xff] }
 0x4d7   :  { %v7283_v16 = vpop.f32.mrf.mxu1 }
 0x4d8   :  { %v7284_v25 = vadd.f32 %v7283_v16, %v13569_v8 }
 0x4d9   :  { %v7285_v42 = vpop.f32.mrf.mxu1 }
 0x4da   :  { %v7286_v3 = vadd.f32 %v7285_v42, %v7245_v47  ;;  %v7325_v12 = vadd.f32 %v7324_v62, %v7284_v25 }
 0x4db   :  { %v7287_v19 = vpop.f32.mrf.mxu1 }
 0x4dc   :  { %v7327_v55 = vadd.f32 %v7326_v10, %v7286_v3 }
 0x4dd   :  { %v7288_v57 = vpop.f32.mrf.mxu1 }
 0x509   :  { %v7406_v49 = vpop.f32.mrf.mxu0 }
 0x50b   :  { %v7408_v60 = vpop.f32.mrf.mxu0 }
 0x50d   :  { %v7410_v21 = vpop.f32.mrf.mxu0 }
 0x50f   :  { %v7411_v17 = vpop.f32.mrf.mxu0 }
 0x517   :  { %v7365_v7 = vpop.f32.mrf.mxu1 }
 0x518   :  { %v7366_v26 = vadd.f32 %v7365_v7, %v7325_v12 }
 0x519   :  { %v7367_v51 = vpop.f32.mrf.mxu1 }
 0x51a   :  { %v7368_v39 = vadd.f32 %v7367_v51, %v7327_v55  ;;  %v7407_v38 = vadd.f32 %v7406_v49, %v7366_v26 }
 0x51b   :  { %v7369_v8 = vpop.f32.mrf.mxu1 }
 0x51c   :  { %v7409_v0 = vadd.f32 %v7408_v60, %v7368_v39 }
 0x51d   :  { %v7370_v5 = vpop.f32.mrf.mxu1 }
 0x549   :  { %v7488_v47 = vpop.f32.mrf.mxu0 }
 0x54b   :  { %v7490_v50 = vpop.f32.mrf.mxu0 }
 0x54d   :  { %v7492_v22 = vpop.f32.mrf.mxu0 }
 0x54f   :  { %v7493_v15 = vpop.f32.mrf.mxu0 }
 0x557   :  { %v7447_v43 = vpop.f32.mrf.mxu1 }
 0x558   :  { %v7448_v6 = vadd.f32 %v7447_v43, %v7407_v38 }
 0x559   :  { %v7449_v14 = vpop.f32.mrf.mxu1 }
 0x55a   :  { %v7450_v23 = vadd.f32 %v7449_v14, %v7409_v0  ;;  %v7489_v29 = vadd.f32 %v7488_v47, %v7448_v6 }
 0x55b   :  { %v7451_v61 = vpop.f32.mrf.mxu1 }
 0x55c   :  { %v7491_v37 = vadd.f32 %v7490_v50, %v7450_v23 }
 0x55d   :  { %v7452_v44 = vpop.f32.mrf.mxu1 }
 0x567   :  { %v7529_v58 = vpop.f32.mrf.mxu1 }
 0x568   :  { %v7530_v48 = vadd.f32 %v7529_v58, %v7489_v29 }
 0x569   :  { %v7531_v32 = vpop.f32.mrf.mxu1 }
 0x56a   :  { %v7532_v56 = vadd.f32 %v7531_v32, %v7491_v37  ;;  %v7538_v59 = vmax.f32 %v7530_v48, 0.0 }
 0x56b   :  { %v7533_v27 = vpop.f32.mrf.mxu1 }
 0x56c   :  { %v7539_v33 = vmax.f32 %v7532_v56, 0.0  ;;  %v7542_v4 = vpack.c.bf16 %v7538_v59, %v7538_v59 }
 0x56d   :  { %v7534_v46 = vpop.f32.mrf.mxu1 }
 0x56e   :  { %v7543_v34 = vpack.c.bf16 %v7539_v33, %v7539_v33 }
 0x570   :  { %7879 = vmatprep.mubr.bf16.mxu0 %v7543_v34 }
 0x571   :  { %7880 = vmatmul.mubr.bf16.vlgmr.msra.gmra.mxu0 %v7542_v4 }
 0x587   :  { %v8993_v30 = vpop.f32.mrf.mxu1 }
 0x589   :  { %v8994_v35 = vpop.f32.mrf.mxu1 }
 0x58a   :  { %v8995_v62 = vadd.f32 %v8994_v35, %v8993_v30 }
 0x58b   :  { %v8996_v10 = vpop.f32.mrf.mxu1 }
 0x58c   :  { %v7842_v20 = vadd.f32 %v8995_v62, %v8817_v63 }
 0x58d   :  { %v8997_v24 = vpop.f32.mrf.mxu1 }
 0x631   :  { %v9015_v1 = vpop.f32.mrf.mxu0 }
 0x633   :  { %v9016_v11 = vpop.f32.mrf.mxu0 }
 0x634   :  { %v9017_v13 = vadd.f32 %v9016_v11, %v9015_v1 }
 0x635   :  { %v9018_v16 = vpop.f32.mrf.mxu0 }
 0x636   :  { %v7882_v25 = vadd.f32 %v9017_v13, %v7842_v20 }
 0x637   :  { %v9019_v42 = vpop.f32.mrf.mxu0 }
 0x638   :  { %7888 = vst.msk [vmem:[#allocation4] sm:$0x3] %vm7887_vm5, %v7882_v25 }
 0x639   :  { %10370 = shalt.err (!%p10367_p4)
}
 0x63a   :  { %7898 = dma.vmem_to_hbm [thread:$0]  %s7896_s13, 32, %s13694_s7, [#allocation5]  }
 0x63b   :  { %10379 = dma.done.wait [#allocation5], 32  }
 0x63c   :  { %10380 = vsyncadd [#allocation5], 4294967264 }
 0x63d   :  { %7902 = vsyncpa [#allocation5], 1 }

</bundles_post_ra>
